<compile_context>
chip_gen: v6e
topology: v6e:2x2x1
jax: 0.10.0
libtpu: 0.0.40
codegen_flags: <defaults>
</compile_context>

<pallas_src>
import functools
import math

import jax
import jax.numpy as jnp
from jax.experimental import pallas as pl
from jax.experimental.pallas import tpu as pltpu


# ---------------------------------------------------------------------------
# Small helpers
# ---------------------------------------------------------------------------

def _vmem_spec():
    return pl.BlockSpec(memory_space=pltpu.MemorySpace.VMEM)


def _erf(x):
    # TODO(synk): PyTorch nn.GELU() uses exact erf; lax.erf may not lower on Mosaic,
    # so use Abramowitz & Stegun 7.1.26 (|err| < 1.5e-7) built from abs/exp/where.
    a1, a2, a3, a4, a5 = (0.254829592, -0.284496736, 1.421413741,
                          -1.453152027, 1.061405429)
    p = 0.3275911
    ax = jnp.abs(x)
    t = 1.0 / (1.0 + p * ax)
    poly = ((((a5 * t + a4) * t + a3) * t + a2) * t + a1) * t
    y = 1.0 - poly * jnp.exp(-ax * ax)
    return jnp.where(x >= 0.0, y, -y)


# ---------------------------------------------------------------------------
# Pallas kernels
# ---------------------------------------------------------------------------

def _conv_same_kernel(xp_ref, w_ref, b_ref, o_ref):
    """'Same' Conv1d (odd K, replicate-padded input), batch unrolled in-kernel.

    xp_ref: (B, Cin, L + K - 1)   replicate-padded input
    w_ref : (K, Cout, Cin)        per-tap weight matrices
    b_ref : (Cout, 1)
    o_ref : (B, Cout, L)
    """
    B = xp_ref.shape[0]
    K, c_out, _ = w_ref.shape
    L = o_ref.shape[-1]
    for b in range(B):                      # B is small & static -> unrolled
        xb = xp_ref[b].astype(jnp.float32)  # (Cin, L + K - 1)
        acc = jnp.zeros((c_out, L), jnp.float32)
        for k in range(K):                  # static tap loop; slices are free
            acc = acc + jnp.dot(w_ref[k], xb[:, k:k + L],
                                preferred_element_type=jnp.float32)
        o_ref[b] = (acc + b_ref[...]).astype(o_ref.dtype)


def _wavelet_block_kernel(xp_ref, *refs, kernel_sizes, max_pad):
    """Fused WaveletBlock: parallel convs + 1x1 fusion + BatchNorm1d(train) + GELU + res.

    xp_ref : (B, C, L + 2*max_pad)  replicate-padded block input
    refs   : [w_0 (k0,C,C), b_0 (C,1), ..., w_{n-1}, b_{n-1},
              wf (C, n*C), bf (C,1), gamma (C,1), beta (C,1), o_ref (B, C, L)]
    """
    nc = len(kernel_sizes)
    conv_w = [refs[2 * i] for i in range(nc)]
    conv_b = [refs[2 * i + 1] for i in range(nc)]
    wf_ref, bf_ref, g_ref, bt_ref = refs[2 * nc:2 * nc + 4]
    o_ref = refs[2 * nc + 4]

    B, C, _ = xp_ref.shape
    L = o_ref.shape[-1]

    fused = []   # per-batch pre-BN activations, f32 (C, L)
    resid = []   # per-batch residual (the un-padded block input), f32 (C, L)
    for b in range(B):
        xb = xp_ref[b].astype(jnp.float32)               # (C, L + 2*max_pad)
        resid.append(xb[:, max_pad:max_pad + L])
        acc_f = jnp.zeros((C, L), jnp.float32) + bf_ref[...]
        for ci, k_size in enumerate(kernel_sizes):
            off = max_pad - k_size // 2
            conv = jnp.zeros((C, L), jnp.float32) + conv_b[ci][...]
            for k in range(k_size):                      # static taps
                conv = conv + jnp.dot(conv_w[ci][k], xb[:, off + k:off + k + L],
                                      preferred_element_type=jnp.float32)
            # fusion conv (1x1): add this conv's channel-block contribution
            acc_f = acc_f + jnp.dot(wf_ref[:, ci * C:(ci + 1) * C], conv,
                                    preferred_element_type=jnp.float32)
        fused.append(acc_f)

    # Training-mode BatchNorm1d statistics over (batch, length), biased variance.
    n = float(B * L)
    total = fused[0].sum(axis=1, keepdims=True)
    for f in fused[1:]:
        total = total + f.sum(axis=1, keepdims=True)
    mean = total / n
    sq = None
    for f in fused:
        c = f - mean
        s = (c * c).sum(axis=1, keepdims=True)
        sq = s if sq is None else sq + s
    inv = jax.lax.rsqrt(sq / n + 1e-5)

    for b in range(B):
        z = g_ref[...] * ((fused[b] - mean) * inv) + bt_ref[...]
        gelu = 0.5 * z * (1.0 + _erf(z * 0.7071067811865476))
        o_ref[b] = (gelu + resid[b]).astype(o_ref.dtype)


def _down_kernel(xe_ref, xo_ref, w_ref, b_ref, o_ref):
    """Conv1d(Cin, Cout, kernel=2, stride=2) given even/odd phases.

    xe/xo : (B, Cin, Lout)     even / odd samples of the input
    w_ref : (2, Cout, Cin)
    b_ref : (Cout, 1)
    o_ref : (B, Cout, Lout)
    """
    B = xe_ref.shape[0]
    for b in range(B):
        acc = jnp.dot(w_ref[0], xe_ref[b].astype(jnp.float32),
                      preferred_element_type=jnp.float32)
        acc = acc + jnp.dot(w_ref[1], xo_ref[b].astype(jnp.float32),
                            preferred_element_type=jnp.float32)
        o_ref[b] = (acc + b_ref[...]).astype(o_ref.dtype)


def _up_kernel(x_ref, w_ref, b_ref, oe_ref, oo_ref):
    """ConvTranspose1d(Cin, Cout, 2, stride=2): even/odd output phases.

    x_ref : (B, Cin, L)
    w_ref : (2, Cout, Cin)     (already transposed: w_ref[k] = W[:, :, k].T)
    b_ref : (Cout, 1)
    oe/oo : (B, Cout, L)       out[..., 2l] = oe[..., l], out[..., 2l+1] = oo[..., l]
    """
    B = x_ref.shape[0]
    for b in range(B):
        xb = x_ref[b].astype(jnp.float32)
        oe_ref[b] = (jnp.dot(w_ref[0], xb, preferred_element_type=jnp.float32)
                     + b_ref[...]).astype(oe_ref.dtype)
        oo_ref[b] = (jnp.dot(w_ref[1], xb, preferred_element_type=jnp.float32)
                     + b_ref[...]).astype(oo_ref.dtype)


# ---------------------------------------------------------------------------
# Wrappers around pallas_call
# ---------------------------------------------------------------------------

def conv1d_same_replicate(x, w, b):
    """PyTorch Conv1d(Cin, Cout, K, padding=K//2, padding_mode='replicate'), odd K."""
    B, Cin, L = x.shape
    Cout, _, K = w.shape
    pad = K // 2
    xp = jnp.pad(x, ((0, 0), (0, 0), (pad, pad)), mode="edge")
    wT = jnp.transpose(w, (2, 0, 1))                     # (K, Cout, Cin)
    args = (xp, wT, b[:, None])
    ce = pl.CostEstimate(flops=int(2 * B * K * Cout * Cin * L),
                         transcendentals=0,
                         bytes_accessed=int(4 * (xp.size + wT.size + Cout
                                                 + B * Cout * L)))
    return pl.pallas_call(
        _conv_same_kernel,
        out_shape=jax.ShapeDtypeStruct((B, Cout, L), x.dtype),
        in_specs=[_vmem_spec() for _ in args],
        out_specs=_vmem_spec(),
        cost_estimate=ce,
    )(*args)


def wavelet_block(x, p, kernel_sizes):
    """Fused WaveletBlock forward: one pallas_call, VMEM-resident."""
    B, C, L = x.shape
    nc = len(kernel_sizes)
    max_pad = max(k // 2 for k in kernel_sizes)
    xp = jnp.pad(x, ((0, 0), (0, 0), (max_pad, max_pad)), mode="edge")

    args = [xp]
    for c in p["convs"]:
        args.append(jnp.transpose(c["w"], (2, 0, 1)))    # (k, C, C)
        args.append(c["b"][:, None])
    args.append(p["fusion"]["w"][:, :, 0])               # (C, nc*C)
    args.append(p["fusion"]["b"][:, None])
    args.append(p["bn"]["gamma"][:, None])
    args.append(p["bn"]["beta"][:, None])

    flops = int(2 * B * L * C * C * (sum(kernel_sizes) + nc) + 12 * B * C * L)
    bytes_acc = int(4 * (xp.size + C * C * (sum(kernel_sizes) + nc)
                         + (4 + nc) * C + B * C * L))
    ce = pl.CostEstimate(flops=flops, transcendentals=int(B * C * L),
                         bytes_accessed=bytes_acc)

    return pl.pallas_call(
        functools.partial(_wavelet_block_kernel,
                          kernel_sizes=tuple(kernel_sizes), max_pad=max_pad),
        out_shape=jax.ShapeDtypeStruct((B, C, L), x.dtype),
        in_specs=[_vmem_spec() for _ in args],
        out_specs=_vmem_spec(),
        cost_estimate=ce,
    )(*args)


def downsample_conv(x, w, b):
    """PyTorch Conv1d(Cin, Cout, 2, stride=2).  x: (B, Cin, L), w: (Cout, Cin, 2)."""
    B, Cin, L = x.shape
    Cout = w.shape[0]
    Lout = (L - 2) // 2 + 1
    xe = x[:, :, 0:2 * Lout:2]                           # each element read once
    xo = x[:, :, 1:2 * Lout:2]
    wT = jnp.transpose(w, (2, 0, 1))                     # (2, Cout, Cin)
    args = (xe, xo, wT, b[:, None])
    ce = pl.CostEstimate(flops=int(2 * B * 2 * Cout * Cin * Lout),
                         transcendentals=0,
                         bytes_accessed=int(4 * (xe.size + xo.size + wT.size
                                                 + Cout + B * Cout * Lout)))
    return pl.pallas_call(
        _down_kernel,
        out_shape=jax.ShapeDtypeStruct((B, Cout, Lout), x.dtype),
        in_specs=[_vmem_spec() for _ in args],
        out_specs=_vmem_spec(),
        cost_estimate=ce,
    )(*args)


def upsample_conv_transpose(x, w, b):
    """PyTorch ConvTranspose1d(Cin, Cout, 2, stride=2).  x: (B, Cin, L), w: (Cin, Cout, 2)."""
    B, Cin, L = x.shape
    Cout = w.shape[1]
    wT = jnp.transpose(w, (2, 1, 0))                     # (2, Cout, Cin)
    args = (x, wT, b[:, None])
    ce = pl.CostEstimate(flops=int(2 * B * 2 * Cout * Cin * L),
                         transcendentals=0,
                         bytes_accessed=int(4 * (x.size + wT.size + Cout
                                                 + 2 * B * Cout * L)))
    oe, oo = pl.pallas_call(
        _up_kernel,
        out_shape=(jax.ShapeDtypeStruct((B, Cout, L), x.dtype),
                   jax.ShapeDtypeStruct((B, Cout, L), x.dtype)),
        in_specs=[_vmem_spec() for _ in args],
        out_specs=(_vmem_spec(), _vmem_spec()),
        cost_estimate=ce,
    )(*args)
    # Interleave even/odd output phases -> length 2L.
    return jnp.stack([oe, oo], axis=-1).reshape(B, Cout, 2 * L)


# ---------------------------------------------------------------------------
# Model forward (thin glue around the fused kernels)
# ---------------------------------------------------------------------------

def wavelet_unet_forward(x, params, kernel_sizes=(3, 5, 7)):
    x = conv1d_same_replicate(x, params["input_conv"]["w"],
                              params["input_conv"]["b"])
    skips = []
    for enc_p, down_p in zip(params["encoder"], params["downsample"]):
        x = wavelet_block(x, enc_p, kernel_sizes)
        skips.append(x)
        x = downsample_conv(x, down_p["w"], down_p["b"])
    x = wavelet_block(x, params["middle"], kernel_sizes)
    for dec_p, up_p, skip in zip(params["decoder"], params["upsample"],
                                 reversed(skips)):
        x = upsample_conv_transpose(x, up_p["w"], up_p["b"])
        if x.shape[-1] != skip.shape[-1]:                # matches F.pad branch
            x = jnp.pad(x, ((0, 0), (0, 0), (0, skip.shape[-1] - x.shape[-1])))
        x = x + skip
        x = wavelet_block(x, dec_p, kernel_sizes)
    x = conv1d_same_replicate(x, params["output_conv"]["w"],
                              params["output_conv"]["b"])
    return x


# ---------------------------------------------------------------------------
# Deterministic parameter initialization (shapes follow the PyTorch __init__)
# ---------------------------------------------------------------------------

def _uniform(key, shape, scale):
    return jax.random.uniform(key, shape, jnp.float32, -scale, scale)


def init_conv1d(key, cin, cout, k):
    kw, kb = jax.random.split(key)
    s = 1.0 / math.sqrt(cin * k)
    return {"w": _uniform(kw, (cout, cin, k), s), "b": _uniform(kb, (cout,), s)}


def init_conv_transpose1d(key, cin, cout, k):
    kw, kb = jax.random.split(key)
    s = 1.0 / math.sqrt(cin * k)
    return {"w": _uniform(kw, (cin, cout, k), s), "b": _uniform(kb, (cout,), s)}


def init_bn(key, c):
    kg, kb = jax.random.split(key)
    return {"gamma": 1.0 + 0.1 * jax.random.normal(kg, (c,), jnp.float32),
            "beta": 0.1 * jax.random.normal(kb, (c,), jnp.float32)}


def init_wavelet_block(key, ch, kernel_sizes):
    keys = jax.random.split(key, len(kernel_sizes) + 2)
    return {"convs": [init_conv1d(keys[i], ch, ch, k)
                      for i, k in enumerate(kernel_sizes)],
            "fusion": init_conv1d(keys[-2], ch * len(kernel_sizes), ch, 1),
            "bn": init_bn(keys[-1], ch)}


def init_wavelet_unet(key, input_channels, hidden_channels, num_blocks,
                      kernel_sizes):
    # Consumption: 1 input_conv + 2*nb (encoder+downsample) + 1 middle
    #            + 2*nb (upsample+decoder) + 1 output_conv = 3 + 4*nb keys.
    keys = iter(jax.random.split(key, 3 + 4 * num_blocks))
    params = {"input_conv": init_conv1d(next(keys), input_channels,
                                        hidden_channels, 7)}
    encoder, downsample = [], []
    ch = hidden_channels
    for _ in range(num_blocks):
        encoder.append(init_wavelet_block(next(keys), ch, kernel_sizes))
        downsample.append(init_conv1d(next(keys), ch, ch * 2, 2))
        ch *= 2
    params["encoder"], params["downsample"] = encoder, downsample
    params["middle"] = init_wavelet_block(next(keys), ch, kernel_sizes)
    upsample, decoder = [], []
    for _ in range(num_blocks):
        upsample.append(init_conv_transpose1d(next(keys), ch, ch // 2, 2))
        ch //= 2
        decoder.append(init_wavelet_block(next(keys), ch, kernel_sizes))
    params["upsample"], params["decoder"] = upsample, decoder
    params["output_conv"] = init_conv1d(next(keys), hidden_channels,
                                        input_channels, 7)
    return params


# ---------------------------------------------------------------------------
# Main
# ---------------------------------------------------------------------------

if __name__ == "__main__":
    key = jax.random.PRNGKey(0)
    k_param, k_x = jax.random.split(key)

    INPUT_CHANNELS = 4
    HIDDEN_CHANNELS = 8
    NUM_BLOCKS = 2
    KERNEL_SIZES = (3, 5, 7)
    BATCH, LENGTH = 2, 16              # LENGTH divisible by 2**NUM_BLOCKS

    params = init_wavelet_unet(k_param, INPUT_CHANNELS, HIDDEN_CHANNELS,
                               NUM_BLOCKS, list(KERNEL_SIZES))
    x = jax.random.normal(k_x, (BATCH, INPUT_CHANNELS, LENGTH), jnp.float32)

    fwd = jax.jit(functools.partial(wavelet_unet_forward,
                                    kernel_sizes=KERNEL_SIZES))
    out = jax.block_until_ready(fwd(x, params))

    assert out.shape == (BATCH, INPUT_CHANNELS, LENGTH), out.shape
    assert bool(jnp.all(jnp.isfinite(out)))
    print("KERNEL_OK")
</pallas_src>

<mosaic_0001>
module attributes {stable_mosaic.version = 11 : i64} {
  func.func @_conv_same_kernel(%arg0: memref<2x4x22xf32, #tpu.memory_space<vmem>>, %arg1: memref<7x8x4xf32, #tpu.memory_space<vmem>>, %arg2: memref<8x1xf32, #tpu.memory_space<vmem>>, %arg3: memref<2x8x16xf32, #tpu.memory_space<vmem>>) attributes {dimension_semantics = [], scalar_prefetch = 0 : i64, scratch_operands = 0 : i64, tpu.core_type = #tpu.core_type<tc>} {
    %c0 = arith.constant 0 : index
    %c0_0 = arith.constant 0 : index
    %c0_1 = arith.constant 0 : index
    %0 = vector.load %arg0[%c0, %c0_0, %c0_1] : memref<2x4x22xf32, #tpu.memory_space<vmem>>, vector<1x4x22xf32>
    %1 = vector.shape_cast %0 : vector<1x4x22xf32> to vector<4x22xf32>
    %cst = arith.constant 0.000000e+00 : f32
    %2 = vector.broadcast %cst : f32 to vector<8x16xf32>
    %c0_2 = arith.constant 0 : index
    %c0_3 = arith.constant 0 : index
    %c0_4 = arith.constant 0 : index
    %3 = vector.load %arg1[%c0_2, %c0_3, %c0_4] : memref<7x8x4xf32, #tpu.memory_space<vmem>>, vector<1x8x4xf32>
    %4 = vector.shape_cast %3 : vector<1x8x4xf32> to vector<8x4xf32>
    %5 = vector.extract_strided_slice %1 {offsets = [0, 0], sizes = [4, 16], strides = [1, 1]} : vector<4x22xf32> to vector<4x16xf32>
    %cst_5 = arith.constant dense<0.000000e+00> : vector<8x16xf32>
    %6 = tpu.matmul %4, %5, %cst_5 {dimension_numbers = #tpu.dot_dimension_numbers<[1], [0], [0], [1], [0, 0, 1, 1], [], []>} : vector<8x4xf32>, vector<4x16xf32>, vector<8x16xf32> -> vector<8x16xf32>
    %7 = arith.addf %2, %6 : vector<8x16xf32>
    %c1 = arith.constant 1 : index
    %c0_6 = arith.constant 0 : index
    %c0_7 = arith.constant 0 : index
    %8 = vector.load %arg1[%c1, %c0_6, %c0_7] : memref<7x8x4xf32, #tpu.memory_space<vmem>>, vector<1x8x4xf32>
    %9 = vector.shape_cast %8 : vector<1x8x4xf32> to vector<8x4xf32>
    %10 = vector.extract_strided_slice %1 {offsets = [0, 1], sizes = [4, 16], strides = [1, 1]} : vector<4x22xf32> to vector<4x16xf32>
    %cst_8 = arith.constant dense<0.000000e+00> : vector<8x16xf32>
    %11 = tpu.matmul %9, %10, %cst_8 {dimension_numbers = #tpu.dot_dimension_numbers<[1], [0], [0], [1], [0, 0, 1, 1], [], []>} : vector<8x4xf32>, vector<4x16xf32>, vector<8x16xf32> -> vector<8x16xf32>
    %12 = arith.addf %7, %11 : vector<8x16xf32>
    %c2 = arith.constant 2 : index
    %c0_9 = arith.constant 0 : index
    %c0_10 = arith.constant 0 : index
    %13 = vector.load %arg1[%c2, %c0_9, %c0_10] : memref<7x8x4xf32, #tpu.memory_space<vmem>>, vector<1x8x4xf32>
    %14 = vector.shape_cast %13 : vector<1x8x4xf32> to vector<8x4xf32>
    %15 = vector.extract_strided_slice %1 {offsets = [0, 2], sizes = [4, 16], strides = [1, 1]} : vector<4x22xf32> to vector<4x16xf32>
    %cst_11 = arith.constant dense<0.000000e+00> : vector<8x16xf32>
    %16 = tpu.matmul %14, %15, %cst_11 {dimension_numbers = #tpu.dot_dimension_numbers<[1], [0], [0], [1], [0, 0, 1, 1], [], []>} : vector<8x4xf32>, vector<4x16xf32>, vector<8x16xf32> -> vector<8x16xf32>
    %17 = arith.addf %12, %16 : vector<8x16xf32>
    %c3 = arith.constant 3 : index
    %c0_12 = arith.constant 0 : index
    %c0_13 = arith.constant 0 : index
    %18 = vector.load %arg1[%c3, %c0_12, %c0_13] : memref<7x8x4xf32, #tpu.memory_space<vmem>>, vector<1x8x4xf32>
    %19 = vector.shape_cast %18 : vector<1x8x4xf32> to vector<8x4xf32>
    %20 = vector.extract_strided_slice %1 {offsets = [0, 3], sizes = [4, 16], strides = [1, 1]} : vector<4x22xf32> to vector<4x16xf32>
    %cst_14 = arith.constant dense<0.000000e+00> : vector<8x16xf32>
    %21 = tpu.matmul %19, %20, %cst_14 {dimension_numbers = #tpu.dot_dimension_numbers<[1], [0], [0], [1], [0, 0, 1, 1], [], []>} : vector<8x4xf32>, vector<4x16xf32>, vector<8x16xf32> -> vector<8x16xf32>
    %22 = arith.addf %17, %21 : vector<8x16xf32>
    %c4 = arith.constant 4 : index
    %c0_15 = arith.constant 0 : index
    %c0_16 = arith.constant 0 : index
    %23 = vector.load %arg1[%c4, %c0_15, %c0_16] : memref<7x8x4xf32, #tpu.memory_space<vmem>>, vector<1x8x4xf32>
    %24 = vector.shape_cast %23 : vector<1x8x4xf32> to vector<8x4xf32>
    %25 = vector.extract_strided_slice %1 {offsets = [0, 4], sizes = [4, 16], strides = [1, 1]} : vector<4x22xf32> to vector<4x16xf32>
    %cst_17 = arith.constant dense<0.000000e+00> : vector<8x16xf32>
    %26 = tpu.matmul %24, %25, %cst_17 {dimension_numbers = #tpu.dot_dimension_numbers<[1], [0], [0], [1], [0, 0, 1, 1], [], []>} : vector<8x4xf32>, vector<4x16xf32>, vector<8x16xf32> -> vector<8x16xf32>
    %27 = arith.addf %22, %26 : vector<8x16xf32>
    %c5 = arith.constant 5 : index
    %c0_18 = arith.constant 0 : index
    %c0_19 = arith.constant 0 : index
    %28 = vector.load %arg1[%c5, %c0_18, %c0_19] : memref<7x8x4xf32, #tpu.memory_space<vmem>>, vector<1x8x4xf32>
    %29 = vector.shape_cast %28 : vector<1x8x4xf32> to vector<8x4xf32>
    %30 = vector.extract_strided_slice %1 {offsets = [0, 5], sizes = [4, 16], strides = [1, 1]} : vector<4x22xf32> to vector<4x16xf32>
    %cst_20 = arith.constant dense<0.000000e+00> : vector<8x16xf32>
    %31 = tpu.matmul %29, %30, %cst_20 {dimension_numbers = #tpu.dot_dimension_numbers<[1], [0], [0], [1], [0, 0, 1, 1], [], []>} : vector<8x4xf32>, vector<4x16xf32>, vector<8x16xf32> -> vector<8x16xf32>
    %32 = arith.addf %27, %31 : vector<8x16xf32>
    %c6 = arith.constant 6 : index
    %c0_21 = arith.constant 0 : index
    %c0_22 = arith.constant 0 : index
    %33 = vector.load %arg1[%c6, %c0_21, %c0_22] : memref<7x8x4xf32, #tpu.memory_space<vmem>>, vector<1x8x4xf32>
    %34 = vector.shape_cast %33 : vector<1x8x4xf32> to vector<8x4xf32>
    %35 = vector.extract_strided_slice %1 {offsets = [0, 6], sizes = [4, 16], strides = [1, 1]} : vector<4x22xf32> to vector<4x16xf32>
    %cst_23 = arith.constant dense<0.000000e+00> : vector<8x16xf32>
    %36 = tpu.matmul %34, %35, %cst_23 {dimension_numbers = #tpu.dot_dimension_numbers<[1], [0], [0], [1], [0, 0, 1, 1], [], []>} : vector<8x4xf32>, vector<4x16xf32>, vector<8x16xf32> -> vector<8x16xf32>
    %37 = arith.addf %32, %36 : vector<8x16xf32>
    %c0_24 = arith.constant 0 : index
    %c0_25 = arith.constant 0 : index
    %38 = vector.load %arg2[%c0_24, %c0_25] : memref<8x1xf32, #tpu.memory_space<vmem>>, vector<8x1xf32>
    %39 = vector.broadcast %38 : vector<8x1xf32> to vector<8x16xf32>
    %40 = arith.addf %37, %39 : vector<8x16xf32>
    %c0_26 = arith.constant 0 : index
    %c0_27 = arith.constant 0 : index
    %c0_28 = arith.constant 0 : index
    %41 = vector.load %arg3[%c0_26, %c0_27, %c0_28] : memref<2x8x16xf32, #tpu.memory_space<vmem>>, vector<1x8x16xf32>
    %42 = vector.shape_cast %41 : vector<1x8x16xf32> to vector<8x16xf32>
    %43 = vector.shape_cast %40 : vector<8x16xf32> to vector<1x8x16xf32>
    tpu.vector_store %arg3[%c0_26, %c0_27, %c0_28], %43 {strides = array<i32>} : memref<2x8x16xf32, #tpu.memory_space<vmem>>, vector<1x8x16xf32>,
    %c1_29 = arith.constant 1 : index
    %c0_30 = arith.constant 0 : index
    %c0_31 = arith.constant 0 : index
    %44 = vector.load %arg0[%c1_29, %c0_30, %c0_31] : memref<2x4x22xf32, #tpu.memory_space<vmem>>, vector<1x4x22xf32>
    %45 = vector.shape_cast %44 : vector<1x4x22xf32> to vector<4x22xf32>
    %cst_32 = arith.constant 0.000000e+00 : f32
    %46 = vector.broadcast %cst_32 : f32 to vector<8x16xf32>
    %c0_33 = arith.constant 0 : index
    %c0_34 = arith.constant 0 : index
    %c0_35 = arith.constant 0 : index
    %47 = vector.load %arg1[%c0_33, %c0_34, %c0_35] : memref<7x8x4xf32, #tpu.memory_space<vmem>>, vector<1x8x4xf32>
    %48 = vector.shape_cast %47 : vector<1x8x4xf32> to vector<8x4xf32>
    %49 = vector.extract_strided_slice %45 {offsets = [0, 0], sizes = [4, 16], strides = [1, 1]} : vector<4x22xf32> to vector<4x16xf32>
    %cst_36 = arith.constant dense<0.000000e+00> : vector<8x16xf32>
    %50 = tpu.matmul %48, %49, %cst_36 {dimension_numbers = #tpu.dot_dimension_numbers<[1], [0], [0], [1], [0, 0, 1, 1], [], []>} : vector<8x4xf32>, vector<4x16xf32>, vector<8x16xf32> -> vector<8x16xf32>
    %51 = arith.addf %46, %50 : vector<8x16xf32>
    %c1_37 = arith.constant 1 : index
    %c0_38 = arith.constant 0 : index
    %c0_39 = arith.constant 0 : index
    %52 = vector.load %arg1[%c1_37, %c0_38, %c0_39] : memref<7x8x4xf32, #tpu.memory_space<vmem>>, vector<1x8x4xf32>
    %53 = vector.shape_cast %52 : vector<1x8x4xf32> to vector<8x4xf32>
    %54 = vector.extract_strided_slice %45 {offsets = [0, 1], sizes = [4, 16], strides = [1, 1]} : vector<4x22xf32> to vector<4x16xf32>
    %cst_40 = arith.constant dense<0.000000e+00> : vector<8x16xf32>
    %55 = tpu.matmul %53, %54, %cst_40 {dimension_numbers = #tpu.dot_dimension_numbers<[1], [0], [0], [1], [0, 0, 1, 1], [], []>} : vector<8x4xf32>, vector<4x16xf32>, vector<8x16xf32> -> vector<8x16xf32>
    %56 = arith.addf %51, %55 : vector<8x16xf32>
    %c2_41 = arith.constant 2 : index
    %c0_42 = arith.constant 0 : index
    %c0_43 = arith.constant 0 : index
    %57 = vector.load %arg1[%c2_41, %c0_42, %c0_43] : memref<7x8x4xf32, #tpu.memory_space<vmem>>, vector<1x8x4xf32>
    %58 = vector.shape_cast %57 : vector<1x8x4xf32> to vector<8x4xf32>
    %59 = vector.extract_strided_slice %45 {offsets = [0, 2], sizes = [4, 16], strides = [1, 1]} : vector<4x22xf32> to vector<4x16xf32>
    %cst_44 = arith.constant dense<0.000000e+00> : vector<8x16xf32>
    %60 = tpu.matmul %58, %59, %cst_44 {dimension_numbers = #tpu.dot_dimension_numbers<[1], [0], [0], [1], [0, 0, 1, 1], [], []>} : vector<8x4xf32>, vector<4x16xf32>, vector<8x16xf32> -> vector<8x16xf32>
    %61 = arith.addf %56, %60 : vector<8x16xf32>
    %c3_45 = arith.constant 3 : index
    %c0_46 = arith.constant 0 : index
    %c0_47 = arith.constant 0 : index
    %62 = vector.load %arg1[%c3_45, %c0_46, %c0_47] : memref<7x8x4xf32, #tpu.memory_space<vmem>>, vector<1x8x4xf32>
    %63 = vector.shape_cast %62 : vector<1x8x4xf32> to vector<8x4xf32>
    %64 = vector.extract_strided_slice %45 {offsets = [0, 3], sizes = [4, 16], strides = [1, 1]} : vector<4x22xf32> to vector<4x16xf32>
    %cst_48 = arith.constant dense<0.000000e+00> : vector<8x16xf32>
    %65 = tpu.matmul %63, %64, %cst_48 {dimension_numbers = #tpu.dot_dimension_numbers<[1], [0], [0], [1], [0, 0, 1, 1], [], []>} : vector<8x4xf32>, vector<4x16xf32>, vector<8x16xf32> -> vector<8x16xf32>
    %66 = arith.addf %61, %65 : vector<8x16xf32>
    %c4_49 = arith.constant 4 : index
    %c0_50 = arith.constant 0 : index
    %c0_51 = arith.constant 0 : index
    %67 = vector.load %arg1[%c4_49, %c0_50, %c0_51] : memref<7x8x4xf32, #tpu.memory_space<vmem>>, vector<1x8x4xf32>
    %68 = vector.shape_cast %67 : vector<1x8x4xf32> to vector<8x4xf32>
    %69 = vector.extract_strided_slice %45 {offsets = [0, 4], sizes = [4, 16], strides = [1, 1]} : vector<4x22xf32> to vector<4x16xf32>
    %cst_52 = arith.constant dense<0.000000e+00> : vector<8x16xf32>
    %70 = tpu.matmul %68, %69, %cst_52 {dimension_numbers = #tpu.dot_dimension_numbers<[1], [0], [0], [1], [0, 0, 1, 1], [], []>} : vector<8x4xf32>, vector<4x16xf32>, vector<8x16xf32> -> vector<8x16xf32>
    %71 = arith.addf %66, %70 : vector<8x16xf32>
    %c5_53 = arith.constant 5 : index
    %c0_54 = arith.constant 0 : index
    %c0_55 = arith.constant 0 : index
    %72 = vector.load %arg1[%c5_53, %c0_54, %c0_55] : memref<7x8x4xf32, #tpu.memory_space<vmem>>, vector<1x8x4xf32>
    %73 = vector.shape_cast %72 : vector<1x8x4xf32> to vector<8x4xf32>
    %74 = vector.extract_strided_slice %45 {offsets = [0, 5], sizes = [4, 16], strides = [1, 1]} : vector<4x22xf32> to vector<4x16xf32>
    %cst_56 = arith.constant dense<0.000000e+00> : vector<8x16xf32>
    %75 = tpu.matmul %73, %74, %cst_56 {dimension_numbers = #tpu.dot_dimension_numbers<[1], [0], [0], [1], [0, 0, 1, 1], [], []>} : vector<8x4xf32>, vector<4x16xf32>, vector<8x16xf32> -> vector<8x16xf32>
    %76 = arith.addf %71, %75 : vector<8x16xf32>
    %c6_57 = arith.constant 6 : index
    %c0_58 = arith.constant 0 : index
    %c0_59 = arith.constant 0 : index
    %77 = vector.load %arg1[%c6_57, %c0_58, %c0_59] : memref<7x8x4xf32, #tpu.memory_space<vmem>>, vector<1x8x4xf32>
    %78 = vector.shape_cast %77 : vector<1x8x4xf32> to vector<8x4xf32>
    %79 = vector.extract_strided_slice %45 {offsets = [0, 6], sizes = [4, 16], strides = [1, 1]} : vector<4x22xf32> to vector<4x16xf32>
    %cst_60 = arith.constant dense<0.000000e+00> : vector<8x16xf32>
    %80 = tpu.matmul %78, %79, %cst_60 {dimension_numbers = #tpu.dot_dimension_numbers<[1], [0], [0], [1], [0, 0, 1, 1], [], []>} : vector<8x4xf32>, vector<4x16xf32>, vector<8x16xf32> -> vector<8x16xf32>
    %81 = arith.addf %76, %80 : vector<8x16xf32>
    %c0_61 = arith.constant 0 : index
    %c0_62 = arith.constant 0 : index
    %82 = vector.load %arg2[%c0_61, %c0_62] : memref<8x1xf32, #tpu.memory_space<vmem>>, vector<8x1xf32>
    %83 = vector.broadcast %82 : vector<8x1xf32> to vector<8x16xf32>
    %84 = arith.addf %81, %83 : vector<8x16xf32>
    %c1_63 = arith.constant 1 : index
    %c0_64 = arith.constant 0 : index
    %c0_65 = arith.constant 0 : index
    %85 = vector.load %arg3[%c1_63, %c0_64, %c0_65] : memref<2x8x16xf32, #tpu.memory_space<vmem>>, vector<1x8x16xf32>
    %86 = vector.shape_cast %85 : vector<1x8x16xf32> to vector<8x16xf32>
    %87 = vector.shape_cast %84 : vector<8x16xf32> to vector<1x8x16xf32>
    tpu.vector_store %arg3[%c1_63, %c0_64, %c0_65], %87 {strides = array<i32>} : memref<2x8x16xf32, #tpu.memory_space<vmem>>, vector<1x8x16xf32>,
    return
  }
}

module attributes {stable_mosaic.version = 11 : i64} {
  func.func @_wavelet_block_kernel(%arg0: memref<2x8x22xf32, #tpu.memory_space<vmem>>, %arg1: memref<3x8x8xf32, #tpu.memory_space<vmem>>, %arg2: memref<8x1xf32, #tpu.memory_space<vmem>>, %arg3: memref<5x8x8xf32, #tpu.memory_space<vmem>>, %arg4: memref<8x1xf32, #tpu.memory_space<vmem>>, %arg5: memref<7x8x8xf32, #tpu.memory_space<vmem>>, %arg6: memref<8x1xf32, #tpu.memory_space<vmem>>, %arg7: memref<8x24xf32, #tpu.memory_space<vmem>>, %arg8: memref<8x1xf32, #tpu.memory_space<vmem>>, %arg9: memref<8x1xf32, #tpu.memory_space<vmem>>, %arg10: memref<8x1xf32, #tpu.memory_space<vmem>>, %arg11: memref<2x8x16xf32, #tpu.memory_space<vmem>>) attributes {dimension_semantics = [], scalar_prefetch = 0 : i64, scratch_operands = 0 : i64, tpu.core_type = #tpu.core_type<tc>} {
    %c0 = arith.constant 0 : index
    %c0_0 = arith.constant 0 : index
    %c0_1 = arith.constant 0 : index
    %0 = vector.load %arg0[%c0, %c0_0, %c0_1] : memref<2x8x22xf32, #tpu.memory_space<vmem>>, vector<1x8x22xf32>
    %1 = vector.shape_cast %0 : vector<1x8x22xf32> to vector<8x22xf32>
    %2 = vector.extract_strided_slice %1 {offsets = [0, 3], sizes = [8, 16], strides = [1, 1]} : vector<8x22xf32> to vector<8x16xf32>
    %cst = arith.constant 0.000000e+00 : f32
    %3 = vector.broadcast %cst : f32 to vector<8x16xf32>
    %c0_2 = arith.constant 0 : index
    %c0_3 = arith.constant 0 : index
    %4 = vector.load %arg8[%c0_2, %c0_3] : memref<8x1xf32, #tpu.memory_space<vmem>>, vector<8x1xf32>
    %5 = vector.broadcast %4 : vector<8x1xf32> to vector<8x16xf32>
    %6 = arith.addf %3, %5 : vector<8x16xf32>
    %cst_4 = arith.constant 0.000000e+00 : f32
    %7 = vector.broadcast %cst_4 : f32 to vector<8x16xf32>
    %c0_5 = arith.constant 0 : index
    %c0_6 = arith.constant 0 : index
    %8 = vector.load %arg2[%c0_5, %c0_6] : memref<8x1xf32, #tpu.memory_space<vmem>>, vector<8x1xf32>
    %9 = vector.broadcast %8 : vector<8x1xf32> to vector<8x16xf32>
    %10 = arith.addf %7, %9 : vector<8x16xf32>
    %c0_7 = arith.constant 0 : index
    %c0_8 = arith.constant 0 : index
    %c0_9 = arith.constant 0 : index
    %11 = vector.load %arg1[%c0_7, %c0_8, %c0_9] : memref<3x8x8xf32, #tpu.memory_space<vmem>>, vector<1x8x8xf32>
    %12 = vector.shape_cast %11 : vector<1x8x8xf32> to vector<8x8xf32>
    %13 = vector.extract_strided_slice %1 {offsets = [0, 2], sizes = [8, 16], strides = [1, 1]} : vector<8x22xf32> to vector<8x16xf32>
    %cst_10 = arith.constant dense<0.000000e+00> : vector<8x16xf32>
    %14 = tpu.matmul %12, %13, %cst_10 {dimension_numbers = #tpu.dot_dimension_numbers<[1], [0], [0], [1], [0, 0, 1, 1], [], []>} : vector<8x8xf32>, vector<8x16xf32>, vector<8x16xf32> -> vector<8x16xf32>
    %15 = arith.addf %10, %14 : vector<8x16xf32>
    %c1 = arith.constant 1 : index
    %c0_11 = arith.constant 0 : index
    %c0_12 = arith.constant 0 : index
    %16 = vector.load %arg1[%c1, %c0_11, %c0_12] : memref<3x8x8xf32, #tpu.memory_space<vmem>>, vector<1x8x8xf32>
    %17 = vector.shape_cast %16 : vector<1x8x8xf32> to vector<8x8xf32>
    %18 = vector.extract_strided_slice %1 {offsets = [0, 3], sizes = [8, 16], strides = [1, 1]} : vector<8x22xf32> to vector<8x16xf32>
    %cst_13 = arith.constant dense<0.000000e+00> : vector<8x16xf32>
    %19 = tpu.matmul %17, %18, %cst_13 {dimension_numbers = #tpu.dot_dimension_numbers<[1], [0], [0], [1], [0, 0, 1, 1], [], []>} : vector<8x8xf32>, vector<8x16xf32>, vector<8x16xf32> -> vector<8x16xf32>
    %20 = arith.addf %15, %19 : vector<8x16xf32>
    %c2 = arith.constant 2 : index
    %c0_14 = arith.constant 0 : index
    %c0_15 = arith.constant 0 : index
    %21 = vector.load %arg1[%c2, %c0_14, %c0_15] : memref<3x8x8xf32, #tpu.memory_space<vmem>>, vector<1x8x8xf32>
    %22 = vector.shape_cast %21 : vector<1x8x8xf32> to vector<8x8xf32>
    %23 = vector.extract_strided_slice %1 {offsets = [0, 4], sizes = [8, 16], strides = [1, 1]} : vector<8x22xf32> to vector<8x16xf32>
    %cst_16 = arith.constant dense<0.000000e+00> : vector<8x16xf32>
    %24 = tpu.matmul %22, %23, %cst_16 {dimension_numbers = #tpu.dot_dimension_numbers<[1], [0], [0], [1], [0, 0, 1, 1], [], []>} : vector<8x8xf32>, vector<8x16xf32>, vector<8x16xf32> -> vector<8x16xf32>
    %25 = arith.addf %20, %24 : vector<8x16xf32>
    %c0_17 = arith.constant 0 : index
    %c0_18 = arith.constant 0 : index
    %26 = vector.load %arg7[%c0_17, %c0_18] : memref<8x24xf32, #tpu.memory_space<vmem>>, vector<8x8xf32>
    %cst_19 = arith.constant dense<0.000000e+00> : vector<8x16xf32>
    %27 = tpu.matmul %26, %25, %cst_19 {dimension_numbers = #tpu.dot_dimension_numbers<[1], [0], [0], [1], [0, 0, 1, 1], [], []>} : vector<8x8xf32>, vector<8x16xf32>, vector<8x16xf32> -> vector<8x16xf32>
    %28 = arith.addf %6, %27 : vector<8x16xf32>
    %cst_20 = arith.constant 0.000000e+00 : f32
    %29 = vector.broadcast %cst_20 : f32 to vector<8x16xf32>
    %c0_21 = arith.constant 0 : index
    %c0_22 = arith.constant 0 : index
    %30 = vector.load %arg4[%c0_21, %c0_22] : memref<8x1xf32, #tpu.memory_space<vmem>>, vector<8x1xf32>
    %31 = vector.broadcast %30 : vector<8x1xf32> to vector<8x16xf32>
    %32 = arith.addf %29, %31 : vector<8x16xf32>
    %c0_23 = arith.constant 0 : index
    %c0_24 = arith.constant 0 : index
    %c0_25 = arith.constant 0 : index
    %33 = vector.load %arg3[%c0_23, %c0_24, %c0_25] : memref<5x8x8xf32, #tpu.memory_space<vmem>>, vector<1x8x8xf32>
    %34 = vector.shape_cast %33 : vector<1x8x8xf32> to vector<8x8xf32>
    %35 = vector.extract_strided_slice %1 {offsets = [0, 1], sizes = [8, 16], strides = [1, 1]} : vector<8x22xf32> to vector<8x16xf32>
    %cst_26 = arith.constant dense<0.000000e+00> : vector<8x16xf32>
    %36 = tpu.matmul %34, %35, %cst_26 {dimension_numbers = #tpu.dot_dimension_numbers<[1], [0], [0], [1], [0, 0, 1, 1], [], []>} : vector<8x8xf32>, vector<8x16xf32>, vector<8x16xf32> -> vector<8x16xf32>
    %37 = arith.addf %32, %36 : vector<8x16xf32>
    %c1_27 = arith.constant 1 : index
    %c0_28 = arith.constant 0 : index
    %c0_29 = arith.constant 0 : index
    %38 = vector.load %arg3[%c1_27, %c0_28, %c0_29] : memref<5x8x8xf32, #tpu.memory_space<vmem>>, vector<1x8x8xf32>
    %39 = vector.shape_cast %38 : vector<1x8x8xf32> to vector<8x8xf32>
    %40 = vector.extract_strided_slice %1 {offsets = [0, 2], sizes = [8, 16], strides = [1, 1]} : vector<8x22xf32> to vector<8x16xf32>
    %cst_30 = arith.constant dense<0.000000e+00> : vector<8x16xf32>
    %41 = tpu.matmul %39, %40, %cst_30 {dimension_numbers = #tpu.dot_dimension_numbers<[1], [0], [0], [1], [0, 0, 1, 1], [], []>} : vector<8x8xf32>, vector<8x16xf32>, vector<8x16xf32> -> vector<8x16xf32>
    %42 = arith.addf %37, %41 : vector<8x16xf32>
    %c2_31 = arith.constant 2 : index
    %c0_32 = arith.constant 0 : index
    %c0_33 = arith.constant 0 : index
    %43 = vector.load %arg3[%c2_31, %c0_32, %c0_33] : memref<5x8x8xf32, #tpu.memory_space<vmem>>, vector<1x8x8xf32>
    %44 = vector.shape_cast %43 : vector<1x8x8xf32> to vector<8x8xf32>
    %45 = vector.extract_strided_slice %1 {offsets = [0, 3], sizes = [8, 16], strides = [1, 1]} : vector<8x22xf32> to vector<8x16xf32>
    %cst_34 = arith.constant dense<0.000000e+00> : vector<8x16xf32>
    %46 = tpu.matmul %44, %45, %cst_34 {dimension_numbers = #tpu.dot_dimension_numbers<[1], [0], [0], [1], [0, 0, 1, 1], [], []>} : vector<8x8xf32>, vector<8x16xf32>, vector<8x16xf32> -> vector<8x16xf32>
    %47 = arith.addf %42, %46 : vector<8x16xf32>
    %c3 = arith.constant 3 : index
    %c0_35 = arith.constant 0 : index
    %c0_36 = arith.constant 0 : index
    %48 = vector.load %arg3[%c3, %c0_35, %c0_36] : memref<5x8x8xf32, #tpu.memory_space<vmem>>, vector<1x8x8xf32>
    %49 = vector.shape_cast %48 : vector<1x8x8xf32> to vector<8x8xf32>
    %50 = vector.extract_strided_slice %1 {offsets = [0, 4], sizes = [8, 16], strides = [1, 1]} : vector<8x22xf32> to vector<8x16xf32>
    %cst_37 = arith.constant dense<0.000000e+00> : vector<8x16xf32>
    %51 = tpu.matmul %49, %50, %cst_37 {dimension_numbers = #tpu.dot_dimension_numbers<[1], [0], [0], [1], [0, 0, 1, 1], [], []>} : vector<8x8xf32>, vector<8x16xf32>, vector<8x16xf32> -> vector<8x16xf32>
    %52 = arith.addf %47, %51 : vector<8x16xf32>
    %c4 = arith.constant 4 : index
    %c0_38 = arith.constant 0 : index
    %c0_39 = arith.constant 0 : index
    %53 = vector.load %arg3[%c4, %c0_38, %c0_39] : memref<5x8x8xf32, #tpu.memory_space<vmem>>, vector<1x8x8xf32>
    %54 = vector.shape_cast %53 : vector<1x8x8xf32> to vector<8x8xf32>
    %55 = vector.extract_strided_slice %1 {offsets = [0, 5], sizes = [8, 16], strides = [1, 1]} : vector<8x22xf32> to vector<8x16xf32>
    %cst_40 = arith.constant dense<0.000000e+00> : vector<8x16xf32>
    %56 = tpu.matmul %54, %55, %cst_40 {dimension_numbers = #tpu.dot_dimension_numbers<[1], [0], [0], [1], [0, 0, 1, 1], [], []>} : vector<8x8xf32>, vector<8x16xf32>, vector<8x16xf32> -> vector<8x16xf32>
    %57 = arith.addf %52, %56 : vector<8x16xf32>
    %c0_41 = arith.constant 0 : index
    %c8 = arith.constant 8 : index
    %58 = vector.load %arg7[%c0_41, %c8] : memref<8x24xf32, #tpu.memory_space<vmem>>, vector<8x8xf32>
    %cst_42 = arith.constant dense<0.000000e+00> : vector<8x16xf32>
    %59 = tpu.matmul %58, %57, %cst_42 {dimension_numbers = #tpu.dot_dimension_numbers<[1], [0], [0], [1], [0, 0, 1, 1], [], []>} : vector<8x8xf32>, vector<8x16xf32>, vector<8x16xf32> -> vector<8x16xf32>
    %60 = arith.addf %28, %59 : vector<8x16xf32>
    %cst_43 = arith.constant 0.000000e+00 : f32
    %61 = vector.broadcast %cst_43 : f32 to vector<8x16xf32>
    %c0_44 = arith.constant 0 : index
    %c0_45 = arith.constant 0 : index
    %62 = vector.load %arg6[%c0_44, %c0_45] : memref<8x1xf32, #tpu.memory_space<vmem>>, vector<8x1xf32>
    %63 = vector.broadcast %62 : vector<8x1xf32> to vector<8x16xf32>
    %64 = arith.addf %61, %63 : vector<8x16xf32>
    %c0_46 = arith.constant 0 : index
    %c0_47 = arith.constant 0 : index
    %c0_48 = arith.constant 0 : index
    %65 = vector.load %arg5[%c0_46, %c0_47, %c0_48] : memref<7x8x8xf32, #tpu.memory_space<vmem>>, vector<1x8x8xf32>
    %66 = vector.shape_cast %65 : vector<1x8x8xf32> to vector<8x8xf32>
    %67 = vector.extract_strided_slice %1 {offsets = [0, 0], sizes = [8, 16], strides = [1, 1]} : vector<8x22xf32> to vector<8x16xf32>
    %cst_49 = arith.constant dense<0.000000e+00> : vector<8x16xf32>
    %68 = tpu.matmul %66, %67, %cst_49 {dimension_numbers = #tpu.dot_dimension_numbers<[1], [0], [0], [1], [0, 0, 1, 1], [], []>} : vector<8x8xf32>, vector<8x16xf32>, vector<8x16xf32> -> vector<8x16xf32>
    %69 = arith.addf %64, %68 : vector<8x16xf32>
    %c1_50 = arith.constant 1 : index
    %c0_51 = arith.constant 0 : index
    %c0_52 = arith.constant 0 : index
    %70 = vector.load %arg5[%c1_50, %c0_51, %c0_52] : memref<7x8x8xf32, #tpu.memory_space<vmem>>, vector<1x8x8xf32>
    %71 = vector.shape_cast %70 : vector<1x8x8xf32> to vector<8x8xf32>
    %72 = vector.extract_strided_slice %1 {offsets = [0, 1], sizes = [8, 16], strides = [1, 1]} : vector<8x22xf32> to vector<8x16xf32>
    %cst_53 = arith.constant dense<0.000000e+00> : vector<8x16xf32>
    %73 = tpu.matmul %71, %72, %cst_53 {dimension_numbers = #tpu.dot_dimension_numbers<[1], [0], [0], [1], [0, 0, 1, 1], [], []>} : vector<8x8xf32>, vector<8x16xf32>, vector<8x16xf32> -> vector<8x16xf32>
    %74 = arith.addf %69, %73 : vector<8x16xf32>
    %c2_54 = arith.constant 2 : index
    %c0_55 = arith.constant 0 : index
    %c0_56 = arith.constant 0 : index
    %75 = vector.load %arg5[%c2_54, %c0_55, %c0_56] : memref<7x8x8xf32, #tpu.memory_space<vmem>>, vector<1x8x8xf32>
    %76 = vector.shape_cast %75 : vector<1x8x8xf32> to vector<8x8xf32>
    %77 = vector.extract_strided_slice %1 {offsets = [0, 2], sizes = [8, 16], strides = [1, 1]} : vector<8x22xf32> to vector<8x16xf32>
    %cst_57 = arith.constant dense<0.000000e+00> : vector<8x16xf32>
    %78 = tpu.matmul %76, %77, %cst_57 {dimension_numbers = #tpu.dot_dimension_numbers<[1], [0], [0], [1], [0, 0, 1, 1], [], []>} : vector<8x8xf32>, vector<8x16xf32>, vector<8x16xf32> -> vector<8x16xf32>
    %79 = arith.addf %74, %78 : vector<8x16xf32>
    %c3_58 = arith.constant 3 : index
    %c0_59 = arith.constant 0 : index
    %c0_60 = arith.constant 0 : index
    %80 = vector.load %arg5[%c3_58, %c0_59, %c0_60] : memref<7x8x8xf32, #tpu.memory_space<vmem>>, vector<1x8x8xf32>
    %81 = vector.shape_cast %80 : vector<1x8x8xf32> to vector<8x8xf32>
    %82 = vector.extract_strided_slice %1 {offsets = [0, 3], sizes = [8, 16], strides = [1, 1]} : vector<8x22xf32> to vector<8x16xf32>
    %cst_61 = arith.constant dense<0.000000e+00> : vector<8x16xf32>
    %83 = tpu.matmul %81, %82, %cst_61 {dimension_numbers = #tpu.dot_dimension_numbers<[1], [0], [0], [1], [0, 0, 1, 1], [], []>} : vector<8x8xf32>, vector<8x16xf32>, vector<8x16xf32> -> vector<8x16xf32>
    %84 = arith.addf %79, %83 : vector<8x16xf32>
    %c4_62 = arith.constant 4 : index
    %c0_63 = arith.constant 0 : index
    %c0_64 = arith.constant 0 : index
    %85 = vector.load %arg5[%c4_62, %c0_63, %c0_64] : memref<7x8x8xf32, #tpu.memory_space<vmem>>, vector<1x8x8xf32>
    %86 = vector.shape_cast %85 : vector<1x8x8xf32> to vector<8x8xf32>
    %87 = vector.extract_strided_slice %1 {offsets = [0, 4], sizes = [8, 16], strides = [1, 1]} : vector<8x22xf32> to vector<8x16xf32>
    %cst_65 = arith.constant dense<0.000000e+00> : vector<8x16xf32>
    %88 = tpu.matmul %86, %87, %cst_65 {dimension_numbers = #tpu.dot_dimension_numbers<[1], [0], [0], [1], [0, 0, 1, 1], [], []>} : vector<8x8xf32>, vector<8x16xf32>, vector<8x16xf32> -> vector<8x16xf32>
    %89 = arith.addf %84, %88 : vector<8x16xf32>
    %c5 = arith.constant 5 : index
    %c0_66 = arith.constant 0 : index
    %c0_67 = arith.constant 0 : index
    %90 = vector.load %arg5[%c5, %c0_66, %c0_67] : memref<7x8x8xf32, #tpu.memory_space<vmem>>, vector<1x8x8xf32>
    %91 = vector.shape_cast %90 : vector<1x8x8xf32> to vector<8x8xf32>
    %92 = vector.extract_strided_slice %1 {offsets = [0, 5], sizes = [8, 16], strides = [1, 1]} : vector<8x22xf32> to vector<8x16xf32>
    %cst_68 = arith.constant dense<0.000000e+00> : vector<8x16xf32>
    %93 = tpu.matmul %91, %92, %cst_68 {dimension_numbers = #tpu.dot_dimension_numbers<[1], [0], [0], [1], [0, 0, 1, 1], [], []>} : vector<8x8xf32>, vector<8x16xf32>, vector<8x16xf32> -> vector<8x16xf32>
    %94 = arith.addf %89, %93 : vector<8x16xf32>
    %c6 = arith.constant 6 : index
    %c0_69 = arith.constant 0 : index
    %c0_70 = arith.constant 0 : index
    %95 = vector.load %arg5[%c6, %c0_69, %c0_70] : memref<7x8x8xf32, #tpu.memory_space<vmem>>, vector<1x8x8xf32>
    %96 = vector.shape_cast %95 : vector<1x8x8xf32> to vector<8x8xf32>
    %97 = vector.extract_strided_slice %1 {offsets = [0, 6], sizes = [8, 16], strides = [1, 1]} : vector<8x22xf32> to vector<8x16xf32>
    %cst_71 = arith.constant dense<0.000000e+00> : vector<8x16xf32>
    %98 = tpu.matmul %96, %97, %cst_71 {dimension_numbers = #tpu.dot_dimension_numbers<[1], [0], [0], [1], [0, 0, 1, 1], [], []>} : vector<8x8xf32>, vector<8x16xf32>, vector<8x16xf32> -> vector<8x16xf32>
    %99 = arith.addf %94, %98 : vector<8x16xf32>
    %c0_72 = arith.constant 0 : index
    %c16 = arith.constant 16 : index
    %100 = vector.load %arg7[%c0_72, %c16] : memref<8x24xf32, #tpu.memory_space<vmem>>, vector<8x8xf32>
    %cst_73 = arith.constant dense<0.000000e+00> : vector<8x16xf32>
    %101 = tpu.matmul %100, %99, %cst_73 {dimension_numbers = #tpu.dot_dimension_numbers<[1], [0], [0], [1], [0, 0, 1, 1], [], []>} : vector<8x8xf32>, vector<8x16xf32>, vector<8x16xf32> -> vector<8x16xf32>
    %102 = arith.addf %60, %101 : vector<8x16xf32>
    %c1_74 = arith.constant 1 : index
    %c0_75 = arith.constant 0 : index
    %c0_76 = arith.constant 0 : index
    %103 = vector.load %arg0[%c1_74, %c0_75, %c0_76] : memref<2x8x22xf32, #tpu.memory_space<vmem>>, vector<1x8x22xf32>
    %104 = vector.shape_cast %103 : vector<1x8x22xf32> to vector<8x22xf32>
    %105 = vector.extract_strided_slice %104 {offsets = [0, 3], sizes = [8, 16], strides = [1, 1]} : vector<8x22xf32> to vector<8x16xf32>
    %cst_77 = arith.constant 0.000000e+00 : f32
    %106 = vector.broadcast %cst_77 : f32 to vector<8x16xf32>
    %c0_78 = arith.constant 0 : index
    %c0_79 = arith.constant 0 : index
    %107 = vector.load %arg8[%c0_78, %c0_79] : memref<8x1xf32, #tpu.memory_space<vmem>>, vector<8x1xf32>
    %108 = vector.broadcast %107 : vector<8x1xf32> to vector<8x16xf32>
    %109 = arith.addf %106, %108 : vector<8x16xf32>
    %cst_80 = arith.constant 0.000000e+00 : f32
    %110 = vector.broadcast %cst_80 : f32 to vector<8x16xf32>
    %c0_81 = arith.constant 0 : index
    %c0_82 = arith.constant 0 : index
    %111 = vector.load %arg2[%c0_81, %c0_82] : memref<8x1xf32, #tpu.memory_space<vmem>>, vector<8x1xf32>
    %112 = vector.broadcast %111 : vector<8x1xf32> to vector<8x16xf32>
    %113 = arith.addf %110, %112 : vector<8x16xf32>
    %c0_83 = arith.constant 0 : index
    %c0_84 = arith.constant 0 : index
    %c0_85 = arith.constant 0 : index
    %114 = vector.load %arg1[%c0_83, %c0_84, %c0_85] : memref<3x8x8xf32, #tpu.memory_space<vmem>>, vector<1x8x8xf32>
    %115 = vector.shape_cast %114 : vector<1x8x8xf32> to vector<8x8xf32>
    %116 = vector.extract_strided_slice %104 {offsets = [0, 2], sizes = [8, 16], strides = [1, 1]} : vector<8x22xf32> to vector<8x16xf32>
    %cst_86 = arith.constant dense<0.000000e+00> : vector<8x16xf32>
    %117 = tpu.matmul %115, %116, %cst_86 {dimension_numbers = #tpu.dot_dimension_numbers<[1], [0], [0], [1], [0, 0, 1, 1], [], []>} : vector<8x8xf32>, vector<8x16xf32>, vector<8x16xf32> -> vector<8x16xf32>
    %118 = arith.addf %113, %117 : vector<8x16xf32>
    %c1_87 = arith.constant 1 : index
    %c0_88 = arith.constant 0 : index
    %c0_89 = arith.constant 0 : index
    %119 = vector.load %arg1[%c1_87, %c0_88, %c0_89] : memref<3x8x8xf32, #tpu.memory_space<vmem>>, vector<1x8x8xf32>
    %120 = vector.shape_cast %119 : vector<1x8x8xf32> to vector<8x8xf32>
    %121 = vector.extract_strided_slice %104 {offsets = [0, 3], sizes = [8, 16], strides = [1, 1]} : vector<8x22xf32> to vector<8x16xf32>
    %cst_90 = arith.constant dense<0.000000e+00> : vector<8x16xf32>
    %122 = tpu.matmul %120, %121, %cst_90 {dimension_numbers = #tpu.dot_dimension_numbers<[1], [0], [0], [1], [0, 0, 1, 1], [], []>} : vector<8x8xf32>, vector<8x16xf32>, vector<8x16xf32> -> vector<8x16xf32>
    %123 = arith.addf %118, %122 : vector<8x16xf32>
    %c2_91 = arith.constant 2 : index
    %c0_92 = arith.constant 0 : index
    %c0_93 = arith.constant 0 : index
    %124 = vector.load %arg1[%c2_91, %c0_92, %c0_93] : memref<3x8x8xf32, #tpu.memory_space<vmem>>, vector<1x8x8xf32>
    %125 = vector.shape_cast %124 : vector<1x8x8xf32> to vector<8x8xf32>
    %126 = vector.extract_strided_slice %104 {offsets = [0, 4], sizes = [8, 16], strides = [1, 1]} : vector<8x22xf32> to vector<8x16xf32>
    %cst_94 = arith.constant dense<0.000000e+00> : vector<8x16xf32>
    %127 = tpu.matmul %125, %126, %cst_94 {dimension_numbers = #tpu.dot_dimension_numbers<[1], [0], [0], [1], [0, 0, 1, 1], [], []>} : vector<8x8xf32>, vector<8x16xf32>, vector<8x16xf32> -> vector<8x16xf32>
    %128 = arith.addf %123, %127 : vector<8x16xf32>
    %c0_95 = arith.constant 0 : index
    %c0_96 = arith.constant 0 : index
    %129 = vector.load %arg7[%c0_95, %c0_96] : memref<8x24xf32, #tpu.memory_space<vmem>>, vector<8x8xf32>
    %cst_97 = arith.constant dense<0.000000e+00> : vector<8x16xf32>
    %130 = tpu.matmul %129, %128, %cst_97 {dimension_numbers = #tpu.dot_dimension_numbers<[1], [0], [0], [1], [0, 0, 1, 1], [], []>} : vector<8x8xf32>, vector<8x16xf32>, vector<8x16xf32> -> vector<8x16xf32>
    %131 = arith.addf %109, %130 : vector<8x16xf32>
    %cst_98 = arith.constant 0.000000e+00 : f32
    %132 = vector.broadcast %cst_98 : f32 to vector<8x16xf32>
    %c0_99 = arith.constant 0 : index
    %c0_100 = arith.constant 0 : index
    %133 = vector.load %arg4[%c0_99, %c0_100] : memref<8x1xf32, #tpu.memory_space<vmem>>, vector<8x1xf32>
    %134 = vector.broadcast %133 : vector<8x1xf32> to vector<8x16xf32>
    %135 = arith.addf %132, %134 : vector<8x16xf32>
    %c0_101 = arith.constant 0 : index
    %c0_102 = arith.constant 0 : index
    %c0_103 = arith.constant 0 : index
    %136 = vector.load %arg3[%c0_101, %c0_102, %c0_103] : memref<5x8x8xf32, #tpu.memory_space<vmem>>, vector<1x8x8xf32>
    %137 = vector.shape_cast %136 : vector<1x8x8xf32> to vector<8x8xf32>
    %138 = vector.extract_strided_slice %104 {offsets = [0, 1], sizes = [8, 16], strides = [1, 1]} : vector<8x22xf32> to vector<8x16xf32>
    %cst_104 = arith.constant dense<0.000000e+00> : vector<8x16xf32>
    %139 = tpu.matmul %137, %138, %cst_104 {dimension_numbers = #tpu.dot_dimension_numbers<[1], [0], [0], [1], [0, 0, 1, 1], [], []>} : vector<8x8xf32>, vector<8x16xf32>, vector<8x16xf32> -> vector<8x16xf32>
    %140 = arith.addf %135, %139 : vector<8x16xf32>
    %c1_105 = arith.constant 1 : index
    %c0_106 = arith.constant 0 : index
    %c0_107 = arith.constant 0 : index
    %141 = vector.load %arg3[%c1_105, %c0_106, %c0_107] : memref<5x8x8xf32, #tpu.memory_space<vmem>>, vector<1x8x8xf32>
    %142 = vector.shape_cast %141 : vector<1x8x8xf32> to vector<8x8xf32>
    %143 = vector.extract_strided_slice %104 {offsets = [0, 2], sizes = [8, 16], strides = [1, 1]} : vector<8x22xf32> to vector<8x16xf32>
    %cst_108 = arith.constant dense<0.000000e+00> : vector<8x16xf32>
    %144 = tpu.matmul %142, %143, %cst_108 {dimension_numbers = #tpu.dot_dimension_numbers<[1], [0], [0], [1], [0, 0, 1, 1], [], []>} : vector<8x8xf32>, vector<8x16xf32>, vector<8x16xf32> -> vector<8x16xf32>
    %145 = arith.addf %140, %144 : vector<8x16xf32>
    %c2_109 = arith.constant 2 : index
    %c0_110 = arith.constant 0 : index
    %c0_111 = arith.constant 0 : index
    %146 = vector.load %arg3[%c2_109, %c0_110, %c0_111] : memref<5x8x8xf32, #tpu.memory_space<vmem>>, vector<1x8x8xf32>
    %147 = vector.shape_cast %146 : vector<1x8x8xf32> to vector<8x8xf32>
    %148 = vector.extract_strided_slice %104 {offsets = [0, 3], sizes = [8, 16], strides = [1, 1]} : vector<8x22xf32> to vector<8x16xf32>
    %cst_112 = arith.constant dense<0.000000e+00> : vector<8x16xf32>
    %149 = tpu.matmul %147, %148, %cst_112 {dimension_numbers = #tpu.dot_dimension_numbers<[1], [0], [0], [1], [0, 0, 1, 1], [], []>} : vector<8x8xf32>, vector<8x16xf32>, vector<8x16xf32> -> vector<8x16xf32>
    %150 = arith.addf %145, %149 : vector<8x16xf32>
    %c3_113 = arith.constant 3 : index
    %c0_114 = arith.constant 0 : index
    %c0_115 = arith.constant 0 : index
    %151 = vector.load %arg3[%c3_113, %c0_114, %c0_115] : memref<5x8x8xf32, #tpu.memory_space<vmem>>, vector<1x8x8xf32>
    %152 = vector.shape_cast %151 : vector<1x8x8xf32> to vector<8x8xf32>
    %153 = vector.extract_strided_slice %104 {offsets = [0, 4], sizes = [8, 16], strides = [1, 1]} : vector<8x22xf32> to vector<8x16xf32>
    %cst_116 = arith.constant dense<0.000000e+00> : vector<8x16xf32>
    %154 = tpu.matmul %152, %153, %cst_116 {dimension_numbers = #tpu.dot_dimension_numbers<[1], [0], [0], [1], [0, 0, 1, 1], [], []>} : vector<8x8xf32>, vector<8x16xf32>, vector<8x16xf32> -> vector<8x16xf32>
    %155 = arith.addf %150, %154 : vector<8x16xf32>
    %c4_117 = arith.constant 4 : index
    %c0_118 = arith.constant 0 : index
    %c0_119 = arith.constant 0 : index
    %156 = vector.load %arg3[%c4_117, %c0_118, %c0_119] : memref<5x8x8xf32, #tpu.memory_space<vmem>>, vector<1x8x8xf32>
    %157 = vector.shape_cast %156 : vector<1x8x8xf32> to vector<8x8xf32>
    %158 = vector.extract_strided_slice %104 {offsets = [0, 5], sizes = [8, 16], strides = [1, 1]} : vector<8x22xf32> to vector<8x16xf32>
    %cst_120 = arith.constant dense<0.000000e+00> : vector<8x16xf32>
    %159 = tpu.matmul %157, %158, %cst_120 {dimension_numbers = #tpu.dot_dimension_numbers<[1], [0], [0], [1], [0, 0, 1, 1], [], []>} : vector<8x8xf32>, vector<8x16xf32>, vector<8x16xf32> -> vector<8x16xf32>
    %160 = arith.addf %155, %159 : vector<8x16xf32>
    %c0_121 = arith.constant 0 : index
    %c8_122 = arith.constant 8 : index
    %161 = vector.load %arg7[%c0_121, %c8_122] : memref<8x24xf32, #tpu.memory_space<vmem>>, vector<8x8xf32>
    %cst_123 = arith.constant dense<0.000000e+00> : vector<8x16xf32>
    %162 = tpu.matmul %161, %160, %cst_123 {dimension_numbers = #tpu.dot_dimension_numbers<[1], [0], [0], [1], [0, 0, 1, 1], [], []>} : vector<8x8xf32>, vector<8x16xf32>, vector<8x16xf32> -> vector<8x16xf32>
    %163 = arith.addf %131, %162 : vector<8x16xf32>
    %cst_124 = arith.constant 0.000000e+00 : f32
    %164 = vector.broadcast %cst_124 : f32 to vector<8x16xf32>
    %c0_125 = arith.constant 0 : index
    %c0_126 = arith.constant 0 : index
    %165 = vector.load %arg6[%c0_125, %c0_126] : memref<8x1xf32, #tpu.memory_space<vmem>>, vector<8x1xf32>
    %166 = vector.broadcast %165 : vector<8x1xf32> to vector<8x16xf32>
    %167 = arith.addf %164, %166 : vector<8x16xf32>
    %c0_127 = arith.constant 0 : index
    %c0_128 = arith.constant 0 : index
    %c0_129 = arith.constant 0 : index
    %168 = vector.load %arg5[%c0_127, %c0_128, %c0_129] : memref<7x8x8xf32, #tpu.memory_space<vmem>>, vector<1x8x8xf32>
    %169 = vector.shape_cast %168 : vector<1x8x8xf32> to vector<8x8xf32>
    %170 = vector.extract_strided_slice %104 {offsets = [0, 0], sizes = [8, 16], strides = [1, 1]} : vector<8x22xf32> to vector<8x16xf32>
    %cst_130 = arith.constant dense<0.000000e+00> : vector<8x16xf32>
    %171 = tpu.matmul %169, %170, %cst_130 {dimension_numbers = #tpu.dot_dimension_numbers<[1], [0], [0], [1], [0, 0, 1, 1], [], []>} : vector<8x8xf32>, vector<8x16xf32>, vector<8x16xf32> -> vector<8x16xf32>
    %172 = arith.addf %167, %171 : vector<8x16xf32>
    %c1_131 = arith.constant 1 : index
    %c0_132 = arith.constant 0 : index
    %c0_133 = arith.constant 0 : index
    %173 = vector.load %arg5[%c1_131, %c0_132, %c0_133] : memref<7x8x8xf32, #tpu.memory_space<vmem>>, vector<1x8x8xf32>
    %174 = vector.shape_cast %173 : vector<1x8x8xf32> to vector<8x8xf32>
    %175 = vector.extract_strided_slice %104 {offsets = [0, 1], sizes = [8, 16], strides = [1, 1]} : vector<8x22xf32> to vector<8x16xf32>
    %cst_134 = arith.constant dense<0.000000e+00> : vector<8x16xf32>
    %176 = tpu.matmul %174, %175, %cst_134 {dimension_numbers = #tpu.dot_dimension_numbers<[1], [0], [0], [1], [0, 0, 1, 1], [], []>} : vector<8x8xf32>, vector<8x16xf32>, vector<8x16xf32> -> vector<8x16xf32>
    %177 = arith.addf %172, %176 : vector<8x16xf32>
    %c2_135 = arith.constant 2 : index
    %c0_136 = arith.constant 0 : index
    %c0_137 = arith.constant 0 : index
    %178 = vector.load %arg5[%c2_135, %c0_136, %c0_137] : memref<7x8x8xf32, #tpu.memory_space<vmem>>, vector<1x8x8xf32>
    %179 = vector.shape_cast %178 : vector<1x8x8xf32> to vector<8x8xf32>
    %180 = vector.extract_strided_slice %104 {offsets = [0, 2], sizes = [8, 16], strides = [1, 1]} : vector<8x22xf32> to vector<8x16xf32>
    %cst_138 = arith.constant dense<0.000000e+00> : vector<8x16xf32>
    %181 = tpu.matmul %179, %180, %cst_138 {dimension_numbers = #tpu.dot_dimension_numbers<[1], [0], [0], [1], [0, 0, 1, 1], [], []>} : vector<8x8xf32>, vector<8x16xf32>, vector<8x16xf32> -> vector<8x16xf32>
    %182 = arith.addf %177, %181 : vector<8x16xf32>
    %c3_139 = arith.constant 3 : index
    %c0_140 = arith.constant 0 : index
    %c0_141 = arith.constant 0 : index
    %183 = vector.load %arg5[%c3_139, %c0_140, %c0_141] : memref<7x8x8xf32, #tpu.memory_space<vmem>>, vector<1x8x8xf32>
    %184 = vector.shape_cast %183 : vector<1x8x8xf32> to vector<8x8xf32>
    %185 = vector.extract_strided_slice %104 {offsets = [0, 3], sizes = [8, 16], strides = [1, 1]} : vector<8x22xf32> to vector<8x16xf32>
    %cst_142 = arith.constant dense<0.000000e+00> : vector<8x16xf32>
    %186 = tpu.matmul %184, %185, %cst_142 {dimension_numbers = #tpu.dot_dimension_numbers<[1], [0], [0], [1], [0, 0, 1, 1], [], []>} : vector<8x8xf32>, vector<8x16xf32>, vector<8x16xf32> -> vector<8x16xf32>
    %187 = arith.addf %182, %186 : vector<8x16xf32>
    %c4_143 = arith.constant 4 : index
    %c0_144 = arith.constant 0 : index
    %c0_145 = arith.constant 0 : index
    %188 = vector.load %arg5[%c4_143, %c0_144, %c0_145] : memref<7x8x8xf32, #tpu.memory_space<vmem>>, vector<1x8x8xf32>
    %189 = vector.shape_cast %188 : vector<1x8x8xf32> to vector<8x8xf32>
    %190 = vector.extract_strided_slice %104 {offsets = [0, 4], sizes = [8, 16], strides = [1, 1]} : vector<8x22xf32> to vector<8x16xf32>
    %cst_146 = arith.constant dense<0.000000e+00> : vector<8x16xf32>
    %191 = tpu.matmul %189, %190, %cst_146 {dimension_numbers = #tpu.dot_dimension_numbers<[1], [0], [0], [1], [0, 0, 1, 1], [], []>} : vector<8x8xf32>, vector<8x16xf32>, vector<8x16xf32> -> vector<8x16xf32>
    %192 = arith.addf %187, %191 : vector<8x16xf32>
    %c5_147 = arith.constant 5 : index
    %c0_148 = arith.constant 0 : index
    %c0_149 = arith.constant 0 : index
    %193 = vector.load %arg5[%c5_147, %c0_148, %c0_149] : memref<7x8x8xf32, #tpu.memory_space<vmem>>, vector<1x8x8xf32>
    %194 = vector.shape_cast %193 : vector<1x8x8xf32> to vector<8x8xf32>
    %195 = vector.extract_strided_slice %104 {offsets = [0, 5], sizes = [8, 16], strides = [1, 1]} : vector<8x22xf32> to vector<8x16xf32>
    %cst_150 = arith.constant dense<0.000000e+00> : vector<8x16xf32>
    %196 = tpu.matmul %194, %195, %cst_150 {dimension_numbers = #tpu.dot_dimension_numbers<[1], [0], [0], [1], [0, 0, 1, 1], [], []>} : vector<8x8xf32>, vector<8x16xf32>, vector<8x16xf32> -> vector<8x16xf32>
    %197 = arith.addf %192, %196 : vector<8x16xf32>
    %c6_151 = arith.constant 6 : index
    %c0_152 = arith.constant 0 : index
    %c0_153 = arith.constant 0 : index
    %198 = vector.load %arg5[%c6_151, %c0_152, %c0_153] : memref<7x8x8xf32, #tpu.memory_space<vmem>>, vector<1x8x8xf32>
    %199 = vector.shape_cast %198 : vector<1x8x8xf32> to vector<8x8xf32>
    %200 = vector.extract_strided_slice %104 {offsets = [0, 6], sizes = [8, 16], strides = [1, 1]} : vector<8x22xf32> to vector<8x16xf32>
    %cst_154 = arith.constant dense<0.000000e+00> : vector<8x16xf32>
    %201 = tpu.matmul %199, %200, %cst_154 {dimension_numbers = #tpu.dot_dimension_numbers<[1], [0], [0], [1], [0, 0, 1, 1], [], []>} : vector<8x8xf32>, vector<8x16xf32>, vector<8x16xf32> -> vector<8x16xf32>
    %202 = arith.addf %197, %201 : vector<8x16xf32>
    %c0_155 = arith.constant 0 : index
    %c16_156 = arith.constant 16 : index
    %203 = vector.load %arg7[%c0_155, %c16_156] : memref<8x24xf32, #tpu.memory_space<vmem>>, vector<8x8xf32>
    %cst_157 = arith.constant dense<0.000000e+00> : vector<8x16xf32>
    %204 = tpu.matmul %203, %202, %cst_157 {dimension_numbers = #tpu.dot_dimension_numbers<[1], [0], [0], [1], [0, 0, 1, 1], [], []>} : vector<8x8xf32>, vector<8x16xf32>, vector<8x16xf32> -> vector<8x16xf32>
    %205 = arith.addf %163, %204 : vector<8x16xf32>
    %cst_158 = arith.constant dense<0.000000e+00> : vector<8xf32>
    %206 = vector.multi_reduction <add>, %102, %cst_158 [1] : vector<8x16xf32> to vector<8xf32>
    %207 = vector.shape_cast %206 : vector<8xf32> to vector<8x1xf32>
    %cst_159 = arith.constant dense<0.000000e+00> : vector<8xf32>
    %208 = vector.multi_reduction <add>, %205, %cst_159 [1] : vector<8x16xf32> to vector<8xf32>
    %209 = vector.shape_cast %208 : vector<8xf32> to vector<8x1xf32>
    %210 = arith.addf %207, %209 : vector<8x1xf32>
    %cst_160 = arith.constant 3.200000e+01 : f32
    %211 = vector.broadcast %cst_160 : f32 to vector<8x1xf32>
    %212 = arith.divf %210, %211 : vector<8x1xf32>
    %213 = vector.broadcast %212 : vector<8x1xf32> to vector<8x16xf32>
    %214 = arith.subf %102, %213 : vector<8x16xf32>
    %215 = arith.mulf %214, %214 : vector<8x16xf32>
    %cst_161 = arith.constant dense<0.000000e+00> : vector<8xf32>
    %216 = vector.multi_reduction <add>, %215, %cst_161 [1] : vector<8x16xf32> to vector<8xf32>
    %217 = vector.shape_cast %216 : vector<8xf32> to vector<8x1xf32>
    %218 = vector.broadcast %212 : vector<8x1xf32> to vector<8x16xf32>
    %219 = arith.subf %205, %218 : vector<8x16xf32>
    %220 = arith.mulf %219, %219 : vector<8x16xf32>
    %cst_162 = arith.constant dense<0.000000e+00> : vector<8xf32>
    %221 = vector.multi_reduction <add>, %220, %cst_162 [1] : vector<8x16xf32> to vector<8xf32>
    %222 = vector.shape_cast %221 : vector<8xf32> to vector<8x1xf32>
    %223 = arith.addf %217, %222 : vector<8x1xf32>
    %cst_163 = arith.constant 3.200000e+01 : f32
    %224 = vector.broadcast %cst_163 : f32 to vector<8x1xf32>
    %225 = arith.divf %223, %224 : vector<8x1xf32>
    %cst_164 = arith.constant 9.99999974E-6 : f32
    %226 = vector.broadcast %cst_164 : f32 to vector<8x1xf32>
    %227 = arith.addf %225, %226 : vector<8x1xf32>
    %228 = math.rsqrt %227 : vector<8x1xf32>
    %c0_165 = arith.constant 0 : index
    %c0_166 = arith.constant 0 : index
    %229 = vector.load %arg9[%c0_165, %c0_166] : memref<8x1xf32, #tpu.memory_space<vmem>>, vector<8x1xf32>
    %230 = vector.broadcast %212 : vector<8x1xf32> to vector<8x16xf32>
    %231 = arith.subf %102, %230 : vector<8x16xf32>
    %232 = vector.broadcast %228 : vector<8x1xf32> to vector<8x16xf32>
    %233 = arith.mulf %231, %232 : vector<8x16xf32>
    %234 = vector.broadcast %229 : vector<8x1xf32> to vector<8x16xf32>
    %235 = arith.mulf %234, %233 : vector<8x16xf32>
    %c0_167 = arith.constant 0 : index
    %c0_168 = arith.constant 0 : index
    %236 = vector.load %arg10[%c0_167, %c0_168] : memref<8x1xf32, #tpu.memory_space<vmem>>, vector<8x1xf32>
    %237 = vector.broadcast %236 : vector<8x1xf32> to vector<8x16xf32>
    %238 = arith.addf %235, %237 : vector<8x16xf32>
    %cst_169 = arith.constant 5.000000e-01 : f32
    %239 = vector.broadcast %cst_169 : f32 to vector<8x16xf32>
    %240 = arith.mulf %239, %238 : vector<8x16xf32>
    %cst_170 = arith.constant 0.707106769 : f32
    %241 = vector.broadcast %cst_170 : f32 to vector<8x16xf32>
    %242 = arith.mulf %238, %241 : vector<8x16xf32>
    %243 = math.absf %242 : vector<8x16xf32>
    %cst_171 = arith.constant 0.327591091 : f32
    %244 = vector.broadcast %cst_171 : f32 to vector<8x16xf32>
    %245 = arith.mulf %244, %243 : vector<8x16xf32>
    %cst_172 = arith.constant 1.000000e+00 : f32
    %246 = vector.broadcast %cst_172 : f32 to vector<8x16xf32>
    %247 = arith.addf %246, %245 : vector<8x16xf32>
    %cst_173 = arith.constant 1.000000e+00 : f32
    %248 = vector.broadcast %cst_173 : f32 to vector<8x16xf32>
    %249 = arith.divf %248, %247 : vector<8x16xf32>
    %cst_174 = arith.constant 1.06140542 : f32
    %250 = vector.broadcast %cst_174 : f32 to vector<8x16xf32>
    %251 = arith.mulf %250, %249 : vector<8x16xf32>
    %cst_175 = arith.constant -1.45315206 : f32
    %252 = vector.broadcast %cst_175 : f32 to vector<8x16xf32>
    %253 = arith.addf %251, %252 : vector<8x16xf32>
    %254 = arith.mulf %253, %249 : vector<8x16xf32>
    %cst_176 = arith.constant 1.42141378 : f32
    %255 = vector.broadcast %cst_176 : f32 to vector<8x16xf32>
    %256 = arith.addf %254, %255 : vector<8x16xf32>
    %257 = arith.mulf %256, %249 : vector<8x16xf32>
    %cst_177 = arith.constant -0.284496725 : f32
    %258 = vector.broadcast %cst_177 : f32 to vector<8x16xf32>
    %259 = arith.addf %257, %258 : vector<8x16xf32>
    %260 = arith.mulf %259, %249 : vector<8x16xf32>
    %cst_178 = arith.constant 0.254829586 : f32
    %261 = vector.broadcast %cst_178 : f32 to vector<8x16xf32>
    %262 = arith.addf %260, %261 : vector<8x16xf32>
    %263 = arith.mulf %262, %249 : vector<8x16xf32>
    %cst_179 = arith.constant 0.000000e+00 : f32
    %264 = vector.broadcast %cst_179 : f32 to vector<8x16xf32>
    %265 = arith.subf %264, %243 : vector<8x16xf32>
    %266 = arith.mulf %265, %243 : vector<8x16xf32>
    %267 = math.exp %266 : vector<8x16xf32>
    %268 = arith.mulf %263, %267 : vector<8x16xf32>
    %cst_180 = arith.constant 1.000000e+00 : f32
    %269 = vector.broadcast %cst_180 : f32 to vector<8x16xf32>
    %270 = arith.subf %269, %268 : vector<8x16xf32>
    %cst_181 = arith.constant 0.000000e+00 : f32
    %271 = vector.broadcast %cst_181 : f32 to vector<8x16xf32>
    %272 = arith.cmpf oge, %242, %271 : vector<8x16xf32>
    %cst_182 = arith.constant 0.000000e+00 : f32
    %273 = vector.broadcast %cst_182 : f32 to vector<8x16xf32>
    %274 = arith.subf %273, %270 : vector<8x16xf32>
    %275 = arith.select %272, %270, %274 : vector<8x16xi1>, vector<8x16xf32>
    %cst_183 = arith.constant 1.000000e+00 : f32
    %276 = vector.broadcast %cst_183 : f32 to vector<8x16xf32>
    %277 = arith.addf %276, %275 : vector<8x16xf32>
    %278 = arith.mulf %240, %277 : vector<8x16xf32>
    %279 = arith.addf %278, %2 : vector<8x16xf32>
    %c0_184 = arith.constant 0 : index
    %c0_185 = arith.constant 0 : index
    %c0_186 = arith.constant 0 : index
    %280 = vector.load %arg11[%c0_184, %c0_185, %c0_186] : memref<2x8x16xf32, #tpu.memory_space<vmem>>, vector<1x8x16xf32>
    %281 = vector.shape_cast %280 : vector<1x8x16xf32> to vector<8x16xf32>
    %282 = vector.shape_cast %279 : vector<8x16xf32> to vector<1x8x16xf32>
    tpu.vector_store %arg11[%c0_184, %c0_185, %c0_186], %282 {strides = array<i32>} : memref<2x8x16xf32, #tpu.memory_space<vmem>>, vector<1x8x16xf32>,
    %c0_187 = arith.constant 0 : index
    %c0_188 = arith.constant 0 : index
    %283 = vector.load %arg9[%c0_187, %c0_188] : memref<8x1xf32, #tpu.memory_space<vmem>>, vector<8x1xf32>
    %284 = vector.broadcast %212 : vector<8x1xf32> to vector<8x16xf32>
    %285 = arith.subf %205, %284 : vector<8x16xf32>
    %286 = vector.broadcast %228 : vector<8x1xf32> to vector<8x16xf32>
    %287 = arith.mulf %285, %286 : vector<8x16xf32>
    %288 = vector.broadcast %283 : vector<8x1xf32> to vector<8x16xf32>
    %289 = arith.mulf %288, %287 : vector<8x16xf32>
    %c0_189 = arith.constant 0 : index
    %c0_190 = arith.constant 0 : index
    %290 = vector.load %arg10[%c0_189, %c0_190] : memref<8x1xf32, #tpu.memory_space<vmem>>, vector<8x1xf32>
    %291 = vector.broadcast %290 : vector<8x1xf32> to vector<8x16xf32>
    %292 = arith.addf %289, %291 : vector<8x16xf32>
    %cst_191 = arith.constant 5.000000e-01 : f32
    %293 = vector.broadcast %cst_191 : f32 to vector<8x16xf32>
    %294 = arith.mulf %293, %292 : vector<8x16xf32>
    %cst_192 = arith.constant 0.707106769 : f32
    %295 = vector.broadcast %cst_192 : f32 to vector<8x16xf32>
    %296 = arith.mulf %292, %295 : vector<8x16xf32>
    %297 = math.absf %296 : vector<8x16xf32>
    %cst_193 = arith.constant 0.327591091 : f32
    %298 = vector.broadcast %cst_193 : f32 to vector<8x16xf32>
    %299 = arith.mulf %298, %297 : vector<8x16xf32>
    %cst_194 = arith.constant 1.000000e+00 : f32
    %300 = vector.broadcast %cst_194 : f32 to vector<8x16xf32>
    %301 = arith.addf %300, %299 : vector<8x16xf32>
    %cst_195 = arith.constant 1.000000e+00 : f32
    %302 = vector.broadcast %cst_195 : f32 to vector<8x16xf32>
    %303 = arith.divf %302, %301 : vector<8x16xf32>
    %cst_196 = arith.constant 1.06140542 : f32
    %304 = vector.broadcast %cst_196 : f32 to vector<8x16xf32>
    %305 = arith.mulf %304, %303 : vector<8x16xf32>
    %cst_197 = arith.constant -1.45315206 : f32
    %306 = vector.broadcast %cst_197 : f32 to vector<8x16xf32>
    %307 = arith.addf %305, %306 : vector<8x16xf32>
    %308 = arith.mulf %307, %303 : vector<8x16xf32>
    %cst_198 = arith.constant 1.42141378 : f32
    %309 = vector.broadcast %cst_198 : f32 to vector<8x16xf32>
    %310 = arith.addf %308, %309 : vector<8x16xf32>
    %311 = arith.mulf %310, %303 : vector<8x16xf32>
    %cst_199 = arith.constant -0.284496725 : f32
    %312 = vector.broadcast %cst_199 : f32 to vector<8x16xf32>
    %313 = arith.addf %311, %312 : vector<8x16xf32>
    %314 = arith.mulf %313, %303 : vector<8x16xf32>
    %cst_200 = arith.constant 0.254829586 : f32
    %315 = vector.broadcast %cst_200 : f32 to vector<8x16xf32>
    %316 = arith.addf %314, %315 : vector<8x16xf32>
    %317 = arith.mulf %316, %303 : vector<8x16xf32>
    %cst_201 = arith.constant 0.000000e+00 : f32
    %318 = vector.broadcast %cst_201 : f32 to vector<8x16xf32>
    %319 = arith.subf %318, %297 : vector<8x16xf32>
    %320 = arith.mulf %319, %297 : vector<8x16xf32>
    %321 = math.exp %320 : vector<8x16xf32>
    %322 = arith.mulf %317, %321 : vector<8x16xf32>
    %cst_202 = arith.constant 1.000000e+00 : f32
    %323 = vector.broadcast %cst_202 : f32 to vector<8x16xf32>
    %324 = arith.subf %323, %322 : vector<8x16xf32>
    %cst_203 = arith.constant 0.000000e+00 : f32
    %325 = vector.broadcast %cst_203 : f32 to vector<8x16xf32>
    %326 = arith.cmpf oge, %296, %325 : vector<8x16xf32>
    %cst_204 = arith.constant 0.000000e+00 : f32
    %327 = vector.broadcast %cst_204 : f32 to vector<8x16xf32>
    %328 = arith.subf %327, %324 : vector<8x16xf32>
    %329 = arith.select %326, %324, %328 : vector<8x16xi1>, vector<8x16xf32>
    %cst_205 = arith.constant 1.000000e+00 : f32
    %330 = vector.broadcast %cst_205 : f32 to vector<8x16xf32>
    %331 = arith.addf %330, %329 : vector<8x16xf32>
    %332 = arith.mulf %294, %331 : vector<8x16xf32>
    %333 = arith.addf %332, %105 : vector<8x16xf32>
    %c1_206 = arith.constant 1 : index
    %c0_207 = arith.constant 0 : index
    %c0_208 = arith.constant 0 : index
    %334 = vector.load %arg11[%c1_206, %c0_207, %c0_208] : memref<2x8x16xf32, #tpu.memory_space<vmem>>, vector<1x8x16xf32>
    %335 = vector.shape_cast %334 : vector<1x8x16xf32> to vector<8x16xf32>
    %336 = vector.shape_cast %333 : vector<8x16xf32> to vector<1x8x16xf32>
    tpu.vector_store %arg11[%c1_206, %c0_207, %c0_208], %336 {strides = array<i32>} : memref<2x8x16xf32, #tpu.memory_space<vmem>>, vector<1x8x16xf32>,
    return
  }
}

module attributes {stable_mosaic.version = 11 : i64} {
  func.func @_down_kernel(%arg0: memref<2x8x8xf32, #tpu.memory_space<vmem>>, %arg1: memref<2x8x8xf32, #tpu.memory_space<vmem>>, %arg2: memref<2x16x8xf32, #tpu.memory_space<vmem>>, %arg3: memref<16x1xf32, #tpu.memory_space<vmem>>, %arg4: memref<2x16x8xf32, #tpu.memory_space<vmem>>) attributes {dimension_semantics = [], scalar_prefetch = 0 : i64, scratch_operands = 0 : i64, tpu.core_type = #tpu.core_type<tc>} {
    %c0 = arith.constant 0 : index
    %c0_0 = arith.constant 0 : index
    %c0_1 = arith.constant 0 : index
    %0 = vector.load %arg2[%c0, %c0_0, %c0_1] : memref<2x16x8xf32, #tpu.memory_space<vmem>>, vector<1x16x8xf32>
    %1 = vector.shape_cast %0 : vector<1x16x8xf32> to vector<16x8xf32>
    %c0_2 = arith.constant 0 : index
    %c0_3 = arith.constant 0 : index
    %c0_4 = arith.constant 0 : index
    %2 = vector.load %arg0[%c0_2, %c0_3, %c0_4] : memref<2x8x8xf32, #tpu.memory_space<vmem>>, vector<1x8x8xf32>
    %3 = vector.shape_cast %2 : vector<1x8x8xf32> to vector<8x8xf32>
    %cst = arith.constant dense<0.000000e+00> : vector<16x8xf32>
    %4 = tpu.matmul %1, %3, %cst {dimension_numbers = #tpu.dot_dimension_numbers<[1], [0], [0], [1], [0, 0, 1, 1], [], []>} : vector<16x8xf32>, vector<8x8xf32>, vector<16x8xf32> -> vector<16x8xf32>
    %c1 = arith.constant 1 : index
    %c0_5 = arith.constant 0 : index
    %c0_6 = arith.constant 0 : index
    %5 = vector.load %arg2[%c1, %c0_5, %c0_6] : memref<2x16x8xf32, #tpu.memory_space<vmem>>, vector<1x16x8xf32>
    %6 = vector.shape_cast %5 : vector<1x16x8xf32> to vector<16x8xf32>
    %c0_7 = arith.constant 0 : index
    %c0_8 = arith.constant 0 : index
    %c0_9 = arith.constant 0 : index
    %7 = vector.load %arg1[%c0_7, %c0_8, %c0_9] : memref<2x8x8xf32, #tpu.memory_space<vmem>>, vector<1x8x8xf32>
    %8 = vector.shape_cast %7 : vector<1x8x8xf32> to vector<8x8xf32>
    %cst_10 = arith.constant dense<0.000000e+00> : vector<16x8xf32>
    %9 = tpu.matmul %6, %8, %cst_10 {dimension_numbers = #tpu.dot_dimension_numbers<[1], [0], [0], [1], [0, 0, 1, 1], [], []>} : vector<16x8xf32>, vector<8x8xf32>, vector<16x8xf32> -> vector<16x8xf32>
    %10 = arith.addf %4, %9 : vector<16x8xf32>
    %c0_11 = arith.constant 0 : index
    %c0_12 = arith.constant 0 : index
    %11 = vector.load %arg3[%c0_11, %c0_12] : memref<16x1xf32, #tpu.memory_space<vmem>>, vector<16x1xf32>
    %12 = vector.broadcast %11 : vector<16x1xf32> to vector<16x8xf32>
    %13 = arith.addf %10, %12 : vector<16x8xf32>
    %c0_13 = arith.constant 0 : index
    %c0_14 = arith.constant 0 : index
    %c0_15 = arith.constant 0 : index
    %14 = vector.load %arg4[%c0_13, %c0_14, %c0_15] : memref<2x16x8xf32, #tpu.memory_space<vmem>>, vector<1x16x8xf32>
    %15 = vector.shape_cast %14 : vector<1x16x8xf32> to vector<16x8xf32>
    %16 = vector.shape_cast %13 : vector<16x8xf32> to vector<1x16x8xf32>
    tpu.vector_store %arg4[%c0_13, %c0_14, %c0_15], %16 {strides = array<i32>} : memref<2x16x8xf32, #tpu.memory_space<vmem>>, vector<1x16x8xf32>,
    %c0_16 = arith.constant 0 : index
    %c0_17 = arith.constant 0 : index
    %c0_18 = arith.constant 0 : index
    %17 = vector.load %arg2[%c0_16, %c0_17, %c0_18] : memref<2x16x8xf32, #tpu.memory_space<vmem>>, vector<1x16x8xf32>
    %18 = vector.shape_cast %17 : vector<1x16x8xf32> to vector<16x8xf32>
    %c1_19 = arith.constant 1 : index
    %c0_20 = arith.constant 0 : index
    %c0_21 = arith.constant 0 : index
    %19 = vector.load %arg0[%c1_19, %c0_20, %c0_21] : memref<2x8x8xf32, #tpu.memory_space<vmem>>, vector<1x8x8xf32>
    %20 = vector.shape_cast %19 : vector<1x8x8xf32> to vector<8x8xf32>
    %cst_22 = arith.constant dense<0.000000e+00> : vector<16x8xf32>
    %21 = tpu.matmul %18, %20, %cst_22 {dimension_numbers = #tpu.dot_dimension_numbers<[1], [0], [0], [1], [0, 0, 1, 1], [], []>} : vector<16x8xf32>, vector<8x8xf32>, vector<16x8xf32> -> vector<16x8xf32>
    %c1_23 = arith.constant 1 : index
    %c0_24 = arith.constant 0 : index
    %c0_25 = arith.constant 0 : index
    %22 = vector.load %arg2[%c1_23, %c0_24, %c0_25] : memref<2x16x8xf32, #tpu.memory_space<vmem>>, vector<1x16x8xf32>
    %23 = vector.shape_cast %22 : vector<1x16x8xf32> to vector<16x8xf32>
    %c1_26 = arith.constant 1 : index
    %c0_27 = arith.constant 0 : index
    %c0_28 = arith.constant 0 : index
    %24 = vector.load %arg1[%c1_26, %c0_27, %c0_28] : memref<2x8x8xf32, #tpu.memory_space<vmem>>, vector<1x8x8xf32>
    %25 = vector.shape_cast %24 : vector<1x8x8xf32> to vector<8x8xf32>
    %cst_29 = arith.constant dense<0.000000e+00> : vector<16x8xf32>
    %26 = tpu.matmul %23, %25, %cst_29 {dimension_numbers = #tpu.dot_dimension_numbers<[1], [0], [0], [1], [0, 0, 1, 1], [], []>} : vector<16x8xf32>, vector<8x8xf32>, vector<16x8xf32> -> vector<16x8xf32>
    %27 = arith.addf %21, %26 : vector<16x8xf32>
    %c0_30 = arith.constant 0 : index
    %c0_31 = arith.constant 0 : index
    %28 = vector.load %arg3[%c0_30, %c0_31] : memref<16x1xf32, #tpu.memory_space<vmem>>, vector<16x1xf32>
    %29 = vector.broadcast %28 : vector<16x1xf32> to vector<16x8xf32>
    %30 = arith.addf %27, %29 : vector<16x8xf32>
    %c1_32 = arith.constant 1 : index
    %c0_33 = arith.constant 0 : index
    %c0_34 = arith.constant 0 : index
    %31 = vector.load %arg4[%c1_32, %c0_33, %c0_34] : memref<2x16x8xf32, #tpu.memory_space<vmem>>, vector<1x16x8xf32>
    %32 = vector.shape_cast %31 : vector<1x16x8xf32> to vector<16x8xf32>
    %33 = vector.shape_cast %30 : vector<16x8xf32> to vector<1x16x8xf32>
    tpu.vector_store %arg4[%c1_32, %c0_33, %c0_34], %33 {strides = array<i32>} : memref<2x16x8xf32, #tpu.memory_space<vmem>>, vector<1x16x8xf32>,
    return
  }
}

module attributes {stable_mosaic.version = 11 : i64} {
  func.func @_wavelet_block_kernel(%arg0: memref<2x16x14xf32, #tpu.memory_space<vmem>>, %arg1: memref<3x16x16xf32, #tpu.memory_space<vmem>>, %arg2: memref<16x1xf32, #tpu.memory_space<vmem>>, %arg3: memref<5x16x16xf32, #tpu.memory_space<vmem>>, %arg4: memref<16x1xf32, #tpu.memory_space<vmem>>, %arg5: memref<7x16x16xf32, #tpu.memory_space<vmem>>, %arg6: memref<16x1xf32, #tpu.memory_space<vmem>>, %arg7: memref<16x48xf32, #tpu.memory_space<vmem>>, %arg8: memref<16x1xf32, #tpu.memory_space<vmem>>, %arg9: memref<16x1xf32, #tpu.memory_space<vmem>>, %arg10: memref<16x1xf32, #tpu.memory_space<vmem>>, %arg11: memref<2x16x8xf32, #tpu.memory_space<vmem>>) attributes {dimension_semantics = [], scalar_prefetch = 0 : i64, scratch_operands = 0 : i64, tpu.core_type = #tpu.core_type<tc>} {
    %c0 = arith.constant 0 : index
    %c0_0 = arith.constant 0 : index
    %c0_1 = arith.constant 0 : index
    %0 = vector.load %arg0[%c0, %c0_0, %c0_1] : memref<2x16x14xf32, #tpu.memory_space<vmem>>, vector<1x16x14xf32>
    %1 = vector.shape_cast %0 : vector<1x16x14xf32> to vector<16x14xf32>
    %2 = vector.extract_strided_slice %1 {offsets = [0, 3], sizes = [16, 8], strides = [1, 1]} : vector<16x14xf32> to vector<16x8xf32>
    %cst = arith.constant 0.000000e+00 : f32
    %3 = vector.broadcast %cst : f32 to vector<16x8xf32>
    %c0_2 = arith.constant 0 : index
    %c0_3 = arith.constant 0 : index
    %4 = vector.load %arg8[%c0_2, %c0_3] : memref<16x1xf32, #tpu.memory_space<vmem>>, vector<16x1xf32>
    %5 = vector.broadcast %4 : vector<16x1xf32> to vector<16x8xf32>
    %6 = arith.addf %3, %5 : vector<16x8xf32>
    %cst_4 = arith.constant 0.000000e+00 : f32
    %7 = vector.broadcast %cst_4 : f32 to vector<16x8xf32>
    %c0_5 = arith.constant 0 : index
    %c0_6 = arith.constant 0 : index
    %8 = vector.load %arg2[%c0_5, %c0_6] : memref<16x1xf32, #tpu.memory_space<vmem>>, vector<16x1xf32>
    %9 = vector.broadcast %8 : vector<16x1xf32> to vector<16x8xf32>
    %10 = arith.addf %7, %9 : vector<16x8xf32>
    %c0_7 = arith.constant 0 : index
    %c0_8 = arith.constant 0 : index
    %c0_9 = arith.constant 0 : index
    %11 = vector.load %arg1[%c0_7, %c0_8, %c0_9] : memref<3x16x16xf32, #tpu.memory_space<vmem>>, vector<1x16x16xf32>
    %12 = vector.shape_cast %11 : vector<1x16x16xf32> to vector<16x16xf32>
    %13 = vector.extract_strided_slice %1 {offsets = [0, 2], sizes = [16, 8], strides = [1, 1]} : vector<16x14xf32> to vector<16x8xf32>
    %cst_10 = arith.constant dense<0.000000e+00> : vector<16x8xf32>
    %14 = tpu.matmul %12, %13, %cst_10 {dimension_numbers = #tpu.dot_dimension_numbers<[1], [0], [0], [1], [0, 0, 1, 1], [], []>} : vector<16x16xf32>, vector<16x8xf32>, vector<16x8xf32> -> vector<16x8xf32>
    %15 = arith.addf %10, %14 : vector<16x8xf32>
    %c1 = arith.constant 1 : index
    %c0_11 = arith.constant 0 : index
    %c0_12 = arith.constant 0 : index
    %16 = vector.load %arg1[%c1, %c0_11, %c0_12] : memref<3x16x16xf32, #tpu.memory_space<vmem>>, vector<1x16x16xf32>
    %17 = vector.shape_cast %16 : vector<1x16x16xf32> to vector<16x16xf32>
    %18 = vector.extract_strided_slice %1 {offsets = [0, 3], sizes = [16, 8], strides = [1, 1]} : vector<16x14xf32> to vector<16x8xf32>
    %cst_13 = arith.constant dense<0.000000e+00> : vector<16x8xf32>
    %19 = tpu.matmul %17, %18, %cst_13 {dimension_numbers = #tpu.dot_dimension_numbers<[1], [0], [0], [1], [0, 0, 1, 1], [], []>} : vector<16x16xf32>, vector<16x8xf32>, vector<16x8xf32> -> vector<16x8xf32>
    %20 = arith.addf %15, %19 : vector<16x8xf32>
    %c2 = arith.constant 2 : index
    %c0_14 = arith.constant 0 : index
    %c0_15 = arith.constant 0 : index
    %21 = vector.load %arg1[%c2, %c0_14, %c0_15] : memref<3x16x16xf32, #tpu.memory_space<vmem>>, vector<1x16x16xf32>
    %22 = vector.shape_cast %21 : vector<1x16x16xf32> to vector<16x16xf32>
    %23 = vector.extract_strided_slice %1 {offsets = [0, 4], sizes = [16, 8], strides = [1, 1]} : vector<16x14xf32> to vector<16x8xf32>
    %cst_16 = arith.constant dense<0.000000e+00> : vector<16x8xf32>
    %24 = tpu.matmul %22, %23, %cst_16 {dimension_numbers = #tpu.dot_dimension_numbers<[1], [0], [0], [1], [0, 0, 1, 1], [], []>} : vector<16x16xf32>, vector<16x8xf32>, vector<16x8xf32> -> vector<16x8xf32>
    %25 = arith.addf %20, %24 : vector<16x8xf32>
    %c0_17 = arith.constant 0 : index
    %c0_18 = arith.constant 0 : index
    %26 = vector.load %arg7[%c0_17, %c0_18] : memref<16x48xf32, #tpu.memory_space<vmem>>, vector<16x16xf32>
    %cst_19 = arith.constant dense<0.000000e+00> : vector<16x8xf32>
    %27 = tpu.matmul %26, %25, %cst_19 {dimension_numbers = #tpu.dot_dimension_numbers<[1], [0], [0], [1], [0, 0, 1, 1], [], []>} : vector<16x16xf32>, vector<16x8xf32>, vector<16x8xf32> -> vector<16x8xf32>
    %28 = arith.addf %6, %27 : vector<16x8xf32>
    %cst_20 = arith.constant 0.000000e+00 : f32
    %29 = vector.broadcast %cst_20 : f32 to vector<16x8xf32>
    %c0_21 = arith.constant 0 : index
    %c0_22 = arith.constant 0 : index
    %30 = vector.load %arg4[%c0_21, %c0_22] : memref<16x1xf32, #tpu.memory_space<vmem>>, vector<16x1xf32>
    %31 = vector.broadcast %30 : vector<16x1xf32> to vector<16x8xf32>
    %32 = arith.addf %29, %31 : vector<16x8xf32>
    %c0_23 = arith.constant 0 : index
    %c0_24 = arith.constant 0 : index
    %c0_25 = arith.constant 0 : index
    %33 = vector.load %arg3[%c0_23, %c0_24, %c0_25] : memref<5x16x16xf32, #tpu.memory_space<vmem>>, vector<1x16x16xf32>
    %34 = vector.shape_cast %33 : vector<1x16x16xf32> to vector<16x16xf32>
    %35 = vector.extract_strided_slice %1 {offsets = [0, 1], sizes = [16, 8], strides = [1, 1]} : vector<16x14xf32> to vector<16x8xf32>
    %cst_26 = arith.constant dense<0.000000e+00> : vector<16x8xf32>
    %36 = tpu.matmul %34, %35, %cst_26 {dimension_numbers = #tpu.dot_dimension_numbers<[1], [0], [0], [1], [0, 0, 1, 1], [], []>} : vector<16x16xf32>, vector<16x8xf32>, vector<16x8xf32> -> vector<16x8xf32>
    %37 = arith.addf %32, %36 : vector<16x8xf32>
    %c1_27 = arith.constant 1 : index
    %c0_28 = arith.constant 0 : index
    %c0_29 = arith.constant 0 : index
    %38 = vector.load %arg3[%c1_27, %c0_28, %c0_29] : memref<5x16x16xf32, #tpu.memory_space<vmem>>, vector<1x16x16xf32>
    %39 = vector.shape_cast %38 : vector<1x16x16xf32> to vector<16x16xf32>
    %40 = vector.extract_strided_slice %1 {offsets = [0, 2], sizes = [16, 8], strides = [1, 1]} : vector<16x14xf32> to vector<16x8xf32>
    %cst_30 = arith.constant dense<0.000000e+00> : vector<16x8xf32>
    %41 = tpu.matmul %39, %40, %cst_30 {dimension_numbers = #tpu.dot_dimension_numbers<[1], [0], [0], [1], [0, 0, 1, 1], [], []>} : vector<16x16xf32>, vector<16x8xf32>, vector<16x8xf32> -> vector<16x8xf32>
    %42 = arith.addf %37, %41 : vector<16x8xf32>
    %c2_31 = arith.constant 2 : index
    %c0_32 = arith.constant 0 : index
    %c0_33 = arith.constant 0 : index
    %43 = vector.load %arg3[%c2_31, %c0_32, %c0_33] : memref<5x16x16xf32, #tpu.memory_space<vmem>>, vector<1x16x16xf32>
    %44 = vector.shape_cast %43 : vector<1x16x16xf32> to vector<16x16xf32>
    %45 = vector.extract_strided_slice %1 {offsets = [0, 3], sizes = [16, 8], strides = [1, 1]} : vector<16x14xf32> to vector<16x8xf32>
    %cst_34 = arith.constant dense<0.000000e+00> : vector<16x8xf32>
    %46 = tpu.matmul %44, %45, %cst_34 {dimension_numbers = #tpu.dot_dimension_numbers<[1], [0], [0], [1], [0, 0, 1, 1], [], []>} : vector<16x16xf32>, vector<16x8xf32>, vector<16x8xf32> -> vector<16x8xf32>
    %47 = arith.addf %42, %46 : vector<16x8xf32>
    %c3 = arith.constant 3 : index
    %c0_35 = arith.constant 0 : index
    %c0_36 = arith.constant 0 : index
    %48 = vector.load %arg3[%c3, %c0_35, %c0_36] : memref<5x16x16xf32, #tpu.memory_space<vmem>>, vector<1x16x16xf32>
    %49 = vector.shape_cast %48 : vector<1x16x16xf32> to vector<16x16xf32>
    %50 = vector.extract_strided_slice %1 {offsets = [0, 4], sizes = [16, 8], strides = [1, 1]} : vector<16x14xf32> to vector<16x8xf32>
    %cst_37 = arith.constant dense<0.000000e+00> : vector<16x8xf32>
    %51 = tpu.matmul %49, %50, %cst_37 {dimension_numbers = #tpu.dot_dimension_numbers<[1], [0], [0], [1], [0, 0, 1, 1], [], []>} : vector<16x16xf32>, vector<16x8xf32>, vector<16x8xf32> -> vector<16x8xf32>
    %52 = arith.addf %47, %51 : vector<16x8xf32>
    %c4 = arith.constant 4 : index
    %c0_38 = arith.constant 0 : index
    %c0_39 = arith.constant 0 : index
    %53 = vector.load %arg3[%c4, %c0_38, %c0_39] : memref<5x16x16xf32, #tpu.memory_space<vmem>>, vector<1x16x16xf32>
    %54 = vector.shape_cast %53 : vector<1x16x16xf32> to vector<16x16xf32>
    %55 = vector.extract_strided_slice %1 {offsets = [0, 5], sizes = [16, 8], strides = [1, 1]} : vector<16x14xf32> to vector<16x8xf32>
    %cst_40 = arith.constant dense<0.000000e+00> : vector<16x8xf32>
    %56 = tpu.matmul %54, %55, %cst_40 {dimension_numbers = #tpu.dot_dimension_numbers<[1], [0], [0], [1], [0, 0, 1, 1], [], []>} : vector<16x16xf32>, vector<16x8xf32>, vector<16x8xf32> -> vector<16x8xf32>
    %57 = arith.addf %52, %56 : vector<16x8xf32>
    %c0_41 = arith.constant 0 : index
    %c16 = arith.constant 16 : index
    %58 = vector.load %arg7[%c0_41, %c16] : memref<16x48xf32, #tpu.memory_space<vmem>>, vector<16x16xf32>
    %cst_42 = arith.constant dense<0.000000e+00> : vector<16x8xf32>
    %59 = tpu.matmul %58, %57, %cst_42 {dimension_numbers = #tpu.dot_dimension_numbers<[1], [0], [0], [1], [0, 0, 1, 1], [], []>} : vector<16x16xf32>, vector<16x8xf32>, vector<16x8xf32> -> vector<16x8xf32>
    %60 = arith.addf %28, %59 : vector<16x8xf32>
    %cst_43 = arith.constant 0.000000e+00 : f32
    %61 = vector.broadcast %cst_43 : f32 to vector<16x8xf32>
    %c0_44 = arith.constant 0 : index
    %c0_45 = arith.constant 0 : index
    %62 = vector.load %arg6[%c0_44, %c0_45] : memref<16x1xf32, #tpu.memory_space<vmem>>, vector<16x1xf32>
    %63 = vector.broadcast %62 : vector<16x1xf32> to vector<16x8xf32>
    %64 = arith.addf %61, %63 : vector<16x8xf32>
    %c0_46 = arith.constant 0 : index
    %c0_47 = arith.constant 0 : index
    %c0_48 = arith.constant 0 : index
    %65 = vector.load %arg5[%c0_46, %c0_47, %c0_48] : memref<7x16x16xf32, #tpu.memory_space<vmem>>, vector<1x16x16xf32>
    %66 = vector.shape_cast %65 : vector<1x16x16xf32> to vector<16x16xf32>
    %67 = vector.extract_strided_slice %1 {offsets = [0, 0], sizes = [16, 8], strides = [1, 1]} : vector<16x14xf32> to vector<16x8xf32>
    %cst_49 = arith.constant dense<0.000000e+00> : vector<16x8xf32>
    %68 = tpu.matmul %66, %67, %cst_49 {dimension_numbers = #tpu.dot_dimension_numbers<[1], [0], [0], [1], [0, 0, 1, 1], [], []>} : vector<16x16xf32>, vector<16x8xf32>, vector<16x8xf32> -> vector<16x8xf32>
    %69 = arith.addf %64, %68 : vector<16x8xf32>
    %c1_50 = arith.constant 1 : index
    %c0_51 = arith.constant 0 : index
    %c0_52 = arith.constant 0 : index
    %70 = vector.load %arg5[%c1_50, %c0_51, %c0_52] : memref<7x16x16xf32, #tpu.memory_space<vmem>>, vector<1x16x16xf32>
    %71 = vector.shape_cast %70 : vector<1x16x16xf32> to vector<16x16xf32>
    %72 = vector.extract_strided_slice %1 {offsets = [0, 1], sizes = [16, 8], strides = [1, 1]} : vector<16x14xf32> to vector<16x8xf32>
    %cst_53 = arith.constant dense<0.000000e+00> : vector<16x8xf32>
    %73 = tpu.matmul %71, %72, %cst_53 {dimension_numbers = #tpu.dot_dimension_numbers<[1], [0], [0], [1], [0, 0, 1, 1], [], []>} : vector<16x16xf32>, vector<16x8xf32>, vector<16x8xf32> -> vector<16x8xf32>
    %74 = arith.addf %69, %73 : vector<16x8xf32>
    %c2_54 = arith.constant 2 : index
    %c0_55 = arith.constant 0 : index
    %c0_56 = arith.constant 0 : index
    %75 = vector.load %arg5[%c2_54, %c0_55, %c0_56] : memref<7x16x16xf32, #tpu.memory_space<vmem>>, vector<1x16x16xf32>
    %76 = vector.shape_cast %75 : vector<1x16x16xf32> to vector<16x16xf32>
    %77 = vector.extract_strided_slice %1 {offsets = [0, 2], sizes = [16, 8], strides = [1, 1]} : vector<16x14xf32> to vector<16x8xf32>
    %cst_57 = arith.constant dense<0.000000e+00> : vector<16x8xf32>
    %78 = tpu.matmul %76, %77, %cst_57 {dimension_numbers = #tpu.dot_dimension_numbers<[1], [0], [0], [1], [0, 0, 1, 1], [], []>} : vector<16x16xf32>, vector<16x8xf32>, vector<16x8xf32> -> vector<16x8xf32>
    %79 = arith.addf %74, %78 : vector<16x8xf32>
    %c3_58 = arith.constant 3 : index
    %c0_59 = arith.constant 0 : index
    %c0_60 = arith.constant 0 : index
    %80 = vector.load %arg5[%c3_58, %c0_59, %c0_60] : memref<7x16x16xf32, #tpu.memory_space<vmem>>, vector<1x16x16xf32>
    %81 = vector.shape_cast %80 : vector<1x16x16xf32> to vector<16x16xf32>
    %82 = vector.extract_strided_slice %1 {offsets = [0, 3], sizes = [16, 8], strides = [1, 1]} : vector<16x14xf32> to vector<16x8xf32>
    %cst_61 = arith.constant dense<0.000000e+00> : vector<16x8xf32>
    %83 = tpu.matmul %81, %82, %cst_61 {dimension_numbers = #tpu.dot_dimension_numbers<[1], [0], [0], [1], [0, 0, 1, 1], [], []>} : vector<16x16xf32>, vector<16x8xf32>, vector<16x8xf32> -> vector<16x8xf32>
    %84 = arith.addf %79, %83 : vector<16x8xf32>
    %c4_62 = arith.constant 4 : index
    %c0_63 = arith.constant 0 : index
    %c0_64 = arith.constant 0 : index
    %85 = vector.load %arg5[%c4_62, %c0_63, %c0_64] : memref<7x16x16xf32, #tpu.memory_space<vmem>>, vector<1x16x16xf32>
    %86 = vector.shape_cast %85 : vector<1x16x16xf32> to vector<16x16xf32>
    %87 = vector.extract_strided_slice %1 {offsets = [0, 4], sizes = [16, 8], strides = [1, 1]} : vector<16x14xf32> to vector<16x8xf32>
    %cst_65 = arith.constant dense<0.000000e+00> : vector<16x8xf32>
    %88 = tpu.matmul %86, %87, %cst_65 {dimension_numbers = #tpu.dot_dimension_numbers<[1], [0], [0], [1], [0, 0, 1, 1], [], []>} : vector<16x16xf32>, vector<16x8xf32>, vector<16x8xf32> -> vector<16x8xf32>
    %89 = arith.addf %84, %88 : vector<16x8xf32>
    %c5 = arith.constant 5 : index
    %c0_66 = arith.constant 0 : index
    %c0_67 = arith.constant 0 : index
    %90 = vector.load %arg5[%c5, %c0_66, %c0_67] : memref<7x16x16xf32, #tpu.memory_space<vmem>>, vector<1x16x16xf32>
    %91 = vector.shape_cast %90 : vector<1x16x16xf32> to vector<16x16xf32>
    %92 = vector.extract_strided_slice %1 {offsets = [0, 5], sizes = [16, 8], strides = [1, 1]} : vector<16x14xf32> to vector<16x8xf32>
    %cst_68 = arith.constant dense<0.000000e+00> : vector<16x8xf32>
    %93 = tpu.matmul %91, %92, %cst_68 {dimension_numbers = #tpu.dot_dimension_numbers<[1], [0], [0], [1], [0, 0, 1, 1], [], []>} : vector<16x16xf32>, vector<16x8xf32>, vector<16x8xf32> -> vector<16x8xf32>
    %94 = arith.addf %89, %93 : vector<16x8xf32>
    %c6 = arith.constant 6 : index
    %c0_69 = arith.constant 0 : index
    %c0_70 = arith.constant 0 : index
    %95 = vector.load %arg5[%c6, %c0_69, %c0_70] : memref<7x16x16xf32, #tpu.memory_space<vmem>>, vector<1x16x16xf32>
    %96 = vector.shape_cast %95 : vector<1x16x16xf32> to vector<16x16xf32>
    %97 = vector.extract_strided_slice %1 {offsets = [0, 6], sizes = [16, 8], strides = [1, 1]} : vector<16x14xf32> to vector<16x8xf32>
    %cst_71 = arith.constant dense<0.000000e+00> : vector<16x8xf32>
    %98 = tpu.matmul %96, %97, %cst_71 {dimension_numbers = #tpu.dot_dimension_numbers<[1], [0], [0], [1], [0, 0, 1, 1], [], []>} : vector<16x16xf32>, vector<16x8xf32>, vector<16x8xf32> -> vector<16x8xf32>
    %99 = arith.addf %94, %98 : vector<16x8xf32>
    %c0_72 = arith.constant 0 : index
    %c32 = arith.constant 32 : index
    %100 = vector.load %arg7[%c0_72, %c32] : memref<16x48xf32, #tpu.memory_space<vmem>>, vector<16x16xf32>
    %cst_73 = arith.constant dense<0.000000e+00> : vector<16x8xf32>
    %101 = tpu.matmul %100, %99, %cst_73 {dimension_numbers = #tpu.dot_dimension_numbers<[1], [0], [0], [1], [0, 0, 1, 1], [], []>} : vector<16x16xf32>, vector<16x8xf32>, vector<16x8xf32> -> vector<16x8xf32>
    %102 = arith.addf %60, %101 : vector<16x8xf32>
    %c1_74 = arith.constant 1 : index
    %c0_75 = arith.constant 0 : index
    %c0_76 = arith.constant 0 : index
    %103 = vector.load %arg0[%c1_74, %c0_75, %c0_76] : memref<2x16x14xf32, #tpu.memory_space<vmem>>, vector<1x16x14xf32>
    %104 = vector.shape_cast %103 : vector<1x16x14xf32> to vector<16x14xf32>
    %105 = vector.extract_strided_slice %104 {offsets = [0, 3], sizes = [16, 8], strides = [1, 1]} : vector<16x14xf32> to vector<16x8xf32>
    %cst_77 = arith.constant 0.000000e+00 : f32
    %106 = vector.broadcast %cst_77 : f32 to vector<16x8xf32>
    %c0_78 = arith.constant 0 : index
    %c0_79 = arith.constant 0 : index
    %107 = vector.load %arg8[%c0_78, %c0_79] : memref<16x1xf32, #tpu.memory_space<vmem>>, vector<16x1xf32>
    %108 = vector.broadcast %107 : vector<16x1xf32> to vector<16x8xf32>
    %109 = arith.addf %106, %108 : vector<16x8xf32>
    %cst_80 = arith.constant 0.000000e+00 : f32
    %110 = vector.broadcast %cst_80 : f32 to vector<16x8xf32>
    %c0_81 = arith.constant 0 : index
    %c0_82 = arith.constant 0 : index
    %111 = vector.load %arg2[%c0_81, %c0_82] : memref<16x1xf32, #tpu.memory_space<vmem>>, vector<16x1xf32>
    %112 = vector.broadcast %111 : vector<16x1xf32> to vector<16x8xf32>
    %113 = arith.addf %110, %112 : vector<16x8xf32>
    %c0_83 = arith.constant 0 : index
    %c0_84 = arith.constant 0 : index
    %c0_85 = arith.constant 0 : index
    %114 = vector.load %arg1[%c0_83, %c0_84, %c0_85] : memref<3x16x16xf32, #tpu.memory_space<vmem>>, vector<1x16x16xf32>
    %115 = vector.shape_cast %114 : vector<1x16x16xf32> to vector<16x16xf32>
    %116 = vector.extract_strided_slice %104 {offsets = [0, 2], sizes = [16, 8], strides = [1, 1]} : vector<16x14xf32> to vector<16x8xf32>
    %cst_86 = arith.constant dense<0.000000e+00> : vector<16x8xf32>
    %117 = tpu.matmul %115, %116, %cst_86 {dimension_numbers = #tpu.dot_dimension_numbers<[1], [0], [0], [1], [0, 0, 1, 1], [], []>} : vector<16x16xf32>, vector<16x8xf32>, vector<16x8xf32> -> vector<16x8xf32>
    %118 = arith.addf %113, %117 : vector<16x8xf32>
    %c1_87 = arith.constant 1 : index
    %c0_88 = arith.constant 0 : index
    %c0_89 = arith.constant 0 : index
    %119 = vector.load %arg1[%c1_87, %c0_88, %c0_89] : memref<3x16x16xf32, #tpu.memory_space<vmem>>, vector<1x16x16xf32>
    %120 = vector.shape_cast %119 : vector<1x16x16xf32> to vector<16x16xf32>
    %121 = vector.extract_strided_slice %104 {offsets = [0, 3], sizes = [16, 8], strides = [1, 1]} : vector<16x14xf32> to vector<16x8xf32>
    %cst_90 = arith.constant dense<0.000000e+00> : vector<16x8xf32>
    %122 = tpu.matmul %120, %121, %cst_90 {dimension_numbers = #tpu.dot_dimension_numbers<[1], [0], [0], [1], [0, 0, 1, 1], [], []>} : vector<16x16xf32>, vector<16x8xf32>, vector<16x8xf32> -> vector<16x8xf32>
    %123 = arith.addf %118, %122 : vector<16x8xf32>
    %c2_91 = arith.constant 2 : index
    %c0_92 = arith.constant 0 : index
    %c0_93 = arith.constant 0 : index
    %124 = vector.load %arg1[%c2_91, %c0_92, %c0_93] : memref<3x16x16xf32, #tpu.memory_space<vmem>>, vector<1x16x16xf32>
    %125 = vector.shape_cast %124 : vector<1x16x16xf32> to vector<16x16xf32>
    %126 = vector.extract_strided_slice %104 {offsets = [0, 4], sizes = [16, 8], strides = [1, 1]} : vector<16x14xf32> to vector<16x8xf32>
    %cst_94 = arith.constant dense<0.000000e+00> : vector<16x8xf32>
    %127 = tpu.matmul %125, %126, %cst_94 {dimension_numbers = #tpu.dot_dimension_numbers<[1], [0], [0], [1], [0, 0, 1, 1], [], []>} : vector<16x16xf32>, vector<16x8xf32>, vector<16x8xf32> -> vector<16x8xf32>
    %128 = arith.addf %123, %127 : vector<16x8xf32>
    %c0_95 = arith.constant 0 : index
    %c0_96 = arith.constant 0 : index
    %129 = vector.load %arg7[%c0_95, %c0_96] : memref<16x48xf32, #tpu.memory_space<vmem>>, vector<16x16xf32>
    %cst_97 = arith.constant dense<0.000000e+00> : vector<16x8xf32>
    %130 = tpu.matmul %129, %128, %cst_97 {dimension_numbers = #tpu.dot_dimension_numbers<[1], [0], [0], [1], [0, 0, 1, 1], [], []>} : vector<16x16xf32>, vector<16x8xf32>, vector<16x8xf32> -> vector<16x8xf32>
    %131 = arith.addf %109, %130 : vector<16x8xf32>
    %cst_98 = arith.constant 0.000000e+00 : f32
    %132 = vector.broadcast %cst_98 : f32 to vector<16x8xf32>
    %c0_99 = arith.constant 0 : index
    %c0_100 = arith.constant 0 : index
    %133 = vector.load %arg4[%c0_99, %c0_100] : memref<16x1xf32, #tpu.memory_space<vmem>>, vector<16x1xf32>
    %134 = vector.broadcast %133 : vector<16x1xf32> to vector<16x8xf32>
    %135 = arith.addf %132, %134 : vector<16x8xf32>
    %c0_101 = arith.constant 0 : index
    %c0_102 = arith.constant 0 : index
    %c0_103 = arith.constant 0 : index
    %136 = vector.load %arg3[%c0_101, %c0_102, %c0_103] : memref<5x16x16xf32, #tpu.memory_space<vmem>>, vector<1x16x16xf32>
    %137 = vector.shape_cast %136 : vector<1x16x16xf32> to vector<16x16xf32>
    %138 = vector.extract_strided_slice %104 {offsets = [0, 1], sizes = [16, 8], strides = [1, 1]} : vector<16x14xf32> to vector<16x8xf32>
    %cst_104 = arith.constant dense<0.000000e+00> : vector<16x8xf32>
    %139 = tpu.matmul %137, %138, %cst_104 {dimension_numbers = #tpu.dot_dimension_numbers<[1], [0], [0], [1], [0, 0, 1, 1], [], []>} : vector<16x16xf32>, vector<16x8xf32>, vector<16x8xf32> -> vector<16x8xf32>
    %140 = arith.addf %135, %139 : vector<16x8xf32>
    %c1_105 = arith.constant 1 : index
    %c0_106 = arith.constant 0 : index
    %c0_107 = arith.constant 0 : index
    %141 = vector.load %arg3[%c1_105, %c0_106, %c0_107] : memref<5x16x16xf32, #tpu.memory_space<vmem>>, vector<1x16x16xf32>
    %142 = vector.shape_cast %141 : vector<1x16x16xf32> to vector<16x16xf32>
    %143 = vector.extract_strided_slice %104 {offsets = [0, 2], sizes = [16, 8], strides = [1, 1]} : vector<16x14xf32> to vector<16x8xf32>
    %cst_108 = arith.constant dense<0.000000e+00> : vector<16x8xf32>
    %144 = tpu.matmul %142, %143, %cst_108 {dimension_numbers = #tpu.dot_dimension_numbers<[1], [0], [0], [1], [0, 0, 1, 1], [], []>} : vector<16x16xf32>, vector<16x8xf32>, vector<16x8xf32> -> vector<16x8xf32>
    %145 = arith.addf %140, %144 : vector<16x8xf32>
    %c2_109 = arith.constant 2 : index
    %c0_110 = arith.constant 0 : index
    %c0_111 = arith.constant 0 : index
    %146 = vector.load %arg3[%c2_109, %c0_110, %c0_111] : memref<5x16x16xf32, #tpu.memory_space<vmem>>, vector<1x16x16xf32>
    %147 = vector.shape_cast %146 : vector<1x16x16xf32> to vector<16x16xf32>
    %148 = vector.extract_strided_slice %104 {offsets = [0, 3], sizes = [16, 8], strides = [1, 1]} : vector<16x14xf32> to vector<16x8xf32>
    %cst_112 = arith.constant dense<0.000000e+00> : vector<16x8xf32>
    %149 = tpu.matmul %147, %148, %cst_112 {dimension_numbers = #tpu.dot_dimension_numbers<[1], [0], [0], [1], [0, 0, 1, 1], [], []>} : vector<16x16xf32>, vector<16x8xf32>, vector<16x8xf32> -> vector<16x8xf32>
    %150 = arith.addf %145, %149 : vector<16x8xf32>
    %c3_113 = arith.constant 3 : index
    %c0_114 = arith.constant 0 : index
    %c0_115 = arith.constant 0 : index
    %151 = vector.load %arg3[%c3_113, %c0_114, %c0_115] : memref<5x16x16xf32, #tpu.memory_space<vmem>>, vector<1x16x16xf32>
    %152 = vector.shape_cast %151 : vector<1x16x16xf32> to vector<16x16xf32>
    %153 = vector.extract_strided_slice %104 {offsets = [0, 4], sizes = [16, 8], strides = [1, 1]} : vector<16x14xf32> to vector<16x8xf32>
    %cst_116 = arith.constant dense<0.000000e+00> : vector<16x8xf32>
    %154 = tpu.matmul %152, %153, %cst_116 {dimension_numbers = #tpu.dot_dimension_numbers<[1], [0], [0], [1], [0, 0, 1, 1], [], []>} : vector<16x16xf32>, vector<16x8xf32>, vector<16x8xf32> -> vector<16x8xf32>
    %155 = arith.addf %150, %154 : vector<16x8xf32>
    %c4_117 = arith.constant 4 : index
    %c0_118 = arith.constant 0 : index
    %c0_119 = arith.constant 0 : index
    %156 = vector.load %arg3[%c4_117, %c0_118, %c0_119] : memref<5x16x16xf32, #tpu.memory_space<vmem>>, vector<1x16x16xf32>
    %157 = vector.shape_cast %156 : vector<1x16x16xf32> to vector<16x16xf32>
    %158 = vector.extract_strided_slice %104 {offsets = [0, 5], sizes = [16, 8], strides = [1, 1]} : vector<16x14xf32> to vector<16x8xf32>
    %cst_120 = arith.constant dense<0.000000e+00> : vector<16x8xf32>
    %159 = tpu.matmul %157, %158, %cst_120 {dimension_numbers = #tpu.dot_dimension_numbers<[1], [0], [0], [1], [0, 0, 1, 1], [], []>} : vector<16x16xf32>, vector<16x8xf32>, vector<16x8xf32> -> vector<16x8xf32>
    %160 = arith.addf %155, %159 : vector<16x8xf32>
    %c0_121 = arith.constant 0 : index
    %c16_122 = arith.constant 16 : index
    %161 = vector.load %arg7[%c0_121, %c16_122] : memref<16x48xf32, #tpu.memory_space<vmem>>, vector<16x16xf32>
    %cst_123 = arith.constant dense<0.000000e+00> : vector<16x8xf32>
    %162 = tpu.matmul %161, %160, %cst_123 {dimension_numbers = #tpu.dot_dimension_numbers<[1], [0], [0], [1], [0, 0, 1, 1], [], []>} : vector<16x16xf32>, vector<16x8xf32>, vector<16x8xf32> -> vector<16x8xf32>
    %163 = arith.addf %131, %162 : vector<16x8xf32>
    %cst_124 = arith.constant 0.000000e+00 : f32
    %164 = vector.broadcast %cst_124 : f32 to vector<16x8xf32>
    %c0_125 = arith.constant 0 : index
    %c0_126 = arith.constant 0 : index
    %165 = vector.load %arg6[%c0_125, %c0_126] : memref<16x1xf32, #tpu.memory_space<vmem>>, vector<16x1xf32>
    %166 = vector.broadcast %165 : vector<16x1xf32> to vector<16x8xf32>
    %167 = arith.addf %164, %166 : vector<16x8xf32>
    %c0_127 = arith.constant 0 : index
    %c0_128 = arith.constant 0 : index
    %c0_129 = arith.constant 0 : index
    %168 = vector.load %arg5[%c0_127, %c0_128, %c0_129] : memref<7x16x16xf32, #tpu.memory_space<vmem>>, vector<1x16x16xf32>
    %169 = vector.shape_cast %168 : vector<1x16x16xf32> to vector<16x16xf32>
    %170 = vector.extract_strided_slice %104 {offsets = [0, 0], sizes = [16, 8], strides = [1, 1]} : vector<16x14xf32> to vector<16x8xf32>
    %cst_130 = arith.constant dense<0.000000e+00> : vector<16x8xf32>
    %171 = tpu.matmul %169, %170, %cst_130 {dimension_numbers = #tpu.dot_dimension_numbers<[1], [0], [0], [1], [0, 0, 1, 1], [], []>} : vector<16x16xf32>, vector<16x8xf32>, vector<16x8xf32> -> vector<16x8xf32>
    %172 = arith.addf %167, %171 : vector<16x8xf32>
    %c1_131 = arith.constant 1 : index
    %c0_132 = arith.constant 0 : index
    %c0_133 = arith.constant 0 : index
    %173 = vector.load %arg5[%c1_131, %c0_132, %c0_133] : memref<7x16x16xf32, #tpu.memory_space<vmem>>, vector<1x16x16xf32>
    %174 = vector.shape_cast %173 : vector<1x16x16xf32> to vector<16x16xf32>
    %175 = vector.extract_strided_slice %104 {offsets = [0, 1], sizes = [16, 8], strides = [1, 1]} : vector<16x14xf32> to vector<16x8xf32>
    %cst_134 = arith.constant dense<0.000000e+00> : vector<16x8xf32>
    %176 = tpu.matmul %174, %175, %cst_134 {dimension_numbers = #tpu.dot_dimension_numbers<[1], [0], [0], [1], [0, 0, 1, 1], [], []>} : vector<16x16xf32>, vector<16x8xf32>, vector<16x8xf32> -> vector<16x8xf32>
    %177 = arith.addf %172, %176 : vector<16x8xf32>
    %c2_135 = arith.constant 2 : index
    %c0_136 = arith.constant 0 : index
    %c0_137 = arith.constant 0 : index
    %178 = vector.load %arg5[%c2_135, %c0_136, %c0_137] : memref<7x16x16xf32, #tpu.memory_space<vmem>>, vector<1x16x16xf32>
    %179 = vector.shape_cast %178 : vector<1x16x16xf32> to vector<16x16xf32>
    %180 = vector.extract_strided_slice %104 {offsets = [0, 2], sizes = [16, 8], strides = [1, 1]} : vector<16x14xf32> to vector<16x8xf32>
    %cst_138 = arith.constant dense<0.000000e+00> : vector<16x8xf32>
    %181 = tpu.matmul %179, %180, %cst_138 {dimension_numbers = #tpu.dot_dimension_numbers<[1], [0], [0], [1], [0, 0, 1, 1], [], []>} : vector<16x16xf32>, vector<16x8xf32>, vector<16x8xf32> -> vector<16x8xf32>
    %182 = arith.addf %177, %181 : vector<16x8xf32>
    %c3_139 = arith.constant 3 : index
    %c0_140 = arith.constant 0 : index
    %c0_141 = arith.constant 0 : index
    %183 = vector.load %arg5[%c3_139, %c0_140, %c0_141] : memref<7x16x16xf32, #tpu.memory_space<vmem>>, vector<1x16x16xf32>
    %184 = vector.shape_cast %183 : vector<1x16x16xf32> to vector<16x16xf32>
    %185 = vector.extract_strided_slice %104 {offsets = [0, 3], sizes = [16, 8], strides = [1, 1]} : vector<16x14xf32> to vector<16x8xf32>
    %cst_142 = arith.constant dense<0.000000e+00> : vector<16x8xf32>
    %186 = tpu.matmul %184, %185, %cst_142 {dimension_numbers = #tpu.dot_dimension_numbers<[1], [0], [0], [1], [0, 0, 1, 1], [], []>} : vector<16x16xf32>, vector<16x8xf32>, vector<16x8xf32> -> vector<16x8xf32>
    %187 = arith.addf %182, %186 : vector<16x8xf32>
    %c4_143 = arith.constant 4 : index
    %c0_144 = arith.constant 0 : index
    %c0_145 = arith.constant 0 : index
    %188 = vector.load %arg5[%c4_143, %c0_144, %c0_145] : memref<7x16x16xf32, #tpu.memory_space<vmem>>, vector<1x16x16xf32>
    %189 = vector.shape_cast %188 : vector<1x16x16xf32> to vector<16x16xf32>
    %190 = vector.extract_strided_slice %104 {offsets = [0, 4], sizes = [16, 8], strides = [1, 1]} : vector<16x14xf32> to vector<16x8xf32>
    %cst_146 = arith.constant dense<0.000000e+00> : vector<16x8xf32>
    %191 = tpu.matmul %189, %190, %cst_146 {dimension_numbers = #tpu.dot_dimension_numbers<[1], [0], [0], [1], [0, 0, 1, 1], [], []>} : vector<16x16xf32>, vector<16x8xf32>, vector<16x8xf32> -> vector<16x8xf32>
    %192 = arith.addf %187, %191 : vector<16x8xf32>
    %c5_147 = arith.constant 5 : index
    %c0_148 = arith.constant 0 : index
    %c0_149 = arith.constant 0 : index
    %193 = vector.load %arg5[%c5_147, %c0_148, %c0_149] : memref<7x16x16xf32, #tpu.memory_space<vmem>>, vector<1x16x16xf32>
    %194 = vector.shape_cast %193 : vector<1x16x16xf32> to vector<16x16xf32>
    %195 = vector.extract_strided_slice %104 {offsets = [0, 5], sizes = [16, 8], strides = [1, 1]} : vector<16x14xf32> to vector<16x8xf32>
    %cst_150 = arith.constant dense<0.000000e+00> : vector<16x8xf32>
    %196 = tpu.matmul %194, %195, %cst_150 {dimension_numbers = #tpu.dot_dimension_numbers<[1], [0], [0], [1], [0, 0, 1, 1], [], []>} : vector<16x16xf32>, vector<16x8xf32>, vector<16x8xf32> -> vector<16x8xf32>
    %197 = arith.addf %192, %196 : vector<16x8xf32>
    %c6_151 = arith.constant 6 : index
    %c0_152 = arith.constant 0 : index
    %c0_153 = arith.constant 0 : index
    %198 = vector.load %arg5[%c6_151, %c0_152, %c0_153] : memref<7x16x16xf32, #tpu.memory_space<vmem>>, vector<1x16x16xf32>
    %199 = vector.shape_cast %198 : vector<1x16x16xf32> to vector<16x16xf32>
    %200 = vector.extract_strided_slice %104 {offsets = [0, 6], sizes = [16, 8], strides = [1, 1]} : vector<16x14xf32> to vector<16x8xf32>
    %cst_154 = arith.constant dense<0.000000e+00> : vector<16x8xf32>
    %201 = tpu.matmul %199, %200, %cst_154 {dimension_numbers = #tpu.dot_dimension_numbers<[1], [0], [0], [1], [0, 0, 1, 1], [], []>} : vector<16x16xf32>, vector<16x8xf32>, vector<16x8xf32> -> vector<16x8xf32>
    %202 = arith.addf %197, %201 : vector<16x8xf32>
    %c0_155 = arith.constant 0 : index
    %c32_156 = arith.constant 32 : index
    %203 = vector.load %arg7[%c0_155, %c32_156] : memref<16x48xf32, #tpu.memory_space<vmem>>, vector<16x16xf32>
    %cst_157 = arith.constant dense<0.000000e+00> : vector<16x8xf32>
    %204 = tpu.matmul %203, %202, %cst_157 {dimension_numbers = #tpu.dot_dimension_numbers<[1], [0], [0], [1], [0, 0, 1, 1], [], []>} : vector<16x16xf32>, vector<16x8xf32>, vector<16x8xf32> -> vector<16x8xf32>
    %205 = arith.addf %163, %204 : vector<16x8xf32>
    %cst_158 = arith.constant dense<0.000000e+00> : vector<16xf32>
    %206 = vector.multi_reduction <add>, %102, %cst_158 [1] : vector<16x8xf32> to vector<16xf32>
    %207 = vector.shape_cast %206 : vector<16xf32> to vector<16x1xf32>
    %cst_159 = arith.constant dense<0.000000e+00> : vector<16xf32>
    %208 = vector.multi_reduction <add>, %205, %cst_159 [1] : vector<16x8xf32> to vector<16xf32>
    %209 = vector.shape_cast %208 : vector<16xf32> to vector<16x1xf32>
    %210 = arith.addf %207, %209 : vector<16x1xf32>
    %cst_160 = arith.constant 1.600000e+01 : f32
    %211 = vector.broadcast %cst_160 : f32 to vector<16x1xf32>
    %212 = arith.divf %210, %211 : vector<16x1xf32>
    %213 = vector.broadcast %212 : vector<16x1xf32> to vector<16x8xf32>
    %214 = arith.subf %102, %213 : vector<16x8xf32>
    %215 = arith.mulf %214, %214 : vector<16x8xf32>
    %cst_161 = arith.constant dense<0.000000e+00> : vector<16xf32>
    %216 = vector.multi_reduction <add>, %215, %cst_161 [1] : vector<16x8xf32> to vector<16xf32>
    %217 = vector.shape_cast %216 : vector<16xf32> to vector<16x1xf32>
    %218 = vector.broadcast %212 : vector<16x1xf32> to vector<16x8xf32>
    %219 = arith.subf %205, %218 : vector<16x8xf32>
    %220 = arith.mulf %219, %219 : vector<16x8xf32>
    %cst_162 = arith.constant dense<0.000000e+00> : vector<16xf32>
    %221 = vector.multi_reduction <add>, %220, %cst_162 [1] : vector<16x8xf32> to vector<16xf32>
    %222 = vector.shape_cast %221 : vector<16xf32> to vector<16x1xf32>
    %223 = arith.addf %217, %222 : vector<16x1xf32>
    %cst_163 = arith.constant 1.600000e+01 : f32
    %224 = vector.broadcast %cst_163 : f32 to vector<16x1xf32>
    %225 = arith.divf %223, %224 : vector<16x1xf32>
    %cst_164 = arith.constant 9.99999974E-6 : f32
    %226 = vector.broadcast %cst_164 : f32 to vector<16x1xf32>
    %227 = arith.addf %225, %226 : vector<16x1xf32>
    %228 = math.rsqrt %227 : vector<16x1xf32>
    %c0_165 = arith.constant 0 : index
    %c0_166 = arith.constant 0 : index
    %229 = vector.load %arg9[%c0_165, %c0_166] : memref<16x1xf32, #tpu.memory_space<vmem>>, vector<16x1xf32>
    %230 = vector.broadcast %212 : vector<16x1xf32> to vector<16x8xf32>
    %231 = arith.subf %102, %230 : vector<16x8xf32>
    %232 = vector.broadcast %228 : vector<16x1xf32> to vector<16x8xf32>
    %233 = arith.mulf %231, %232 : vector<16x8xf32>
    %234 = vector.broadcast %229 : vector<16x1xf32> to vector<16x8xf32>
    %235 = arith.mulf %234, %233 : vector<16x8xf32>
    %c0_167 = arith.constant 0 : index
    %c0_168 = arith.constant 0 : index
    %236 = vector.load %arg10[%c0_167, %c0_168] : memref<16x1xf32, #tpu.memory_space<vmem>>, vector<16x1xf32>
    %237 = vector.broadcast %236 : vector<16x1xf32> to vector<16x8xf32>
    %238 = arith.addf %235, %237 : vector<16x8xf32>
    %cst_169 = arith.constant 5.000000e-01 : f32
    %239 = vector.broadcast %cst_169 : f32 to vector<16x8xf32>
    %240 = arith.mulf %239, %238 : vector<16x8xf32>
    %cst_170 = arith.constant 0.707106769 : f32
    %241 = vector.broadcast %cst_170 : f32 to vector<16x8xf32>
    %242 = arith.mulf %238, %241 : vector<16x8xf32>
    %243 = math.absf %242 : vector<16x8xf32>
    %cst_171 = arith.constant 0.327591091 : f32
    %244 = vector.broadcast %cst_171 : f32 to vector<16x8xf32>
    %245 = arith.mulf %244, %243 : vector<16x8xf32>
    %cst_172 = arith.constant 1.000000e+00 : f32
    %246 = vector.broadcast %cst_172 : f32 to vector<16x8xf32>
    %247 = arith.addf %246, %245 : vector<16x8xf32>
    %cst_173 = arith.constant 1.000000e+00 : f32
    %248 = vector.broadcast %cst_173 : f32 to vector<16x8xf32>
    %249 = arith.divf %248, %247 : vector<16x8xf32>
    %cst_174 = arith.constant 1.06140542 : f32
    %250 = vector.broadcast %cst_174 : f32 to vector<16x8xf32>
    %251 = arith.mulf %250, %249 : vector<16x8xf32>
    %cst_175 = arith.constant -1.45315206 : f32
    %252 = vector.broadcast %cst_175 : f32 to vector<16x8xf32>
    %253 = arith.addf %251, %252 : vector<16x8xf32>
    %254 = arith.mulf %253, %249 : vector<16x8xf32>
    %cst_176 = arith.constant 1.42141378 : f32
    %255 = vector.broadcast %cst_176 : f32 to vector<16x8xf32>
    %256 = arith.addf %254, %255 : vector<16x8xf32>
    %257 = arith.mulf %256, %249 : vector<16x8xf32>
    %cst_177 = arith.constant -0.284496725 : f32
    %258 = vector.broadcast %cst_177 : f32 to vector<16x8xf32>
    %259 = arith.addf %257, %258 : vector<16x8xf32>
    %260 = arith.mulf %259, %249 : vector<16x8xf32>
    %cst_178 = arith.constant 0.254829586 : f32
    %261 = vector.broadcast %cst_178 : f32 to vector<16x8xf32>
    %262 = arith.addf %260, %261 : vector<16x8xf32>
    %263 = arith.mulf %262, %249 : vector<16x8xf32>
    %cst_179 = arith.constant 0.000000e+00 : f32
    %264 = vector.broadcast %cst_179 : f32 to vector<16x8xf32>
    %265 = arith.subf %264, %243 : vector<16x8xf32>
    %266 = arith.mulf %265, %243 : vector<16x8xf32>
    %267 = math.exp %266 : vector<16x8xf32>
    %268 = arith.mulf %263, %267 : vector<16x8xf32>
    %cst_180 = arith.constant 1.000000e+00 : f32
    %269 = vector.broadcast %cst_180 : f32 to vector<16x8xf32>
    %270 = arith.subf %269, %268 : vector<16x8xf32>
    %cst_181 = arith.constant 0.000000e+00 : f32
    %271 = vector.broadcast %cst_181 : f32 to vector<16x8xf32>
    %272 = arith.cmpf oge, %242, %271 : vector<16x8xf32>
    %cst_182 = arith.constant 0.000000e+00 : f32
    %273 = vector.broadcast %cst_182 : f32 to vector<16x8xf32>
    %274 = arith.subf %273, %270 : vector<16x8xf32>
    %275 = arith.select %272, %270, %274 : vector<16x8xi1>, vector<16x8xf32>
    %cst_183 = arith.constant 1.000000e+00 : f32
    %276 = vector.broadcast %cst_183 : f32 to vector<16x8xf32>
    %277 = arith.addf %276, %275 : vector<16x8xf32>
    %278 = arith.mulf %240, %277 : vector<16x8xf32>
    %279 = arith.addf %278, %2 : vector<16x8xf32>
    %c0_184 = arith.constant 0 : index
    %c0_185 = arith.constant 0 : index
    %c0_186 = arith.constant 0 : index
    %280 = vector.load %arg11[%c0_184, %c0_185, %c0_186] : memref<2x16x8xf32, #tpu.memory_space<vmem>>, vector<1x16x8xf32>
    %281 = vector.shape_cast %280 : vector<1x16x8xf32> to vector<16x8xf32>
    %282 = vector.shape_cast %279 : vector<16x8xf32> to vector<1x16x8xf32>
    tpu.vector_store %arg11[%c0_184, %c0_185, %c0_186], %282 {strides = array<i32>} : memref<2x16x8xf32, #tpu.memory_space<vmem>>, vector<1x16x8xf32>,
    %c0_187 = arith.constant 0 : index
    %c0_188 = arith.constant 0 : index
    %283 = vector.load %arg9[%c0_187, %c0_188] : memref<16x1xf32, #tpu.memory_space<vmem>>, vector<16x1xf32>
    %284 = vector.broadcast %212 : vector<16x1xf32> to vector<16x8xf32>
    %285 = arith.subf %205, %284 : vector<16x8xf32>
    %286 = vector.broadcast %228 : vector<16x1xf32> to vector<16x8xf32>
    %287 = arith.mulf %285, %286 : vector<16x8xf32>
    %288 = vector.broadcast %283 : vector<16x1xf32> to vector<16x8xf32>
    %289 = arith.mulf %288, %287 : vector<16x8xf32>
    %c0_189 = arith.constant 0 : index
    %c0_190 = arith.constant 0 : index
    %290 = vector.load %arg10[%c0_189, %c0_190] : memref<16x1xf32, #tpu.memory_space<vmem>>, vector<16x1xf32>
    %291 = vector.broadcast %290 : vector<16x1xf32> to vector<16x8xf32>
    %292 = arith.addf %289, %291 : vector<16x8xf32>
    %cst_191 = arith.constant 5.000000e-01 : f32
    %293 = vector.broadcast %cst_191 : f32 to vector<16x8xf32>
    %294 = arith.mulf %293, %292 : vector<16x8xf32>
    %cst_192 = arith.constant 0.707106769 : f32
    %295 = vector.broadcast %cst_192 : f32 to vector<16x8xf32>
    %296 = arith.mulf %292, %295 : vector<16x8xf32>
    %297 = math.absf %296 : vector<16x8xf32>
    %cst_193 = arith.constant 0.327591091 : f32
    %298 = vector.broadcast %cst_193 : f32 to vector<16x8xf32>
    %299 = arith.mulf %298, %297 : vector<16x8xf32>
    %cst_194 = arith.constant 1.000000e+00 : f32
    %300 = vector.broadcast %cst_194 : f32 to vector<16x8xf32>
    %301 = arith.addf %300, %299 : vector<16x8xf32>
    %cst_195 = arith.constant 1.000000e+00 : f32
    %302 = vector.broadcast %cst_195 : f32 to vector<16x8xf32>
    %303 = arith.divf %302, %301 : vector<16x8xf32>
    %cst_196 = arith.constant 1.06140542 : f32
    %304 = vector.broadcast %cst_196 : f32 to vector<16x8xf32>
    %305 = arith.mulf %304, %303 : vector<16x8xf32>
    %cst_197 = arith.constant -1.45315206 : f32
    %306 = vector.broadcast %cst_197 : f32 to vector<16x8xf32>
    %307 = arith.addf %305, %306 : vector<16x8xf32>
    %308 = arith.mulf %307, %303 : vector<16x8xf32>
    %cst_198 = arith.constant 1.42141378 : f32
    %309 = vector.broadcast %cst_198 : f32 to vector<16x8xf32>
    %310 = arith.addf %308, %309 : vector<16x8xf32>
    %311 = arith.mulf %310, %303 : vector<16x8xf32>
    %cst_199 = arith.constant -0.284496725 : f32
    %312 = vector.broadcast %cst_199 : f32 to vector<16x8xf32>
    %313 = arith.addf %311, %312 : vector<16x8xf32>
    %314 = arith.mulf %313, %303 : vector<16x8xf32>
    %cst_200 = arith.constant 0.254829586 : f32
    %315 = vector.broadcast %cst_200 : f32 to vector<16x8xf32>
    %316 = arith.addf %314, %315 : vector<16x8xf32>
    %317 = arith.mulf %316, %303 : vector<16x8xf32>
    %cst_201 = arith.constant 0.000000e+00 : f32
    %318 = vector.broadcast %cst_201 : f32 to vector<16x8xf32>
    %319 = arith.subf %318, %297 : vector<16x8xf32>
    %320 = arith.mulf %319, %297 : vector<16x8xf32>
    %321 = math.exp %320 : vector<16x8xf32>
    %322 = arith.mulf %317, %321 : vector<16x8xf32>
    %cst_202 = arith.constant 1.000000e+00 : f32
    %323 = vector.broadcast %cst_202 : f32 to vector<16x8xf32>
    %324 = arith.subf %323, %322 : vector<16x8xf32>
    %cst_203 = arith.constant 0.000000e+00 : f32
    %325 = vector.broadcast %cst_203 : f32 to vector<16x8xf32>
    %326 = arith.cmpf oge, %296, %325 : vector<16x8xf32>
    %cst_204 = arith.constant 0.000000e+00 : f32
    %327 = vector.broadcast %cst_204 : f32 to vector<16x8xf32>
    %328 = arith.subf %327, %324 : vector<16x8xf32>
    %329 = arith.select %326, %324, %328 : vector<16x8xi1>, vector<16x8xf32>
    %cst_205 = arith.constant 1.000000e+00 : f32
    %330 = vector.broadcast %cst_205 : f32 to vector<16x8xf32>
    %331 = arith.addf %330, %329 : vector<16x8xf32>
    %332 = arith.mulf %294, %331 : vector<16x8xf32>
    %333 = arith.addf %332, %105 : vector<16x8xf32>
    %c1_206 = arith.constant 1 : index
    %c0_207 = arith.constant 0 : index
    %c0_208 = arith.constant 0 : index
    %334 = vector.load %arg11[%c1_206, %c0_207, %c0_208] : memref<2x16x8xf32, #tpu.memory_space<vmem>>, vector<1x16x8xf32>
    %335 = vector.shape_cast %334 : vector<1x16x8xf32> to vector<16x8xf32>
    %336 = vector.shape_cast %333 : vector<16x8xf32> to vector<1x16x8xf32>
    tpu.vector_store %arg11[%c1_206, %c0_207, %c0_208], %336 {strides = array<i32>} : memref<2x16x8xf32, #tpu.memory_space<vmem>>, vector<1x16x8xf32>,
    return
  }
}

module attributes {stable_mosaic.version = 11 : i64} {
  func.func @_down_kernel(%arg0: memref<2x16x4xf32, #tpu.memory_space<vmem>>, %arg1: memref<2x16x4xf32, #tpu.memory_space<vmem>>, %arg2: memref<2x32x16xf32, #tpu.memory_space<vmem>>, %arg3: memref<32x1xf32, #tpu.memory_space<vmem>>, %arg4: memref<2x32x4xf32, #tpu.memory_space<vmem>>) attributes {dimension_semantics = [], scalar_prefetch = 0 : i64, scratch_operands = 0 : i64, tpu.core_type = #tpu.core_type<tc>} {
    %c0 = arith.constant 0 : index
    %c0_0 = arith.constant 0 : index
    %c0_1 = arith.constant 0 : index
    %0 = vector.load %arg2[%c0, %c0_0, %c0_1] : memref<2x32x16xf32, #tpu.memory_space<vmem>>, vector<1x32x16xf32>
    %1 = vector.shape_cast %0 : vector<1x32x16xf32> to vector<32x16xf32>
    %c0_2 = arith.constant 0 : index
    %c0_3 = arith.constant 0 : index
    %c0_4 = arith.constant 0 : index
    %2 = vector.load %arg0[%c0_2, %c0_3, %c0_4] : memref<2x16x4xf32, #tpu.memory_space<vmem>>, vector<1x16x4xf32>
    %3 = vector.shape_cast %2 : vector<1x16x4xf32> to vector<16x4xf32>
    %cst = arith.constant dense<0.000000e+00> : vector<32x4xf32>
    %4 = tpu.matmul %1, %3, %cst {dimension_numbers = #tpu.dot_dimension_numbers<[1], [0], [0], [1], [0, 0, 1, 1], [], []>} : vector<32x16xf32>, vector<16x4xf32>, vector<32x4xf32> -> vector<32x4xf32>
    %c1 = arith.constant 1 : index
    %c0_5 = arith.constant 0 : index
    %c0_6 = arith.constant 0 : index
    %5 = vector.load %arg2[%c1, %c0_5, %c0_6] : memref<2x32x16xf32, #tpu.memory_space<vmem>>, vector<1x32x16xf32>
    %6 = vector.shape_cast %5 : vector<1x32x16xf32> to vector<32x16xf32>
    %c0_7 = arith.constant 0 : index
    %c0_8 = arith.constant 0 : index
    %c0_9 = arith.constant 0 : index
    %7 = vector.load %arg1[%c0_7, %c0_8, %c0_9] : memref<2x16x4xf32, #tpu.memory_space<vmem>>, vector<1x16x4xf32>
    %8 = vector.shape_cast %7 : vector<1x16x4xf32> to vector<16x4xf32>
    %cst_10 = arith.constant dense<0.000000e+00> : vector<32x4xf32>
    %9 = tpu.matmul %6, %8, %cst_10 {dimension_numbers = #tpu.dot_dimension_numbers<[1], [0], [0], [1], [0, 0, 1, 1], [], []>} : vector<32x16xf32>, vector<16x4xf32>, vector<32x4xf32> -> vector<32x4xf32>
    %10 = arith.addf %4, %9 : vector<32x4xf32>
    %c0_11 = arith.constant 0 : index
    %c0_12 = arith.constant 0 : index
    %11 = vector.load %arg3[%c0_11, %c0_12] : memref<32x1xf32, #tpu.memory_space<vmem>>, vector<32x1xf32>
    %12 = vector.broadcast %11 : vector<32x1xf32> to vector<32x4xf32>
    %13 = arith.addf %10, %12 : vector<32x4xf32>
    %c0_13 = arith.constant 0 : index
    %c0_14 = arith.constant 0 : index
    %c0_15 = arith.constant 0 : index
    %14 = vector.load %arg4[%c0_13, %c0_14, %c0_15] : memref<2x32x4xf32, #tpu.memory_space<vmem>>, vector<1x32x4xf32>
    %15 = vector.shape_cast %14 : vector<1x32x4xf32> to vector<32x4xf32>
    %16 = vector.shape_cast %13 : vector<32x4xf32> to vector<1x32x4xf32>
    tpu.vector_store %arg4[%c0_13, %c0_14, %c0_15], %16 {strides = array<i32>} : memref<2x32x4xf32, #tpu.memory_space<vmem>>, vector<1x32x4xf32>,
    %c0_16 = arith.constant 0 : index
    %c0_17 = arith.constant 0 : index
    %c0_18 = arith.constant 0 : index
    %17 = vector.load %arg2[%c0_16, %c0_17, %c0_18] : memref<2x32x16xf32, #tpu.memory_space<vmem>>, vector<1x32x16xf32>
    %18 = vector.shape_cast %17 : vector<1x32x16xf32> to vector<32x16xf32>
    %c1_19 = arith.constant 1 : index
    %c0_20 = arith.constant 0 : index
    %c0_21 = arith.constant 0 : index
    %19 = vector.load %arg0[%c1_19, %c0_20, %c0_21] : memref<2x16x4xf32, #tpu.memory_space<vmem>>, vector<1x16x4xf32>
    %20 = vector.shape_cast %19 : vector<1x16x4xf32> to vector<16x4xf32>
    %cst_22 = arith.constant dense<0.000000e+00> : vector<32x4xf32>
    %21 = tpu.matmul %18, %20, %cst_22 {dimension_numbers = #tpu.dot_dimension_numbers<[1], [0], [0], [1], [0, 0, 1, 1], [], []>} : vector<32x16xf32>, vector<16x4xf32>, vector<32x4xf32> -> vector<32x4xf32>
    %c1_23 = arith.constant 1 : index
    %c0_24 = arith.constant 0 : index
    %c0_25 = arith.constant 0 : index
    %22 = vector.load %arg2[%c1_23, %c0_24, %c0_25] : memref<2x32x16xf32, #tpu.memory_space<vmem>>, vector<1x32x16xf32>
    %23 = vector.shape_cast %22 : vector<1x32x16xf32> to vector<32x16xf32>
    %c1_26 = arith.constant 1 : index
    %c0_27 = arith.constant 0 : index
    %c0_28 = arith.constant 0 : index
    %24 = vector.load %arg1[%c1_26, %c0_27, %c0_28] : memref<2x16x4xf32, #tpu.memory_space<vmem>>, vector<1x16x4xf32>
    %25 = vector.shape_cast %24 : vector<1x16x4xf32> to vector<16x4xf32>
    %cst_29 = arith.constant dense<0.000000e+00> : vector<32x4xf32>
    %26 = tpu.matmul %23, %25, %cst_29 {dimension_numbers = #tpu.dot_dimension_numbers<[1], [0], [0], [1], [0, 0, 1, 1], [], []>} : vector<32x16xf32>, vector<16x4xf32>, vector<32x4xf32> -> vector<32x4xf32>
    %27 = arith.addf %21, %26 : vector<32x4xf32>
    %c0_30 = arith.constant 0 : index
    %c0_31 = arith.constant 0 : index
    %28 = vector.load %arg3[%c0_30, %c0_31] : memref<32x1xf32, #tpu.memory_space<vmem>>, vector<32x1xf32>
    %29 = vector.broadcast %28 : vector<32x1xf32> to vector<32x4xf32>
    %30 = arith.addf %27, %29 : vector<32x4xf32>
    %c1_32 = arith.constant 1 : index
    %c0_33 = arith.constant 0 : index
    %c0_34 = arith.constant 0 : index
    %31 = vector.load %arg4[%c1_32, %c0_33, %c0_34] : memref<2x32x4xf32, #tpu.memory_space<vmem>>, vector<1x32x4xf32>
    %32 = vector.shape_cast %31 : vector<1x32x4xf32> to vector<32x4xf32>
    %33 = vector.shape_cast %30 : vector<32x4xf32> to vector<1x32x4xf32>
    tpu.vector_store %arg4[%c1_32, %c0_33, %c0_34], %33 {strides = array<i32>} : memref<2x32x4xf32, #tpu.memory_space<vmem>>, vector<1x32x4xf32>,
    return
  }
}

module attributes {stable_mosaic.version = 11 : i64} {
  func.func @_wavelet_block_kernel(%arg0: memref<2x32x10xf32, #tpu.memory_space<vmem>>, %arg1: memref<3x32x32xf32, #tpu.memory_space<vmem>>, %arg2: memref<32x1xf32, #tpu.memory_space<vmem>>, %arg3: memref<5x32x32xf32, #tpu.memory_space<vmem>>, %arg4: memref<32x1xf32, #tpu.memory_space<vmem>>, %arg5: memref<7x32x32xf32, #tpu.memory_space<vmem>>, %arg6: memref<32x1xf32, #tpu.memory_space<vmem>>, %arg7: memref<32x96xf32, #tpu.memory_space<vmem>>, %arg8: memref<32x1xf32, #tpu.memory_space<vmem>>, %arg9: memref<32x1xf32, #tpu.memory_space<vmem>>, %arg10: memref<32x1xf32, #tpu.memory_space<vmem>>, %arg11: memref<2x32x4xf32, #tpu.memory_space<vmem>>) attributes {dimension_semantics = [], scalar_prefetch = 0 : i64, scratch_operands = 0 : i64, tpu.core_type = #tpu.core_type<tc>} {
    %c0 = arith.constant 0 : index
    %c0_0 = arith.constant 0 : index
    %c0_1 = arith.constant 0 : index
    %0 = vector.load %arg0[%c0, %c0_0, %c0_1] : memref<2x32x10xf32, #tpu.memory_space<vmem>>, vector<1x32x10xf32>
    %1 = vector.shape_cast %0 : vector<1x32x10xf32> to vector<32x10xf32>
    %2 = vector.extract_strided_slice %1 {offsets = [0, 3], sizes = [32, 4], strides = [1, 1]} : vector<32x10xf32> to vector<32x4xf32>
    %cst = arith.constant 0.000000e+00 : f32
    %3 = vector.broadcast %cst : f32 to vector<32x4xf32>
    %c0_2 = arith.constant 0 : index
    %c0_3 = arith.constant 0 : index
    %4 = vector.load %arg8[%c0_2, %c0_3] : memref<32x1xf32, #tpu.memory_space<vmem>>, vector<32x1xf32>
    %5 = vector.broadcast %4 : vector<32x1xf32> to vector<32x4xf32>
    %6 = arith.addf %3, %5 : vector<32x4xf32>
    %cst_4 = arith.constant 0.000000e+00 : f32
    %7 = vector.broadcast %cst_4 : f32 to vector<32x4xf32>
    %c0_5 = arith.constant 0 : index
    %c0_6 = arith.constant 0 : index
    %8 = vector.load %arg2[%c0_5, %c0_6] : memref<32x1xf32, #tpu.memory_space<vmem>>, vector<32x1xf32>
    %9 = vector.broadcast %8 : vector<32x1xf32> to vector<32x4xf32>
    %10 = arith.addf %7, %9 : vector<32x4xf32>
    %c0_7 = arith.constant 0 : index
    %c0_8 = arith.constant 0 : index
    %c0_9 = arith.constant 0 : index
    %11 = vector.load %arg1[%c0_7, %c0_8, %c0_9] : memref<3x32x32xf32, #tpu.memory_space<vmem>>, vector<1x32x32xf32>
    %12 = vector.shape_cast %11 : vector<1x32x32xf32> to vector<32x32xf32>
    %13 = vector.extract_strided_slice %1 {offsets = [0, 2], sizes = [32, 4], strides = [1, 1]} : vector<32x10xf32> to vector<32x4xf32>
    %cst_10 = arith.constant dense<0.000000e+00> : vector<32x4xf32>
    %14 = tpu.matmul %12, %13, %cst_10 {dimension_numbers = #tpu.dot_dimension_numbers<[1], [0], [0], [1], [0, 0, 1, 1], [], []>} : vector<32x32xf32>, vector<32x4xf32>, vector<32x4xf32> -> vector<32x4xf32>
    %15 = arith.addf %10, %14 : vector<32x4xf32>
    %c1 = arith.constant 1 : index
    %c0_11 = arith.constant 0 : index
    %c0_12 = arith.constant 0 : index
    %16 = vector.load %arg1[%c1, %c0_11, %c0_12] : memref<3x32x32xf32, #tpu.memory_space<vmem>>, vector<1x32x32xf32>
    %17 = vector.shape_cast %16 : vector<1x32x32xf32> to vector<32x32xf32>
    %18 = vector.extract_strided_slice %1 {offsets = [0, 3], sizes = [32, 4], strides = [1, 1]} : vector<32x10xf32> to vector<32x4xf32>
    %cst_13 = arith.constant dense<0.000000e+00> : vector<32x4xf32>
    %19 = tpu.matmul %17, %18, %cst_13 {dimension_numbers = #tpu.dot_dimension_numbers<[1], [0], [0], [1], [0, 0, 1, 1], [], []>} : vector<32x32xf32>, vector<32x4xf32>, vector<32x4xf32> -> vector<32x4xf32>
    %20 = arith.addf %15, %19 : vector<32x4xf32>
    %c2 = arith.constant 2 : index
    %c0_14 = arith.constant 0 : index
    %c0_15 = arith.constant 0 : index
    %21 = vector.load %arg1[%c2, %c0_14, %c0_15] : memref<3x32x32xf32, #tpu.memory_space<vmem>>, vector<1x32x32xf32>
    %22 = vector.shape_cast %21 : vector<1x32x32xf32> to vector<32x32xf32>
    %23 = vector.extract_strided_slice %1 {offsets = [0, 4], sizes = [32, 4], strides = [1, 1]} : vector<32x10xf32> to vector<32x4xf32>
    %cst_16 = arith.constant dense<0.000000e+00> : vector<32x4xf32>
    %24 = tpu.matmul %22, %23, %cst_16 {dimension_numbers = #tpu.dot_dimension_numbers<[1], [0], [0], [1], [0, 0, 1, 1], [], []>} : vector<32x32xf32>, vector<32x4xf32>, vector<32x4xf32> -> vector<32x4xf32>
    %25 = arith.addf %20, %24 : vector<32x4xf32>
    %c0_17 = arith.constant 0 : index
    %c0_18 = arith.constant 0 : index
    %26 = vector.load %arg7[%c0_17, %c0_18] : memref<32x96xf32, #tpu.memory_space<vmem>>, vector<32x32xf32>
    %cst_19 = arith.constant dense<0.000000e+00> : vector<32x4xf32>
    %27 = tpu.matmul %26, %25, %cst_19 {dimension_numbers = #tpu.dot_dimension_numbers<[1], [0], [0], [1], [0, 0, 1, 1], [], []>} : vector<32x32xf32>, vector<32x4xf32>, vector<32x4xf32> -> vector<32x4xf32>
    %28 = arith.addf %6, %27 : vector<32x4xf32>
    %cst_20 = arith.constant 0.000000e+00 : f32
    %29 = vector.broadcast %cst_20 : f32 to vector<32x4xf32>
    %c0_21 = arith.constant 0 : index
    %c0_22 = arith.constant 0 : index
    %30 = vector.load %arg4[%c0_21, %c0_22] : memref<32x1xf32, #tpu.memory_space<vmem>>, vector<32x1xf32>
    %31 = vector.broadcast %30 : vector<32x1xf32> to vector<32x4xf32>
    %32 = arith.addf %29, %31 : vector<32x4xf32>
    %c0_23 = arith.constant 0 : index
    %c0_24 = arith.constant 0 : index
    %c0_25 = arith.constant 0 : index
    %33 = vector.load %arg3[%c0_23, %c0_24, %c0_25] : memref<5x32x32xf32, #tpu.memory_space<vmem>>, vector<1x32x32xf32>
    %34 = vector.shape_cast %33 : vector<1x32x32xf32> to vector<32x32xf32>
    %35 = vector.extract_strided_slice %1 {offsets = [0, 1], sizes = [32, 4], strides = [1, 1]} : vector<32x10xf32> to vector<32x4xf32>
    %cst_26 = arith.constant dense<0.000000e+00> : vector<32x4xf32>
    %36 = tpu.matmul %34, %35, %cst_26 {dimension_numbers = #tpu.dot_dimension_numbers<[1], [0], [0], [1], [0, 0, 1, 1], [], []>} : vector<32x32xf32>, vector<32x4xf32>, vector<32x4xf32> -> vector<32x4xf32>
    %37 = arith.addf %32, %36 : vector<32x4xf32>
    %c1_27 = arith.constant 1 : index
    %c0_28 = arith.constant 0 : index
    %c0_29 = arith.constant 0 : index
    %38 = vector.load %arg3[%c1_27, %c0_28, %c0_29] : memref<5x32x32xf32, #tpu.memory_space<vmem>>, vector<1x32x32xf32>
    %39 = vector.shape_cast %38 : vector<1x32x32xf32> to vector<32x32xf32>
    %40 = vector.extract_strided_slice %1 {offsets = [0, 2], sizes = [32, 4], strides = [1, 1]} : vector<32x10xf32> to vector<32x4xf32>
    %cst_30 = arith.constant dense<0.000000e+00> : vector<32x4xf32>
    %41 = tpu.matmul %39, %40, %cst_30 {dimension_numbers = #tpu.dot_dimension_numbers<[1], [0], [0], [1], [0, 0, 1, 1], [], []>} : vector<32x32xf32>, vector<32x4xf32>, vector<32x4xf32> -> vector<32x4xf32>
    %42 = arith.addf %37, %41 : vector<32x4xf32>
    %c2_31 = arith.constant 2 : index
    %c0_32 = arith.constant 0 : index
    %c0_33 = arith.constant 0 : index
    %43 = vector.load %arg3[%c2_31, %c0_32, %c0_33] : memref<5x32x32xf32, #tpu.memory_space<vmem>>, vector<1x32x32xf32>
    %44 = vector.shape_cast %43 : vector<1x32x32xf32> to vector<32x32xf32>
    %45 = vector.extract_strided_slice %1 {offsets = [0, 3], sizes = [32, 4], strides = [1, 1]} : vector<32x10xf32> to vector<32x4xf32>
    %cst_34 = arith.constant dense<0.000000e+00> : vector<32x4xf32>
    %46 = tpu.matmul %44, %45, %cst_34 {dimension_numbers = #tpu.dot_dimension_numbers<[1], [0], [0], [1], [0, 0, 1, 1], [], []>} : vector<32x32xf32>, vector<32x4xf32>, vector<32x4xf32> -> vector<32x4xf32>
    %47 = arith.addf %42, %46 : vector<32x4xf32>
    %c3 = arith.constant 3 : index
    %c0_35 = arith.constant 0 : index
    %c0_36 = arith.constant 0 : index
    %48 = vector.load %arg3[%c3, %c0_35, %c0_36] : memref<5x32x32xf32, #tpu.memory_space<vmem>>, vector<1x32x32xf32>
    %49 = vector.shape_cast %48 : vector<1x32x32xf32> to vector<32x32xf32>
    %50 = vector.extract_strided_slice %1 {offsets = [0, 4], sizes = [32, 4], strides = [1, 1]} : vector<32x10xf32> to vector<32x4xf32>
    %cst_37 = arith.constant dense<0.000000e+00> : vector<32x4xf32>
    %51 = tpu.matmul %49, %50, %cst_37 {dimension_numbers = #tpu.dot_dimension_numbers<[1], [0], [0], [1], [0, 0, 1, 1], [], []>} : vector<32x32xf32>, vector<32x4xf32>, vector<32x4xf32> -> vector<32x4xf32>
    %52 = arith.addf %47, %51 : vector<32x4xf32>
    %c4 = arith.constant 4 : index
    %c0_38 = arith.constant 0 : index
    %c0_39 = arith.constant 0 : index
    %53 = vector.load %arg3[%c4, %c0_38, %c0_39] : memref<5x32x32xf32, #tpu.memory_space<vmem>>, vector<1x32x32xf32>
    %54 = vector.shape_cast %53 : vector<1x32x32xf32> to vector<32x32xf32>
    %55 = vector.extract_strided_slice %1 {offsets = [0, 5], sizes = [32, 4], strides = [1, 1]} : vector<32x10xf32> to vector<32x4xf32>
    %cst_40 = arith.constant dense<0.000000e+00> : vector<32x4xf32>
    %56 = tpu.matmul %54, %55, %cst_40 {dimension_numbers = #tpu.dot_dimension_numbers<[1], [0], [0], [1], [0, 0, 1, 1], [], []>} : vector<32x32xf32>, vector<32x4xf32>, vector<32x4xf32> -> vector<32x4xf32>
    %57 = arith.addf %52, %56 : vector<32x4xf32>
    %c0_41 = arith.constant 0 : index
    %c32 = arith.constant 32 : index
    %58 = vector.load %arg7[%c0_41, %c32] : memref<32x96xf32, #tpu.memory_space<vmem>>, vector<32x32xf32>
    %cst_42 = arith.constant dense<0.000000e+00> : vector<32x4xf32>
    %59 = tpu.matmul %58, %57, %cst_42 {dimension_numbers = #tpu.dot_dimension_numbers<[1], [0], [0], [1], [0, 0, 1, 1], [], []>} : vector<32x32xf32>, vector<32x4xf32>, vector<32x4xf32> -> vector<32x4xf32>
    %60 = arith.addf %28, %59 : vector<32x4xf32>
    %cst_43 = arith.constant 0.000000e+00 : f32
    %61 = vector.broadcast %cst_43 : f32 to vector<32x4xf32>
    %c0_44 = arith.constant 0 : index
    %c0_45 = arith.constant 0 : index
    %62 = vector.load %arg6[%c0_44, %c0_45] : memref<32x1xf32, #tpu.memory_space<vmem>>, vector<32x1xf32>
    %63 = vector.broadcast %62 : vector<32x1xf32> to vector<32x4xf32>
    %64 = arith.addf %61, %63 : vector<32x4xf32>
    %c0_46 = arith.constant 0 : index
    %c0_47 = arith.constant 0 : index
    %c0_48 = arith.constant 0 : index
    %65 = vector.load %arg5[%c0_46, %c0_47, %c0_48] : memref<7x32x32xf32, #tpu.memory_space<vmem>>, vector<1x32x32xf32>
    %66 = vector.shape_cast %65 : vector<1x32x32xf32> to vector<32x32xf32>
    %67 = vector.extract_strided_slice %1 {offsets = [0, 0], sizes = [32, 4], strides = [1, 1]} : vector<32x10xf32> to vector<32x4xf32>
    %cst_49 = arith.constant dense<0.000000e+00> : vector<32x4xf32>
    %68 = tpu.matmul %66, %67, %cst_49 {dimension_numbers = #tpu.dot_dimension_numbers<[1], [0], [0], [1], [0, 0, 1, 1], [], []>} : vector<32x32xf32>, vector<32x4xf32>, vector<32x4xf32> -> vector<32x4xf32>
    %69 = arith.addf %64, %68 : vector<32x4xf32>
    %c1_50 = arith.constant 1 : index
    %c0_51 = arith.constant 0 : index
    %c0_52 = arith.constant 0 : index
    %70 = vector.load %arg5[%c1_50, %c0_51, %c0_52] : memref<7x32x32xf32, #tpu.memory_space<vmem>>, vector<1x32x32xf32>
    %71 = vector.shape_cast %70 : vector<1x32x32xf32> to vector<32x32xf32>
    %72 = vector.extract_strided_slice %1 {offsets = [0, 1], sizes = [32, 4], strides = [1, 1]} : vector<32x10xf32> to vector<32x4xf32>
    %cst_53 = arith.constant dense<0.000000e+00> : vector<32x4xf32>
    %73 = tpu.matmul %71, %72, %cst_53 {dimension_numbers = #tpu.dot_dimension_numbers<[1], [0], [0], [1], [0, 0, 1, 1], [], []>} : vector<32x32xf32>, vector<32x4xf32>, vector<32x4xf32> -> vector<32x4xf32>
    %74 = arith.addf %69, %73 : vector<32x4xf32>
    %c2_54 = arith.constant 2 : index
    %c0_55 = arith.constant 0 : index
    %c0_56 = arith.constant 0 : index
    %75 = vector.load %arg5[%c2_54, %c0_55, %c0_56] : memref<7x32x32xf32, #tpu.memory_space<vmem>>, vector<1x32x32xf32>
    %76 = vector.shape_cast %75 : vector<1x32x32xf32> to vector<32x32xf32>
    %77 = vector.extract_strided_slice %1 {offsets = [0, 2], sizes = [32, 4], strides = [1, 1]} : vector<32x10xf32> to vector<32x4xf32>
    %cst_57 = arith.constant dense<0.000000e+00> : vector<32x4xf32>
    %78 = tpu.matmul %76, %77, %cst_57 {dimension_numbers = #tpu.dot_dimension_numbers<[1], [0], [0], [1], [0, 0, 1, 1], [], []>} : vector<32x32xf32>, vector<32x4xf32>, vector<32x4xf32> -> vector<32x4xf32>
    %79 = arith.addf %74, %78 : vector<32x4xf32>
    %c3_58 = arith.constant 3 : index
    %c0_59 = arith.constant 0 : index
    %c0_60 = arith.constant 0 : index
    %80 = vector.load %arg5[%c3_58, %c0_59, %c0_60] : memref<7x32x32xf32, #tpu.memory_space<vmem>>, vector<1x32x32xf32>
    %81 = vector.shape_cast %80 : vector<1x32x32xf32> to vector<32x32xf32>
    %82 = vector.extract_strided_slice %1 {offsets = [0, 3], sizes = [32, 4], strides = [1, 1]} : vector<32x10xf32> to vector<32x4xf32>
    %cst_61 = arith.constant dense<0.000000e+00> : vector<32x4xf32>
    %83 = tpu.matmul %81, %82, %cst_61 {dimension_numbers = #tpu.dot_dimension_numbers<[1], [0], [0], [1], [0, 0, 1, 1], [], []>} : vector<32x32xf32>, vector<32x4xf32>, vector<32x4xf32> -> vector<32x4xf32>
    %84 = arith.addf %79, %83 : vector<32x4xf32>
    %c4_62 = arith.constant 4 : index
    %c0_63 = arith.constant 0 : index
    %c0_64 = arith.constant 0 : index
    %85 = vector.load %arg5[%c4_62, %c0_63, %c0_64] : memref<7x32x32xf32, #tpu.memory_space<vmem>>, vector<1x32x32xf32>
    %86 = vector.shape_cast %85 : vector<1x32x32xf32> to vector<32x32xf32>
    %87 = vector.extract_strided_slice %1 {offsets = [0, 4], sizes = [32, 4], strides = [1, 1]} : vector<32x10xf32> to vector<32x4xf32>
    %cst_65 = arith.constant dense<0.000000e+00> : vector<32x4xf32>
    %88 = tpu.matmul %86, %87, %cst_65 {dimension_numbers = #tpu.dot_dimension_numbers<[1], [0], [0], [1], [0, 0, 1, 1], [], []>} : vector<32x32xf32>, vector<32x4xf32>, vector<32x4xf32> -> vector<32x4xf32>
    %89 = arith.addf %84, %88 : vector<32x4xf32>
    %c5 = arith.constant 5 : index
    %c0_66 = arith.constant 0 : index
    %c0_67 = arith.constant 0 : index
    %90 = vector.load %arg5[%c5, %c0_66, %c0_67] : memref<7x32x32xf32, #tpu.memory_space<vmem>>, vector<1x32x32xf32>
    %91 = vector.shape_cast %90 : vector<1x32x32xf32> to vector<32x32xf32>
    %92 = vector.extract_strided_slice %1 {offsets = [0, 5], sizes = [32, 4], strides = [1, 1]} : vector<32x10xf32> to vector<32x4xf32>
    %cst_68 = arith.constant dense<0.000000e+00> : vector<32x4xf32>
    %93 = tpu.matmul %91, %92, %cst_68 {dimension_numbers = #tpu.dot_dimension_numbers<[1], [0], [0], [1], [0, 0, 1, 1], [], []>} : vector<32x32xf32>, vector<32x4xf32>, vector<32x4xf32> -> vector<32x4xf32>
    %94 = arith.addf %89, %93 : vector<32x4xf32>
    %c6 = arith.constant 6 : index
    %c0_69 = arith.constant 0 : index
    %c0_70 = arith.constant 0 : index
    %95 = vector.load %arg5[%c6, %c0_69, %c0_70] : memref<7x32x32xf32, #tpu.memory_space<vmem>>, vector<1x32x32xf32>
    %96 = vector.shape_cast %95 : vector<1x32x32xf32> to vector<32x32xf32>
    %97 = vector.extract_strided_slice %1 {offsets = [0, 6], sizes = [32, 4], strides = [1, 1]} : vector<32x10xf32> to vector<32x4xf32>
    %cst_71 = arith.constant dense<0.000000e+00> : vector<32x4xf32>
    %98 = tpu.matmul %96, %97, %cst_71 {dimension_numbers = #tpu.dot_dimension_numbers<[1], [0], [0], [1], [0, 0, 1, 1], [], []>} : vector<32x32xf32>, vector<32x4xf32>, vector<32x4xf32> -> vector<32x4xf32>
    %99 = arith.addf %94, %98 : vector<32x4xf32>
    %c0_72 = arith.constant 0 : index
    %c64 = arith.constant 64 : index
    %100 = vector.load %arg7[%c0_72, %c64] : memref<32x96xf32, #tpu.memory_space<vmem>>, vector<32x32xf32>
    %cst_73 = arith.constant dense<0.000000e+00> : vector<32x4xf32>
    %101 = tpu.matmul %100, %99, %cst_73 {dimension_numbers = #tpu.dot_dimension_numbers<[1], [0], [0], [1], [0, 0, 1, 1], [], []>} : vector<32x32xf32>, vector<32x4xf32>, vector<32x4xf32> -> vector<32x4xf32>
    %102 = arith.addf %60, %101 : vector<32x4xf32>
    %c1_74 = arith.constant 1 : index
    %c0_75 = arith.constant 0 : index
    %c0_76 = arith.constant 0 : index
    %103 = vector.load %arg0[%c1_74, %c0_75, %c0_76] : memref<2x32x10xf32, #tpu.memory_space<vmem>>, vector<1x32x10xf32>
    %104 = vector.shape_cast %103 : vector<1x32x10xf32> to vector<32x10xf32>
    %105 = vector.extract_strided_slice %104 {offsets = [0, 3], sizes = [32, 4], strides = [1, 1]} : vector<32x10xf32> to vector<32x4xf32>
    %cst_77 = arith.constant 0.000000e+00 : f32
    %106 = vector.broadcast %cst_77 : f32 to vector<32x4xf32>
    %c0_78 = arith.constant 0 : index
    %c0_79 = arith.constant 0 : index
    %107 = vector.load %arg8[%c0_78, %c0_79] : memref<32x1xf32, #tpu.memory_space<vmem>>, vector<32x1xf32>
    %108 = vector.broadcast %107 : vector<32x1xf32> to vector<32x4xf32>
    %109 = arith.addf %106, %108 : vector<32x4xf32>
    %cst_80 = arith.constant 0.000000e+00 : f32
    %110 = vector.broadcast %cst_80 : f32 to vector<32x4xf32>
    %c0_81 = arith.constant 0 : index
    %c0_82 = arith.constant 0 : index
    %111 = vector.load %arg2[%c0_81, %c0_82] : memref<32x1xf32, #tpu.memory_space<vmem>>, vector<32x1xf32>
    %112 = vector.broadcast %111 : vector<32x1xf32> to vector<32x4xf32>
    %113 = arith.addf %110, %112 : vector<32x4xf32>
    %c0_83 = arith.constant 0 : index
    %c0_84 = arith.constant 0 : index
    %c0_85 = arith.constant 0 : index
    %114 = vector.load %arg1[%c0_83, %c0_84, %c0_85] : memref<3x32x32xf32, #tpu.memory_space<vmem>>, vector<1x32x32xf32>
    %115 = vector.shape_cast %114 : vector<1x32x32xf32> to vector<32x32xf32>
    %116 = vector.extract_strided_slice %104 {offsets = [0, 2], sizes = [32, 4], strides = [1, 1]} : vector<32x10xf32> to vector<32x4xf32>
    %cst_86 = arith.constant dense<0.000000e+00> : vector<32x4xf32>
    %117 = tpu.matmul %115, %116, %cst_86 {dimension_numbers = #tpu.dot_dimension_numbers<[1], [0], [0], [1], [0, 0, 1, 1], [], []>} : vector<32x32xf32>, vector<32x4xf32>, vector<32x4xf32> -> vector<32x4xf32>
    %118 = arith.addf %113, %117 : vector<32x4xf32>
    %c1_87 = arith.constant 1 : index
    %c0_88 = arith.constant 0 : index
    %c0_89 = arith.constant 0 : index
    %119 = vector.load %arg1[%c1_87, %c0_88, %c0_89] : memref<3x32x32xf32, #tpu.memory_space<vmem>>, vector<1x32x32xf32>
    %120 = vector.shape_cast %119 : vector<1x32x32xf32> to vector<32x32xf32>
    %121 = vector.extract_strided_slice %104 {offsets = [0, 3], sizes = [32, 4], strides = [1, 1]} : vector<32x10xf32> to vector<32x4xf32>
    %cst_90 = arith.constant dense<0.000000e+00> : vector<32x4xf32>
    %122 = tpu.matmul %120, %121, %cst_90 {dimension_numbers = #tpu.dot_dimension_numbers<[1], [0], [0], [1], [0, 0, 1, 1], [], []>} : vector<32x32xf32>, vector<32x4xf32>, vector<32x4xf32> -> vector<32x4xf32>
    %123 = arith.addf %118, %122 : vector<32x4xf32>
    %c2_91 = arith.constant 2 : index
    %c0_92 = arith.constant 0 : index
    %c0_93 = arith.constant 0 : index
    %124 = vector.load %arg1[%c2_91, %c0_92, %c0_93] : memref<3x32x32xf32, #tpu.memory_space<vmem>>, vector<1x32x32xf32>
    %125 = vector.shape_cast %124 : vector<1x32x32xf32> to vector<32x32xf32>
    %126 = vector.extract_strided_slice %104 {offsets = [0, 4], sizes = [32, 4], strides = [1, 1]} : vector<32x10xf32> to vector<32x4xf32>
    %cst_94 = arith.constant dense<0.000000e+00> : vector<32x4xf32>
    %127 = tpu.matmul %125, %126, %cst_94 {dimension_numbers = #tpu.dot_dimension_numbers<[1], [0], [0], [1], [0, 0, 1, 1], [], []>} : vector<32x32xf32>, vector<32x4xf32>, vector<32x4xf32> -> vector<32x4xf32>
    %128 = arith.addf %123, %127 : vector<32x4xf32>
    %c0_95 = arith.constant 0 : index
    %c0_96 = arith.constant 0 : index
    %129 = vector.load %arg7[%c0_95, %c0_96] : memref<32x96xf32, #tpu.memory_space<vmem>>, vector<32x32xf32>
    %cst_97 = arith.constant dense<0.000000e+00> : vector<32x4xf32>
    %130 = tpu.matmul %129, %128, %cst_97 {dimension_numbers = #tpu.dot_dimension_numbers<[1], [0], [0], [1], [0, 0, 1, 1], [], []>} : vector<32x32xf32>, vector<32x4xf32>, vector<32x4xf32> -> vector<32x4xf32>
    %131 = arith.addf %109, %130 : vector<32x4xf32>
    %cst_98 = arith.constant 0.000000e+00 : f32
    %132 = vector.broadcast %cst_98 : f32 to vector<32x4xf32>
    %c0_99 = arith.constant 0 : index
    %c0_100 = arith.constant 0 : index
    %133 = vector.load %arg4[%c0_99, %c0_100] : memref<32x1xf32, #tpu.memory_space<vmem>>, vector<32x1xf32>
    %134 = vector.broadcast %133 : vector<32x1xf32> to vector<32x4xf32>
    %135 = arith.addf %132, %134 : vector<32x4xf32>
    %c0_101 = arith.constant 0 : index
    %c0_102 = arith.constant 0 : index
    %c0_103 = arith.constant 0 : index
    %136 = vector.load %arg3[%c0_101, %c0_102, %c0_103] : memref<5x32x32xf32, #tpu.memory_space<vmem>>, vector<1x32x32xf32>
    %137 = vector.shape_cast %136 : vector<1x32x32xf32> to vector<32x32xf32>
    %138 = vector.extract_strided_slice %104 {offsets = [0, 1], sizes = [32, 4], strides = [1, 1]} : vector<32x10xf32> to vector<32x4xf32>
    %cst_104 = arith.constant dense<0.000000e+00> : vector<32x4xf32>
    %139 = tpu.matmul %137, %138, %cst_104 {dimension_numbers = #tpu.dot_dimension_numbers<[1], [0], [0], [1], [0, 0, 1, 1], [], []>} : vector<32x32xf32>, vector<32x4xf32>, vector<32x4xf32> -> vector<32x4xf32>
    %140 = arith.addf %135, %139 : vector<32x4xf32>
    %c1_105 = arith.constant 1 : index
    %c0_106 = arith.constant 0 : index
    %c0_107 = arith.constant 0 : index
    %141 = vector.load %arg3[%c1_105, %c0_106, %c0_107] : memref<5x32x32xf32, #tpu.memory_space<vmem>>, vector<1x32x32xf32>
    %142 = vector.shape_cast %141 : vector<1x32x32xf32> to vector<32x32xf32>
    %143 = vector.extract_strided_slice %104 {offsets = [0, 2], sizes = [32, 4], strides = [1, 1]} : vector<32x10xf32> to vector<32x4xf32>
    %cst_108 = arith.constant dense<0.000000e+00> : vector<32x4xf32>
    %144 = tpu.matmul %142, %143, %cst_108 {dimension_numbers = #tpu.dot_dimension_numbers<[1], [0], [0], [1], [0, 0, 1, 1], [], []>} : vector<32x32xf32>, vector<32x4xf32>, vector<32x4xf32> -> vector<32x4xf32>
    %145 = arith.addf %140, %144 : vector<32x4xf32>
    %c2_109 = arith.constant 2 : index
    %c0_110 = arith.constant 0 : index
    %c0_111 = arith.constant 0 : index
    %146 = vector.load %arg3[%c2_109, %c0_110, %c0_111] : memref<5x32x32xf32, #tpu.memory_space<vmem>>, vector<1x32x32xf32>
    %147 = vector.shape_cast %146 : vector<1x32x32xf32> to vector<32x32xf32>
    %148 = vector.extract_strided_slice %104 {offsets = [0, 3], sizes = [32, 4], strides = [1, 1]} : vector<32x10xf32> to vector<32x4xf32>
    %cst_112 = arith.constant dense<0.000000e+00> : vector<32x4xf32>
    %149 = tpu.matmul %147, %148, %cst_112 {dimension_numbers = #tpu.dot_dimension_numbers<[1], [0], [0], [1], [0, 0, 1, 1], [], []>} : vector<32x32xf32>, vector<32x4xf32>, vector<32x4xf32> -> vector<32x4xf32>
    %150 = arith.addf %145, %149 : vector<32x4xf32>
    %c3_113 = arith.constant 3 : index
    %c0_114 = arith.constant 0 : index
    %c0_115 = arith.constant 0 : index
    %151 = vector.load %arg3[%c3_113, %c0_114, %c0_115] : memref<5x32x32xf32, #tpu.memory_space<vmem>>, vector<1x32x32xf32>
    %152 = vector.shape_cast %151 : vector<1x32x32xf32> to vector<32x32xf32>
    %153 = vector.extract_strided_slice %104 {offsets = [0, 4], sizes = [32, 4], strides = [1, 1]} : vector<32x10xf32> to vector<32x4xf32>
    %cst_116 = arith.constant dense<0.000000e+00> : vector<32x4xf32>
    %154 = tpu.matmul %152, %153, %cst_116 {dimension_numbers = #tpu.dot_dimension_numbers<[1], [0], [0], [1], [0, 0, 1, 1], [], []>} : vector<32x32xf32>, vector<32x4xf32>, vector<32x4xf32> -> vector<32x4xf32>
    %155 = arith.addf %150, %154 : vector<32x4xf32>
    %c4_117 = arith.constant 4 : index
    %c0_118 = arith.constant 0 : index
    %c0_119 = arith.constant 0 : index
    %156 = vector.load %arg3[%c4_117, %c0_118, %c0_119] : memref<5x32x32xf32, #tpu.memory_space<vmem>>, vector<1x32x32xf32>
    %157 = vector.shape_cast %156 : vector<1x32x32xf32> to vector<32x32xf32>
    %158 = vector.extract_strided_slice %104 {offsets = [0, 5], sizes = [32, 4], strides = [1, 1]} : vector<32x10xf32> to vector<32x4xf32>
    %cst_120 = arith.constant dense<0.000000e+00> : vector<32x4xf32>
    %159 = tpu.matmul %157, %158, %cst_120 {dimension_numbers = #tpu.dot_dimension_numbers<[1], [0], [0], [1], [0, 0, 1, 1], [], []>} : vector<32x32xf32>, vector<32x4xf32>, vector<32x4xf32> -> vector<32x4xf32>
    %160 = arith.addf %155, %159 : vector<32x4xf32>
    %c0_121 = arith.constant 0 : index
    %c32_122 = arith.constant 32 : index
    %161 = vector.load %arg7[%c0_121, %c32_122] : memref<32x96xf32, #tpu.memory_space<vmem>>, vector<32x32xf32>
    %cst_123 = arith.constant dense<0.000000e+00> : vector<32x4xf32>
    %162 = tpu.matmul %161, %160, %cst_123 {dimension_numbers = #tpu.dot_dimension_numbers<[1], [0], [0], [1], [0, 0, 1, 1], [], []>} : vector<32x32xf32>, vector<32x4xf32>, vector<32x4xf32> -> vector<32x4xf32>
    %163 = arith.addf %131, %162 : vector<32x4xf32>
    %cst_124 = arith.constant 0.000000e+00 : f32
    %164 = vector.broadcast %cst_124 : f32 to vector<32x4xf32>
    %c0_125 = arith.constant 0 : index
    %c0_126 = arith.constant 0 : index
    %165 = vector.load %arg6[%c0_125, %c0_126] : memref<32x1xf32, #tpu.memory_space<vmem>>, vector<32x1xf32>
    %166 = vector.broadcast %165 : vector<32x1xf32> to vector<32x4xf32>
    %167 = arith.addf %164, %166 : vector<32x4xf32>
    %c0_127 = arith.constant 0 : index
    %c0_128 = arith.constant 0 : index
    %c0_129 = arith.constant 0 : index
    %168 = vector.load %arg5[%c0_127, %c0_128, %c0_129] : memref<7x32x32xf32, #tpu.memory_space<vmem>>, vector<1x32x32xf32>
    %169 = vector.shape_cast %168 : vector<1x32x32xf32> to vector<32x32xf32>
    %170 = vector.extract_strided_slice %104 {offsets = [0, 0], sizes = [32, 4], strides = [1, 1]} : vector<32x10xf32> to vector<32x4xf32>
    %cst_130 = arith.constant dense<0.000000e+00> : vector<32x4xf32>
    %171 = tpu.matmul %169, %170, %cst_130 {dimension_numbers = #tpu.dot_dimension_numbers<[1], [0], [0], [1], [0, 0, 1, 1], [], []>} : vector<32x32xf32>, vector<32x4xf32>, vector<32x4xf32> -> vector<32x4xf32>
    %172 = arith.addf %167, %171 : vector<32x4xf32>
    %c1_131 = arith.constant 1 : index
    %c0_132 = arith.constant 0 : index
    %c0_133 = arith.constant 0 : index
    %173 = vector.load %arg5[%c1_131, %c0_132, %c0_133] : memref<7x32x32xf32, #tpu.memory_space<vmem>>, vector<1x32x32xf32>
    %174 = vector.shape_cast %173 : vector<1x32x32xf32> to vector<32x32xf32>
    %175 = vector.extract_strided_slice %104 {offsets = [0, 1], sizes = [32, 4], strides = [1, 1]} : vector<32x10xf32> to vector<32x4xf32>
    %cst_134 = arith.constant dense<0.000000e+00> : vector<32x4xf32>
    %176 = tpu.matmul %174, %175, %cst_134 {dimension_numbers = #tpu.dot_dimension_numbers<[1], [0], [0], [1], [0, 0, 1, 1], [], []>} : vector<32x32xf32>, vector<32x4xf32>, vector<32x4xf32> -> vector<32x4xf32>
    %177 = arith.addf %172, %176 : vector<32x4xf32>
    %c2_135 = arith.constant 2 : index
    %c0_136 = arith.constant 0 : index
    %c0_137 = arith.constant 0 : index
    %178 = vector.load %arg5[%c2_135, %c0_136, %c0_137] : memref<7x32x32xf32, #tpu.memory_space<vmem>>, vector<1x32x32xf32>
    %179 = vector.shape_cast %178 : vector<1x32x32xf32> to vector<32x32xf32>
    %180 = vector.extract_strided_slice %104 {offsets = [0, 2], sizes = [32, 4], strides = [1, 1]} : vector<32x10xf32> to vector<32x4xf32>
    %cst_138 = arith.constant dense<0.000000e+00> : vector<32x4xf32>
    %181 = tpu.matmul %179, %180, %cst_138 {dimension_numbers = #tpu.dot_dimension_numbers<[1], [0], [0], [1], [0, 0, 1, 1], [], []>} : vector<32x32xf32>, vector<32x4xf32>, vector<32x4xf32> -> vector<32x4xf32>
    %182 = arith.addf %177, %181 : vector<32x4xf32>
    %c3_139 = arith.constant 3 : index
    %c0_140 = arith.constant 0 : index
    %c0_141 = arith.constant 0 : index
    %183 = vector.load %arg5[%c3_139, %c0_140, %c0_141] : memref<7x32x32xf32, #tpu.memory_space<vmem>>, vector<1x32x32xf32>
    %184 = vector.shape_cast %183 : vector<1x32x32xf32> to vector<32x32xf32>
    %185 = vector.extract_strided_slice %104 {offsets = [0, 3], sizes = [32, 4], strides = [1, 1]} : vector<32x10xf32> to vector<32x4xf32>
    %cst_142 = arith.constant dense<0.000000e+00> : vector<32x4xf32>
    %186 = tpu.matmul %184, %185, %cst_142 {dimension_numbers = #tpu.dot_dimension_numbers<[1], [0], [0], [1], [0, 0, 1, 1], [], []>} : vector<32x32xf32>, vector<32x4xf32>, vector<32x4xf32> -> vector<32x4xf32>
    %187 = arith.addf %182, %186 : vector<32x4xf32>
    %c4_143 = arith.constant 4 : index
    %c0_144 = arith.constant 0 : index
    %c0_145 = arith.constant 0 : index
    %188 = vector.load %arg5[%c4_143, %c0_144, %c0_145] : memref<7x32x32xf32, #tpu.memory_space<vmem>>, vector<1x32x32xf32>
    %189 = vector.shape_cast %188 : vector<1x32x32xf32> to vector<32x32xf32>
    %190 = vector.extract_strided_slice %104 {offsets = [0, 4], sizes = [32, 4], strides = [1, 1]} : vector<32x10xf32> to vector<32x4xf32>
    %cst_146 = arith.constant dense<0.000000e+00> : vector<32x4xf32>
    %191 = tpu.matmul %189, %190, %cst_146 {dimension_numbers = #tpu.dot_dimension_numbers<[1], [0], [0], [1], [0, 0, 1, 1], [], []>} : vector<32x32xf32>, vector<32x4xf32>, vector<32x4xf32> -> vector<32x4xf32>
    %192 = arith.addf %187, %191 : vector<32x4xf32>
    %c5_147 = arith.constant 5 : index
    %c0_148 = arith.constant 0 : index
    %c0_149 = arith.constant 0 : index
    %193 = vector.load %arg5[%c5_147, %c0_148, %c0_149] : memref<7x32x32xf32, #tpu.memory_space<vmem>>, vector<1x32x32xf32>
    %194 = vector.shape_cast %193 : vector<1x32x32xf32> to vector<32x32xf32>
    %195 = vector.extract_strided_slice %104 {offsets = [0, 5], sizes = [32, 4], strides = [1, 1]} : vector<32x10xf32> to vector<32x4xf32>
    %cst_150 = arith.constant dense<0.000000e+00> : vector<32x4xf32>
    %196 = tpu.matmul %194, %195, %cst_150 {dimension_numbers = #tpu.dot_dimension_numbers<[1], [0], [0], [1], [0, 0, 1, 1], [], []>} : vector<32x32xf32>, vector<32x4xf32>, vector<32x4xf32> -> vector<32x4xf32>
    %197 = arith.addf %192, %196 : vector<32x4xf32>
    %c6_151 = arith.constant 6 : index
    %c0_152 = arith.constant 0 : index
    %c0_153 = arith.constant 0 : index
    %198 = vector.load %arg5[%c6_151, %c0_152, %c0_153] : memref<7x32x32xf32, #tpu.memory_space<vmem>>, vector<1x32x32xf32>
    %199 = vector.shape_cast %198 : vector<1x32x32xf32> to vector<32x32xf32>
    %200 = vector.extract_strided_slice %104 {offsets = [0, 6], sizes = [32, 4], strides = [1, 1]} : vector<32x10xf32> to vector<32x4xf32>
    %cst_154 = arith.constant dense<0.000000e+00> : vector<32x4xf32>
    %201 = tpu.matmul %199, %200, %cst_154 {dimension_numbers = #tpu.dot_dimension_numbers<[1], [0], [0], [1], [0, 0, 1, 1], [], []>} : vector<32x32xf32>, vector<32x4xf32>, vector<32x4xf32> -> vector<32x4xf32>
    %202 = arith.addf %197, %201 : vector<32x4xf32>
    %c0_155 = arith.constant 0 : index
    %c64_156 = arith.constant 64 : index
    %203 = vector.load %arg7[%c0_155, %c64_156] : memref<32x96xf32, #tpu.memory_space<vmem>>, vector<32x32xf32>
    %cst_157 = arith.constant dense<0.000000e+00> : vector<32x4xf32>
    %204 = tpu.matmul %203, %202, %cst_157 {dimension_numbers = #tpu.dot_dimension_numbers<[1], [0], [0], [1], [0, 0, 1, 1], [], []>} : vector<32x32xf32>, vector<32x4xf32>, vector<32x4xf32> -> vector<32x4xf32>
    %205 = arith.addf %163, %204 : vector<32x4xf32>
    %cst_158 = arith.constant dense<0.000000e+00> : vector<32xf32>
    %206 = vector.multi_reduction <add>, %102, %cst_158 [1] : vector<32x4xf32> to vector<32xf32>
    %207 = vector.shape_cast %206 : vector<32xf32> to vector<32x1xf32>
    %cst_159 = arith.constant dense<0.000000e+00> : vector<32xf32>
    %208 = vector.multi_reduction <add>, %205, %cst_159 [1] : vector<32x4xf32> to vector<32xf32>
    %209 = vector.shape_cast %208 : vector<32xf32> to vector<32x1xf32>
    %210 = arith.addf %207, %209 : vector<32x1xf32>
    %cst_160 = arith.constant 8.000000e+00 : f32
    %211 = vector.broadcast %cst_160 : f32 to vector<32x1xf32>
    %212 = arith.divf %210, %211 : vector<32x1xf32>
    %213 = vector.broadcast %212 : vector<32x1xf32> to vector<32x4xf32>
    %214 = arith.subf %102, %213 : vector<32x4xf32>
    %215 = arith.mulf %214, %214 : vector<32x4xf32>
    %cst_161 = arith.constant dense<0.000000e+00> : vector<32xf32>
    %216 = vector.multi_reduction <add>, %215, %cst_161 [1] : vector<32x4xf32> to vector<32xf32>
    %217 = vector.shape_cast %216 : vector<32xf32> to vector<32x1xf32>
    %218 = vector.broadcast %212 : vector<32x1xf32> to vector<32x4xf32>
    %219 = arith.subf %205, %218 : vector<32x4xf32>
    %220 = arith.mulf %219, %219 : vector<32x4xf32>
    %cst_162 = arith.constant dense<0.000000e+00> : vector<32xf32>
    %221 = vector.multi_reduction <add>, %220, %cst_162 [1] : vector<32x4xf32> to vector<32xf32>
    %222 = vector.shape_cast %221 : vector<32xf32> to vector<32x1xf32>
    %223 = arith.addf %217, %222 : vector<32x1xf32>
    %cst_163 = arith.constant 8.000000e+00 : f32
    %224 = vector.broadcast %cst_163 : f32 to vector<32x1xf32>
    %225 = arith.divf %223, %224 : vector<32x1xf32>
    %cst_164 = arith.constant 9.99999974E-6 : f32
    %226 = vector.broadcast %cst_164 : f32 to vector<32x1xf32>
    %227 = arith.addf %225, %226 : vector<32x1xf32>
    %228 = math.rsqrt %227 : vector<32x1xf32>
    %c0_165 = arith.constant 0 : index
    %c0_166 = arith.constant 0 : index
    %229 = vector.load %arg9[%c0_165, %c0_166] : memref<32x1xf32, #tpu.memory_space<vmem>>, vector<32x1xf32>
    %230 = vector.broadcast %212 : vector<32x1xf32> to vector<32x4xf32>
    %231 = arith.subf %102, %230 : vector<32x4xf32>
    %232 = vector.broadcast %228 : vector<32x1xf32> to vector<32x4xf32>
    %233 = arith.mulf %231, %232 : vector<32x4xf32>
    %234 = vector.broadcast %229 : vector<32x1xf32> to vector<32x4xf32>
    %235 = arith.mulf %234, %233 : vector<32x4xf32>
    %c0_167 = arith.constant 0 : index
    %c0_168 = arith.constant 0 : index
    %236 = vector.load %arg10[%c0_167, %c0_168] : memref<32x1xf32, #tpu.memory_space<vmem>>, vector<32x1xf32>
    %237 = vector.broadcast %236 : vector<32x1xf32> to vector<32x4xf32>
    %238 = arith.addf %235, %237 : vector<32x4xf32>
    %cst_169 = arith.constant 5.000000e-01 : f32
    %239 = vector.broadcast %cst_169 : f32 to vector<32x4xf32>
    %240 = arith.mulf %239, %238 : vector<32x4xf32>
    %cst_170 = arith.constant 0.707106769 : f32
    %241 = vector.broadcast %cst_170 : f32 to vector<32x4xf32>
    %242 = arith.mulf %238, %241 : vector<32x4xf32>
    %243 = math.absf %242 : vector<32x4xf32>
    %cst_171 = arith.constant 0.327591091 : f32
    %244 = vector.broadcast %cst_171 : f32 to vector<32x4xf32>
    %245 = arith.mulf %244, %243 : vector<32x4xf32>
    %cst_172 = arith.constant 1.000000e+00 : f32
    %246 = vector.broadcast %cst_172 : f32 to vector<32x4xf32>
    %247 = arith.addf %246, %245 : vector<32x4xf32>
    %cst_173 = arith.constant 1.000000e+00 : f32
    %248 = vector.broadcast %cst_173 : f32 to vector<32x4xf32>
    %249 = arith.divf %248, %247 : vector<32x4xf32>
    %cst_174 = arith.constant 1.06140542 : f32
    %250 = vector.broadcast %cst_174 : f32 to vector<32x4xf32>
    %251 = arith.mulf %250, %249 : vector<32x4xf32>
    %cst_175 = arith.constant -1.45315206 : f32
    %252 = vector.broadcast %cst_175 : f32 to vector<32x4xf32>
    %253 = arith.addf %251, %252 : vector<32x4xf32>
    %254 = arith.mulf %253, %249 : vector<32x4xf32>
    %cst_176 = arith.constant 1.42141378 : f32
    %255 = vector.broadcast %cst_176 : f32 to vector<32x4xf32>
    %256 = arith.addf %254, %255 : vector<32x4xf32>
    %257 = arith.mulf %256, %249 : vector<32x4xf32>
    %cst_177 = arith.constant -0.284496725 : f32
    %258 = vector.broadcast %cst_177 : f32 to vector<32x4xf32>
    %259 = arith.addf %257, %258 : vector<32x4xf32>
    %260 = arith.mulf %259, %249 : vector<32x4xf32>
    %cst_178 = arith.constant 0.254829586 : f32
    %261 = vector.broadcast %cst_178 : f32 to vector<32x4xf32>
    %262 = arith.addf %260, %261 : vector<32x4xf32>
    %263 = arith.mulf %262, %249 : vector<32x4xf32>
    %cst_179 = arith.constant 0.000000e+00 : f32
    %264 = vector.broadcast %cst_179 : f32 to vector<32x4xf32>
    %265 = arith.subf %264, %243 : vector<32x4xf32>
    %266 = arith.mulf %265, %243 : vector<32x4xf32>
    %267 = math.exp %266 : vector<32x4xf32>
    %268 = arith.mulf %263, %267 : vector<32x4xf32>
    %cst_180 = arith.constant 1.000000e+00 : f32
    %269 = vector.broadcast %cst_180 : f32 to vector<32x4xf32>
    %270 = arith.subf %269, %268 : vector<32x4xf32>
    %cst_181 = arith.constant 0.000000e+00 : f32
    %271 = vector.broadcast %cst_181 : f32 to vector<32x4xf32>
    %272 = arith.cmpf oge, %242, %271 : vector<32x4xf32>
    %cst_182 = arith.constant 0.000000e+00 : f32
    %273 = vector.broadcast %cst_182 : f32 to vector<32x4xf32>
    %274 = arith.subf %273, %270 : vector<32x4xf32>
    %275 = arith.select %272, %270, %274 : vector<32x4xi1>, vector<32x4xf32>
    %cst_183 = arith.constant 1.000000e+00 : f32
    %276 = vector.broadcast %cst_183 : f32 to vector<32x4xf32>
    %277 = arith.addf %276, %275 : vector<32x4xf32>
    %278 = arith.mulf %240, %277 : vector<32x4xf32>
    %279 = arith.addf %278, %2 : vector<32x4xf32>
    %c0_184 = arith.constant 0 : index
    %c0_185 = arith.constant 0 : index
    %c0_186 = arith.constant 0 : index
    %280 = vector.load %arg11[%c0_184, %c0_185, %c0_186] : memref<2x32x4xf32, #tpu.memory_space<vmem>>, vector<1x32x4xf32>
    %281 = vector.shape_cast %280 : vector<1x32x4xf32> to vector<32x4xf32>
    %282 = vector.shape_cast %279 : vector<32x4xf32> to vector<1x32x4xf32>
    tpu.vector_store %arg11[%c0_184, %c0_185, %c0_186], %282 {strides = array<i32>} : memref<2x32x4xf32, #tpu.memory_space<vmem>>, vector<1x32x4xf32>,
    %c0_187 = arith.constant 0 : index
    %c0_188 = arith.constant 0 : index
    %283 = vector.load %arg9[%c0_187, %c0_188] : memref<32x1xf32, #tpu.memory_space<vmem>>, vector<32x1xf32>
    %284 = vector.broadcast %212 : vector<32x1xf32> to vector<32x4xf32>
    %285 = arith.subf %205, %284 : vector<32x4xf32>
    %286 = vector.broadcast %228 : vector<32x1xf32> to vector<32x4xf32>
    %287 = arith.mulf %285, %286 : vector<32x4xf32>
    %288 = vector.broadcast %283 : vector<32x1xf32> to vector<32x4xf32>
    %289 = arith.mulf %288, %287 : vector<32x4xf32>
    %c0_189 = arith.constant 0 : index
    %c0_190 = arith.constant 0 : index
    %290 = vector.load %arg10[%c0_189, %c0_190] : memref<32x1xf32, #tpu.memory_space<vmem>>, vector<32x1xf32>
    %291 = vector.broadcast %290 : vector<32x1xf32> to vector<32x4xf32>
    %292 = arith.addf %289, %291 : vector<32x4xf32>
    %cst_191 = arith.constant 5.000000e-01 : f32
    %293 = vector.broadcast %cst_191 : f32 to vector<32x4xf32>
    %294 = arith.mulf %293, %292 : vector<32x4xf32>
    %cst_192 = arith.constant 0.707106769 : f32
    %295 = vector.broadcast %cst_192 : f32 to vector<32x4xf32>
    %296 = arith.mulf %292, %295 : vector<32x4xf32>
    %297 = math.absf %296 : vector<32x4xf32>
    %cst_193 = arith.constant 0.327591091 : f32
    %298 = vector.broadcast %cst_193 : f32 to vector<32x4xf32>
    %299 = arith.mulf %298, %297 : vector<32x4xf32>
    %cst_194 = arith.constant 1.000000e+00 : f32
    %300 = vector.broadcast %cst_194 : f32 to vector<32x4xf32>
    %301 = arith.addf %300, %299 : vector<32x4xf32>
    %cst_195 = arith.constant 1.000000e+00 : f32
    %302 = vector.broadcast %cst_195 : f32 to vector<32x4xf32>
    %303 = arith.divf %302, %301 : vector<32x4xf32>
    %cst_196 = arith.constant 1.06140542 : f32
    %304 = vector.broadcast %cst_196 : f32 to vector<32x4xf32>
    %305 = arith.mulf %304, %303 : vector<32x4xf32>
    %cst_197 = arith.constant -1.45315206 : f32
    %306 = vector.broadcast %cst_197 : f32 to vector<32x4xf32>
    %307 = arith.addf %305, %306 : vector<32x4xf32>
    %308 = arith.mulf %307, %303 : vector<32x4xf32>
    %cst_198 = arith.constant 1.42141378 : f32
    %309 = vector.broadcast %cst_198 : f32 to vector<32x4xf32>
    %310 = arith.addf %308, %309 : vector<32x4xf32>
    %311 = arith.mulf %310, %303 : vector<32x4xf32>
    %cst_199 = arith.constant -0.284496725 : f32
    %312 = vector.broadcast %cst_199 : f32 to vector<32x4xf32>
    %313 = arith.addf %311, %312 : vector<32x4xf32>
    %314 = arith.mulf %313, %303 : vector<32x4xf32>
    %cst_200 = arith.constant 0.254829586 : f32
    %315 = vector.broadcast %cst_200 : f32 to vector<32x4xf32>
    %316 = arith.addf %314, %315 : vector<32x4xf32>
    %317 = arith.mulf %316, %303 : vector<32x4xf32>
    %cst_201 = arith.constant 0.000000e+00 : f32
    %318 = vector.broadcast %cst_201 : f32 to vector<32x4xf32>
    %319 = arith.subf %318, %297 : vector<32x4xf32>
    %320 = arith.mulf %319, %297 : vector<32x4xf32>
    %321 = math.exp %320 : vector<32x4xf32>
    %322 = arith.mulf %317, %321 : vector<32x4xf32>
    %cst_202 = arith.constant 1.000000e+00 : f32
    %323 = vector.broadcast %cst_202 : f32 to vector<32x4xf32>
    %324 = arith.subf %323, %322 : vector<32x4xf32>
    %cst_203 = arith.constant 0.000000e+00 : f32
    %325 = vector.broadcast %cst_203 : f32 to vector<32x4xf32>
    %326 = arith.cmpf oge, %296, %325 : vector<32x4xf32>
    %cst_204 = arith.constant 0.000000e+00 : f32
    %327 = vector.broadcast %cst_204 : f32 to vector<32x4xf32>
    %328 = arith.subf %327, %324 : vector<32x4xf32>
    %329 = arith.select %326, %324, %328 : vector<32x4xi1>, vector<32x4xf32>
    %cst_205 = arith.constant 1.000000e+00 : f32
    %330 = vector.broadcast %cst_205 : f32 to vector<32x4xf32>
    %331 = arith.addf %330, %329 : vector<32x4xf32>
    %332 = arith.mulf %294, %331 : vector<32x4xf32>
    %333 = arith.addf %332, %105 : vector<32x4xf32>
    %c1_206 = arith.constant 1 : index
    %c0_207 = arith.constant 0 : index
    %c0_208 = arith.constant 0 : index
    %334 = vector.load %arg11[%c1_206, %c0_207, %c0_208] : memref<2x32x4xf32, #tpu.memory_space<vmem>>, vector<1x32x4xf32>
    %335 = vector.shape_cast %334 : vector<1x32x4xf32> to vector<32x4xf32>
    %336 = vector.shape_cast %333 : vector<32x4xf32> to vector<1x32x4xf32>
    tpu.vector_store %arg11[%c1_206, %c0_207, %c0_208], %336 {strides = array<i32>} : memref<2x32x4xf32, #tpu.memory_space<vmem>>, vector<1x32x4xf32>,
    return
  }
}

module attributes {stable_mosaic.version = 11 : i64} {
  func.func @_up_kernel(%arg0: memref<2x32x4xf32, #tpu.memory_space<vmem>>, %arg1: memref<2x16x32xf32, #tpu.memory_space<vmem>>, %arg2: memref<16x1xf32, #tpu.memory_space<vmem>>, %arg3: memref<2x16x4xf32, #tpu.memory_space<vmem>>, %arg4: memref<2x16x4xf32, #tpu.memory_space<vmem>>) attributes {dimension_semantics = [], scalar_prefetch = 0 : i64, scratch_operands = 0 : i64, tpu.core_type = #tpu.core_type<tc>} {
    %c0 = arith.constant 0 : index
    %c0_0 = arith.constant 0 : index
    %c0_1 = arith.constant 0 : index
    %0 = vector.load %arg0[%c0, %c0_0, %c0_1] : memref<2x32x4xf32, #tpu.memory_space<vmem>>, vector<1x32x4xf32>
    %1 = vector.shape_cast %0 : vector<1x32x4xf32> to vector<32x4xf32>
    %c0_2 = arith.constant 0 : index
    %c0_3 = arith.constant 0 : index
    %c0_4 = arith.constant 0 : index
    %2 = vector.load %arg1[%c0_2, %c0_3, %c0_4] : memref<2x16x32xf32, #tpu.memory_space<vmem>>, vector<1x16x32xf32>
    %3 = vector.shape_cast %2 : vector<1x16x32xf32> to vector<16x32xf32>
    %cst = arith.constant dense<0.000000e+00> : vector<16x4xf32>
    %4 = tpu.matmul %3, %1, %cst {dimension_numbers = #tpu.dot_dimension_numbers<[1], [0], [0], [1], [0, 0, 1, 1], [], []>} : vector<16x32xf32>, vector<32x4xf32>, vector<16x4xf32> -> vector<16x4xf32>
    %c0_5 = arith.constant 0 : index
    %c0_6 = arith.constant 0 : index
    %5 = vector.load %arg2[%c0_5, %c0_6] : memref<16x1xf32, #tpu.memory_space<vmem>>, vector<16x1xf32>
    %6 = vector.broadcast %5 : vector<16x1xf32> to vector<16x4xf32>
    %7 = arith.addf %4, %6 : vector<16x4xf32>
    %c0_7 = arith.constant 0 : index
    %c0_8 = arith.constant 0 : index
    %c0_9 = arith.constant 0 : index
    %8 = vector.load %arg3[%c0_7, %c0_8, %c0_9] : memref<2x16x4xf32, #tpu.memory_space<vmem>>, vector<1x16x4xf32>
    %9 = vector.shape_cast %8 : vector<1x16x4xf32> to vector<16x4xf32>
    %10 = vector.shape_cast %7 : vector<16x4xf32> to vector<1x16x4xf32>
    tpu.vector_store %arg3[%c0_7, %c0_8, %c0_9], %10 {strides = array<i32>} : memref<2x16x4xf32, #tpu.memory_space<vmem>>, vector<1x16x4xf32>,
    %c1 = arith.constant 1 : index
    %c0_10 = arith.constant 0 : index
    %c0_11 = arith.constant 0 : index
    %11 = vector.load %arg1[%c1, %c0_10, %c0_11] : memref<2x16x32xf32, #tpu.memory_space<vmem>>, vector<1x16x32xf32>
    %12 = vector.shape_cast %11 : vector<1x16x32xf32> to vector<16x32xf32>
    %cst_12 = arith.constant dense<0.000000e+00> : vector<16x4xf32>
    %13 = tpu.matmul %12, %1, %cst_12 {dimension_numbers = #tpu.dot_dimension_numbers<[1], [0], [0], [1], [0, 0, 1, 1], [], []>} : vector<16x32xf32>, vector<32x4xf32>, vector<16x4xf32> -> vector<16x4xf32>
    %c0_13 = arith.constant 0 : index
    %c0_14 = arith.constant 0 : index
    %14 = vector.load %arg2[%c0_13, %c0_14] : memref<16x1xf32, #tpu.memory_space<vmem>>, vector<16x1xf32>
    %15 = vector.broadcast %14 : vector<16x1xf32> to vector<16x4xf32>
    %16 = arith.addf %13, %15 : vector<16x4xf32>
    %c0_15 = arith.constant 0 : index
    %c0_16 = arith.constant 0 : index
    %c0_17 = arith.constant 0 : index
    %17 = vector.load %arg4[%c0_15, %c0_16, %c0_17] : memref<2x16x4xf32, #tpu.memory_space<vmem>>, vector<1x16x4xf32>
    %18 = vector.shape_cast %17 : vector<1x16x4xf32> to vector<16x4xf32>
    %19 = vector.shape_cast %16 : vector<16x4xf32> to vector<1x16x4xf32>
    tpu.vector_store %arg4[%c0_15, %c0_16, %c0_17], %19 {strides = array<i32>} : memref<2x16x4xf32, #tpu.memory_space<vmem>>, vector<1x16x4xf32>,
    %c1_18 = arith.constant 1 : index
    %c0_19 = arith.constant 0 : index
    %c0_20 = arith.constant 0 : index
    %20 = vector.load %arg0[%c1_18, %c0_19, %c0_20] : memref<2x32x4xf32, #tpu.memory_space<vmem>>, vector<1x32x4xf32>
    %21 = vector.shape_cast %20 : vector<1x32x4xf32> to vector<32x4xf32>
    %c0_21 = arith.constant 0 : index
    %c0_22 = arith.constant 0 : index
    %c0_23 = arith.constant 0 : index
    %22 = vector.load %arg1[%c0_21, %c0_22, %c0_23] : memref<2x16x32xf32, #tpu.memory_space<vmem>>, vector<1x16x32xf32>
    %23 = vector.shape_cast %22 : vector<1x16x32xf32> to vector<16x32xf32>
    %cst_24 = arith.constant dense<0.000000e+00> : vector<16x4xf32>
    %24 = tpu.matmul %23, %21, %cst_24 {dimension_numbers = #tpu.dot_dimension_numbers<[1], [0], [0], [1], [0, 0, 1, 1], [], []>} : vector<16x32xf32>, vector<32x4xf32>, vector<16x4xf32> -> vector<16x4xf32>
    %c0_25 = arith.constant 0 : index
    %c0_26 = arith.constant 0 : index
    %25 = vector.load %arg2[%c0_25, %c0_26] : memref<16x1xf32, #tpu.memory_space<vmem>>, vector<16x1xf32>
    %26 = vector.broadcast %25 : vector<16x1xf32> to vector<16x4xf32>
    %27 = arith.addf %24, %26 : vector<16x4xf32>
    %c1_27 = arith.constant 1 : index
    %c0_28 = arith.constant 0 : index
    %c0_29 = arith.constant 0 : index
    %28 = vector.load %arg3[%c1_27, %c0_28, %c0_29] : memref<2x16x4xf32, #tpu.memory_space<vmem>>, vector<1x16x4xf32>
    %29 = vector.shape_cast %28 : vector<1x16x4xf32> to vector<16x4xf32>
    %30 = vector.shape_cast %27 : vector<16x4xf32> to vector<1x16x4xf32>
    tpu.vector_store %arg3[%c1_27, %c0_28, %c0_29], %30 {strides = array<i32>} : memref<2x16x4xf32, #tpu.memory_space<vmem>>, vector<1x16x4xf32>,
    %c1_30 = arith.constant 1 : index
    %c0_31 = arith.constant 0 : index
    %c0_32 = arith.constant 0 : index
    %31 = vector.load %arg1[%c1_30, %c0_31, %c0_32] : memref<2x16x32xf32, #tpu.memory_space<vmem>>, vector<1x16x32xf32>
    %32 = vector.shape_cast %31 : vector<1x16x32xf32> to vector<16x32xf32>
    %cst_33 = arith.constant dense<0.000000e+00> : vector<16x4xf32>
    %33 = tpu.matmul %32, %21, %cst_33 {dimension_numbers = #tpu.dot_dimension_numbers<[1], [0], [0], [1], [0, 0, 1, 1], [], []>} : vector<16x32xf32>, vector<32x4xf32>, vector<16x4xf32> -> vector<16x4xf32>
    %c0_34 = arith.constant 0 : index
    %c0_35 = arith.constant 0 : index
    %34 = vector.load %arg2[%c0_34, %c0_35] : memref<16x1xf32, #tpu.memory_space<vmem>>, vector<16x1xf32>
    %35 = vector.broadcast %34 : vector<16x1xf32> to vector<16x4xf32>
    %36 = arith.addf %33, %35 : vector<16x4xf32>
    %c1_36 = arith.constant 1 : index
    %c0_37 = arith.constant 0 : index
    %c0_38 = arith.constant 0 : index
    %37 = vector.load %arg4[%c1_36, %c0_37, %c0_38] : memref<2x16x4xf32, #tpu.memory_space<vmem>>, vector<1x16x4xf32>
    %38 = vector.shape_cast %37 : vector<1x16x4xf32> to vector<16x4xf32>
    %39 = vector.shape_cast %36 : vector<16x4xf32> to vector<1x16x4xf32>
    tpu.vector_store %arg4[%c1_36, %c0_37, %c0_38], %39 {strides = array<i32>} : memref<2x16x4xf32, #tpu.memory_space<vmem>>, vector<1x16x4xf32>,
    return
  }
}

module attributes {stable_mosaic.version = 11 : i64} {
  func.func @_up_kernel(%arg0: memref<2x16x8xf32, #tpu.memory_space<vmem>>, %arg1: memref<2x8x16xf32, #tpu.memory_space<vmem>>, %arg2: memref<8x1xf32, #tpu.memory_space<vmem>>, %arg3: memref<2x8x8xf32, #tpu.memory_space<vmem>>, %arg4: memref<2x8x8xf32, #tpu.memory_space<vmem>>) attributes {dimension_semantics = [], scalar_prefetch = 0 : i64, scratch_operands = 0 : i64, tpu.core_type = #tpu.core_type<tc>} {
    %c0 = arith.constant 0 : index
    %c0_0 = arith.constant 0 : index
    %c0_1 = arith.constant 0 : index
    %0 = vector.load %arg0[%c0, %c0_0, %c0_1] : memref<2x16x8xf32, #tpu.memory_space<vmem>>, vector<1x16x8xf32>
    %1 = vector.shape_cast %0 : vector<1x16x8xf32> to vector<16x8xf32>
    %c0_2 = arith.constant 0 : index
    %c0_3 = arith.constant 0 : index
    %c0_4 = arith.constant 0 : index
    %2 = vector.load %arg1[%c0_2, %c0_3, %c0_4] : memref<2x8x16xf32, #tpu.memory_space<vmem>>, vector<1x8x16xf32>
    %3 = vector.shape_cast %2 : vector<1x8x16xf32> to vector<8x16xf32>
    %cst = arith.constant dense<0.000000e+00> : vector<8x8xf32>
    %4 = tpu.matmul %3, %1, %cst {dimension_numbers = #tpu.dot_dimension_numbers<[1], [0], [0], [1], [0, 0, 1, 1], [], []>} : vector<8x16xf32>, vector<16x8xf32>, vector<8x8xf32> -> vector<8x8xf32>
    %c0_5 = arith.constant 0 : index
    %c0_6 = arith.constant 0 : index
    %5 = vector.load %arg2[%c0_5, %c0_6] : memref<8x1xf32, #tpu.memory_space<vmem>>, vector<8x1xf32>
    %6 = vector.broadcast %5 : vector<8x1xf32> to vector<8x8xf32>
    %7 = arith.addf %4, %6 : vector<8x8xf32>
    %c0_7 = arith.constant 0 : index
    %c0_8 = arith.constant 0 : index
    %c0_9 = arith.constant 0 : index
    %8 = vector.load %arg3[%c0_7, %c0_8, %c0_9] : memref<2x8x8xf32, #tpu.memory_space<vmem>>, vector<1x8x8xf32>
    %9 = vector.shape_cast %8 : vector<1x8x8xf32> to vector<8x8xf32>
    %10 = vector.shape_cast %7 : vector<8x8xf32> to vector<1x8x8xf32>
    tpu.vector_store %arg3[%c0_7, %c0_8, %c0_9], %10 {strides = array<i32>} : memref<2x8x8xf32, #tpu.memory_space<vmem>>, vector<1x8x8xf32>,
    %c1 = arith.constant 1 : index
    %c0_10 = arith.constant 0 : index
    %c0_11 = arith.constant 0 : index
    %11 = vector.load %arg1[%c1, %c0_10, %c0_11] : memref<2x8x16xf32, #tpu.memory_space<vmem>>, vector<1x8x16xf32>
    %12 = vector.shape_cast %11 : vector<1x8x16xf32> to vector<8x16xf32>
    %cst_12 = arith.constant dense<0.000000e+00> : vector<8x8xf32>
    %13 = tpu.matmul %12, %1, %cst_12 {dimension_numbers = #tpu.dot_dimension_numbers<[1], [0], [0], [1], [0, 0, 1, 1], [], []>} : vector<8x16xf32>, vector<16x8xf32>, vector<8x8xf32> -> vector<8x8xf32>
    %c0_13 = arith.constant 0 : index
    %c0_14 = arith.constant 0 : index
    %14 = vector.load %arg2[%c0_13, %c0_14] : memref<8x1xf32, #tpu.memory_space<vmem>>, vector<8x1xf32>
    %15 = vector.broadcast %14 : vector<8x1xf32> to vector<8x8xf32>
    %16 = arith.addf %13, %15 : vector<8x8xf32>
    %c0_15 = arith.constant 0 : index
    %c0_16 = arith.constant 0 : index
    %c0_17 = arith.constant 0 : index
    %17 = vector.load %arg4[%c0_15, %c0_16, %c0_17] : memref<2x8x8xf32, #tpu.memory_space<vmem>>, vector<1x8x8xf32>
    %18 = vector.shape_cast %17 : vector<1x8x8xf32> to vector<8x8xf32>
    %19 = vector.shape_cast %16 : vector<8x8xf32> to vector<1x8x8xf32>
    tpu.vector_store %arg4[%c0_15, %c0_16, %c0_17], %19 {strides = array<i32>} : memref<2x8x8xf32, #tpu.memory_space<vmem>>, vector<1x8x8xf32>,
    %c1_18 = arith.constant 1 : index
    %c0_19 = arith.constant 0 : index
    %c0_20 = arith.constant 0 : index
    %20 = vector.load %arg0[%c1_18, %c0_19, %c0_20] : memref<2x16x8xf32, #tpu.memory_space<vmem>>, vector<1x16x8xf32>
    %21 = vector.shape_cast %20 : vector<1x16x8xf32> to vector<16x8xf32>
    %c0_21 = arith.constant 0 : index
    %c0_22 = arith.constant 0 : index
    %c0_23 = arith.constant 0 : index
    %22 = vector.load %arg1[%c0_21, %c0_22, %c0_23] : memref<2x8x16xf32, #tpu.memory_space<vmem>>, vector<1x8x16xf32>
    %23 = vector.shape_cast %22 : vector<1x8x16xf32> to vector<8x16xf32>
    %cst_24 = arith.constant dense<0.000000e+00> : vector<8x8xf32>
    %24 = tpu.matmul %23, %21, %cst_24 {dimension_numbers = #tpu.dot_dimension_numbers<[1], [0], [0], [1], [0, 0, 1, 1], [], []>} : vector<8x16xf32>, vector<16x8xf32>, vector<8x8xf32> -> vector<8x8xf32>
    %c0_25 = arith.constant 0 : index
    %c0_26 = arith.constant 0 : index
    %25 = vector.load %arg2[%c0_25, %c0_26] : memref<8x1xf32, #tpu.memory_space<vmem>>, vector<8x1xf32>
    %26 = vector.broadcast %25 : vector<8x1xf32> to vector<8x8xf32>
    %27 = arith.addf %24, %26 : vector<8x8xf32>
    %c1_27 = arith.constant 1 : index
    %c0_28 = arith.constant 0 : index
    %c0_29 = arith.constant 0 : index
    %28 = vector.load %arg3[%c1_27, %c0_28, %c0_29] : memref<2x8x8xf32, #tpu.memory_space<vmem>>, vector<1x8x8xf32>
    %29 = vector.shape_cast %28 : vector<1x8x8xf32> to vector<8x8xf32>
    %30 = vector.shape_cast %27 : vector<8x8xf32> to vector<1x8x8xf32>
    tpu.vector_store %arg3[%c1_27, %c0_28, %c0_29], %30 {strides = array<i32>} : memref<2x8x8xf32, #tpu.memory_space<vmem>>, vector<1x8x8xf32>,
    %c1_30 = arith.constant 1 : index
    %c0_31 = arith.constant 0 : index
    %c0_32 = arith.constant 0 : index
    %31 = vector.load %arg1[%c1_30, %c0_31, %c0_32] : memref<2x8x16xf32, #tpu.memory_space<vmem>>, vector<1x8x16xf32>
    %32 = vector.shape_cast %31 : vector<1x8x16xf32> to vector<8x16xf32>
    %cst_33 = arith.constant dense<0.000000e+00> : vector<8x8xf32>
    %33 = tpu.matmul %32, %21, %cst_33 {dimension_numbers = #tpu.dot_dimension_numbers<[1], [0], [0], [1], [0, 0, 1, 1], [], []>} : vector<8x16xf32>, vector<16x8xf32>, vector<8x8xf32> -> vector<8x8xf32>
    %c0_34 = arith.constant 0 : index
    %c0_35 = arith.constant 0 : index
    %34 = vector.load %arg2[%c0_34, %c0_35] : memref<8x1xf32, #tpu.memory_space<vmem>>, vector<8x1xf32>
    %35 = vector.broadcast %34 : vector<8x1xf32> to vector<8x8xf32>
    %36 = arith.addf %33, %35 : vector<8x8xf32>
    %c1_36 = arith.constant 1 : index
    %c0_37 = arith.constant 0 : index
    %c0_38 = arith.constant 0 : index
    %37 = vector.load %arg4[%c1_36, %c0_37, %c0_38] : memref<2x8x8xf32, #tpu.memory_space<vmem>>, vector<1x8x8xf32>
    %38 = vector.shape_cast %37 : vector<1x8x8xf32> to vector<8x8xf32>
    %39 = vector.shape_cast %36 : vector<8x8xf32> to vector<1x8x8xf32>
    tpu.vector_store %arg4[%c1_36, %c0_37, %c0_38], %39 {strides = array<i32>} : memref<2x8x8xf32, #tpu.memory_space<vmem>>, vector<1x8x8xf32>,
    return
  }
}

module attributes {stable_mosaic.version = 11 : i64} {
  func.func @_conv_same_kernel(%arg0: memref<2x8x22xf32, #tpu.memory_space<vmem>>, %arg1: memref<7x4x8xf32, #tpu.memory_space<vmem>>, %arg2: memref<4x1xf32, #tpu.memory_space<vmem>>, %arg3: memref<2x4x16xf32, #tpu.memory_space<vmem>>) attributes {dimension_semantics = [], scalar_prefetch = 0 : i64, scratch_operands = 0 : i64, tpu.core_type = #tpu.core_type<tc>} {
    %c0 = arith.constant 0 : index
    %c0_0 = arith.constant 0 : index
    %c0_1 = arith.constant 0 : index
    %0 = vector.load %arg0[%c0, %c0_0, %c0_1] : memref<2x8x22xf32, #tpu.memory_space<vmem>>, vector<1x8x22xf32>
    %1 = vector.shape_cast %0 : vector<1x8x22xf32> to vector<8x22xf32>
    %cst = arith.constant 0.000000e+00 : f32
    %2 = vector.broadcast %cst : f32 to vector<4x16xf32>
    %c0_2 = arith.constant 0 : index
    %c0_3 = arith.constant 0 : index
    %c0_4 = arith.constant 0 : index
    %3 = vector.load %arg1[%c0_2, %c0_3, %c0_4] : memref<7x4x8xf32, #tpu.memory_space<vmem>>, vector<1x4x8xf32>
    %4 = vector.shape_cast %3 : vector<1x4x8xf32> to vector<4x8xf32>
    %5 = vector.extract_strided_slice %1 {offsets = [0, 0], sizes = [8, 16], strides = [1, 1]} : vector<8x22xf32> to vector<8x16xf32>
    %cst_5 = arith.constant dense<0.000000e+00> : vector<4x16xf32>
    %6 = tpu.matmul %4, %5, %cst_5 {dimension_numbers = #tpu.dot_dimension_numbers<[1], [0], [0], [1], [0, 0, 1, 1], [], []>} : vector<4x8xf32>, vector<8x16xf32>, vector<4x16xf32> -> vector<4x16xf32>
    %7 = arith.addf %2, %6 : vector<4x16xf32>
    %c1 = arith.constant 1 : index
    %c0_6 = arith.constant 0 : index
    %c0_7 = arith.constant 0 : index
    %8 = vector.load %arg1[%c1, %c0_6, %c0_7] : memref<7x4x8xf32, #tpu.memory_space<vmem>>, vector<1x4x8xf32>
    %9 = vector.shape_cast %8 : vector<1x4x8xf32> to vector<4x8xf32>
    %10 = vector.extract_strided_slice %1 {offsets = [0, 1], sizes = [8, 16], strides = [1, 1]} : vector<8x22xf32> to vector<8x16xf32>
    %cst_8 = arith.constant dense<0.000000e+00> : vector<4x16xf32>
    %11 = tpu.matmul %9, %10, %cst_8 {dimension_numbers = #tpu.dot_dimension_numbers<[1], [0], [0], [1], [0, 0, 1, 1], [], []>} : vector<4x8xf32>, vector<8x16xf32>, vector<4x16xf32> -> vector<4x16xf32>
    %12 = arith.addf %7, %11 : vector<4x16xf32>
    %c2 = arith.constant 2 : index
    %c0_9 = arith.constant 0 : index
    %c0_10 = arith.constant 0 : index
    %13 = vector.load %arg1[%c2, %c0_9, %c0_10] : memref<7x4x8xf32, #tpu.memory_space<vmem>>, vector<1x4x8xf32>
    %14 = vector.shape_cast %13 : vector<1x4x8xf32> to vector<4x8xf32>
    %15 = vector.extract_strided_slice %1 {offsets = [0, 2], sizes = [8, 16], strides = [1, 1]} : vector<8x22xf32> to vector<8x16xf32>
    %cst_11 = arith.constant dense<0.000000e+00> : vector<4x16xf32>
    %16 = tpu.matmul %14, %15, %cst_11 {dimension_numbers = #tpu.dot_dimension_numbers<[1], [0], [0], [1], [0, 0, 1, 1], [], []>} : vector<4x8xf32>, vector<8x16xf32>, vector<4x16xf32> -> vector<4x16xf32>
    %17 = arith.addf %12, %16 : vector<4x16xf32>
    %c3 = arith.constant 3 : index
    %c0_12 = arith.constant 0 : index
    %c0_13 = arith.constant 0 : index
    %18 = vector.load %arg1[%c3, %c0_12, %c0_13] : memref<7x4x8xf32, #tpu.memory_space<vmem>>, vector<1x4x8xf32>
    %19 = vector.shape_cast %18 : vector<1x4x8xf32> to vector<4x8xf32>
    %20 = vector.extract_strided_slice %1 {offsets = [0, 3], sizes = [8, 16], strides = [1, 1]} : vector<8x22xf32> to vector<8x16xf32>
    %cst_14 = arith.constant dense<0.000000e+00> : vector<4x16xf32>
    %21 = tpu.matmul %19, %20, %cst_14 {dimension_numbers = #tpu.dot_dimension_numbers<[1], [0], [0], [1], [0, 0, 1, 1], [], []>} : vector<4x8xf32>, vector<8x16xf32>, vector<4x16xf32> -> vector<4x16xf32>
    %22 = arith.addf %17, %21 : vector<4x16xf32>
    %c4 = arith.constant 4 : index
    %c0_15 = arith.constant 0 : index
    %c0_16 = arith.constant 0 : index
    %23 = vector.load %arg1[%c4, %c0_15, %c0_16] : memref<7x4x8xf32, #tpu.memory_space<vmem>>, vector<1x4x8xf32>
    %24 = vector.shape_cast %23 : vector<1x4x8xf32> to vector<4x8xf32>
    %25 = vector.extract_strided_slice %1 {offsets = [0, 4], sizes = [8, 16], strides = [1, 1]} : vector<8x22xf32> to vector<8x16xf32>
    %cst_17 = arith.constant dense<0.000000e+00> : vector<4x16xf32>
    %26 = tpu.matmul %24, %25, %cst_17 {dimension_numbers = #tpu.dot_dimension_numbers<[1], [0], [0], [1], [0, 0, 1, 1], [], []>} : vector<4x8xf32>, vector<8x16xf32>, vector<4x16xf32> -> vector<4x16xf32>
    %27 = arith.addf %22, %26 : vector<4x16xf32>
    %c5 = arith.constant 5 : index
    %c0_18 = arith.constant 0 : index
    %c0_19 = arith.constant 0 : index
    %28 = vector.load %arg1[%c5, %c0_18, %c0_19] : memref<7x4x8xf32, #tpu.memory_space<vmem>>, vector<1x4x8xf32>
    %29 = vector.shape_cast %28 : vector<1x4x8xf32> to vector<4x8xf32>
    %30 = vector.extract_strided_slice %1 {offsets = [0, 5], sizes = [8, 16], strides = [1, 1]} : vector<8x22xf32> to vector<8x16xf32>
    %cst_20 = arith.constant dense<0.000000e+00> : vector<4x16xf32>
    %31 = tpu.matmul %29, %30, %cst_20 {dimension_numbers = #tpu.dot_dimension_numbers<[1], [0], [0], [1], [0, 0, 1, 1], [], []>} : vector<4x8xf32>, vector<8x16xf32>, vector<4x16xf32> -> vector<4x16xf32>
    %32 = arith.addf %27, %31 : vector<4x16xf32>
    %c6 = arith.constant 6 : index
    %c0_21 = arith.constant 0 : index
    %c0_22 = arith.constant 0 : index
    %33 = vector.load %arg1[%c6, %c0_21, %c0_22] : memref<7x4x8xf32, #tpu.memory_space<vmem>>, vector<1x4x8xf32>
    %34 = vector.shape_cast %33 : vector<1x4x8xf32> to vector<4x8xf32>
    %35 = vector.extract_strided_slice %1 {offsets = [0, 6], sizes = [8, 16], strides = [1, 1]} : vector<8x22xf32> to vector<8x16xf32>
    %cst_23 = arith.constant dense<0.000000e+00> : vector<4x16xf32>
    %36 = tpu.matmul %34, %35, %cst_23 {dimension_numbers = #tpu.dot_dimension_numbers<[1], [0], [0], [1], [0, 0, 1, 1], [], []>} : vector<4x8xf32>, vector<8x16xf32>, vector<4x16xf32> -> vector<4x16xf32>
    %37 = arith.addf %32, %36 : vector<4x16xf32>
    %c0_24 = arith.constant 0 : index
    %c0_25 = arith.constant 0 : index
    %38 = vector.load %arg2[%c0_24, %c0_25] : memref<4x1xf32, #tpu.memory_space<vmem>>, vector<4x1xf32>
    %39 = vector.broadcast %38 : vector<4x1xf32> to vector<4x16xf32>
    %40 = arith.addf %37, %39 : vector<4x16xf32>
    %c0_26 = arith.constant 0 : index
    %c0_27 = arith.constant 0 : index
    %c0_28 = arith.constant 0 : index
    %41 = vector.load %arg3[%c0_26, %c0_27, %c0_28] : memref<2x4x16xf32, #tpu.memory_space<vmem>>, vector<1x4x16xf32>
    %42 = vector.shape_cast %41 : vector<1x4x16xf32> to vector<4x16xf32>
    %43 = vector.shape_cast %40 : vector<4x16xf32> to vector<1x4x16xf32>
    tpu.vector_store %arg3[%c0_26, %c0_27, %c0_28], %43 {strides = array<i32>} : memref<2x4x16xf32, #tpu.memory_space<vmem>>, vector<1x4x16xf32>,
    %c1_29 = arith.constant 1 : index
    %c0_30 = arith.constant 0 : index
    %c0_31 = arith.constant 0 : index
    %44 = vector.load %arg0[%c1_29, %c0_30, %c0_31] : memref<2x8x22xf32, #tpu.memory_space<vmem>>, vector<1x8x22xf32>
    %45 = vector.shape_cast %44 : vector<1x8x22xf32> to vector<8x22xf32>
    %cst_32 = arith.constant 0.000000e+00 : f32
    %46 = vector.broadcast %cst_32 : f32 to vector<4x16xf32>
    %c0_33 = arith.constant 0 : index
    %c0_34 = arith.constant 0 : index
    %c0_35 = arith.constant 0 : index
    %47 = vector.load %arg1[%c0_33, %c0_34, %c0_35] : memref<7x4x8xf32, #tpu.memory_space<vmem>>, vector<1x4x8xf32>
    %48 = vector.shape_cast %47 : vector<1x4x8xf32> to vector<4x8xf32>
    %49 = vector.extract_strided_slice %45 {offsets = [0, 0], sizes = [8, 16], strides = [1, 1]} : vector<8x22xf32> to vector<8x16xf32>
    %cst_36 = arith.constant dense<0.000000e+00> : vector<4x16xf32>
    %50 = tpu.matmul %48, %49, %cst_36 {dimension_numbers = #tpu.dot_dimension_numbers<[1], [0], [0], [1], [0, 0, 1, 1], [], []>} : vector<4x8xf32>, vector<8x16xf32>, vector<4x16xf32> -> vector<4x16xf32>
    %51 = arith.addf %46, %50 : vector<4x16xf32>
    %c1_37 = arith.constant 1 : index
    %c0_38 = arith.constant 0 : index
    %c0_39 = arith.constant 0 : index
    %52 = vector.load %arg1[%c1_37, %c0_38, %c0_39] : memref<7x4x8xf32, #tpu.memory_space<vmem>>, vector<1x4x8xf32>
    %53 = vector.shape_cast %52 : vector<1x4x8xf32> to vector<4x8xf32>
    %54 = vector.extract_strided_slice %45 {offsets = [0, 1], sizes = [8, 16], strides = [1, 1]} : vector<8x22xf32> to vector<8x16xf32>
    %cst_40 = arith.constant dense<0.000000e+00> : vector<4x16xf32>
    %55 = tpu.matmul %53, %54, %cst_40 {dimension_numbers = #tpu.dot_dimension_numbers<[1], [0], [0], [1], [0, 0, 1, 1], [], []>} : vector<4x8xf32>, vector<8x16xf32>, vector<4x16xf32> -> vector<4x16xf32>
    %56 = arith.addf %51, %55 : vector<4x16xf32>
    %c2_41 = arith.constant 2 : index
    %c0_42 = arith.constant 0 : index
    %c0_43 = arith.constant 0 : index
    %57 = vector.load %arg1[%c2_41, %c0_42, %c0_43] : memref<7x4x8xf32, #tpu.memory_space<vmem>>, vector<1x4x8xf32>
    %58 = vector.shape_cast %57 : vector<1x4x8xf32> to vector<4x8xf32>
    %59 = vector.extract_strided_slice %45 {offsets = [0, 2], sizes = [8, 16], strides = [1, 1]} : vector<8x22xf32> to vector<8x16xf32>
    %cst_44 = arith.constant dense<0.000000e+00> : vector<4x16xf32>
    %60 = tpu.matmul %58, %59, %cst_44 {dimension_numbers = #tpu.dot_dimension_numbers<[1], [0], [0], [1], [0, 0, 1, 1], [], []>} : vector<4x8xf32>, vector<8x16xf32>, vector<4x16xf32> -> vector<4x16xf32>
    %61 = arith.addf %56, %60 : vector<4x16xf32>
    %c3_45 = arith.constant 3 : index
    %c0_46 = arith.constant 0 : index
    %c0_47 = arith.constant 0 : index
    %62 = vector.load %arg1[%c3_45, %c0_46, %c0_47] : memref<7x4x8xf32, #tpu.memory_space<vmem>>, vector<1x4x8xf32>
    %63 = vector.shape_cast %62 : vector<1x4x8xf32> to vector<4x8xf32>
    %64 = vector.extract_strided_slice %45 {offsets = [0, 3], sizes = [8, 16], strides = [1, 1]} : vector<8x22xf32> to vector<8x16xf32>
    %cst_48 = arith.constant dense<0.000000e+00> : vector<4x16xf32>
    %65 = tpu.matmul %63, %64, %cst_48 {dimension_numbers = #tpu.dot_dimension_numbers<[1], [0], [0], [1], [0, 0, 1, 1], [], []>} : vector<4x8xf32>, vector<8x16xf32>, vector<4x16xf32> -> vector<4x16xf32>
    %66 = arith.addf %61, %65 : vector<4x16xf32>
    %c4_49 = arith.constant 4 : index
    %c0_50 = arith.constant 0 : index
    %c0_51 = arith.constant 0 : index
    %67 = vector.load %arg1[%c4_49, %c0_50, %c0_51] : memref<7x4x8xf32, #tpu.memory_space<vmem>>, vector<1x4x8xf32>
    %68 = vector.shape_cast %67 : vector<1x4x8xf32> to vector<4x8xf32>
    %69 = vector.extract_strided_slice %45 {offsets = [0, 4], sizes = [8, 16], strides = [1, 1]} : vector<8x22xf32> to vector<8x16xf32>
    %cst_52 = arith.constant dense<0.000000e+00> : vector<4x16xf32>
    %70 = tpu.matmul %68, %69, %cst_52 {dimension_numbers = #tpu.dot_dimension_numbers<[1], [0], [0], [1], [0, 0, 1, 1], [], []>} : vector<4x8xf32>, vector<8x16xf32>, vector<4x16xf32> -> vector<4x16xf32>
    %71 = arith.addf %66, %70 : vector<4x16xf32>
    %c5_53 = arith.constant 5 : index
    %c0_54 = arith.constant 0 : index
    %c0_55 = arith.constant 0 : index
    %72 = vector.load %arg1[%c5_53, %c0_54, %c0_55] : memref<7x4x8xf32, #tpu.memory_space<vmem>>, vector<1x4x8xf32>
    %73 = vector.shape_cast %72 : vector<1x4x8xf32> to vector<4x8xf32>
    %74 = vector.extract_strided_slice %45 {offsets = [0, 5], sizes = [8, 16], strides = [1, 1]} : vector<8x22xf32> to vector<8x16xf32>
    %cst_56 = arith.constant dense<0.000000e+00> : vector<4x16xf32>
    %75 = tpu.matmul %73, %74, %cst_56 {dimension_numbers = #tpu.dot_dimension_numbers<[1], [0], [0], [1], [0, 0, 1, 1], [], []>} : vector<4x8xf32>, vector<8x16xf32>, vector<4x16xf32> -> vector<4x16xf32>
    %76 = arith.addf %71, %75 : vector<4x16xf32>
    %c6_57 = arith.constant 6 : index
    %c0_58 = arith.constant 0 : index
    %c0_59 = arith.constant 0 : index
    %77 = vector.load %arg1[%c6_57, %c0_58, %c0_59] : memref<7x4x8xf32, #tpu.memory_space<vmem>>, vector<1x4x8xf32>
    %78 = vector.shape_cast %77 : vector<1x4x8xf32> to vector<4x8xf32>
    %79 = vector.extract_strided_slice %45 {offsets = [0, 6], sizes = [8, 16], strides = [1, 1]} : vector<8x22xf32> to vector<8x16xf32>
    %cst_60 = arith.constant dense<0.000000e+00> : vector<4x16xf32>
    %80 = tpu.matmul %78, %79, %cst_60 {dimension_numbers = #tpu.dot_dimension_numbers<[1], [0], [0], [1], [0, 0, 1, 1], [], []>} : vector<4x8xf32>, vector<8x16xf32>, vector<4x16xf32> -> vector<4x16xf32>
    %81 = arith.addf %76, %80 : vector<4x16xf32>
    %c0_61 = arith.constant 0 : index
    %c0_62 = arith.constant 0 : index
    %82 = vector.load %arg2[%c0_61, %c0_62] : memref<4x1xf32, #tpu.memory_space<vmem>>, vector<4x1xf32>
    %83 = vector.broadcast %82 : vector<4x1xf32> to vector<4x16xf32>
    %84 = arith.addf %81, %83 : vector<4x16xf32>
    %c1_63 = arith.constant 1 : index
    %c0_64 = arith.constant 0 : index
    %c0_65 = arith.constant 0 : index
    %85 = vector.load %arg3[%c1_63, %c0_64, %c0_65] : memref<2x4x16xf32, #tpu.memory_space<vmem>>, vector<1x4x16xf32>
    %86 = vector.shape_cast %85 : vector<1x4x16xf32> to vector<4x16xf32>
    %87 = vector.shape_cast %84 : vector<4x16xf32> to vector<1x4x16xf32>
    tpu.vector_store %arg3[%c1_63, %c0_64, %c0_65], %87 {strides = array<i32>} : memref<2x4x16xf32, #tpu.memory_space<vmem>>, vector<1x4x16xf32>,
    return
  }
}

</mosaic_0001>

<bundles_post_ra>
// kernel: wavelet_unet_forward.13
= control target key start
LH: loop header
LB: loop body
LE: loop exit
PB: predicated region body
PF: predicated region fallthrough
CT: control target
= control target key end

     0   :  { %vm24_vm0 = vcmask 64512   ;;  %v445_v3 = vmov 0   ;;  %s525_s1 = inlined_call_operand.vmem [shape: f32[2,8,8], index: 1, kind: input, shape index: {}]   ;;  %s526_s0 = inlined_call_operand.vmem [shape: f32[2,8,8], index: 0, kind: input, shape index: {}]   ;;  %s527_s2 = inlined_call_operand.vmem [shape: f32[2,16,8], index: 2, kind: input, shape index: {}]   ;;  %s528_s3 = inlined_call_operand.vmem [shape: f32[16,1], index: 3, kind: input, shape index: {}]   ;;  %s529_s4 = inlined_call_operand.vmem [shape: f32[2,16,8], index: 4, kind: output, shape index: {}]  }
   0x1   :  { %v23_v0 = vld [vmem:[%s525_s1] sm:$0xff]  ;;  %v394_v2 = vld [vmem:[%s527_s2 + $0x10] sm:$0xff]  ;;  %443 = vset.pattern.permute.xlu0 %v445_v3  ;;  %444 = vset.pattern.permute.xlu1 %v445_v3  ;;  %v395_v5 = vld [vmem:[%s527_s2 + $0x18] sm:$0xff] }
   0x2   :  { %v19_v1 = vld [vmem:[%s526_s0] sm:$0xff]  ;;  %422 = vmatprep.subr.mxu0 %v23_v0  ;;  %v18_v6 = vld [vmem:[%s527_s2 + $0x8] sm:$0xff]  ;;  %424 = vmatprep.mubr.msk.f32.mxu0 %vm24_vm0, %v394_v2 }
   0x3   :  { %427 = vmatprep.subr.mxu1 %v19_v1  ;;  %v17_v4 = vld [vmem:[%s527_s2] sm:$0xff]  ;;  %423 = vmatpush3.msra.mxu0 %v23_v0  ;;  %v403_v7 = vld [vmem:[%s525_s1 + $0x8] sm:$0xff] }
   0x4   :  { %v400_v8 = vld [vmem:[%s526_s0 + $0x8] sm:$0xff]  ;;  %428 = vmatpush3.msra.mxu1 %v19_v1  ;;  %429 = vmatprep.mubr.msk.f32.mxu1 %vm24_vm0, %v17_v4  ;;  %v187_v9 = vld [vmem:[%s528_s3] sm:$0xff] }
   0x5   :  { %425 = vmatmul.mubr.msk.f32.vlgmr.msra.gmra.mxu0 %vm24_vm0, %v395_v5  ;;  %430 = vmatmul.mubr.msk.f32.vlgmr.msra.gmra.mxu1 %vm24_vm0, %v18_v6  ;;  %v188_v10 = vld [vmem:[%s528_s3 + $0x8] sm:$0xff] }
   0x6   :  { %432 = vmatprep.subr.mxu0 %v403_v7  ;;  %437 = vmatprep.subr.mxu1 %v400_v8 }
   0x7   :  { %433 = vmatpush3.msra.mxu0 %v403_v7  ;;  %438 = vmatpush3.msra.mxu1 %v400_v8 }
   0x8   :  { %434 = vmatprep.mubr.msk.f32.mxu0 %vm24_vm0, %v394_v2  ;;  %439 = vmatprep.mubr.msk.f32.mxu1 %vm24_vm0, %v17_v4 }
   0x9   :  { %435 = vmatmul.mubr.msk.f32.vlgmr.msra.gmra.mxu0 %vm24_vm0, %v395_v5  ;;  %440 = vmatmul.mubr.msk.f32.vlgmr.msra.gmra.mxu1 %vm24_vm0, %v18_v6 }
   0xa   :  { %191 = vperm.xlu0 %443, %v187_v9   ;;  %377 = vperm.xlu1 %444, %v187_v9  }
   0xe   :  { %196 = vperm.xlu0 %443, %v188_v10   ;;  %382 = vperm.xlu1 %444, %v188_v10  }
  0x85   :  { %v192_v11 = vpop.permute.xlu0 %191  ;;  %v378_v12 = vpop.permute.xlu1 %377 }
  0x89   :  { %v197_v13 = vpop.permute.xlu0 %196  ;;  %v383_v25 = vpop.permute.xlu1 %382 }
  0xc5   :  { %v426_v14 = vpop.f32.mrf.mxu0  ;;  %v431_v15 = vpop.f32.mrf.mxu1 }
  0xc6   :  { %v184_v16 = vadd.f32 %v431_v15, %v426_v14 }
  0xc7   :  { %v97_v17 = vpop.f32.mrf.mxu0  ;;  %v178_v18 = vpop.f32.mrf.mxu1 }
  0xc8   :  { %v179_v19 = vadd.f32 %v178_v18, %v97_v17  ;;  %v200_v20 = vadd.f32 %v197_v13, %v184_v16 }
  0xc9   :  { %v436_v21 = vpop.f32.mrf.mxu0  ;;  %v441_v22 = vpop.f32.mrf.mxu1 }
  0xca   :  { %v199_v23 = vadd.f32 %v192_v11, %v179_v19  ;;  %202 = vst.msk [vmem:[%s529_s4 + $0x8] sm:$0xff] %vm24_vm0, %v200_v20  ;;  %v370_v24 = vadd.f32 %v441_v22, %v436_v21 }
  0xcb   :  { %v283_v26 = vpop.f32.mrf.mxu0  ;;  %v364_v27 = vpop.f32.mrf.mxu1 }
  0xcc   :  { %201 = vst.msk [vmem:[%s529_s4] sm:$0xff] %vm24_vm0, %v199_v23  ;;  %v386_v28 = vadd.f32 %v383_v25, %v370_v24  ;;  %v365_v29 = vadd.f32 %v364_v27, %v283_v26 }
  0xce   :  { %409 = vst.msk [vmem:[%s529_s4 + $0x18] sm:$0xff] %vm24_vm0, %v386_v28  ;;  %v385_v30 = vadd.f32 %v378_v12, %v365_v29 }
  0xd0   :  { %408 = vst.msk [vmem:[%s529_s4 + $0x10] sm:$0xff] %vm24_vm0, %v385_v30 }

// kernel: wavelet_unet_forward.11
= control target key start
LH: loop header
LB: loop body
LE: loop exit
PB: predicated region body
PF: predicated region fallthrough
CT: control target
= control target key end

     0   :  { %v1298_v1 = vmov 0.0   ;;  %vm25_vm0 = vcmask 1043456   ;;  %vm1299_vm1 = vmmov 0   ;;  %s1300_s14 = smov 127   ;;  %s1301_s15 = smov 125   ;;  %vm21_vm2 = vcmask 31744   ;;  %s1439_s0 = inlined_call_operand.vmem [shape: f32[2,4,22], index: 0, kind: input, shape index: {}]   ;;  %s1440_s1 = inlined_call_operand.vmem [shape: f32[7,8,4], index: 1, kind: input, shape index: {}]   ;;  %s1441_s2 = inlined_call_operand.vmem [shape: f32[8,1], index: 2, kind: input, shape index: {}]   ;;  %s1442_s3 = inlined_call_operand.vmem [shape: f32[2,8,16], index: 3, kind: output, shape index: {}]  }
   0x1   :  { %v14_v0 = vld [vmem:[%s1439_s0] sm:$0xf]  ;;  %1217 = vmatprep.subr.mxu0 %v1298_v1  ;;  %1219 = vmatprep.mubr.msk.f32.mxu0 %vm1299_vm1, %v1298_v1  ;;  %s1302_s18 = smov 126   ;;  %s1303_s19 = smov 124   ;;  %v1167_v3 = vld [vmem:[%s1439_s0 + $0x4] sm:$0xf] }
   0x2   :  { %19 = vrot.lane.b32.xlu0 %v14_v0, %s1300_s14  ;;  %255 = vrot.lane.b32.xlu1 %v14_v0, %s1301_s15  ;;  %v1336_v2 = vld [vmem:[%s1440_s1] sm:$0xff]  ;;  %s1304_s20 = smov 123   ;;  %s1305_s21 = smov 122   ;;  %v1306_v4 = vmov 0   ;;  %v1147_v6 = vld [vmem:[%s1440_s1 + $0x8] sm:$0xff]  ;;  %vm580_vm3 = vcmask 130048  }
   0x3   :  { %1222 = vmatprep.subr.mxu1 %v1298_v1  ;;  %1224 = vmatprep.mubr.msk.f32.mxu1 %vm1299_vm1, %v1298_v1  ;;  %v573_v5 = vld [vmem:[%s1441_s2] sm:$0xff]  ;;  %v1155_v9 = vld [vmem:[%s1440_s1 + $0x18] sm:$0xff]  ;;  %v1152_v10 = vld [vmem:[%s1440_s1 + $0x10] sm:$0xff] }
   0x4   :  { %1223 = vmatpush3.msk.msra.mxu1 %vm25_vm0, %v14_v0  ;;  %1296 = vset.pattern.permute.xlu0 %v1306_v4  ;;  %v1158_v13 = vld [vmem:[%s1440_s1 + $0x20] sm:$0xff]  ;;  %v1161_v14 = vld [vmem:[%s1440_s1 + $0x28] sm:$0xff]  ;;  %v1164_v17 = vld [vmem:[%s1440_s1 + $0x30] sm:$0xff] }
   0x5   :  { %1232 = vmatprep.subr.mxu1 %v1298_v1  ;;  %1225 = vmatmul.mubr.msk.f32.vlgmr.msra.gmra.mxu1 %vm21_vm2, %v1336_v2 }
   0x6   :  { %175 = vrot.lane.b32.xlu0 %v14_v0, %s1302_s18  ;;  %335 = vrot.lane.b32.xlu1 %v14_v0, %s1303_s19 }
   0x7   :  { %1234 = vmatprep.mubr.msk.f32.mxu1 %vm1299_vm1, %v1298_v1  ;;  %1297 = vset.pattern.permute.xlu1 %v1306_v4 }
   0xa   :  { %415 = vrot.lane.b32.xlu0 %v14_v0, %s1304_s20  ;;  %495 = vrot.lane.b32.xlu1 %v14_v0, %s1305_s21 }
   0xe   :  { %587 = vrot.lane.b32.xlu0 %v1167_v3, %s1300_s14  ;;  %740 = vrot.lane.b32.xlu1 %v1167_v3, %s1302_s18 }
  0x12   :  { %819 = vrot.lane.b32.xlu0 %v1167_v3, %s1301_s15  ;;  %898 = vrot.lane.b32.xlu1 %v1167_v3, %s1303_s19 }
  0x16   :  { %977 = vrot.lane.b32.xlu0 %v1167_v3, %s1304_s20  ;;  %1056 = vrot.lane.b32.xlu1 %v1167_v3, %s1305_s21 }
  0x1a   :  { %576 = vperm.xlu0 %1296, %v573_v5   ;;  %1137 = vperm.xlu1 %1297, %v573_v5  }
  0x74   :  { %v20_v7 = vpop.permute.xlu0 %19  ;;  %v256_v8 = vpop.permute.xlu1 %255 }
  0x75   :  { %1218 = vmatpush3.msk.msra.mxu0 %vm25_vm0, %v20_v7  ;;  %1233 = vmatpush3.msk.msra.mxu1 %vm25_vm0, %v256_v8 }
  0x76   :  { %1220 = vmatmul.mubr.msk.f32.vlgmr.msra.gmra.mxu0 %vm21_vm2, %v1147_v6  ;;  %1227 = vmatprep.subr.mxu0 %v1298_v1 }
  0x77   :  { %1229 = vmatprep.mubr.msk.f32.mxu0 %vm1299_vm1, %v1298_v1  ;;  %1235 = vmatmul.mubr.msk.f32.vlgmr.msra.gmra.mxu1 %vm21_vm2, %v1155_v9 }
  0x78   :  { %v176_v11 = vpop.permute.xlu0 %175  ;;  %v336_v12 = vpop.permute.xlu1 %335  ;;  %1242 = vmatprep.subr.mxu1 %v1298_v1  ;;  %1244 = vmatprep.mubr.msk.f32.mxu1 %vm1299_vm1, %v1298_v1 }
  0x79   :  { %1228 = vmatpush3.msk.msra.mxu0 %vm25_vm0, %v176_v11 }
  0x7a   :  { %1230 = vmatmul.mubr.msk.f32.vlgmr.msra.gmra.mxu0 %vm21_vm2, %v1152_v10  ;;  %1237 = vmatprep.subr.mxu0 %v1298_v1 }
  0x7b   :  { %1238 = vmatpush3.msk.msra.mxu0 %vm25_vm0, %v336_v12  ;;  %1239 = vmatprep.mubr.msk.f32.mxu0 %vm1299_vm1, %v1298_v1 }
  0x7c   :  { %v416_v15 = vpop.permute.xlu0 %415  ;;  %v496_v16 = vpop.permute.xlu1 %495  ;;  %1247 = vmatprep.subr.mxu0 %v1298_v1 }
  0x7d   :  { %1243 = vmatpush3.msk.msra.mxu1 %vm25_vm0, %v416_v15 }
  0x7e   :  { %1240 = vmatmul.mubr.msk.f32.vlgmr.msra.gmra.mxu0 %vm21_vm2, %v1158_v13  ;;  %1245 = vmatmul.mubr.msk.f32.vlgmr.msra.gmra.mxu1 %vm21_vm2, %v1161_v14 }
  0x7f   :  { %1248 = vmatpush3.msk.msra.mxu0 %vm25_vm0, %v496_v16  ;;  %1249 = vmatprep.mubr.msk.f32.mxu0 %vm1299_vm1, %v1298_v1 }
  0x80   :  { %v588_v18 = vpop.permute.xlu0 %587  ;;  %1252 = vmatprep.subr.mxu1 %v1298_v1  ;;  %1254 = vmatprep.mubr.msk.f32.mxu1 %vm1299_vm1, %v1298_v1  ;;  %v741_v19 = vpop.permute.xlu1 %740 }
  0x81   :  { %1253 = vmatpush3.msk.msra.mxu1 %vm25_vm0, %v588_v18  ;;  %1257 = vmatprep.subr.mxu0 %v1298_v1 }
  0x82   :  { %1250 = vmatmul.mubr.msk.f32.vlgmr.msra.gmra.mxu0 %vm21_vm2, %v1164_v17  ;;  %1255 = vmatmul.mubr.msk.f32.vlgmr.msra.gmra.mxu1 %vm21_vm2, %v1147_v6 }
  0x83   :  { %1258 = vmatpush3.msk.msra.mxu0 %vm25_vm0, %v1167_v3  ;;  %1259 = vmatprep.mubr.msk.f32.mxu0 %vm1299_vm1, %v1298_v1 }
  0x84   :  { %1262 = vmatprep.subr.mxu1 %v1298_v1  ;;  %1267 = vmatprep.subr.mxu0 %v1298_v1  ;;  %v820_v20 = vpop.permute.xlu0 %819  ;;  %v899_v21 = vpop.permute.xlu1 %898 }
  0x85   :  { %1263 = vmatpush3.msk.msra.mxu1 %vm25_vm0, %v741_v19  ;;  %1264 = vmatprep.mubr.msk.f32.mxu1 %vm1299_vm1, %v1298_v1 }
  0x86   :  { %1260 = vmatmul.mubr.msk.f32.vlgmr.msra.gmra.mxu0 %vm21_vm2, %v1336_v2  ;;  %1265 = vmatmul.mubr.msk.f32.vlgmr.msra.gmra.mxu1 %vm21_vm2, %v1152_v10 }
  0x87   :  { %1268 = vmatpush3.msk.msra.mxu0 %vm25_vm0, %v820_v20  ;;  %1269 = vmatprep.mubr.msk.f32.mxu0 %vm1299_vm1, %v1298_v1 }
  0x88   :  { %1272 = vmatprep.subr.mxu1 %v1298_v1  ;;  %1277 = vmatprep.subr.mxu0 %v1298_v1  ;;  %v978_v22 = vpop.permute.xlu0 %977  ;;  %v1057_v23 = vpop.permute.xlu1 %1056 }
  0x89   :  { %1273 = vmatpush3.msk.msra.mxu1 %vm25_vm0, %v899_v21  ;;  %1274 = vmatprep.mubr.msk.f32.mxu1 %vm1299_vm1, %v1298_v1 }
  0x8a   :  { %1270 = vmatmul.mubr.msk.f32.vlgmr.msra.gmra.mxu0 %vm21_vm2, %v1155_v9  ;;  %1275 = vmatmul.mubr.msk.f32.vlgmr.msra.gmra.mxu1 %vm21_vm2, %v1158_v13 }
  0x8b   :  { %1278 = vmatpush3.msk.msra.mxu0 %vm25_vm0, %v978_v22  ;;  %1279 = vmatprep.mubr.msk.f32.mxu0 %vm1299_vm1, %v1298_v1 }
  0x8c   :  { %1282 = vmatprep.subr.mxu1 %v1298_v1  ;;  %1284 = vmatprep.mubr.msk.f32.mxu1 %vm1299_vm1, %v1298_v1 }
  0x8d   :  { %1283 = vmatpush3.msk.msra.mxu1 %vm25_vm0, %v1057_v23 }
  0x8e   :  { %1280 = vmatmul.mubr.msk.f32.vlgmr.msra.gmra.mxu0 %vm21_vm2, %v1161_v14  ;;  %1285 = vmatmul.mubr.msk.f32.vlgmr.msra.gmra.mxu1 %vm21_vm2, %v1164_v17 }
  0x95   :  { %v577_v41 = vpop.permute.xlu0 %576  ;;  %v1138_v63 = vpop.permute.xlu1 %1137 }
  0xc5   :  { %v169_v24 = vpop.f32.mrf.mxu1 }
  0xc7   :  { %v1226_v25 = vpop.f32.mrf.mxu1 }
 0x136   :  { %v94_v26 = vpop.f32.mrf.mxu0 }
 0x137   :  { %v328_v27 = vpop.f32.mrf.mxu1  ;;  %v170_v29 = vadd.f32 %v169_v24, %v94_v26 }
 0x138   :  { %v1221_v28 = vpop.f32.mrf.mxu0 }
 0x139   :  { %v1236_v30 = vpop.f32.mrf.mxu1 }
 0x13a   :  { %v248_v31 = vpop.f32.mrf.mxu0 }
 0x13b   :  { %v252_v32 = vadd.f32 %v248_v31, %v170_v29 }
 0x13c   :  { %v1231_v33 = vpop.f32.mrf.mxu0 }
 0x13d   :  { %v332_v34 = vadd.f32 %v328_v27, %v252_v32 }
 0x13e   :  { %v408_v35 = vpop.f32.mrf.mxu0  ;;  %v488_v36 = vpop.f32.mrf.mxu1 }
 0x13f   :  { %v412_v37 = vadd.f32 %v408_v35, %v332_v34 }
 0x140   :  { %v1241_v38 = vpop.f32.mrf.mxu0  ;;  %v1246_v39 = vpop.f32.mrf.mxu1 }
 0x141   :  { %v492_v40 = vadd.f32 %v488_v36, %v412_v37 }
 0x142   :  { %v568_v42 = vpop.f32.mrf.mxu0  ;;  %v660_v43 = vpop.f32.mrf.mxu1 }
 0x143   :  { %v572_v44 = vadd.f32 %v568_v42, %v492_v40 }
 0x144   :  { %v1251_v45 = vpop.f32.mrf.mxu0  ;;  %v1256_v46 = vpop.f32.mrf.mxu1 }
 0x145   :  { %v579_v47 = vadd.f32 %v577_v41, %v572_v44 }
 0x146   :  { %v735_v48 = vpop.f32.mrf.mxu0  ;;  %v813_v49 = vpop.f32.mrf.mxu1 }
 0x147   :  { %581 = vst.msk [vmem:[%s1442_s3] sm:$0xff] %vm580_vm3, %v579_v47  ;;  %v736_v50 = vadd.f32 %v735_v48, %v660_v43 }
 0x148   :  { %v1261_v51 = vpop.f32.mrf.mxu0  ;;  %v1266_v52 = vpop.f32.mrf.mxu1 }
 0x149   :  { %v817_v53 = vadd.f32 %v813_v49, %v736_v50 }
 0x14a   :  { %v892_v54 = vpop.f32.mrf.mxu0  ;;  %v971_v55 = vpop.f32.mrf.mxu1 }
 0x14b   :  { %v896_v56 = vadd.f32 %v892_v54, %v817_v53 }
 0x14c   :  { %v1271_v57 = vpop.f32.mrf.mxu0  ;;  %v1276_v58 = vpop.f32.mrf.mxu1 }
 0x14d   :  { %v975_v59 = vadd.f32 %v971_v55, %v896_v56 }
 0x14e   :  { %v1050_v60 = vpop.f32.mrf.mxu0  ;;  %v1129_v61 = vpop.f32.mrf.mxu1 }
 0x14f   :  { %v1054_v62 = vadd.f32 %v1050_v60, %v975_v59 }
 0x150   :  { %v1281_v0 = vpop.f32.mrf.mxu0  ;;  %v1286_v1 = vpop.f32.mrf.mxu1 }
 0x151   :  { %v1133_v2 = vadd.f32 %v1129_v61, %v1054_v62 }
 0x153   :  { %v1140_v3 = vadd.f32 %v1138_v63, %v1133_v2 }
 0x155   :  { %1188 = vst.msk [vmem:[%s1442_s3 + $0x8] sm:$0xff] %vm580_vm3, %v1140_v3 }

// kernel: wavelet_unet_forward.12
= control target key start
LH: loop header
LB: loop body
LE: loop exit
PB: predicated region body
PF: predicated region fallthrough
CT: control target
= control target key end

     0   :  { %v3190_v1 = vmov 0   ;;  %s3191_s19 = smov 124   ;;  %s3192_s20 = smov 126   ;;  %v3193_v3 = vmov 0.0   ;;  %vm3194_vm0 = vmmov 0   ;;  %vm58_vm1 = vcmask 64512   ;;  %s3645_s0 = inlined_call_operand.vmem [shape: f32[2,8,22], index: 0, kind: input, shape index: {}]   ;;  %s3646_s2 = inlined_call_operand.vmem [shape: f32[8,1], index: 2, kind: input, shape index: {}]   ;;  %s3647_s4 = inlined_call_operand.vmem [shape: f32[8,1], index: 4, kind: input, shape index: {}]   ;;  %s3648_s7 = inlined_call_operand.vmem [shape: f32[8,24], index: 7, kind: input, shape index: {}]   ;;  %s3649_s6 = inlined_call_operand.vmem [shape: f32[8,1], index: 6, kind: input, shape index: {}]   ;;  %s3650_s1 = inlined_call_operand.vmem [shape: f32[3,8,8], index: 1, kind: input, shape index: {}]   ;;  %s3651_s3 = inlined_call_operand.vmem [shape: f32[5,8,8], index: 3, kind: input, shape index: {}]   ;;  %s3652_s5 = inlined_call_operand.vmem [shape: f32[7,8,8], index: 5, kind: input, shape index: {}]   ;;  %s3653_s8 = inlined_call_operand.vmem [shape: f32[8,1], index: 8, kind: input, shape index: {}]   ;;  %s3654_s9 = inlined_call_operand.vmem [shape: f32[8,1], index: 9, kind: input, shape index: {}]   ;;  %s3655_s10 = inlined_call_operand.vmem [shape: f32[8,1], index: 10, kind: input, shape index: {}]   ;;  %s3656_s11 = inlined_call_operand.vmem [shape: f32[2,8,16], index: 11, kind: output, shape index: {}]  }
   0x1   :  { %v3264_v0 = vld [vmem:[%s3645_s0] sm:$0xff]  ;;  %3178 = vset.pattern.permute.xlu1 %v3190_v1  ;;  %3179 = vset.pattern.permute.xlu0 %v3190_v1  ;;  %s3195_s23 = smov 125   ;;  %s3196_s24 = smov 127   ;;  %v3297_v7 = vld [vmem:[%s3645_s0 + $0x8] sm:$0xff]  ;;  %v3331_v12 = vld [vmem:[%s3650_s1 + $0x10] sm:$0xff]  ;;  %vm2748_vm2 = vcmask 130048  }
   0x2   :  { %214 = vrot.lane.b32.xlu1 %v3264_v0, %s3191_s19  ;;  %55 = vrot.lane.b32.xlu0 %v3264_v0, %s3192_s20  ;;  %v46_v2 = vld [vmem:[%s3646_s2] sm:$0xff]  ;;  %s3197_s2 = smov 123   ;;  %s3198_s29 = smov 120   ;;  %v3326_v11 = vld [vmem:[%s3650_s1 + $0x8] sm:$0xff] }
   0x3   :  { %2987 = vmatprep.subr.mxu0 %v3193_v3  ;;  %2989 = vmatprep.mubr.msk.f32.mxu0 %vm3194_vm0, %v3193_v3  ;;  %v366_v4 = vld [vmem:[%s3647_s4] sm:$0xff]  ;;  %s3199_s13 = smov 122   ;;  %s3200_s4 = smov 112   ;;  %v2874_v16 = vld [vmem:[%s3651_s3 + $0x10] sm:$0xff]  ;;  %v3483_v46 = vld [vmem:[%s3651_s3 + $0x8] sm:$0xff] }
   0x4   :  { %2992 = vmatprep.subr.mxu1 %v3193_v3  ;;  %2994 = vmatprep.mubr.msk.f32.mxu1 %vm3194_vm0, %v3193_v3  ;;  %v3287_v5 = vld [vmem:[%s3648_s7] sm:$0xff]  ;;  %v2884_v23 = vld [vmem:[%s3652_s5 + $0x10] sm:$0xff]  ;;  %v3494_v49 = vld [vmem:[%s3651_s3 + $0x18] sm:$0xff] }
   0x5   :  { %v833_v6 = vld [vmem:[%s3649_s6] sm:$0xff]  ;;  %v3411_v28 = vld [vmem:[%s3652_s5 + $0x30] sm:$0xff] }
   0x6   :  { %49 = vperm.xlu1 %3178, %v46_v2   ;;  %135 = vrot.lane.b32.xlu0 %v3264_v0, %s3195_s23  ;;  %v3310_v8 = vld [vmem:[%s3650_s1] sm:$0xff] }
   0x7   :  { %v373_v14 = vld [vmem:[%s3651_s3] sm:$0xff] }
   0x8   :  { %v2878_v18 = vld [vmem:[%s3651_s3 + $0x20] sm:$0xff] }
   0x9   :  { %v840_v20 = vld [vmem:[%s3652_s5] sm:$0xff] }
   0xa   :  { %374 = vrot.lane.b32.xlu0 %v3264_v0, %s3196_s24  ;;  %681 = vrot.lane.b32.xlu1 %v3264_v0, %s3197_s2  ;;  %v2888_v26 = vld [vmem:[%s3652_s5 + $0x20] sm:$0xff] }
   0xb   :  { %v39_v34 = vld [vmem:[%s3653_s8] sm:$0xff] }
   0xe   :  { %369 = vperm.xlu0 %3179, %v366_v4   ;;  %758 = vrot.lane.b32.xlu1 %v3287_v5, %s3198_s29 }
  0x12   :  { %836 = vperm.xlu0 %3179, %v833_v6   ;;  %1297 = vrot.lane.b32.xlu1 %v3264_v0, %s3199_s13 }
  0x16   :  { %1452 = vrot.lane.b32.xlu0 %v3297_v7, %s3192_s20  ;;  %1374 = vrot.lane.b32.xlu1 %v3287_v5, %s3200_s4 }
  0x1a   :  { %1600 = vrot.lane.b32.xlu0 %v3297_v7, %s3191_s19  ;;  %1526 = vrot.lane.b32.xlu1 %v3297_v7, %s3195_s23 }
  0x1e   :  { %2032 = vrot.lane.b32.xlu0 %v3297_v7, %s3197_s2  ;;  %1745 = vrot.lane.b32.xlu1 %v3297_v7, %s3196_s24 }
  0x22   :  { %2603 = vrot.lane.b32.xlu1 %v3297_v7, %s3199_s13  ;;  %42 = vperm.xlu0 %3179, %v39_v34  }
  0x74   :  { %v3312_v9 = vpop.permute.xlu0 %55  ;;  %v3314_v10 = vpop.permute.xlu1 %214 }
  0x75   :  { %2988 = vmatpush3.msra.mxu0 %v3312_v9 }
  0x76   :  { %2990 = vmatmul.mubr.msk.f32.vlgmr.msra.gmra.mxu0 %vm58_vm1, %v3310_v8  ;;  %2997 = vmatprep.subr.mxu0 %v3193_v3 }
  0x77   :  { %2998 = vmatpush3.msra.mxu0 %v3314_v10  ;;  %2999 = vmatprep.mubr.msk.f32.mxu0 %vm3194_vm0, %v3193_v3 }
  0x78   :  { %v3333_v13 = vpop.permute.xlu0 %135  ;;  %3007 = vmatprep.subr.mxu0 %v3193_v3 }
  0x79   :  { %2993 = vmatpush3.msra.mxu1 %v3333_v13 }
  0x7a   :  { %2995 = vmatmul.mubr.msk.f32.vlgmr.msra.gmra.mxu1 %vm58_vm1, %v3326_v11  ;;  %3000 = vmatmul.mubr.msk.f32.vlgmr.msra.gmra.mxu0 %vm58_vm1, %v3331_v12 }
  0x7b   :  { %3009 = vmatprep.mubr.msk.f32.mxu0 %vm3194_vm0, %v3193_v3  ;;  %3002 = vmatprep.subr.mxu1 %v3193_v3 }
  0x7c   :  { %v3347_v15 = vpop.permute.xlu0 %374  ;;  %3004 = vmatprep.mubr.msk.f32.mxu1 %vm3194_vm0, %v3193_v3 }
  0x7d   :  { %3008 = vmatpush3.msra.mxu0 %v3347_v15 }
  0x7e   :  { %3017 = vmatprep.subr.mxu0 %v3193_v3  ;;  %3010 = vmatmul.mubr.msk.f32.vlgmr.msra.gmra.mxu0 %vm58_vm1, %v373_v14 }
  0x7f   :  { %3018 = vmatpush3.msra.mxu0 %v3333_v13  ;;  %3019 = vmatprep.mubr.msk.f32.mxu0 %vm3194_vm0, %v3193_v3 }
  0x80   :  { %3027 = vmatprep.subr.mxu0 %v3193_v3 }
  0x81   :  { %v3361_v17 = vpop.permute.xlu1 %49 }
  0x82   :  { %3020 = vmatmul.mubr.msk.f32.vlgmr.msra.gmra.mxu0 %vm58_vm1, %v2874_v16 }
  0x83   :  { %3029 = vmatprep.mubr.msk.f32.mxu0 %vm3194_vm0, %v3193_v3 }
  0x85   :  { %v3369_v19 = vpop.permute.xlu1 %681 }
  0x86   :  { %3028 = vmatpush3.msra.mxu0 %v3369_v19 }
  0x87   :  { %3030 = vmatmul.mubr.msk.f32.vlgmr.msra.gmra.mxu0 %vm58_vm1, %v2878_v18  ;;  %3037 = vmatprep.subr.mxu0 %v3193_v3 }
  0x88   :  { %3038 = vmatpush3.msra.mxu0 %v3264_v0  ;;  %3039 = vmatprep.mubr.msk.f32.mxu0 %vm3194_vm0, %v3193_v3 }
  0x89   :  { %3047 = vmatprep.subr.mxu0 %v3193_v3  ;;  %v3381_v21 = vpop.permute.xlu1 %758  ;;  %v3383_v22 = vpop.permute.xlu0 %369 }
  0x8b   :  { %3040 = vmatmul.mubr.msk.f32.vlgmr.msra.gmra.mxu0 %vm58_vm1, %v840_v20 }
  0x8c   :  { %3048 = vmatpush3.msra.mxu0 %v3312_v9  ;;  %3049 = vmatprep.mubr.msk.f32.mxu0 %vm3194_vm0, %v3193_v3 }
  0x8d   :  { %3057 = vmatprep.subr.mxu0 %v3193_v3  ;;  %v1298_v24 = vpop.permute.xlu1 %1297  ;;  %v3394_v25 = vpop.permute.xlu0 %836 }
  0x8f   :  { %3050 = vmatmul.mubr.msk.f32.vlgmr.msra.gmra.mxu0 %vm58_vm1, %v2884_v23 }
  0x90   :  { %3058 = vmatpush3.msra.mxu0 %v3314_v10  ;;  %3059 = vmatprep.mubr.msk.f32.mxu0 %vm3194_vm0, %v3193_v3 }
  0x91   :  { %3067 = vmatprep.subr.mxu0 %v3193_v3  ;;  %v3403_v27 = vpop.permute.xlu1 %1374  ;;  %v3414_v29 = vpop.permute.xlu0 %1452 }
  0x93   :  { %3060 = vmatmul.mubr.msk.f32.vlgmr.msra.gmra.mxu0 %vm58_vm1, %v2888_v26 }
  0x94   :  { %3068 = vmatpush3.msra.mxu0 %v1298_v24  ;;  %3069 = vmatprep.mubr.msk.f32.mxu0 %vm3194_vm0, %v3193_v3 }
  0x95   :  { %3077 = vmatprep.subr.mxu0 %v3193_v3  ;;  %v3418_v30 = vpop.permute.xlu1 %1526  ;;  %v3424_v31 = vpop.permute.xlu0 %1600 }
  0x97   :  { %3070 = vmatmul.mubr.msk.f32.vlgmr.msra.gmra.mxu0 %vm58_vm1, %v3411_v28 }
  0x98   :  { %3078 = vmatpush3.msra.mxu0 %v3414_v29  ;;  %3079 = vmatprep.mubr.msk.f32.mxu0 %vm3194_vm0, %v3193_v3 }
  0x99   :  { %3087 = vmatprep.subr.mxu0 %v3193_v3  ;;  %v3431_v32 = vpop.permute.xlu1 %1745  ;;  %v3448_v33 = vpop.permute.xlu0 %2032 }
  0x9b   :  { %3080 = vmatmul.mubr.msk.f32.vlgmr.msra.gmra.mxu0 %vm58_vm1, %v3310_v8 }
  0x9c   :  { %3088 = vmatpush3.msra.mxu0 %v3424_v31  ;;  %3089 = vmatprep.mubr.msk.f32.mxu0 %vm3194_vm0, %v3193_v3 }
  0x9d   :  { %3097 = vmatprep.subr.mxu0 %v3193_v3 }
  0x9f   :  { %3090 = vmatmul.mubr.msk.f32.vlgmr.msra.gmra.mxu0 %vm58_vm1, %v3331_v12 }
  0xa0   :  { %3098 = vmatpush3.msra.mxu0 %v3431_v32  ;;  %3099 = vmatprep.mubr.msk.f32.mxu0 %vm3194_vm0, %v3193_v3 }
  0xa1   :  { %3107 = vmatprep.subr.mxu0 %v3193_v3 }
  0xa3   :  { %3100 = vmatmul.mubr.msk.f32.vlgmr.msra.gmra.mxu0 %vm58_vm1, %v373_v14 }
  0xa4   :  { %3108 = vmatpush3.msra.mxu0 %v3418_v30  ;;  %3109 = vmatprep.mubr.msk.f32.mxu0 %vm3194_vm0, %v3193_v3 }
  0xa5   :  { %3117 = vmatprep.subr.mxu0 %v3193_v3 }
  0xa7   :  { %3110 = vmatmul.mubr.msk.f32.vlgmr.msra.gmra.mxu0 %vm58_vm1, %v2874_v16 }
  0xa8   :  { %3119 = vmatprep.mubr.msk.f32.mxu0 %vm3194_vm0, %v3193_v3  ;;  %3118 = vmatpush3.msra.mxu0 %v3448_v33 }
  0xa9   :  { %3127 = vmatprep.subr.mxu0 %v3193_v3 }
  0xab   :  { %3120 = vmatmul.mubr.msk.f32.vlgmr.msra.gmra.mxu0 %vm58_vm1, %v2878_v18 }
  0xac   :  { %3128 = vmatpush3.msra.mxu0 %v3297_v7  ;;  %3129 = vmatprep.mubr.msk.f32.mxu0 %vm3194_vm0, %v3193_v3 }
  0xad   :  { %3137 = vmatprep.subr.mxu0 %v3193_v3 }
  0xaf   :  { %3130 = vmatmul.mubr.msk.f32.vlgmr.msra.gmra.mxu0 %vm58_vm1, %v840_v20 }
  0xb0   :  { %3138 = vmatpush3.msra.mxu0 %v3414_v29  ;;  %3139 = vmatprep.mubr.msk.f32.mxu0 %vm3194_vm0, %v3193_v3 }
  0xb1   :  { %3147 = vmatprep.subr.mxu0 %v3193_v3 }
  0xb3   :  { %3140 = vmatmul.mubr.msk.f32.vlgmr.msra.gmra.mxu0 %vm58_vm1, %v2884_v23 }
  0xb4   :  { %3148 = vmatpush3.msra.mxu0 %v3424_v31  ;;  %3149 = vmatprep.mubr.msk.f32.mxu0 %vm3194_vm0, %v3193_v3 }
  0xb5   :  { %3157 = vmatprep.subr.mxu0 %v3193_v3 }
  0xb7   :  { %3150 = vmatmul.mubr.msk.f32.vlgmr.msra.gmra.mxu0 %vm58_vm1, %v2888_v26 }
  0xb8   :  { %3159 = vmatprep.mubr.msk.f32.mxu0 %vm3194_vm0, %v3193_v3 }
 0x136   :  { %v128_v35 = vpop.f32.mrf.mxu0 }
 0x137   :  { %v132_v36 = vadd.f32 %v128_v35, %v3361_v17 }
 0x138   :  { %v2991_v37 = vpop.f32.mrf.mxu0 }
 0x139   :  { %v3545_v37 = vld [vmem:[%s3652_s5 + $0x28] sm:$0xff] }
 0x13a   :  { %v207_v38 = vpop.f32.mrf.mxu1  ;;  %v286_v39 = vpop.f32.mrf.mxu0 }
 0x13b   :  { %v211_v40 = vadd.f32 %v207_v38, %v132_v36  ;;  %v3523_v36 = vld [vmem:[%s3652_s5 + $0x8] sm:$0xff]  ;;  %v3552_v38 = vpop.permute.xlu0 %42 }
 0x13c   :  { %v2996_v41 = vpop.f32.mrf.mxu1  ;;  %v3001_v42 = vpop.f32.mrf.mxu0 }
 0x13d   :  { %v290_v43 = vadd.f32 %v286_v39, %v211_v40 }
 0x13e   :  { %v446_v44 = vpop.f32.mrf.mxu0 }
 0x13f   :  { %3003 = vmatpush3.msra.mxu1 %v290_v43  ;;  %v450_v12 = vadd.f32 %v446_v44, %v3383_v22 }
 0x140   :  { %3005 = vmatmul.mubr.msk.f32.vlgmr.msra.gmra.mxu1 %vm58_vm1, %v3287_v5  ;;  %3012 = vmatprep.subr.mxu1 %v3193_v3  ;;  %v3011_v45 = vpop.f32.mrf.mxu0 }
 0x141   :  { %3013 = vmatpush3.msra.mxu1 %v3312_v9  ;;  %3014 = vmatprep.mubr.msk.f32.mxu1 %vm3194_vm0, %v3193_v3 }
 0x142   :  { %v598_v47 = vpop.f32.mrf.mxu0  ;;  %3022 = vmatprep.subr.mxu1 %v3193_v3 }
 0x144   :  { %3015 = vmatmul.mubr.msk.f32.vlgmr.msra.gmra.mxu1 %vm58_vm1, %v3483_v46  ;;  %v3021_v48 = vpop.f32.mrf.mxu0 }
 0x145   :  { %3023 = vmatpush3.msra.mxu1 %v3314_v10  ;;  %3024 = vmatprep.mubr.msk.f32.mxu1 %vm3194_vm0, %v3193_v3 }
 0x146   :  { %3032 = vmatprep.subr.mxu1 %v3193_v3 }
 0x147   :  { %v753_v50 = vpop.f32.mrf.mxu0 }
 0x148   :  { %3025 = vmatmul.mubr.msk.f32.vlgmr.msra.gmra.mxu1 %vm58_vm1, %v3494_v49 }
 0x149   :  { %v3031_v51 = vpop.f32.mrf.mxu0  ;;  %3034 = vmatprep.mubr.msk.f32.mxu1 %vm3194_vm0, %v3193_v3 }
 0x14b   :  { %v910_v52 = vpop.f32.mrf.mxu0 }
 0x14c   :  { %v914_v42 = vadd.f32 %v910_v52, %v3394_v25  ;;  %v2604_v52 = vpop.permute.xlu1 %2603 }
 0x14d   :  { %v3041_v53 = vpop.f32.mrf.mxu0  ;;  %3158 = vmatpush3.msra.mxu0 %v2604_v52 }
 0x14e   :  { %3160 = vmatmul.mubr.msk.f32.vlgmr.msra.gmra.mxu0 %vm58_vm1, %v3411_v28 }
 0x14f   :  { %v1062_v54 = vpop.f32.mrf.mxu0 }
 0x151   :  { %v3051_v55 = vpop.f32.mrf.mxu0 }
 0x153   :  { %v1214_v56 = vpop.f32.mrf.mxu0 }
 0x155   :  { %v3061_v57 = vpop.f32.mrf.mxu0 }
 0x157   :  { %v1369_v58 = vpop.f32.mrf.mxu0 }
 0x159   :  { %v3071_v59 = vpop.f32.mrf.mxu0 }
 0x15b   :  { %v3501_v60 = vpop.f32.mrf.mxu0 }
 0x15d   :  { %v3081_v61 = vpop.f32.mrf.mxu0 }
 0x15f   :  { %v3503_v62 = vpop.f32.mrf.mxu0 }
 0x161   :  { %v3091_v63 = vpop.f32.mrf.mxu0 }
 0x162   :  { %v1525_v63 = vadd.f32 %v3501_v60, %v3361_v17 }
 0x163   :  { %v3505_v0 = vpop.f32.mrf.mxu0 }
 0x165   :  { %v3101_v1 = vpop.f32.mrf.mxu0 }
 0x167   :  { %v3507_v2 = vpop.f32.mrf.mxu0 }
 0x169   :  { %v3111_v4 = vpop.f32.mrf.mxu0 }
 0x16b   :  { %v3509_v6 = vpop.f32.mrf.mxu0 }
 0x16d   :  { %v3121_v7 = vpop.f32.mrf.mxu0 }
 0x16f   :  { %v3511_v8 = vpop.f32.mrf.mxu0 }
 0x171   :  { %v3131_v9 = vpop.f32.mrf.mxu0 }
 0x200   :  { %v361_v10 = vpop.f32.mrf.mxu1 }
 0x202   :  { %v3006_v14 = vpop.f32.mrf.mxu1 }
 0x204   :  { %v522_v16 = vpop.f32.mrf.mxu1 }
 0x205   :  { %v526_v18 = vadd.f32 %v522_v16, %v450_v12 }
 0x206   :  { %v3016_v20 = vpop.f32.mrf.mxu1 }
 0x207   :  { %v602_v23 = vadd.f32 %v598_v47, %v526_v18 }
 0x208   :  { %v674_v24 = vpop.f32.mrf.mxu1 }
 0x209   :  { %v678_v26 = vadd.f32 %v674_v24, %v602_v23  ;;  %v2247_v23 = vadd.f32 %v3511_v8, %v3394_v25 }
 0x20a   :  { %v3026_v34 = vpop.f32.mrf.mxu1 }
 0x20b   :  { %v757_v35 = vadd.f32 %v753_v50, %v678_v26 }
 0x20d   :  { %3033 = vmatpush3.msra.mxu1 %v757_v35 }
 0x20e   :  { %3035 = vmatmul.mubr.msk.f32.vlgmr.msra.gmra.mxu1 %vm58_vm1, %v3381_v21  ;;  %3042 = vmatprep.subr.mxu1 %v3193_v3 }
 0x20f   :  { %3043 = vmatpush3.msra.mxu1 %v3347_v15  ;;  %3044 = vmatprep.mubr.msk.f32.mxu1 %vm3194_vm0, %v3193_v3  ;;  %v3534_v15 = vld [vmem:[%s3652_s5 + $0x18] sm:$0xff] }
 0x210   :  { %3052 = vmatprep.subr.mxu1 %v3193_v3 }
 0x212   :  { %3045 = vmatmul.mubr.msk.f32.vlgmr.msra.gmra.mxu1 %vm58_vm1, %v3523_v36 }
 0x213   :  { %3053 = vmatpush3.msra.mxu1 %v3333_v13  ;;  %3054 = vmatprep.mubr.msk.f32.mxu1 %vm3194_vm0, %v3193_v3 }
 0x214   :  { %3062 = vmatprep.subr.mxu1 %v3193_v3 }
 0x216   :  { %3055 = vmatmul.mubr.msk.f32.vlgmr.msra.gmra.mxu1 %vm58_vm1, %v3534_v15 }
 0x217   :  { %3063 = vmatpush3.msra.mxu1 %v3369_v19  ;;  %3064 = vmatprep.mubr.msk.f32.mxu1 %vm3194_vm0, %v3193_v3  ;;  %v365_v19 = vadd.f32 %v361_v10, %v3552_v38 }
 0x218   :  { %3072 = vmatprep.subr.mxu1 %v3193_v3 }
 0x21a   :  { %3065 = vmatmul.mubr.msk.f32.vlgmr.msra.gmra.mxu1 %vm58_vm1, %v3545_v37 }
 0x21b   :  { %3074 = vmatprep.mubr.msk.f32.mxu1 %vm3194_vm0, %v3193_v3 }
 0x2ce   :  { %v828_v39 = vpop.f32.mrf.mxu1 }
 0x2cf   :  { %v832_v40 = vadd.f32 %v828_v39, %v365_v19 }
 0x2d0   :  { %v3036_v41 = vpop.f32.mrf.mxu1 }
 0x2d2   :  { %v986_v43 = vpop.f32.mrf.mxu1 }
 0x2d3   :  { %v990_v44 = vadd.f32 %v986_v43, %v914_v42 }
 0x2d4   :  { %v3046_v45 = vpop.f32.mrf.mxu1 }
 0x2d5   :  { %v1066_v47 = vadd.f32 %v1062_v54, %v990_v44 }
 0x2d6   :  { %v1138_v48 = vpop.f32.mrf.mxu1 }
 0x2d7   :  { %v1142_v50 = vadd.f32 %v1138_v48, %v1066_v47 }
 0x2d8   :  { %v3056_v51 = vpop.f32.mrf.mxu1 }
 0x2d9   :  { %v1218_v53 = vadd.f32 %v1214_v56, %v1142_v50 }
 0x2da   :  { %v1290_v55 = vpop.f32.mrf.mxu1 }
 0x2db   :  { %v1294_v57 = vadd.f32 %v1290_v55, %v1218_v53 }
 0x2dc   :  { %v3066_v59 = vpop.f32.mrf.mxu1 }
 0x2dd   :  { %v1373_v61 = vadd.f32 %v1369_v58, %v1294_v57  ;;  %v2780_v57 = vld [vmem:[%s3655_s10] sm:$0xff] }
 0x2df   :  { %3073 = vmatpush3.msra.mxu1 %v1373_v61 }
 0x2e0   :  { %3075 = vmatmul.mubr.msk.f32.vlgmr.msra.gmra.mxu1 %vm58_vm1, %v3403_v27  ;;  %3082 = vmatprep.subr.mxu1 %v3193_v3 }
 0x2e1   :  { %3083 = vmatpush3.msra.mxu1 %v3418_v30  ;;  %3084 = vmatprep.mubr.msk.f32.mxu1 %vm3194_vm0, %v3193_v3 }
 0x2e2   :  { %3092 = vmatprep.subr.mxu1 %v3193_v3 }
 0x2e4   :  { %3085 = vmatmul.mubr.msk.f32.vlgmr.msra.gmra.mxu1 %vm58_vm1, %v3326_v11 }
 0x2e5   :  { %3094 = vmatprep.mubr.msk.f32.mxu1 %vm3194_vm0, %v3193_v3 }
 0x3a0   :  { %v1444_v54 = vpop.f32.mrf.mxu1 }
 0x3a1   :  { %v3569_v56 = vadd.f32 %v1444_v54, %v832_v40 }
 0x3a2   :  { %v3076_v58 = vpop.f32.mrf.mxu1 }
 0x3a3   :  { %v2749_v1 = vsel %vm2748_vm2, %v3569_v56, 0.0 }
 0x3a4   :  { %v1595_v11 = vpop.f32.mrf.mxu1  ;;  %2750 = vadd.xlane.f32.xlu1 %v2749_v1 }
 0x3a5   :  { %v1599_v4 = vadd.f32 %v1595_v11, %v1525_v63 }
 0x3a6   :  { %v3086_v7 = vpop.f32.mrf.mxu1 }
 0x3a7   :  { %v1673_v9 = vadd.f32 %v3503_v62, %v1599_v4 }
 0x3a9   :  { %3093 = vmatpush3.msra.mxu1 %v1673_v9 }
 0x3aa   :  { %3095 = vmatmul.mubr.msk.f32.vlgmr.msra.gmra.mxu1 %vm58_vm1, %v3287_v5  ;;  %3102 = vmatprep.subr.mxu1 %v3193_v3  ;;  %v2816_v5 = vld [vmem:[%s3654_s9] sm:$0xff] }
 0x3ab   :  { %3103 = vmatpush3.msra.mxu1 %v3414_v29  ;;  %3104 = vmatprep.mubr.msk.f32.mxu1 %vm3194_vm0, %v3193_v3  ;;  %v1818_v29 = vadd.f32 %v3505_v0, %v3383_v22 }
 0x3ac   :  { %3112 = vmatprep.subr.mxu1 %v3193_v3 }
 0x3ae   :  { %3105 = vmatmul.mubr.msk.f32.vlgmr.msra.gmra.mxu1 %vm58_vm1, %v3483_v46 }
 0x3af   :  { %3113 = vmatpush3.msra.mxu1 %v3424_v31  ;;  %3114 = vmatprep.mubr.msk.f32.mxu1 %vm3194_vm0, %v3193_v3 }
 0x3b0   :  { %3122 = vmatprep.subr.mxu1 %v3193_v3 }
 0x3b2   :  { %3115 = vmatmul.mubr.msk.f32.vlgmr.msra.gmra.mxu1 %vm58_vm1, %v3494_v49 }
 0x3b3   :  { %3124 = vmatprep.mubr.msk.f32.mxu1 %vm3194_vm0, %v3193_v3 }
 0x3b5   :  { %2820 = vperm.xlu1 %3178, %v2816_v5  }
 0x42d   :  { %v2751_v8 = vpop.xlane.xlu1 %2750 }
 0x431   :  { %v2821_v59 = vpop.permute.xlu1 %2820 }
 0x46a   :  { %v1740_v17 = vpop.f32.mrf.mxu1 }
 0x46b   :  { %v1744_v16 = vadd.f32 %v1740_v17, %v3552_v38 }
 0x46c   :  { %v3096_v28 = vpop.f32.mrf.mxu1 }
 0x46e   :  { %v1885_v31 = vpop.f32.mrf.mxu1 }
 0x46f   :  { %v1889_v46 = vadd.f32 %v1885_v31, %v1818_v29 }
 0x470   :  { %v3106_v60 = vpop.f32.mrf.mxu1 }
 0x471   :  { %v1960_v62 = vadd.f32 %v3507_v2, %v1889_v46 }
 0x472   :  { %v2027_v10 = vpop.f32.mrf.mxu1 }
 0x473   :  { %v2031_v49 = vadd.f32 %v2027_v10, %v1960_v62 }
 0x474   :  { %v3116_v12 = vpop.f32.mrf.mxu1 }
 0x475   :  { %v2105_v14 = vadd.f32 %v3509_v6, %v2031_v49 }
 0x477   :  { %3123 = vmatpush3.msra.mxu1 %v2105_v14 }
 0x478   :  { %3125 = vmatmul.mubr.msk.f32.vlgmr.msra.gmra.mxu1 %vm58_vm1, %v3381_v21  ;;  %3132 = vmatprep.subr.mxu1 %v3193_v3  ;;  %v2385_v21 = vpop.f32.mrf.mxu0 }
 0x479   :  { %3133 = vmatpush3.msra.mxu1 %v3431_v32  ;;  %3134 = vmatprep.mubr.msk.f32.mxu1 %vm3194_vm0, %v3193_v3 }
 0x47a   :  { %3142 = vmatprep.subr.mxu1 %v3193_v3  ;;  %v3141_v22 = vpop.f32.mrf.mxu0 }
 0x47c   :  { %3135 = vmatmul.mubr.msk.f32.vlgmr.msra.gmra.mxu1 %vm58_vm1, %v3523_v36  ;;  %v2527_v32 = vpop.f32.mrf.mxu0 }
 0x47d   :  { %3143 = vmatpush3.msra.mxu1 %v3418_v30  ;;  %3144 = vmatprep.mubr.msk.f32.mxu1 %vm3194_vm0, %v3193_v3 }
 0x47e   :  { %3152 = vmatprep.subr.mxu1 %v3193_v3  ;;  %v3151_v0 = vpop.f32.mrf.mxu0 }
 0x480   :  { %3145 = vmatmul.mubr.msk.f32.vlgmr.msra.gmra.mxu1 %vm58_vm1, %v3534_v15  ;;  %v2672_v2 = vpop.f32.mrf.mxu0 }
 0x481   :  { %3153 = vmatpush3.msra.mxu1 %v3448_v33  ;;  %3154 = vmatprep.mubr.msk.f32.mxu1 %vm3194_vm0, %v3193_v3 }
 0x482   :  { %3162 = vmatprep.subr.mxu1 %v3193_v3  ;;  %v3161_v6 = vpop.f32.mrf.mxu0 }
 0x484   :  { %3155 = vmatmul.mubr.msk.f32.vlgmr.msra.gmra.mxu1 %vm58_vm1, %v3545_v37 }
 0x485   :  { %3164 = vmatprep.mubr.msk.f32.mxu1 %vm3194_vm0, %v3193_v3 }
 0x538   :  { %v2172_v33 = vpop.f32.mrf.mxu1 }
 0x539   :  { %v2176_v18 = vadd.f32 %v2172_v33, %v1744_v16 }
 0x53a   :  { %v3126_v20 = vpop.f32.mrf.mxu1 }
 0x53c   :  { %v2314_v24 = vpop.f32.mrf.mxu1 }
 0x53d   :  { %v2318_v26 = vadd.f32 %v2314_v24, %v2247_v23 }
 0x53e   :  { %v3136_v34 = vpop.f32.mrf.mxu1 }
 0x53f   :  { %v2389_v35 = vadd.f32 %v2385_v21, %v2318_v26 }
 0x540   :  { %v2456_v36 = vpop.f32.mrf.mxu1 }
 0x541   :  { %v2460_v3 = vadd.f32 %v2456_v36, %v2389_v35 }
 0x542   :  { %v3146_v15 = vpop.f32.mrf.mxu1 }
 0x543   :  { %v2531_v37 = vadd.f32 %v2527_v32, %v2460_v3 }
 0x544   :  { %v2598_v19 = vpop.f32.mrf.mxu1 }
 0x545   :  { %v2602_v39 = vadd.f32 %v2598_v19, %v2531_v37 }
 0x546   :  { %v3156_v40 = vpop.f32.mrf.mxu1 }
 0x547   :  { %v2676_v41 = vadd.f32 %v2672_v2, %v2602_v39 }
 0x549   :  { %3163 = vmatpush3.msra.mxu1 %v2676_v41 }
 0x54a   :  { %3165 = vmatmul.mubr.msk.f32.vlgmr.msra.gmra.mxu1 %vm58_vm1, %v3403_v27 }
 0x60a   :  { %v2743_v38 = vpop.f32.mrf.mxu1 }
 0x60b   :  { %v2747_v42 = vadd.f32 %v2743_v38, %v2176_v18 }
 0x60c   :  { %v3166_v43 = vpop.f32.mrf.mxu1 }
 0x60d   :  { %v2752_v25 = vsel %vm2748_vm2, %v2747_v42, 0.0 }
 0x60e   :  { %2753 = vadd.xlane.f32.xlu0 %v2752_v25 }
 0x624   :  { %2776 = vperm.xlu0 %3179, %v2816_v5  }
 0x697   :  { %v2754_v44 = vpop.xlane.xlu0 %2753 }
 0x698   :  { %v2755_v45 = vadd.f32 %v2754_v44, %v2751_v8 }
 0x69a   :  { %v2757_v47 = vmul.f32 0.03125, %v2755_v45 }
 0x69c   :  { %v2758_v48 = vsub.f32 %v3569_v56, %v2757_v47  ;;  %v2763_v50 = vsub.f32 %v2747_v42, %v2757_v47 }
 0x69e   :  { %v2764_v51 = vmul.f32 %v2763_v50, %v2763_v50  ;;  %v2759_v53 = vmul.f32 %v2758_v48, %v2758_v48 }
 0x69f   :  { %v2777_v61 = vpop.permute.xlu0 %2776 }
 0x6a0   :  { %v2765_v55 = vsel %vm2748_vm2, %v2764_v51, 0.0  ;;  %v2760_v27 = vsel %vm2748_vm2, %v2759_v53, 0.0 }
 0x6a1   :  { %2766 = vadd.xlane.f32.xlu1 %v2765_v55  ;;  %2761 = vadd.xlane.f32.xlu0 %v2760_v27 }
 0x6b2   :  { %2783 = vperm.xlu1 %3178, %v2780_v57  }
 0x6b7   :  { %2827 = vperm.xlu0 %3179, %v2780_v57  }
 0x72a   :  { %v2762_v52 = vpop.xlane.xlu0 %2761  ;;  %v2767_v54 = vpop.xlane.xlu1 %2766 }
 0x72b   :  { %v2768_v56 = vadd.f32 %v2767_v54, %v2762_v52 }
 0x72d   :  { %v2769_v58 = vmul.f32 0.03125, %v2768_v56 }
 0x72e   :  { %v2784_v5 = vpop.permute.xlu1 %2783 }
 0x72f   :  { %v2770_v63 = vadd.f32 1e-05, %v2769_v58 }
 0x731   :  { %3180 = vrsqrt.f32 %v2770_v63 }
 0x732   :  { %v2828_v17 = vpop.permute.xlu0 %2827 }
 0x73e   :  { %v3181_v1 = vpop.eup %3180 }
 0x73f   :  { %v2773_v11 = vmul.f32 %v3181_v1, %v2758_v48  ;;  %v2817_v4 = vmul.f32 %v3181_v1, %v2763_v50 }
 0x741   :  { %v2779_v7 = vmul.f32 %v2777_v61, %v2773_v11  ;;  %v2823_v9 = vmul.f32 %v2821_v59, %v2817_v4 }
 0x743   :  { %v2786_v28 = vadd.f32 %v2784_v5, %v2779_v7  ;;  %v2830_v29 = vadd.f32 %v2828_v17, %v2823_v9 }
 0x745   :  { %v2788_v31 = vmul.f32 0.70710677, %v2786_v28  ;;  %v2832_v46 = vmul.f32 0.70710677, %v2830_v29  ;;  %v2787_v55 = vmul.f32 0.5, %v2786_v28  ;;  %v2831_v59 = vmul.f32 0.5, %v2830_v29 }
 0x747   :  { %v2789_v60 = vand.u32 2147483647, %v2788_v31  ;;  %v2833_v62 = vand.u32 2147483647, %v2832_v46  ;;  %vm2809_vm3 = vcmp.ge.f32.partialorder %v2788_v31, 0.0  ;;  %vm2853_vm4 = vcmp.ge.f32.partialorder %v2832_v46, 0.0 }
 0x749   :  { %v2790_v10 = vmul.f32 0.3275911, %v2789_v60  ;;  %v2834_v49 = vmul.f32 0.3275911, %v2833_v62  ;;  %v2803_v21 = vsub.f32 0.0, %v2789_v60  ;;  %v2847_v22 = vsub.f32 0.0, %v2833_v62 }
 0x74b   :  { %v2791_v12 = vadd.f32 1.0, %v2790_v10  ;;  %v2835_v14 = vadd.f32 1.0, %v2834_v49  ;;  %v2804_v32 = vmul.f32 %v2803_v21, %v2789_v60  ;;  %v2848_v0 = vmul.f32 %v2847_v22, %v2833_v62 }
 0x74d   :  { %3182 = vrcp.f32 %v2791_v12  ;;  %v2805_v33 = vmul.f32 1.442695, %v2804_v32  ;;  %v2849_v20 = vmul.f32 1.442695, %v2848_v0 }
 0x74e   :  { %3184 = vrcp.f32 %v2835_v14 }
 0x74f   :  { %3186 = vpow2.f32 %v2805_v33 }
 0x750   :  { %3188 = vpow2.f32 %v2849_v20 }
 0x75a   :  { %v3183_v2 = vpop.eup %3182 }
 0x75b   :  { %v3185_v6 = vpop.eup %3184  ;;  %v2794_v16 = vmul.f32 1.0614054, %v3183_v2 }
 0x75c   :  { %v2838_v18 = vmul.f32 1.0614054, %v3185_v6  ;;  %v3187_v43 = vpop.eup %3186 }
 0x75d   :  { %v2795_v23 = vadd.f32 -1.4531521, %v2794_v16  ;;  %v3189_v8 = vpop.eup %3188 }
 0x75e   :  { %v2839_v24 = vadd.f32 -1.4531521, %v2838_v18 }
 0x75f   :  { %v2796_v26 = vmul.f32 %v3183_v2, %v2795_v23 }
 0x760   :  { %v2840_v34 = vmul.f32 %v3185_v6, %v2839_v24 }
 0x761   :  { %v2797_v35 = vadd.f32 1.4214138, %v2796_v26 }
 0x762   :  { %v2841_v36 = vadd.f32 1.4214138, %v2840_v34 }
 0x763   :  { %v2798_v3 = vmul.f32 %v3183_v2, %v2797_v35 }
 0x764   :  { %v2842_v15 = vmul.f32 %v3185_v6, %v2841_v36 }
 0x765   :  { %v2799_v37 = vadd.f32 -0.28449672, %v2798_v3 }
 0x766   :  { %v2843_v19 = vadd.f32 -0.28449672, %v2842_v15 }
 0x767   :  { %v2800_v39 = vmul.f32 %v3183_v2, %v2799_v37 }
 0x768   :  { %v2844_v40 = vmul.f32 %v3185_v6, %v2843_v19 }
 0x769   :  { %v2801_v41 = vadd.f32 0.2548296, %v2800_v39 }
 0x76a   :  { %v2845_v38 = vadd.f32 0.2548296, %v2844_v40 }
 0x76b   :  { %v2802_v42 = vmul.f32 %v3183_v2, %v2801_v41 }
 0x76c   :  { %v2846_v25 = vmul.f32 %v3185_v6, %v2845_v38 }
 0x76d   :  { %v2807_v44 = vmul.f32 %v3187_v43, %v2802_v42 }
 0x76e   :  { %v2851_v45 = vmul.f32 %v3189_v8, %v2846_v25 }
 0x76f   :  { %v2808_v47 = vsub.f32 1.0, %v2807_v44 }
 0x770   :  { %v2852_v48 = vsub.f32 1.0, %v2851_v45 }
 0x771   :  { %v2810_v50 = vsub.f32 0.0, %v2808_v47 }
 0x772   :  { %v2854_v51 = vsub.f32 0.0, %v2852_v48 }
 0x773   :  { %v2811_v53 = vsel %vm2809_vm3, %v2808_v47, %v2810_v50 }
 0x774   :  { %v2812_v27 = vadd.f32 1.0, %v2811_v53  ;;  %v2855_v57 = vsel %vm2853_vm4, %v2852_v48, %v2854_v51 }
 0x775   :  { %v2856_v61 = vadd.f32 1.0, %v2855_v57 }
 0x776   :  { %v2813_v52 = vmul.f32 %v2812_v27, %v2787_v55 }
 0x777   :  { %v2857_v54 = vmul.f32 %v2856_v61, %v2831_v59 }
 0x778   :  { %v2814_v56 = vadd.f32 %v2813_v52, %v3333_v13 }
 0x779   :  { %v2858_v58 = vadd.f32 %v2857_v54, %v3418_v30 }
 0x77a   :  { %2815 = vst.msk [vmem:[%s3656_s11] sm:$0xff] %vm2748_vm2, %v2814_v56 }
 0x77b   :  { %2914 = vst.msk [vmem:[%s3656_s11 + $0x8] sm:$0xff] %vm2748_vm2, %v2858_v58 }

// kernel: wavelet_unet_forward.15
= control target key start
LH: loop header
LB: loop body
LE: loop exit
PB: predicated region body
PF: predicated region fallthrough
CT: control target
= control target key end

     0   :  { %v602_v3 = vmov 0   ;;  %vm30_vm0 = vcmask 130048   ;;  %vm253_vm1 = vcmask 31744   ;;  %s736_s1 = inlined_call_operand.vmem [shape: f32[2,16,4], index: 1, kind: input, shape index: {}]   ;;  %s737_s0 = inlined_call_operand.vmem [shape: f32[2,16,4], index: 0, kind: input, shape index: {}]   ;;  %s738_s2 = inlined_call_operand.vmem [shape: f32[2,32,16], index: 2, kind: input, shape index: {}]   ;;  %s739_s3 = inlined_call_operand.vmem [shape: f32[32,1], index: 3, kind: input, shape index: {}]   ;;  %s740_s4 = inlined_call_operand.vmem [shape: f32[2,32,4], index: 4, kind: output, shape index: {}]  }
   0x1   :  { %v29_v0 = vld [vmem:[%s736_s1 + $0x8] sm:$0xff]  ;;  %v28_v2 = vld [vmem:[%s736_s1] sm:$0xff]  ;;  %601 = vset.pattern.permute.xlu1 %v602_v3  ;;  %600 = vset.pattern.permute.xlu0 %v602_v3  ;;  %v522_v9 = vld [vmem:[%s736_s1 + $0x18] sm:$0xff] }
   0x2   :  { %v22_v1 = vld [vmem:[%s737_s0 + $0x8] sm:$0xff]  ;;  %559 = vmatprep.subr.mxu0 %v29_v0  ;;  %v21_v4 = vld [vmem:[%s737_s0] sm:$0xff]  ;;  %v516_v10 = vld [vmem:[%s737_s0 + $0x18] sm:$0xff] }
   0x3   :  { %569 = vmatprep.subr.mxu1 %v22_v1  ;;  %v503_v5 = vld [vmem:[%s738_s2 + $0x20] sm:$0xff]  ;;  %560 = vmatpush3.msra.mxu0 %v29_v0  ;;  %v504_v7 = vld [vmem:[%s738_s2 + $0x28] sm:$0xff]  ;;  %v505_v11 = vld [vmem:[%s738_s2 + $0x30] sm:$0xff] }
   0x4   :  { %570 = vmatpush3.msra.mxu1 %v22_v1  ;;  %v17_v6 = vld [vmem:[%s738_s2] sm:$0xff]  ;;  %561 = vmatprep.subr.mxu0 %v28_v2  ;;  %v18_v8 = vld [vmem:[%s738_s2 + $0x8] sm:$0xff]  ;;  %v19_v12 = vld [vmem:[%s738_s2 + $0x10] sm:$0xff] }
   0x5   :  { %571 = vmatprep.subr.mxu1 %v21_v4  ;;  %562 = vmatpush3.msra.mxu0 %v28_v2  ;;  %v506_v13 = vld [vmem:[%s738_s2 + $0x38] sm:$0xff]  ;;  %v521_v15 = vld [vmem:[%s736_s1 + $0x10] sm:$0xff]  ;;  %v225_v18 = vld [vmem:[%s739_s3] sm:$0xff] }
   0x6   :  { %563 = vmatprep.mubr.msk.f32.mxu0 %vm30_vm0, %v503_v5  ;;  %572 = vmatpush3.msra.mxu1 %v21_v4  ;;  %v20_v14 = vld [vmem:[%s738_s2 + $0x18] sm:$0xff]  ;;  %v515_v16 = vld [vmem:[%s737_s0 + $0x10] sm:$0xff]  ;;  %v226_v20 = vld [vmem:[%s739_s3 + $0x8] sm:$0xff] }
   0x7   :  { %573 = vmatprep.mubr.msk.f32.mxu1 %vm30_vm0, %v17_v6  ;;  %564 = vmatmul.mubr.msk.f32.vlgmr.msra.gmra.mxu0 %vm30_vm0, %v504_v7  ;;  %v227_v17 = vld [vmem:[%s739_s3 + $0x10] sm:$0xff]  ;;  %v228_v19 = vld [vmem:[%s739_s3 + $0x18] sm:$0xff] }
   0x8   :  { %574 = vmatmul.mubr.msk.f32.vlgmr.msra.gmra.mxu1 %vm30_vm0, %v18_v8  ;;  %579 = vmatprep.subr.mxu0 %v522_v9 }
   0x9   :  { %589 = vmatprep.subr.mxu1 %v516_v10  ;;  %580 = vmatpush3.msra.mxu0 %v522_v9 }
   0xa   :  { %590 = vmatpush3.msra.mxu1 %v516_v10  ;;  %566 = vmatprep.mubr.msk.f32.mxu0 %vm30_vm0, %v505_v11 }
   0xb   :  { %576 = vmatprep.mubr.msk.f32.mxu1 %vm30_vm0, %v19_v12  ;;  %567 = vmatmul.mubr.msk.f32.gmra.mxu0 %vm30_vm0, %v506_v13 }
   0xc   :  { %577 = vmatmul.mubr.msk.f32.gmra.mxu1 %vm30_vm0, %v20_v14  ;;  %581 = vmatprep.subr.mxu0 %v521_v15 }
   0xd   :  { %591 = vmatprep.subr.mxu1 %v515_v16  ;;  %582 = vmatpush3.msra.mxu0 %v521_v15 }
   0xe   :  { %592 = vmatpush3.msra.mxu1 %v515_v16  ;;  %583 = vmatprep.mubr.msk.f32.mxu0 %vm30_vm0, %v503_v5 }
   0xf   :  { %593 = vmatprep.mubr.msk.f32.mxu1 %vm30_vm0, %v17_v6  ;;  %584 = vmatmul.mubr.msk.f32.vlgmr.msra.gmra.mxu0 %vm30_vm0, %v504_v7 }
  0x10   :  { %594 = vmatmul.mubr.msk.f32.vlgmr.msra.gmra.mxu1 %vm30_vm0, %v18_v8  ;;  %586 = vmatprep.mubr.msk.f32.mxu0 %vm30_vm0, %v505_v11 }
  0x11   :  { %596 = vmatprep.mubr.msk.f32.mxu1 %vm30_vm0, %v19_v12  ;;  %241 = vperm.xlu1 %601, %v227_v17  }
  0x12   :  { %231 = vperm.xlu0 %600, %v225_v18  }
  0x13   :  { %587 = vmatmul.mubr.msk.f32.gmra.mxu0 %vm30_vm0, %v506_v13 }
  0x14   :  { %597 = vmatmul.mubr.msk.f32.gmra.mxu1 %vm30_vm0, %v20_v14 }
  0x15   :  { %246 = vperm.xlu1 %601, %v228_v19  }
  0x16   :  { %236 = vperm.xlu0 %600, %v226_v20  }
  0x19   :  { %477 = vperm.xlu1 %601, %v226_v20  }
  0x1a   :  { %472 = vperm.xlu0 %600, %v225_v18  }
  0x1d   :  { %487 = vperm.xlu1 %601, %v228_v19  }
  0x1e   :  { %482 = vperm.xlu0 %600, %v227_v17  }
  0x8c   :  { %v242_v21 = vpop.permute.xlu1 %241 }
  0x8d   :  { %v232_v22 = vpop.permute.xlu0 %231 }
  0x90   :  { %v247_v25 = vpop.permute.xlu1 %246 }
  0x91   :  { %v237_v26 = vpop.permute.xlu0 %236 }
  0x94   :  { %v478_v38 = vpop.permute.xlu1 %477 }
  0x95   :  { %v473_v43 = vpop.permute.xlu0 %472 }
  0x98   :  { %v488_v52 = vpop.permute.xlu1 %487 }
  0x99   :  { %v483_v59 = vpop.permute.xlu0 %482 }
  0xc7   :  { %v565_v23 = vpop.f32.mrf.mxu0 }
  0xc8   :  { %v575_v24 = vpop.f32.mrf.mxu1 }
  0xc9   :  { %v212_v27 = vadd.f32 %v575_v24, %v565_v23  ;;  %v109_v28 = vpop.f32.mrf.mxu0 }
  0xca   :  { %v206_v29 = vpop.f32.mrf.mxu1 }
  0xcb   :  { %v250_v30 = vadd.f32 %v237_v26, %v212_v27  ;;  %v207_v31 = vadd.f32 %v206_v29, %v109_v28  ;;  %v568_v32 = vpop.f32.mrf.mxu0 }
  0xcc   :  { %v578_v33 = vpop.f32.mrf.mxu1 }
  0xcd   :  { %255 = vst.msk [vmem:[%s740_s4 + $0x8] sm:$0xff] %vm253_vm1, %v250_v30  ;;  %v249_v34 = vadd.f32 %v232_v22, %v207_v31  ;;  %v222_v35 = vadd.f32 %v578_v33, %v568_v32  ;;  %v119_v36 = vpop.f32.mrf.mxu0 }
  0xce   :  { %v216_v37 = vpop.f32.mrf.mxu1 }
  0xcf   :  { %254 = vst.msk [vmem:[%s740_s4] sm:$0xff] %vm253_vm1, %v249_v34  ;;  %v252_v39 = vadd.f32 %v247_v25, %v222_v35  ;;  %v217_v40 = vadd.f32 %v216_v37, %v119_v36  ;;  %v585_v41 = vpop.f32.mrf.mxu0 }
  0xd0   :  { %v595_v42 = vpop.f32.mrf.mxu1 }
  0xd1   :  { %257 = vst.msk [vmem:[%s740_s4 + $0x18] sm:$0xff] %vm253_vm1, %v252_v39  ;;  %v251_v44 = vadd.f32 %v242_v21, %v217_v40  ;;  %v453_v45 = vadd.f32 %v595_v42, %v585_v41  ;;  %v350_v46 = vpop.f32.mrf.mxu0 }
  0xd2   :  { %v447_v47 = vpop.f32.mrf.mxu1 }
  0xd3   :  { %256 = vst.msk [vmem:[%s740_s4 + $0x10] sm:$0xff] %vm253_vm1, %v251_v44  ;;  %v491_v48 = vadd.f32 %v478_v38, %v453_v45  ;;  %v448_v49 = vadd.f32 %v447_v47, %v350_v46  ;;  %v588_v50 = vpop.f32.mrf.mxu0 }
  0xd4   :  { %v598_v51 = vpop.f32.mrf.mxu1 }
  0xd5   :  { %532 = vst.msk [vmem:[%s740_s4 + $0x28] sm:$0xff] %vm253_vm1, %v491_v48  ;;  %v490_v53 = vadd.f32 %v473_v43, %v448_v49  ;;  %v463_v54 = vadd.f32 %v598_v51, %v588_v50  ;;  %v360_v55 = vpop.f32.mrf.mxu0 }
  0xd6   :  { %v457_v56 = vpop.f32.mrf.mxu1 }
  0xd7   :  { %531 = vst.msk [vmem:[%s740_s4 + $0x20] sm:$0xff] %vm253_vm1, %v490_v53  ;;  %v493_v57 = vadd.f32 %v488_v52, %v463_v54  ;;  %v458_v58 = vadd.f32 %v457_v56, %v360_v55 }
  0xd9   :  { %534 = vst.msk [vmem:[%s740_s4 + $0x38] sm:$0xff] %vm253_vm1, %v493_v57  ;;  %v492_v60 = vadd.f32 %v483_v59, %v458_v58 }
  0xdb   :  { %533 = vst.msk [vmem:[%s740_s4 + $0x30] sm:$0xff] %vm253_vm1, %v492_v60 }

// kernel: wavelet_unet_forward.14
= control target key start
LH: loop header
LB: loop body
LE: loop exit
PB: predicated region body
PF: predicated region fallthrough
CT: control target
= control target key end

     0   :  { %v3858_v1 = vmov 0   ;;  %s3859_s19 = smov 125   ;;  %s3860_s20 = smov 126   ;;  %vm78_vm0 = vcmask 130048   ;;  %vm3104_vm1 = vcmask 64512   ;;  %s4595_s0 = inlined_call_operand.vmem [shape: f32[2,16,14], index: 0, kind: input, shape index: {}]   ;;  %s4596_s1 = inlined_call_operand.vmem [shape: f32[3,16,16], index: 1, kind: input, shape index: {}]   ;;  %s4597_s2 = inlined_call_operand.vmem [shape: f32[16,1], index: 2, kind: input, shape index: {}]   ;;  %s4598_s4 = inlined_call_operand.vmem [shape: f32[16,1], index: 4, kind: input, shape index: {}]   ;;  %s4599_s7 = inlined_call_operand.vmem [shape: f32[16,48], index: 7, kind: input, shape index: {}]   ;;  %s4600_s6 = inlined_call_operand.vmem [shape: f32[16,1], index: 6, kind: input, shape index: {}]   ;;  %s4601_s8 = inlined_call_operand.vmem [shape: f32[16,1], index: 8, kind: input, shape index: {}]   ;;  %s4602_s3 = inlined_call_operand.vmem [shape: f32[5,16,16], index: 3, kind: input, shape index: {}]   ;;  %s4603_s5 = inlined_call_operand.vmem [shape: f32[7,16,16], index: 5, kind: input, shape index: {}]   ;;  %s4604_s9 = inlined_call_operand.vmem [shape: f32[16,1], index: 9, kind: input, shape index: {}]   ;;  %s4605_s10 = inlined_call_operand.vmem [shape: f32[16,1], index: 10, kind: input, shape index: {}]   ;;  %s4606_s11 = inlined_call_operand.vmem [shape: f32[2,16,8], index: 11, kind: output, shape index: {}]  }
   0x1   :  { %v3930_v0 = vld [vmem:[%s4595_s0 + $0x8] sm:$0xff]  ;;  %3837 = vset.pattern.permute.xlu1 %v3858_v1  ;;  %3836 = vset.pattern.permute.xlu0 %v3858_v1  ;;  %v3939_v2 = vld [vmem:[%s4595_s0] sm:$0xff]  ;;  %v3953_v4 = vld [vmem:[%s4596_s1 + $0x10] sm:$0xff]  ;;  %s3861_s27 = smov 124   ;;  %s3862_s13 = smov 127  }
   0x2   :  { %167 = vrot.lane.b32.xlu1 %v3930_v0, %s3859_s19  ;;  %74 = vrot.lane.b32.xlu0 %v3930_v0, %s3860_s20  ;;  %v3944_v3 = vld [vmem:[%s4596_s1] sm:$0xff]  ;;  %v55_v6 = vld [vmem:[%s4597_s2 + $0x8] sm:$0xff]  ;;  %s3863_s14 = smov 123   ;;  %s3864_s24 = smov 112  }
   0x3   :  { %3579 = vmatprep.mubr.msk.f32.mxu0 %vm78_vm0, %v3944_v3  ;;  %3586 = vmatprep.mubr.msk.f32.mxu1 %vm78_vm0, %v3953_v4  ;;  %v54_v5 = vld [vmem:[%s4597_s2] sm:$0xff]  ;;  %v432_v7 = vld [vmem:[%s4598_s4 + $0x8] sm:$0xff]  ;;  %s3865_s25 = smov 122   ;;  %v4006_v13 = vld [vmem:[%s4595_s0 + $0x18] sm:$0xff]  ;;  %s3866_s12 = smov 96  }
   0x4   :  { %v431_v8 = vld [vmem:[%s4598_s4] sm:$0xff]  ;;  %v3991_v10 = vld [vmem:[%s4599_s7 + $0x8] sm:$0xff]  ;;  %v4014_v14 = vld [vmem:[%s4595_s0 + $0x10] sm:$0xff] }
   0x5   :  { %v3986_v9 = vld [vmem:[%s4599_s7] sm:$0xff]  ;;  %v972_v11 = vld [vmem:[%s4600_s6 + $0x8] sm:$0xff]  ;;  %v4063_v22 = vld [vmem:[%s4596_s1 + $0x18] sm:$0xff] }
   0x6   :  { %165 = vrot.lane.b32.xlu1 %v3939_v2, %s3859_s19  ;;  %72 = vrot.lane.b32.xlu0 %v3939_v2, %s3860_s20  ;;  %v971_v12 = vld [vmem:[%s4600_s6] sm:$0xff]  ;;  %v41_v15 = vld [vmem:[%s4601_s8 + $0x8] sm:$0xff] }
   0x7   :  { %v40_v16 = vld [vmem:[%s4601_s8] sm:$0xff]  ;;  %v4058_v21 = vld [vmem:[%s4596_s1 + $0x8] sm:$0xff] }
   0x8   :  { %v4070_v23 = vld [vmem:[%s4596_s1 + $0x20] sm:$0xff]  ;;  %v4091_v26 = vld [vmem:[%s4596_s1 + $0x28] sm:$0xff] }
   0x9   :  { %v4097_v27 = vld [vmem:[%s4602_s3] sm:$0xff]  ;;  %v4117_v32 = vld [vmem:[%s4602_s3 + $0x8] sm:$0xff] }
   0xa   :  { %257 = vrot.lane.b32.xlu1 %v3939_v2, %s3861_s27  ;;  %259 = vrot.lane.b32.xlu0 %v3930_v0, %s3861_s27  ;;  %v4123_v33 = vld [vmem:[%s4602_s3 + $0x20] sm:$0xff]  ;;  %v4139_v36 = vld [vmem:[%s4602_s3 + $0x28] sm:$0xff] }
   0xb   :  { %v4145_v37 = vld [vmem:[%s4602_s3 + $0x40] sm:$0xff]  ;;  %v4161_v40 = vld [vmem:[%s4602_s3 + $0x48] sm:$0xff] }
   0xc   :  { %v4167_v41 = vld [vmem:[%s4603_s5] sm:$0xff]  ;;  %v4183_v44 = vld [vmem:[%s4603_s5 + $0x8] sm:$0xff] }
   0xd   :  { %v4189_v45 = vld [vmem:[%s4603_s5 + $0x20] sm:$0xff]  ;;  %v4201_v48 = vld [vmem:[%s4603_s5 + $0x28] sm:$0xff] }
   0xe   :  { %58 = vperm.xlu1 %3837, %v54_v5   ;;  %63 = vperm.xlu0 %3836, %v55_v6   ;;  %v4207_v49 = vld [vmem:[%s4603_s5 + $0x40] sm:$0xff]  ;;  %v4223_v52 = vld [vmem:[%s4603_s5 + $0x48] sm:$0xff] }
   0xf   :  { %v4229_v53 = vld [vmem:[%s4603_s5 + $0x60] sm:$0xff]  ;;  %v4243_v56 = vld [vmem:[%s4603_s5 + $0x68] sm:$0xff] }
  0x12   :  { %449 = vrot.lane.b32.xlu1 %v3930_v0, %s3862_s13  ;;  %447 = vrot.lane.b32.xlu0 %v3939_v2, %s3862_s13 }
  0x16   :  { %799 = vrot.lane.b32.xlu1 %v3930_v0, %s3863_s14  ;;  %797 = vrot.lane.b32.xlu0 %v3939_v2, %s3863_s14 }
  0x1a   :  { %440 = vperm.xlu1 %3837, %v432_v7   ;;  %435 = vperm.xlu0 %3836, %v431_v8  }
  0x1e   :  { %886 = vrot.lane.b32.xlu1 %v3986_v9, %s3864_s24  ;;  %888 = vrot.lane.b32.xlu0 %v3991_v10, %s3864_s24 }
  0x22   :  { %1505 = vrot.lane.b32.xlu1 %v3930_v0, %s3865_s25  ;;  %1503 = vrot.lane.b32.xlu0 %v3939_v2, %s3865_s25 }
  0x26   :  { %980 = vperm.xlu1 %3837, %v972_v11   ;;  %975 = vperm.xlu0 %3836, %v971_v12  }
  0x2a   :  { %1684 = vrot.lane.b32.xlu1 %v4006_v13, %s3860_s20  ;;  %1592 = vrot.lane.b32.xlu0 %v3986_v9, %s3866_s12 }
  0x2e   :  { %1594 = vrot.lane.b32.xlu1 %v3991_v10, %s3866_s12  ;;  %1682 = vrot.lane.b32.xlu0 %v4014_v14, %s3860_s20 }
  0x32   :  { %1767 = vrot.lane.b32.xlu1 %v4006_v13, %s3859_s19  ;;  %1765 = vrot.lane.b32.xlu0 %v4014_v14, %s3859_s19 }
  0x36   :  { %1850 = vrot.lane.b32.xlu1 %v4006_v13, %s3861_s27  ;;  %1848 = vrot.lane.b32.xlu0 %v4014_v14, %s3861_s27 }
  0x3a   :  { %2010 = vrot.lane.b32.xlu1 %v4006_v13, %s3862_s13  ;;  %2008 = vrot.lane.b32.xlu0 %v4014_v14, %s3862_s13 }
  0x3e   :  { %2324 = vrot.lane.b32.xlu1 %v4006_v13, %s3863_s14  ;;  %2322 = vrot.lane.b32.xlu0 %v4014_v14, %s3863_s14 }
  0x42   :  { %2944 = vrot.lane.b32.xlu0 %v4014_v14, %s3865_s25  ;;  %2946 = vrot.lane.b32.xlu1 %v4006_v13, %s3865_s25 }
  0x46   :  { %49 = vperm.xlu0 %3836, %v41_v15   ;;  %44 = vperm.xlu1 %3837, %v40_v16  }
  0x74   :  { %v4043_v17 = vpop.permute.xlu0 %74  ;;  %v4045_v18 = vpop.permute.xlu1 %167 }
  0x75   :  { %4609 = vst [vmem:[#allocation2_spill] sm:$0xff] %v4045_v18  ;;  %3575 = vmatprep.subr.mxu0 %v4043_v17  ;;  %3582 = vmatprep.subr.mxu1 %v4045_v18 }
  0x76   :  { %3576 = vmatpush3.msra.mxu0 %v4043_v17  ;;  %3583 = vmatpush3.msra.mxu1 %v4045_v18 }
  0x78   :  { %v4051_v19 = vpop.permute.xlu0 %72  ;;  %v4053_v20 = vpop.permute.xlu1 %165 }
  0x79   :  { %4610 = vst [vmem:[#allocation3_spill] sm:$0xff] %v4053_v20  ;;  %3577 = vmatprep.subr.mxu0 %v4051_v19  ;;  %3584 = vmatprep.subr.mxu1 %v4053_v20 }
  0x7a   :  { %3578 = vmatpush3.msra.mxu0 %v4051_v19  ;;  %3585 = vmatpush3.msra.mxu1 %v4053_v20 }
  0x7b   :  { %3580 = vmatmul.mubr.msk.f32.vlgmr.msra.gmra.mxu0 %vm78_vm0, %v4058_v21  ;;  %3587 = vmatmul.mubr.msk.f32.vlgmr.msra.gmra.mxu1 %vm78_vm0, %v4063_v22 }
  0x7c   :  { %v4078_v24 = vpop.permute.xlu0 %259  ;;  %v4080_v25 = vpop.permute.xlu1 %257  ;;  %3593 = vmatprep.mubr.msk.f32.mxu0 %vm78_vm0, %v4070_v23  ;;  %3600 = vmatprep.mubr.msk.f32.mxu1 %vm78_vm0, %v3986_v9 }
  0x7d   :  { %3589 = vmatprep.subr.mxu0 %v4078_v24 }
  0x7e   :  { %3590 = vmatpush3.msra.mxu0 %v4078_v24 }
  0x7f   :  { %3591 = vmatprep.subr.mxu0 %v4080_v25 }
  0x80   :  { %3592 = vmatpush3.msra.mxu0 %v4080_v25 }
  0x81   :  { %3594 = vmatmul.mubr.msk.f32.vlgmr.msra.gmra.mxu0 %vm78_vm0, %v4091_v26 }
  0x82   :  { %3607 = vmatprep.mubr.msk.f32.mxu0 %vm78_vm0, %v4097_v27 }
  0x89   :  { %v4104_v28 = vpop.permute.xlu1 %58  ;;  %v4106_v29 = vpop.permute.xlu0 %63 }
  0x8d   :  { %v4108_v30 = vpop.permute.xlu1 %449  ;;  %v4110_v31 = vpop.permute.xlu0 %447 }
  0x8e   :  { %3603 = vmatprep.subr.mxu0 %v4108_v30 }
  0x8f   :  { %3604 = vmatpush3.msra.mxu0 %v4108_v30 }
  0x90   :  { %3605 = vmatprep.subr.mxu0 %v4110_v31 }
  0x91   :  { %v4125_v34 = vpop.permute.xlu1 %799  ;;  %3606 = vmatpush3.msra.mxu0 %v4110_v31  ;;  %v4128_v35 = vpop.permute.xlu0 %797 }
  0x92   :  { %3608 = vmatmul.mubr.msk.f32.vlgmr.msra.gmra.mxu0 %vm78_vm0, %v4117_v32  ;;  %3617 = vmatprep.subr.mxu0 %v4045_v18 }
  0x93   :  { %3618 = vmatpush3.msra.mxu0 %v4045_v18  ;;  %3621 = vmatprep.mubr.msk.f32.mxu0 %vm78_vm0, %v4123_v33 }
  0x94   :  { %3619 = vmatprep.subr.mxu0 %v4053_v20 }
  0x95   :  { %v4147_v38 = vpop.permute.xlu1 %440  ;;  %3620 = vmatpush3.msra.mxu0 %v4053_v20  ;;  %v4150_v39 = vpop.permute.xlu0 %435 }
  0x96   :  { %3622 = vmatmul.mubr.msk.f32.vlgmr.msra.gmra.mxu0 %vm78_vm0, %v4139_v36  ;;  %3631 = vmatprep.subr.mxu0 %v4125_v34 }
  0x97   :  { %3632 = vmatpush3.msra.mxu0 %v4125_v34  ;;  %3635 = vmatprep.mubr.msk.f32.mxu0 %vm78_vm0, %v4145_v37 }
  0x98   :  { %3633 = vmatprep.subr.mxu0 %v4128_v35 }
  0x99   :  { %v4169_v42 = vpop.permute.xlu1 %886  ;;  %3634 = vmatpush3.msra.mxu0 %v4128_v35  ;;  %v4172_v43 = vpop.permute.xlu0 %888 }
  0x9a   :  { %3636 = vmatmul.mubr.msk.f32.vlgmr.msra.gmra.mxu0 %vm78_vm0, %v4161_v40  ;;  %3645 = vmatprep.subr.mxu0 %v3930_v0 }
  0x9b   :  { %3646 = vmatpush3.msra.mxu0 %v3930_v0  ;;  %3649 = vmatprep.mubr.msk.f32.mxu0 %vm78_vm0, %v4167_v41 }
  0x9c   :  { %3647 = vmatprep.subr.mxu0 %v3939_v2 }
  0x9d   :  { %v1506_v46 = vpop.permute.xlu1 %1505  ;;  %3648 = vmatpush3.msra.mxu0 %v3939_v2  ;;  %v1504_v47 = vpop.permute.xlu0 %1503 }
  0x9e   :  { %3650 = vmatmul.mubr.msk.f32.vlgmr.msra.gmra.mxu0 %vm78_vm0, %v4183_v44  ;;  %3659 = vmatprep.subr.mxu0 %v4043_v17 }
  0x9f   :  { %3660 = vmatpush3.msra.mxu0 %v4043_v17  ;;  %3663 = vmatprep.mubr.msk.f32.mxu0 %vm78_vm0, %v4189_v45 }
  0xa0   :  { %3661 = vmatprep.subr.mxu0 %v4051_v19 }
  0xa1   :  { %v4209_v50 = vpop.permute.xlu1 %980  ;;  %3662 = vmatpush3.msra.mxu0 %v4051_v19  ;;  %v4212_v51 = vpop.permute.xlu0 %975 }
  0xa2   :  { %3664 = vmatmul.mubr.msk.f32.vlgmr.msra.gmra.mxu0 %vm78_vm0, %v4201_v48  ;;  %3673 = vmatprep.subr.mxu0 %v4078_v24 }
  0xa3   :  { %3674 = vmatpush3.msra.mxu0 %v4078_v24  ;;  %3677 = vmatprep.mubr.msk.f32.mxu0 %vm78_vm0, %v4207_v49 }
  0xa4   :  { %3675 = vmatprep.subr.mxu0 %v4080_v25 }
  0xa5   :  { %v4231_v54 = vpop.permute.xlu1 %1684  ;;  %3676 = vmatpush3.msra.mxu0 %v4080_v25  ;;  %v4234_v55 = vpop.permute.xlu0 %1592 }
  0xa6   :  { %3678 = vmatmul.mubr.msk.f32.vlgmr.msra.gmra.mxu0 %vm78_vm0, %v4223_v52  ;;  %3687 = vmatprep.subr.mxu0 %v1506_v46 }
  0xa7   :  { %3688 = vmatpush3.msra.mxu0 %v1506_v46  ;;  %3691 = vmatprep.mubr.msk.f32.mxu0 %vm78_vm0, %v4229_v53 }
  0xa8   :  { %3689 = vmatprep.subr.mxu0 %v1504_v47 }
  0xa9   :  { %v4245_v57 = vpop.permute.xlu1 %1594  ;;  %3690 = vmatpush3.msra.mxu0 %v1504_v47  ;;  %v4247_v58 = vpop.permute.xlu0 %1682 }
  0xaa   :  { %3692 = vmatmul.mubr.msk.f32.vlgmr.msra.gmra.mxu0 %vm78_vm0, %v4243_v56  ;;  %3701 = vmatprep.subr.mxu0 %v4231_v54 }
  0xab   :  { %3702 = vmatpush3.msra.mxu0 %v4231_v54  ;;  %3705 = vmatprep.mubr.msk.f32.mxu0 %vm78_vm0, %v3944_v3 }
  0xac   :  { %3703 = vmatprep.subr.mxu0 %v4247_v58 }
  0xad   :  { %v4256_v59 = vpop.permute.xlu1 %1767  ;;  %3704 = vmatpush3.msra.mxu0 %v4247_v58  ;;  %v4259_v60 = vpop.permute.xlu0 %1765 }
  0xae   :  { %3706 = vmatmul.mubr.msk.f32.vlgmr.msra.gmra.mxu0 %vm78_vm0, %v4058_v21 }
  0xaf   :  { %3719 = vmatprep.mubr.msk.f32.mxu0 %vm78_vm0, %v4070_v23 }
  0xb1   :  { %v4265_v61 = vpop.permute.xlu1 %1850  ;;  %v4267_v62 = vpop.permute.xlu0 %1848 }
  0xb2   :  { %3715 = vmatprep.subr.mxu0 %v4265_v61 }
  0xb3   :  { %3716 = vmatpush3.msra.mxu0 %v4265_v61 }
  0xb4   :  { %3717 = vmatprep.subr.mxu0 %v4267_v62 }
  0xb5   :  { %v4272_v63 = vpop.permute.xlu1 %2010  ;;  %3718 = vmatpush3.msra.mxu0 %v4267_v62  ;;  %v4275_v0 = vpop.permute.xlu0 %2008 }
  0xb6   :  { %3720 = vmatmul.mubr.msk.f32.vlgmr.msra.gmra.mxu0 %vm78_vm0, %v4091_v26  ;;  %3729 = vmatprep.subr.mxu0 %v4272_v63 }
  0xb7   :  { %3730 = vmatpush3.msra.mxu0 %v4272_v63  ;;  %3733 = vmatprep.mubr.msk.f32.mxu0 %vm78_vm0, %v4097_v27  ;;  %v4340_v27 = vld [vmem:[%s4602_s3 + $0x10] sm:$0xff] }
  0xb8   :  { %3731 = vmatprep.subr.mxu0 %v4275_v0 }
  0xb9   :  { %3732 = vmatpush3.msra.mxu0 %v4275_v0  ;;  %v4289_v1 = vpop.permute.xlu1 %2324  ;;  %v4295_v2 = vpop.permute.xlu0 %2322 }
  0xba   :  { %3734 = vmatmul.mubr.msk.f32.vlgmr.msra.gmra.mxu0 %vm78_vm0, %v4117_v32  ;;  %3743 = vmatprep.subr.mxu0 %v4256_v59  ;;  %v4351_v32 = vld [vmem:[%s4602_s3 + $0x18] sm:$0xff] }
  0xbb   :  { %3744 = vmatpush3.msra.mxu0 %v4256_v59  ;;  %3747 = vmatprep.mubr.msk.f32.mxu0 %vm78_vm0, %v4123_v33  ;;  %v4357_v33 = vld [vmem:[%s4602_s3 + $0x30] sm:$0xff] }
  0xbc   :  { %3745 = vmatprep.subr.mxu0 %v4259_v60 }
  0xbd   :  { %3746 = vmatpush3.msra.mxu0 %v4259_v60  ;;  %v2947_v3 = vpop.permute.xlu1 %2946  ;;  %v2945_v5 = vpop.permute.xlu0 %2944 }
  0xbe   :  { %3748 = vmatmul.mubr.msk.f32.vlgmr.msra.gmra.mxu0 %vm78_vm0, %v4139_v36  ;;  %3757 = vmatprep.subr.mxu0 %v4289_v1 }
  0xbf   :  { %3758 = vmatpush3.msra.mxu0 %v4289_v1  ;;  %3761 = vmatprep.mubr.msk.f32.mxu0 %vm78_vm0, %v4145_v37 }
  0xc0   :  { %3759 = vmatprep.subr.mxu0 %v4295_v2 }
  0xc1   :  { %3760 = vmatpush3.msra.mxu0 %v4295_v2 }
  0xc2   :  { %3762 = vmatmul.mubr.msk.f32.vlgmr.msra.gmra.mxu0 %vm78_vm0, %v4161_v40  ;;  %3771 = vmatprep.subr.mxu0 %v4006_v13 }
  0xc3   :  { %3772 = vmatpush3.msra.mxu0 %v4006_v13  ;;  %3775 = vmatprep.mubr.msk.f32.mxu0 %vm78_vm0, %v4167_v41 }
  0xc4   :  { %3773 = vmatprep.subr.mxu0 %v4014_v14 }
  0xc5   :  { %3774 = vmatpush3.msra.mxu0 %v4014_v14 }
  0xc6   :  { %3776 = vmatmul.mubr.msk.f32.vlgmr.msra.gmra.mxu0 %vm78_vm0, %v4183_v44  ;;  %3785 = vmatprep.subr.mxu0 %v4231_v54 }
  0xc7   :  { %3786 = vmatpush3.msra.mxu0 %v4231_v54  ;;  %3789 = vmatprep.mubr.msk.f32.mxu0 %vm78_vm0, %v4189_v45 }
  0xc8   :  { %3787 = vmatprep.subr.mxu0 %v4247_v58 }
  0xc9   :  { %3788 = vmatpush3.msra.mxu0 %v4247_v58 }
  0xca   :  { %3799 = vmatprep.subr.mxu0 %v4265_v61  ;;  %3790 = vmatmul.mubr.msk.f32.vlgmr.msra.gmra.mxu0 %vm78_vm0, %v4201_v48 }
  0xcb   :  { %3800 = vmatpush3.msra.mxu0 %v4265_v61  ;;  %3803 = vmatprep.mubr.msk.f32.mxu0 %vm78_vm0, %v4207_v49 }
  0xcc   :  { %3801 = vmatprep.subr.mxu0 %v4267_v62 }
  0xcd   :  { %3802 = vmatpush3.msra.mxu0 %v4267_v62 }
  0xce   :  { %3804 = vmatmul.mubr.msk.f32.vlgmr.msra.gmra.mxu0 %vm78_vm0, %v4223_v52  ;;  %3813 = vmatprep.subr.mxu0 %v2947_v3 }
  0xcf   :  { %3814 = vmatpush3.msra.mxu0 %v2947_v3  ;;  %3817 = vmatprep.mubr.msk.f32.mxu0 %vm78_vm0, %v4229_v53 }
  0xd0   :  { %3815 = vmatprep.subr.mxu0 %v2945_v5 }
  0xd1   :  { %3816 = vmatpush3.msra.mxu0 %v2945_v5 }
  0xd2   :  { %3818 = vmatmul.mubr.msk.f32.vlgmr.msra.gmra.mxu0 %vm78_vm0, %v4243_v56 }
 0x13b   :  { %v3581_v6 = vpop.f32.mrf.mxu0  ;;  %v3588_v7 = vpop.f32.mrf.mxu1 }
 0x13c   :  { %v161_v8 = vadd.f32 %v3581_v6, %v4106_v29 }
 0x13d   :  { %v151_v11 = vpop.f32.mrf.mxu0  ;;  %v243_v14 = vpop.f32.mrf.mxu1 }
 0x13e   :  { %v160_v12 = vadd.f32 %v151_v11, %v4104_v28  ;;  %v253_v13 = vadd.f32 %v3588_v7, %v161_v8 }
 0x140   :  { %v252_v16 = vadd.f32 %v243_v14, %v160_v12  ;;  %v4382_v12 = vld [vmem:[%s4603_s5 + $0x10] sm:$0xff] }
 0x141   :  { %v3595_v15 = vpop.f32.mrf.mxu0  ;;  %v4399_v14 = vld [vmem:[%s4603_s5 + $0x30] sm:$0xff] }
 0x142   :  { %v345_v21 = vadd.f32 %v3595_v15, %v253_v13  ;;  %v4393_v13 = vld [vmem:[%s4603_s5 + $0x18] sm:$0xff] }
 0x143   :  { %v335_v23 = vpop.f32.mrf.mxu0  ;;  %v4429_v15 = vld [vmem:[%s4603_s5 + $0x58] sm:$0xff] }
 0x144   :  { %v344_v26 = vadd.f32 %v335_v23, %v252_v16  ;;  %3596 = vmatprep.subr.mxu1 %v345_v21  ;;  %v4437_v23 = vpop.permute.xlu0 %49 }
 0x145   :  { %3597 = vmatpush3.msra.mxu1 %v345_v21 }
 0x146   :  { %3598 = vmatprep.subr.mxu1 %v344_v26 }
 0x147   :  { %3599 = vmatpush3.msra.mxu1 %v344_v26  ;;  %v4439_v26 = vpop.permute.xlu1 %44 }
 0x148   :  { %3601 = vmatmul.mubr.msk.f32.vlgmr.msra.gmra.mxu1 %vm78_vm0, %v3991_v10  ;;  %3610 = vmatprep.subr.mxu1 %v4043_v17 }
 0x149   :  { %3611 = vmatpush3.msra.mxu1 %v4043_v17  ;;  %3614 = vmatprep.mubr.msk.f32.mxu1 %vm78_vm0, %v4340_v27  ;;  %v4369_v17 = vld [vmem:[%s4602_s3 + $0x38] sm:$0xff] }
 0x14a   :  { %3612 = vmatprep.subr.mxu1 %v4051_v19 }
 0x14b   :  { %3613 = vmatpush3.msra.mxu1 %v4051_v19 }
 0x14c   :  { %3615 = vmatmul.mubr.msk.f32.vlgmr.msra.gmra.mxu1 %vm78_vm0, %v4351_v32  ;;  %3624 = vmatprep.subr.mxu1 %v4078_v24 }
 0x14d   :  { %3625 = vmatpush3.msra.mxu1 %v4078_v24  ;;  %3628 = vmatprep.mubr.msk.f32.mxu1 %vm78_vm0, %v4357_v33 }
 0x14e   :  { %3626 = vmatprep.subr.mxu1 %v4080_v25 }
 0x14f   :  { %3627 = vmatpush3.msra.mxu1 %v4080_v25 }
 0x150   :  { %3629 = vmatmul.mubr.msk.f32.vlgmr.msra.gmra.mxu1 %vm78_vm0, %v4369_v17 }
 0x151   :  { %3642 = vmatprep.mubr.msk.f32.mxu1 %vm78_vm0, %v4169_v42 }
 0x152   :  { %v3609_v19 = vpop.f32.mrf.mxu0 }
 0x153   :  { %v535_v41 = vadd.f32 %v3609_v19, %v4147_v38 }
 0x154   :  { %v525_v24 = vpop.f32.mrf.mxu0 }
 0x155   :  { %v534_v46 = vadd.f32 %v525_v24, %v4150_v39 }
 0x156   :  { %v3623_v36 = vpop.f32.mrf.mxu0 }
 0x158   :  { %v697_v44 = vpop.f32.mrf.mxu0 }
 0x15a   :  { %v3637_v52 = vpop.f32.mrf.mxu0 }
 0x15c   :  { %v875_v8 = vpop.f32.mrf.mxu0 }
 0x15e   :  { %v3651_v16 = vpop.f32.mrf.mxu0 }
 0x208   :  { %v3602_v37 = vpop.f32.mrf.mxu1 }
 0x209   :  { %v430_v19 = vadd.f32 %v3602_v37, %v4437_v23 }
 0x20a   :  { %v420_v40 = vpop.f32.mrf.mxu1 }
 0x20c   :  { %v3616_v45 = vpop.f32.mrf.mxu1 }
 0x20d   :  { %v621_v47 = vadd.f32 %v3616_v45, %v535_v41  ;;  %v429_v41 = vadd.f32 %v420_v40, %v4439_v26  ;;  %v1069_v45 = vadd.f32 %v3651_v16, %v4209_v50 }
 0x20e   :  { %v611_v48 = vpop.f32.mrf.mxu1 }
 0x20f   :  { %v620_v25 = vadd.f32 %v611_v48, %v534_v46  ;;  %v707_v49 = vadd.f32 %v3623_v36, %v621_v47 }
 0x210   :  { %v3630_v53 = vpop.f32.mrf.mxu1 }
 0x211   :  { %v793_v56 = vadd.f32 %v3630_v53, %v707_v49  ;;  %v706_v3 = vadd.f32 %v697_v44, %v620_v25 }
 0x212   :  { %v783_v5 = vpop.f32.mrf.mxu1 }
 0x213   :  { %v885_v6 = vadd.f32 %v3637_v52, %v793_v56  ;;  %v792_v7 = vadd.f32 %v783_v5, %v706_v3 }
 0x215   :  { %v884_v11 = vadd.f32 %v875_v8, %v792_v7  ;;  %3638 = vmatprep.subr.mxu1 %v885_v6 }
 0x216   :  { %3639 = vmatpush3.msra.mxu1 %v885_v6 }
 0x217   :  { %3640 = vmatprep.subr.mxu1 %v884_v11 }
 0x218   :  { %3641 = vmatpush3.msra.mxu1 %v884_v11 }
 0x219   :  { %3643 = vmatmul.mubr.msk.f32.vlgmr.msra.gmra.mxu1 %vm78_vm0, %v4172_v43  ;;  %3652 = vmatprep.subr.mxu1 %v4108_v30 }
 0x21a   :  { %3653 = vmatpush3.msra.mxu1 %v4108_v30  ;;  %3656 = vmatprep.mubr.msk.f32.mxu1 %vm78_vm0, %v4382_v12  ;;  %v4411_v30 = vld [vmem:[%s4603_s5 + $0x38] sm:$0xff] }
 0x21b   :  { %3654 = vmatprep.subr.mxu1 %v4110_v31 }
 0x21c   :  { %3655 = vmatpush3.msra.mxu1 %v4110_v31  ;;  %v4417_v31 = vld [vmem:[%s4603_s5 + $0x50] sm:$0xff] }
 0x21d   :  { %3657 = vmatmul.mubr.msk.f32.vlgmr.msra.gmra.mxu1 %vm78_vm0, %v4393_v13  ;;  %3666 = vmatprep.subr.mxu1 %v4045_v18 }
 0x21e   :  { %3667 = vmatpush3.msra.mxu1 %v4045_v18  ;;  %3670 = vmatprep.mubr.msk.f32.mxu1 %vm78_vm0, %v4399_v14 }
 0x21f   :  { %3668 = vmatprep.subr.mxu1 %v4053_v20 }
 0x220   :  { %3669 = vmatpush3.msra.mxu1 %v4053_v20 }
 0x221   :  { %3671 = vmatmul.mubr.msk.f32.vlgmr.msra.gmra.mxu1 %vm78_vm0, %v4411_v30  ;;  %3680 = vmatprep.subr.mxu1 %v4125_v34 }
 0x222   :  { %3681 = vmatpush3.msra.mxu1 %v4125_v34  ;;  %3684 = vmatprep.mubr.msk.f32.mxu1 %vm78_vm0, %v4417_v31  ;;  %v1059_v34 = vpop.f32.mrf.mxu0 }
 0x223   :  { %3682 = vmatprep.subr.mxu1 %v4128_v35  ;;  %v1068_v25 = vadd.f32 %v1059_v34, %v4212_v51 }
 0x224   :  { %3683 = vmatpush3.msra.mxu1 %v4128_v35  ;;  %v3665_v21 = vpop.f32.mrf.mxu0 }
 0x225   :  { %3685 = vmatmul.mubr.msk.f32.vlgmr.msra.gmra.mxu1 %vm78_vm0, %v4429_v15 }
 0x226   :  { %3698 = vmatprep.mubr.msk.f32.mxu1 %vm78_vm0, %v4234_v55  ;;  %v1231_v24 = vpop.f32.mrf.mxu0 }
 0x228   :  { %v3679_v47 = vpop.f32.mrf.mxu0 }
 0x22a   :  { %v1403_v3 = vpop.f32.mrf.mxu0 }
 0x22c   :  { %v3693_v11 = vpop.f32.mrf.mxu0 }
 0x22e   :  { %v1581_v18 = vpop.f32.mrf.mxu0 }
 0x2d9   :  { %v3644_v36 = vpop.f32.mrf.mxu1 }
 0x2da   :  { %v970_v35 = vadd.f32 %v3644_v36, %v430_v19 }
 0x2db   :  { %v960_v44 = vpop.f32.mrf.mxu1 }
 0x2dc   :  { %v969_v46 = vadd.f32 %v960_v44, %v429_v41 }
 0x2dd   :  { %v3658_v48 = vpop.f32.mrf.mxu1 }
 0x2de   :  { %v1155_v49 = vadd.f32 %v3658_v48, %v1069_v45 }
 0x2df   :  { %v1145_v52 = vpop.f32.mrf.mxu1 }
 0x2e0   :  { %v1154_v53 = vadd.f32 %v1145_v52, %v1068_v25  ;;  %v1241_v56 = vadd.f32 %v3665_v21, %v1155_v49 }
 0x2e1   :  { %v3672_v5 = vpop.f32.mrf.mxu1 }
 0x2e2   :  { %v1327_v37 = vadd.f32 %v3672_v5, %v1241_v56  ;;  %v1240_v6 = vadd.f32 %v1231_v24, %v1154_v53 }
 0x2e3   :  { %v1317_v7 = vpop.f32.mrf.mxu1 }
 0x2e4   :  { %v1326_v8 = vadd.f32 %v1317_v7, %v1240_v6  ;;  %v1413_v40 = vadd.f32 %v3679_v47, %v1327_v37 }
 0x2e5   :  { %v3686_v19 = vpop.f32.mrf.mxu1 }
 0x2e6   :  { %v1499_v36 = vadd.f32 %v3686_v19, %v1413_v40  ;;  %v1412_v16 = vadd.f32 %v1403_v3, %v1326_v8 }
 0x2e7   :  { %v1489_v41 = vpop.f32.mrf.mxu1 }
 0x2e8   :  { %v1591_v44 = vadd.f32 %v3693_v11, %v1499_v36  ;;  %v1498_v20 = vadd.f32 %v1489_v41, %v1412_v16 }
 0x2ea   :  { %v1590_v34 = vadd.f32 %v1581_v18, %v1498_v20  ;;  %3694 = vmatprep.subr.mxu1 %v1591_v44  ;;  %v3707_v18 = vpop.f32.mrf.mxu0 }
 0x2eb   :  { %3695 = vmatpush3.msra.mxu1 %v1591_v44  ;;  %v1764_v47 = vadd.f32 %v3707_v18, %v4106_v29 }
 0x2ec   :  { %3696 = vmatprep.subr.mxu1 %v1590_v34  ;;  %v1754_v24 = vpop.f32.mrf.mxu0 }
 0x2ed   :  { %3697 = vmatpush3.msra.mxu1 %v1590_v34 }
 0x2ee   :  { %3699 = vmatmul.mubr.msk.f32.vlgmr.msra.gmra.mxu1 %vm78_vm0, %v4245_v57  ;;  %3708 = vmatprep.subr.mxu1 %v4256_v59  ;;  %v3721_v25 = vpop.f32.mrf.mxu0 }
 0x2ef   :  { %3709 = vmatpush3.msra.mxu1 %v4256_v59  ;;  %3712 = vmatprep.mubr.msk.f32.mxu1 %vm78_vm0, %v3953_v4 }
 0x2f0   :  { %3710 = vmatprep.subr.mxu1 %v4259_v60  ;;  %v1920_v3 = vpop.f32.mrf.mxu0 }
 0x2f1   :  { %3711 = vmatpush3.msra.mxu1 %v4259_v60 }
 0x2f2   :  { %3713 = vmatmul.mubr.msk.f32.vlgmr.msra.gmra.mxu1 %vm78_vm0, %v4063_v22  ;;  %v1763_v22 = vadd.f32 %v1754_v24, %v4104_v28 }
 0x2f3   :  { %3726 = vmatprep.mubr.msk.f32.mxu1 %vm78_vm0, %v3986_v9 }
 0x3ae   :  { %v3700_v20 = vpop.f32.mrf.mxu1 }
 0x3af   :  { %v4457_v21 = vadd.f32 %v3700_v20, %v970_v35 }
 0x3b0   :  { %v1666_v45 = vpop.f32.mrf.mxu1 }
 0x3b1   :  { %v4460_v4 = vadd.f32 %v1666_v45, %v969_v46  ;;  %v3108_v48 = vsel %vm3104_vm1, %v4457_v21, 0.0 }
 0x3b2   :  { %v3714_v49 = vpop.f32.mrf.mxu1  ;;  %3109 = vadd.xlane.f32.xlu0 %v3108_v48 }
 0x3b3   :  { %v1847_v9 = vadd.f32 %v3714_v49, %v1764_v47  ;;  %v3105_v52 = vsel %vm3104_vm1, %v4460_v4, 0.0 }
 0x3b4   :  { %3106 = vadd.xlane.f32.xlu1 %v3105_v52  ;;  %v1837_v35 = vpop.f32.mrf.mxu1 }
 0x3b5   :  { %v1930_v53 = vadd.f32 %v3721_v25, %v1847_v9  ;;  %v1846_v56 = vadd.f32 %v1837_v35, %v1763_v22 }
 0x3b7   :  { %v1929_v29 = vadd.f32 %v1920_v3, %v1846_v56  ;;  %3722 = vmatprep.subr.mxu1 %v1930_v53 }
 0x3b8   :  { %3723 = vmatpush3.msra.mxu1 %v1930_v53 }
 0x3b9   :  { %3724 = vmatprep.subr.mxu1 %v1929_v29 }
 0x3ba   :  { %3725 = vmatpush3.msra.mxu1 %v1929_v29 }
 0x3bb   :  { %3727 = vmatmul.mubr.msk.f32.vlgmr.msra.gmra.mxu1 %vm78_vm0, %v3991_v10  ;;  %3736 = vmatprep.subr.mxu1 %v4231_v54  ;;  %v3735_v10 = vpop.f32.mrf.mxu0 }
 0x3bc   :  { %3737 = vmatpush3.msra.mxu1 %v4231_v54  ;;  %3740 = vmatprep.mubr.msk.f32.mxu1 %vm78_vm0, %v4340_v27 }
 0x3bd   :  { %3738 = vmatprep.subr.mxu1 %v4247_v58  ;;  %v2080_v28 = vpop.f32.mrf.mxu0 }
 0x3be   :  { %3739 = vmatpush3.msra.mxu1 %v4247_v58 }
 0x3bf   :  { %3741 = vmatmul.mubr.msk.f32.vlgmr.msra.gmra.mxu1 %vm78_vm0, %v4351_v32  ;;  %3750 = vmatprep.subr.mxu1 %v4265_v61  ;;  %v3749_v54 = vpop.f32.mrf.mxu0 }
 0x3c0   :  { %3751 = vmatpush3.msra.mxu1 %v4265_v61  ;;  %3754 = vmatprep.mubr.msk.f32.mxu1 %vm78_vm0, %v4357_v33  ;;  %v2090_v61 = vadd.f32 %v3735_v10, %v4147_v38  ;;  %v2089_v33 = vadd.f32 %v2080_v28, %v4150_v39 }
 0x3c1   :  { %3752 = vmatprep.subr.mxu1 %v4267_v62  ;;  %v2234_v32 = vpop.f32.mrf.mxu0 }
 0x3c2   :  { %3753 = vmatpush3.msra.mxu1 %v4267_v62 }
 0x3c3   :  { %3755 = vmatmul.mubr.msk.f32.vlgmr.msra.gmra.mxu1 %vm78_vm0, %v4369_v17  ;;  %v3763_v7 = vpop.f32.mrf.mxu0 }
 0x3c4   :  { %3768 = vmatprep.mubr.msk.f32.mxu1 %vm78_vm0, %v4169_v42 }
 0x3c5   :  { %v2394_v36 = vpop.f32.mrf.mxu0 }
 0x3c7   :  { %v3777_v38 = vpop.f32.mrf.mxu0 }
 0x3c9   :  { %v2548_v39 = vpop.f32.mrf.mxu0 }
 0x47b   :  { %v3728_v58 = vpop.f32.mrf.mxu1 }
 0x47d   :  { %v1997_v27 = vpop.f32.mrf.mxu1 }
 0x47f   :  { %v3742_v46 = vpop.f32.mrf.mxu1 }
 0x480   :  { %v2167_v5 = vadd.f32 %v3742_v46, %v2090_v61  ;;  %v3167_v61 = vld [vmem:[%s4605_s10 + $0x8] sm:$0xff]  ;;  %v3110_v46 = vpop.xlane.xlu0 %3109 }
 0x481   :  { %v2157_v37 = vpop.f32.mrf.mxu1 }
 0x482   :  { %v2166_v62 = vadd.f32 %v2157_v37, %v2089_v33  ;;  %v2244_v6 = vadd.f32 %v3749_v54, %v2167_v5 }
 0x483   :  { %v3756_v17 = vpop.f32.mrf.mxu1 }
 0x484   :  { %v2321_v8 = vadd.f32 %v3756_v17, %v2244_v6  ;;  %v2243_v40 = vadd.f32 %v2234_v32, %v2166_v62  ;;  %v3107_v32 = vpop.xlane.xlu1 %3106 }
 0x485   :  { %v2311_v42 = vpop.f32.mrf.mxu1 }
 0x486   :  { %v2404_v11 = vadd.f32 %v3763_v7, %v2321_v8  ;;  %v2320_v19 = vadd.f32 %v2311_v42, %v2243_v40 }
 0x488   :  { %v2403_v16 = vadd.f32 %v2394_v36, %v2320_v19  ;;  %3764 = vmatprep.subr.mxu1 %v2404_v11 }
 0x489   :  { %3765 = vmatpush3.msra.mxu1 %v2404_v11 }
 0x48a   :  { %3766 = vmatprep.subr.mxu1 %v2403_v16 }
 0x48b   :  { %3767 = vmatpush3.msra.mxu1 %v2403_v16 }
 0x48c   :  { %3769 = vmatmul.mubr.msk.f32.vlgmr.msra.gmra.mxu1 %vm78_vm0, %v4172_v43  ;;  %3778 = vmatprep.subr.mxu1 %v4272_v63  ;;  %v3791_v43 = vpop.f32.mrf.mxu0 }
 0x48d   :  { %3779 = vmatpush3.msra.mxu1 %v4272_v63  ;;  %3782 = vmatprep.mubr.msk.f32.mxu1 %vm78_vm0, %v4382_v12  ;;  %v2007_v63 = vadd.f32 %v3728_v58, %v4437_v23  ;;  %v2006_v12 = vadd.f32 %v1997_v27, %v4439_v26  ;;  %v3151_v58 = vld [vmem:[%s4604_s9 + $0x8] sm:$0xff]  ;;  %v3238_v27 = vld [vmem:[%s4604_s9] sm:$0xff] }
 0x48e   :  { %3780 = vmatprep.subr.mxu1 %v4275_v0 }
 0x48f   :  { %3781 = vmatpush3.msra.mxu1 %v4275_v0 }
 0x490   :  { %3783 = vmatmul.mubr.msk.f32.vlgmr.msra.gmra.mxu1 %vm78_vm0, %v4393_v13  ;;  %3792 = vmatprep.subr.mxu1 %v4256_v59 }
 0x491   :  { %3793 = vmatpush3.msra.mxu1 %v4256_v59  ;;  %3796 = vmatprep.mubr.msk.f32.mxu1 %vm78_vm0, %v4399_v14 }
 0x492   :  { %3794 = vmatprep.subr.mxu1 %v4259_v60 }
 0x493   :  { %3795 = vmatpush3.msra.mxu1 %v4259_v60 }
 0x494   :  { %3797 = vmatmul.mubr.msk.f32.vlgmr.msra.gmra.mxu1 %vm78_vm0, %v4411_v30  ;;  %3806 = vmatprep.subr.mxu1 %v4289_v1  ;;  %v2558_v30 = vadd.f32 %v3777_v38, %v4209_v50 }
 0x495   :  { %3807 = vmatpush3.msra.mxu1 %v4289_v1  ;;  %3810 = vmatprep.mubr.msk.f32.mxu1 %vm78_vm0, %v4417_v31  ;;  %v2702_v1 = vpop.f32.mrf.mxu0 }
 0x496   :  { %3808 = vmatprep.subr.mxu1 %v4295_v2 }
 0x497   :  { %3809 = vmatpush3.msra.mxu1 %v4295_v2  ;;  %v3805_v41 = vpop.f32.mrf.mxu0 }
 0x498   :  { %3811 = vmatmul.mubr.msk.f32.vlgmr.msra.gmra.mxu1 %vm78_vm0, %v4429_v15  ;;  %v2557_v15 = vadd.f32 %v2548_v39, %v4212_v51 }
 0x499   :  { %3824 = vmatprep.mubr.msk.f32.mxu1 %vm78_vm0, %v4234_v55  ;;  %v2856_v24 = vpop.f32.mrf.mxu0 }
 0x49b   :  { %v3819_v49 = vpop.f32.mrf.mxu0 }
 0x49d   :  { %v3016_v53 = vpop.f32.mrf.mxu0 }
 0x54c   :  { %v3770_v0 = vpop.f32.mrf.mxu1 }
 0x54d   :  { %v2481_v13 = vadd.f32 %v3770_v0, %v2007_v63 }
 0x54e   :  { %v2471_v14 = vpop.f32.mrf.mxu1 }
 0x54f   :  { %v2480_v2 = vadd.f32 %v2471_v14, %v2006_v12 }
 0x550   :  { %v3784_v31 = vpop.f32.mrf.mxu1 }
 0x551   :  { %v2635_v44 = vadd.f32 %v3784_v31, %v2558_v30 }
 0x552   :  { %v2625_v55 = vpop.f32.mrf.mxu1 }
 0x553   :  { %v2712_v34 = vadd.f32 %v3791_v43, %v2635_v44  ;;  %v2634_v18 = vadd.f32 %v2625_v55, %v2557_v15 }
 0x554   :  { %v3798_v20 = vpop.f32.mrf.mxu1 }
 0x555   :  { %v2711_v23 = vadd.f32 %v2702_v1, %v2634_v18  ;;  %v2789_v45 = vadd.f32 %v3798_v20, %v2712_v34 }
 0x556   :  { %v2779_v47 = vpop.f32.mrf.mxu1 }
 0x557   :  { %v2866_v48 = vadd.f32 %v3805_v41, %v2789_v45  ;;  %v2788_v26 = vadd.f32 %v2779_v47, %v2711_v23 }
 0x558   :  { %v3812_v25 = vpop.f32.mrf.mxu1 }
 0x559   :  { %v2865_v22 = vadd.f32 %v2856_v24, %v2788_v26  ;;  %v2943_v50 = vadd.f32 %v3812_v25, %v2866_v48 }
 0x55a   :  { %v2933_v9 = vpop.f32.mrf.mxu1 }
 0x55b   :  { %v3026_v52 = vadd.f32 %v3819_v49, %v2943_v50  ;;  %v2942_v35 = vadd.f32 %v2933_v9, %v2865_v22 }
 0x55d   :  { %v3025_v51 = vadd.f32 %v3016_v53, %v2942_v35  ;;  %3820 = vmatprep.subr.mxu1 %v3026_v52 }
 0x55e   :  { %3821 = vmatpush3.msra.mxu1 %v3026_v52 }
 0x55f   :  { %3822 = vmatprep.subr.mxu1 %v3025_v51 }
 0x560   :  { %3823 = vmatpush3.msra.mxu1 %v3025_v51 }
 0x561   :  { %3825 = vmatmul.mubr.msk.f32.vlgmr.msra.gmra.mxu1 %vm78_vm0, %v4245_v57  ;;  %v3166_v57 = vld [vmem:[%s4605_s10] sm:$0xff] }
 0x621   :  { %v3826_v56 = vpop.f32.mrf.mxu1 }
 0x622   :  { %v3103_v3 = vadd.f32 %v3826_v56, %v2481_v13 }
 0x623   :  { %v3093_v29 = vpop.f32.mrf.mxu1 }
 0x624   :  { %v3102_v10 = vadd.f32 %v3093_v29, %v2480_v2  ;;  %v3114_v28 = vsel %vm3104_vm1, %v3103_v3, 0.0 }
 0x625   :  { %3115 = vadd.xlane.f32.xlu1 %v3114_v28 }
 0x626   :  { %v3111_v54 = vsel %vm3104_vm1, %v3102_v10, 0.0 }
 0x627   :  { %3112 = vadd.xlane.f32.xlu0 %v3111_v54 }
 0x636   :  { %3161 = vperm.xlu1 %3837, %v3151_v58  }
 0x63a   :  { %3244 = vperm.xlu1 %3837, %v3238_v27  }
 0x63d   :  { %3156 = vperm.xlu0 %3836, %v3238_v27  }
 0x63e   :  { %3170 = vperm.xlu1 %3837, %v3166_v57  }
 0x641   :  { %3249 = vperm.xlu0 %3836, %v3151_v58  }
 0x645   :  { %3175 = vperm.xlu0 %3836, %v3167_v61  }
 0x6ae   :  { %v3116_v33 = vpop.xlane.xlu1 %3115 }
 0x6af   :  { %v3118_v5 = vadd.f32 %v3116_v33, %v3110_v46 }
 0x6b0   :  { %v3113_v37 = vpop.xlane.xlu0 %3112 }
 0x6b1   :  { %v3121_v62 = vmul.f32 0.0625, %v3118_v5  ;;  %v3117_v6 = vadd.f32 %v3113_v37, %v3107_v32 }
 0x6b3   :  { %v3123_v7 = vsub.f32 %v4457_v21, %v3121_v62  ;;  %v3133_v17 = vsub.f32 %v3103_v3, %v3121_v62  ;;  %v3120_v8 = vmul.f32 0.0625, %v3117_v6 }
 0x6b5   :  { %v3122_v40 = vsub.f32 %v4460_v4, %v3120_v8  ;;  %v3132_v42 = vsub.f32 %v3102_v10, %v3120_v8  ;;  %v3125_v11 = vmul.f32 %v3123_v7, %v3123_v7  ;;  %v3135_v16 = vmul.f32 %v3133_v17, %v3133_v17  ;;  %v3162_v4 = vpop.permute.xlu1 %3161 }
 0x6b7   :  { %v3129_v19 = vsel %vm3104_vm1, %v3125_v11, 0.0  ;;  %v3124_v36 = vmul.f32 %v3122_v40, %v3122_v40  ;;  %v3134_v39 = vmul.f32 %v3132_v42, %v3132_v42  ;;  %v3139_v43 = vsel %vm3104_vm1, %v3135_v16, 0.0 }
 0x6b8   :  { %3130 = vadd.xlane.f32.xlu1 %v3129_v19  ;;  %v3157_v63 = vpop.permute.xlu0 %3156 }
 0x6b9   :  { %v3126_v38 = vsel %vm3104_vm1, %v3124_v36, 0.0  ;;  %v3136_v21 = vsel %vm3104_vm1, %v3134_v39, 0.0  ;;  %v3245_v0 = vpop.permute.xlu1 %3244 }
 0x6ba   :  { %3127 = vadd.xlane.f32.xlu0 %v3126_v38 }
 0x6bc   :  { %3140 = vadd.xlane.f32.xlu1 %v3139_v43  ;;  %v3250_v1 = vpop.permute.xlu0 %3249 }
 0x6bd   :  { %v3171_v12 = vpop.permute.xlu1 %3170 }
 0x6be   :  { %3137 = vadd.xlane.f32.xlu0 %v3136_v21 }
 0x6c0   :  { %v3176_v13 = vpop.permute.xlu0 %3175 }
 0x6cd   :  { %3258 = vperm.xlu1 %3837, %v3166_v57  }
 0x6d4   :  { %3263 = vperm.xlu0 %3836, %v3167_v61  }
 0x741   :  { %v3131_v14 = vpop.xlane.xlu1 %3130 }
 0x743   :  { %v3128_v30 = vpop.xlane.xlu0 %3127 }
 0x745   :  { %v3141_v2 = vpop.xlane.xlu1 %3140 }
 0x746   :  { %v3143_v31 = vadd.f32 %v3141_v2, %v3131_v14 }
 0x747   :  { %v3138_v41 = vpop.xlane.xlu0 %3137 }
 0x748   :  { %v3145_v15 = vmul.f32 0.0625, %v3143_v31  ;;  %v3142_v44 = vadd.f32 %v3138_v41, %v3128_v30 }
 0x749   :  { %v3259_v35 = vpop.permute.xlu1 %3258 }
 0x74a   :  { %v3147_v55 = vadd.f32 1e-05, %v3145_v15  ;;  %v3144_v34 = vmul.f32 0.0625, %v3142_v44 }
 0x74c   :  { %3838 = vrsqrt.f32 %v3147_v55  ;;  %v3146_v18 = vadd.f32 1e-05, %v3144_v34 }
 0x74e   :  { %3840 = vrsqrt.f32 %v3146_v18 }
 0x74f   :  { %v3264_v49 = vpop.permute.xlu0 %3263 }
 0x759   :  { %v3839_v20 = vpop.eup %3838 }
 0x75a   :  { %v3153_v24 = vmul.f32 %v3839_v20, %v3123_v7  ;;  %v3241_v23 = vmul.f32 %v3839_v20, %v3133_v17 }
 0x75b   :  { %v3841_v45 = vpop.eup %3840 }
 0x75c   :  { %v3165_v47 = vmul.f32 %v3162_v4, %v3153_v24  ;;  %v3152_v48 = vmul.f32 %v3841_v45, %v3122_v40  ;;  %v3240_v26 = vmul.f32 %v3841_v45, %v3132_v42  ;;  %v3253_v25 = vmul.f32 %v3250_v1, %v3241_v23 }
 0x75e   :  { %v4543_v22 = vadd.f32 %v3176_v13, %v3165_v47  ;;  %v3164_v50 = vmul.f32 %v3157_v63, %v3152_v48  ;;  %v3252_v9 = vmul.f32 %v3245_v0, %v3240_v26  ;;  %v4545_v52 = vadd.f32 %v3264_v49, %v3253_v25 }
 0x760   :  { %v4548_v53 = vmul.f32 0.70710677, %v4543_v22  ;;  %v4550_v51 = vadd.f32 %v3171_v12, %v3164_v50  ;;  %v4552_v56 = vadd.f32 %v3259_v35, %v3252_v9  ;;  %v4555_v3 = vmul.f32 0.70710677, %v4545_v52 }
 0x762   :  { %v3185_v29 = vand.u32 2147483647, %v4548_v53  ;;  %v4559_v10 = vmul.f32 0.70710677, %v4550_v51  ;;  %v4562_v28 = vmul.f32 0.70710677, %v4552_v56 }
 0x763   :  { %v3273_v54 = vand.u32 2147483647, %v4555_v3  ;;  %vm3225_vm2 = vcmp.ge.f32.partialorder %v4548_v53, 0.0  ;;  %vm3313_vm3 = vcmp.ge.f32.partialorder %v4555_v3, 0.0 }
 0x764   :  { %v3187_v58 = vmul.f32 0.3275911, %v3185_v29  ;;  %v3184_v27 = vand.u32 2147483647, %v4559_v10  ;;  %v3272_v57 = vand.u32 2147483647, %v4562_v28 }
 0x765   :  { %v3275_v61 = vmul.f32 0.3275911, %v3273_v54  ;;  %v3213_v6 = vsub.f32 0.0, %v3185_v29  ;;  %v3301_v7 = vsub.f32 0.0, %v3273_v54  ;;  %vm3224_vm4 = vcmp.ge.f32.partialorder %v4559_v10, 0.0 }
 0x766   :  { %v3189_v32 = vadd.f32 1.0, %v3187_v58  ;;  %v3186_v46 = vmul.f32 0.3275911, %v3184_v27  ;;  %v3274_v33 = vmul.f32 0.3275911, %v3272_v57  ;;  %v3212_v17 = vsub.f32 0.0, %v3184_v27 }
 0x767   :  { %v3277_v5 = vadd.f32 1.0, %v3275_v61  ;;  %v3215_v8 = vmul.f32 %v3213_v6, %v3185_v29  ;;  %v3300_v40 = vsub.f32 0.0, %v3272_v57  ;;  %v3303_v42 = vmul.f32 %v3301_v7, %v3273_v54 }
 0x768   :  { %3842 = vrcp.f32 %v3189_v32  ;;  %v3188_v37 = vadd.f32 1.0, %v3186_v46  ;;  %v3276_v62 = vadd.f32 1.0, %v3274_v33  ;;  %v3214_v19 = vmul.f32 %v3212_v17, %v3184_v27 }
 0x769   :  { %3844 = vrcp.f32 %v3277_v5  ;;  %v3218_v38 = vmul.f32 1.442695, %v3215_v8  ;;  %v3302_v39 = vmul.f32 %v3300_v40, %v3272_v57  ;;  %v3306_v21 = vmul.f32 1.442695, %v3303_v42 }
 0x76a   :  { %3846 = vrcp.f32 %v3188_v37  ;;  %v3216_v1 = vmul.f32 1.442695, %v3214_v19  ;;  %vm3312_vm5 = vcmp.ge.f32.partialorder %v4562_v28, 0.0 }
 0x76b   :  { %3848 = vrcp.f32 %v3276_v62  ;;  %v3304_v30 = vmul.f32 1.442695, %v3302_v39 }
 0x76c   :  { %3850 = vpow2.f32 %v3218_v38 }
 0x76d   :  { %3852 = vpow2.f32 %v3306_v21 }
 0x76e   :  { %3854 = vpow2.f32 %v3216_v1  ;;  %v3269_v1 = vmul.f32 0.5, %v4545_v52  ;;  %v4612_v52 = vld [vmem:[#allocation3_spill] sm:$0xff] }
 0x76f   :  { %3856 = vpow2.f32 %v3304_v30  ;;  %v3180_v30 = vmul.f32 0.5, %v4550_v51 }
 0x775   :  { %v3843_v11 = vpop.eup %3842 }
 0x776   :  { %v3845_v36 = vpop.eup %3844  ;;  %v3195_v16 = vmul.f32 1.0614054, %v3843_v11 }
 0x777   :  { %v3283_v43 = vmul.f32 1.0614054, %v3845_v36  ;;  %v3847_v4 = vpop.eup %3846 }
 0x778   :  { %v3197_v63 = vadd.f32 -1.4531521, %v3195_v16  ;;  %v3194_v0 = vmul.f32 1.0614054, %v3847_v4  ;;  %v3849_v13 = vpop.eup %3848 }
 0x779   :  { %v3285_v12 = vadd.f32 -1.4531521, %v3283_v43  ;;  %v3282_v31 = vmul.f32 1.0614054, %v3849_v13  ;;  %v3851_v57 = vpop.eup %3850  ;;  %v3181_v43 = vmul.f32 0.5, %v4543_v22 }
 0x77a   :  { %v3199_v14 = vmul.f32 %v3843_v11, %v3197_v63  ;;  %v3196_v2 = vadd.f32 -1.4531521, %v3194_v0  ;;  %v3853_v33 = vpop.eup %3852 }
 0x77b   :  { %v3287_v41 = vmul.f32 %v3845_v36, %v3285_v12  ;;  %v3284_v55 = vadd.f32 -1.4531521, %v3282_v31  ;;  %v3855_v7 = vpop.eup %3854  ;;  %v4611_v31 = vld [vmem:[#allocation2_spill] sm:$0xff] }
 0x77c   :  { %v3201_v15 = vadd.f32 1.4214138, %v3199_v14  ;;  %v3198_v44 = vmul.f32 %v3847_v4, %v3196_v2  ;;  %v3857_v19 = vpop.eup %3856 }
 0x77d   :  { %v3289_v34 = vadd.f32 1.4214138, %v3287_v41  ;;  %v3286_v24 = vmul.f32 %v3849_v13, %v3284_v55 }
 0x77e   :  { %v3203_v18 = vmul.f32 %v3843_v11, %v3201_v15  ;;  %v3200_v20 = vadd.f32 1.4214138, %v3198_v44  ;;  %v3268_v44 = vmul.f32 0.5, %v4552_v56 }
 0x77f   :  { %v3291_v23 = vmul.f32 %v3845_v36, %v3289_v34  ;;  %v3288_v48 = vadd.f32 1.4214138, %v3286_v24 }
 0x780   :  { %v3205_v45 = vadd.f32 -0.28449672, %v3203_v18  ;;  %v3202_v47 = vmul.f32 %v3847_v4, %v3200_v20 }
 0x781   :  { %v3293_v26 = vadd.f32 -0.28449672, %v3291_v23  ;;  %v3290_v50 = vmul.f32 %v3849_v13, %v3288_v48 }
 0x782   :  { %v3207_v25 = vmul.f32 %v3843_v11, %v3205_v45  ;;  %v3204_v49 = vadd.f32 -0.28449672, %v3202_v47 }
 0x783   :  { %v3295_v9 = vmul.f32 %v3845_v36, %v3293_v26  ;;  %v3292_v54 = vadd.f32 -0.28449672, %v3290_v50 }
 0x784   :  { %v3209_v35 = vadd.f32 0.2548296, %v3207_v25  ;;  %v3206_v29 = vmul.f32 %v3847_v4, %v3204_v49 }
 0x785   :  { %v3297_v58 = vadd.f32 0.2548296, %v3295_v9  ;;  %v3294_v32 = vmul.f32 %v3849_v13, %v3292_v54 }
 0x786   :  { %v3211_v27 = vmul.f32 %v3843_v11, %v3209_v35  ;;  %v3208_v61 = vadd.f32 0.2548296, %v3206_v29 }
 0x787   :  { %v3299_v46 = vmul.f32 %v3845_v36, %v3297_v58  ;;  %v3296_v62 = vadd.f32 0.2548296, %v3294_v32 }
 0x788   :  { %v3221_v5 = vmul.f32 %v3851_v57, %v3211_v27  ;;  %v3210_v37 = vmul.f32 %v3847_v4, %v3208_v61 }
 0x789   :  { %v3309_v6 = vmul.f32 %v3853_v33, %v3299_v46  ;;  %v3298_v40 = vmul.f32 %v3849_v13, %v3296_v62 }
 0x78a   :  { %v3223_v17 = vsub.f32 1.0, %v3221_v5  ;;  %v3220_v8 = vmul.f32 %v3855_v7, %v3210_v37 }
 0x78b   :  { %v3311_v42 = vsub.f32 1.0, %v3309_v6  ;;  %v3308_v11 = vmul.f32 %v3857_v19, %v3298_v40 }
 0x78c   :  { %v3227_v16 = vsub.f32 0.0, %v3223_v17  ;;  %v3222_v38 = vsub.f32 1.0, %v3220_v8 }
 0x78d   :  { %v3315_v39 = vsub.f32 0.0, %v3311_v42  ;;  %v3310_v63 = vsub.f32 1.0, %v3308_v11 }
 0x78e   :  { %v3229_v36 = vsel %vm3225_vm2, %v3223_v17, %v3227_v16  ;;  %v3226_v4 = vsub.f32 0.0, %v3222_v38 }
 0x78f   :  { %v3231_v21 = vadd.f32 1.0, %v3229_v36  ;;  %v3317_v0 = vsel %vm3313_vm3, %v3311_v42, %v3315_v39  ;;  %v3314_v53 = vsub.f32 0.0, %v3310_v63 }
 0x790   :  { %v3319_v12 = vadd.f32 1.0, %v3317_v0  ;;  %v3228_v14 = vsel %vm3224_vm4, %v3222_v38, %v3226_v4 }
 0x791   :  { %v3233_v13 = vmul.f32 %v3231_v21, %v3181_v43  ;;  %v3230_v2 = vadd.f32 1.0, %v3228_v14  ;;  %v3316_v41 = vsel %vm3312_vm5, %v3310_v63, %v3314_v53 }
 0x792   :  { %v3321_v22 = vmul.f32 %v3319_v12, %v3269_v1  ;;  %v3318_v55 = vadd.f32 1.0, %v3316_v41 }
 0x793   :  { %v3235_v3 = vadd.f32 %v3233_v13, %v4611_v31  ;;  %v3232_v15 = vmul.f32 %v3230_v2, %v3180_v30 }
 0x794   :  { %v3323_v10 = vadd.f32 %v3321_v22, %v4256_v59  ;;  %v3320_v34 = vmul.f32 %v3318_v55, %v3268_v44 }
 0x795   :  { %3237 = vst.msk [vmem:[%s4606_s11 + $0x8] sm:$0xff] %vm3104_vm1, %v3235_v3  ;;  %v3234_v51 = vadd.f32 %v3232_v15, %v4612_v52 }
 0x796   :  { %3430 = vst.msk [vmem:[%s4606_s11 + $0x18] sm:$0xff] %vm3104_vm1, %v3323_v10  ;;  %v3322_v59 = vadd.f32 %v3320_v34, %v4259_v60 }
 0x797   :  { %3236 = vst.msk [vmem:[%s4606_s11] sm:$0xff] %vm3104_vm1, %v3234_v51 }
 0x798   :  { %3429 = vst.msk [vmem:[%s4606_s11 + $0x10] sm:$0xff] %vm3104_vm1, %v3322_v59 }

// kernel: wavelet_unet_forward.17
= control target key start
LH: loop header
LB: loop body
LE: loop exit
PB: predicated region body
PF: predicated region fallthrough
CT: control target
= control target key end

     0   :  { %v517_v2 = vmov 0   ;;  %vm34_vm0 = vcmask 261120   ;;  %vm116_vm1 = vcmask 31744   ;;  %s625_s0 = inlined_call_operand.vmem [shape: f32[2,32,4], index: 0, kind: input, shape index: {}]   ;;  %s626_s1 = inlined_call_operand.vmem [shape: f32[2,16,32], index: 1, kind: input, shape index: {}]   ;;  %s627_s2 = inlined_call_operand.vmem [shape: f32[16,1], index: 2, kind: input, shape index: {}]   ;;  %s628_s3 = inlined_call_operand.vmem [shape: f32[2,16,4], index: 3, kind: output, shape index: {0}]   ;;  %s629_s4 = inlined_call_operand.vmem [shape: f32[2,16,4], index: 4, kind: output, shape index: {1}]  }
   0x1   :  { %v19_v0 = vld [vmem:[%s625_s0 + $0x18] sm:$0xff]  ;;  %v18_v1 = vld [vmem:[%s625_s0 + $0x10] sm:$0xff]  ;;  %516 = vset.pattern.permute.xlu1 %v517_v2  ;;  %515 = vset.pattern.permute.xlu0 %v517_v2  ;;  %v17_v3 = vld [vmem:[%s625_s0 + $0x8] sm:$0xff] }
   0x2   :  { %470 = vmatprep.subr.mxu0 %v19_v0  ;;  %481 = vmatprep.subr.mxu1 %v19_v0  ;;  %v16_v4 = vld [vmem:[%s625_s0] sm:$0xff]  ;;  %v428_v6 = vld [vmem:[%s626_s1 + $0x10] sm:$0xff]  ;;  %v21_v7 = vld [vmem:[%s626_s1 + $0x8] sm:$0xff] }
   0x3   :  { %471 = vmatpush3.msra.mxu0 %v19_v0  ;;  %482 = vmatpush3.msra.mxu1 %v19_v0  ;;  %v20_v5 = vld [vmem:[%s626_s1] sm:$0xff]  ;;  %v429_v8 = vld [vmem:[%s626_s1 + $0x18] sm:$0xff]  ;;  %v434_v10 = vld [vmem:[%s625_s0 + $0x30] sm:$0xff] }
   0x4   :  { %472 = vmatprep.subr.mxu0 %v18_v1  ;;  %483 = vmatprep.subr.mxu1 %v18_v1  ;;  %v435_v9 = vld [vmem:[%s625_s0 + $0x38] sm:$0xff]  ;;  %v433_v11 = vld [vmem:[%s625_s0 + $0x28] sm:$0xff]  ;;  %v432_v12 = vld [vmem:[%s625_s0 + $0x20] sm:$0xff] }
   0x5   :  { %473 = vmatpush3.msra.mxu0 %v18_v1  ;;  %484 = vmatpush3.msra.mxu1 %v18_v1  ;;  %v122_v13 = vld [vmem:[%s627_s2] sm:$0xff]  ;;  %v123_v14 = vld [vmem:[%s627_s2 + $0x8] sm:$0xff] }
   0x6   :  { %474 = vmatprep.subr.mxu0 %v17_v3  ;;  %485 = vmatprep.subr.mxu1 %v17_v3 }
   0x7   :  { %475 = vmatpush3.msra.mxu0 %v17_v3  ;;  %486 = vmatpush3.msra.mxu1 %v17_v3 }
   0x8   :  { %476 = vmatprep.subr.mxu0 %v16_v4  ;;  %487 = vmatprep.subr.mxu1 %v16_v4 }
   0x9   :  { %477 = vmatpush3.msra.mxu0 %v16_v4  ;;  %478 = vmatprep.mubr.msk.f32.mxu0 %vm34_vm0, %v20_v5 }
   0xa   :  { %488 = vmatpush3.msra.mxu1 %v16_v4  ;;  %489 = vmatprep.mubr.msk.f32.mxu1 %vm34_vm0, %v428_v6 }
   0xb   :  { %479 = vmatmul.mubr.msk.f32.vlgmr.msra.gmra.mxu0 %vm34_vm0, %v21_v7  ;;  %490 = vmatmul.mubr.msk.f32.vlgmr.msra.gmra.mxu1 %vm34_vm0, %v429_v8 }
   0xc   :  { %492 = vmatprep.subr.mxu0 %v435_v9  ;;  %503 = vmatprep.subr.mxu1 %v435_v9 }
   0xd   :  { %493 = vmatpush3.msra.mxu0 %v435_v9  ;;  %504 = vmatpush3.msra.mxu1 %v435_v9 }
   0xe   :  { %494 = vmatprep.subr.mxu0 %v434_v10  ;;  %505 = vmatprep.subr.mxu1 %v434_v10 }
   0xf   :  { %495 = vmatpush3.msra.mxu0 %v434_v10  ;;  %506 = vmatpush3.msra.mxu1 %v434_v10 }
  0x10   :  { %496 = vmatprep.subr.mxu0 %v433_v11  ;;  %507 = vmatprep.subr.mxu1 %v433_v11 }
  0x11   :  { %497 = vmatpush3.msra.mxu0 %v433_v11  ;;  %508 = vmatpush3.msra.mxu1 %v433_v11 }
  0x12   :  { %498 = vmatprep.subr.mxu0 %v432_v12  ;;  %509 = vmatprep.subr.mxu1 %v432_v12 }
  0x13   :  { %499 = vmatpush3.msra.mxu0 %v432_v12  ;;  %500 = vmatprep.mubr.msk.f32.mxu0 %vm34_vm0, %v20_v5 }
  0x14   :  { %510 = vmatpush3.msra.mxu1 %v432_v12  ;;  %511 = vmatprep.mubr.msk.f32.mxu1 %vm34_vm0, %v428_v6 }
  0x15   :  { %501 = vmatmul.mubr.msk.f32.vlgmr.msra.gmra.mxu0 %vm34_vm0, %v21_v7  ;;  %512 = vmatmul.mubr.msk.f32.vlgmr.msra.gmra.mxu1 %vm34_vm0, %v429_v8 }
  0x16   :  { %126 = vperm.xlu1 %516, %v122_v13   ;;  %26 = vperm.xlu0 %515, %v122_v13  }
  0x1a   :  { %131 = vperm.xlu1 %516, %v123_v14   ;;  %31 = vperm.xlu0 %515, %v123_v14  }
  0x1e   :  { %233 = vperm.xlu1 %516, %v123_v14   ;;  %228 = vperm.xlu0 %515, %v122_v13  }
  0x22   :  { %331 = vperm.xlu1 %516, %v123_v14   ;;  %326 = vperm.xlu0 %515, %v122_v13  }
  0x91   :  { %v127_v15 = vpop.permute.xlu1 %126  ;;  %v27_v16 = vpop.permute.xlu0 %26 }
  0x95   :  { %v132_v17 = vpop.permute.xlu1 %131  ;;  %v32_v18 = vpop.permute.xlu0 %31 }
  0x99   :  { %v234_v25 = vpop.permute.xlu1 %233  ;;  %v229_v28 = vpop.permute.xlu0 %228 }
  0x9d   :  { %v332_v29 = vpop.permute.xlu1 %331  ;;  %v327_v32 = vpop.permute.xlu0 %326 }
  0xcb   :  { %v480_v19 = vpop.f32.mrf.mxu0  ;;  %v491_v20 = vpop.f32.mrf.mxu1 }
  0xcc   :  { %v113_v21 = vadd.f32 %v480_v19, %v32_v18  ;;  %v212_v22 = vadd.f32 %v491_v20, %v132_v17 }
  0xcd   :  { %v107_v23 = vpop.f32.mrf.mxu0  ;;  %v206_v24 = vpop.f32.mrf.mxu1 }
  0xce   :  { %118 = vst.msk [vmem:[%s628_s3 + $0x8] sm:$0xff] %vm116_vm1, %v113_v21  ;;  %216 = vst.msk [vmem:[%s629_s4 + $0x8] sm:$0xff] %vm116_vm1, %v212_v22  ;;  %v108_v26 = vadd.f32 %v107_v23, %v27_v16  ;;  %v207_v27 = vadd.f32 %v206_v24, %v127_v15 }
  0xd0   :  { %117 = vst.msk [vmem:[%s628_s3] sm:$0xff] %vm116_vm1, %v108_v26  ;;  %215 = vst.msk [vmem:[%s629_s4] sm:$0xff] %vm116_vm1, %v207_v27 }
  0xd5   :  { %v502_v30 = vpop.f32.mrf.mxu0  ;;  %v513_v31 = vpop.f32.mrf.mxu1 }
  0xd6   :  { %v314_v33 = vadd.f32 %v502_v30, %v234_v25  ;;  %v412_v34 = vadd.f32 %v513_v31, %v332_v29 }
  0xd7   :  { %v308_v35 = vpop.f32.mrf.mxu0  ;;  %v406_v36 = vpop.f32.mrf.mxu1 }
  0xd8   :  { %439 = vst.msk [vmem:[%s628_s3 + $0x18] sm:$0xff] %vm116_vm1, %v314_v33  ;;  %445 = vst.msk [vmem:[%s629_s4 + $0x18] sm:$0xff] %vm116_vm1, %v412_v34  ;;  %v309_v37 = vadd.f32 %v308_v35, %v229_v28  ;;  %v407_v38 = vadd.f32 %v406_v36, %v327_v32 }
  0xda   :  { %438 = vst.msk [vmem:[%s628_s3 + $0x10] sm:$0xff] %vm116_vm1, %v309_v37  ;;  %444 = vst.msk [vmem:[%s629_s4 + $0x10] sm:$0xff] %vm116_vm1, %v407_v38 }

// kernel: wavelet_unet_forward.19
= control target key start
LH: loop header
LB: loop body
LE: loop exit
PB: predicated region body
PF: predicated region fallthrough
CT: control target
= control target key end

     0   :  { %v413_v0 = vmov 0.0   ;;  %vm25_vm0 = vcmask 130048   ;;  %vm414_vm1 = vmmov 0   ;;  %v415_v8 = vmov 0   ;;  %s486_s0 = inlined_call_operand.vmem [shape: f32[2,16,8], index: 0, kind: input, shape index: {}]   ;;  %s487_s1 = inlined_call_operand.vmem [shape: f32[2,8,16], index: 1, kind: input, shape index: {}]   ;;  %s488_s2 = inlined_call_operand.vmem [shape: f32[8,1], index: 2, kind: input, shape index: {}]   ;;  %s489_s3 = inlined_call_operand.vmem [shape: f32[2,8,8], index: 3, kind: output, shape index: {0}]   ;;  %s490_s4 = inlined_call_operand.vmem [shape: f32[2,8,8], index: 4, kind: output, shape index: {1}]  }
   0x1   :  { %380 = vmatprep.subr.mxu0 %v413_v0  ;;  %387 = vmatprep.subr.mxu1 %v413_v0  ;;  %v17_v1 = vld [vmem:[%s486_s0 + $0x8] sm:$0xff]  ;;  %v16_v2 = vld [vmem:[%s486_s0] sm:$0xff]  ;;  %v362_v5 = vld [vmem:[%s486_s0 + $0x18] sm:$0xff]  ;;  %vm99_vm2 = vcmask 64512  }
   0x2   :  { %381 = vmatpush3.msra.mxu0 %v17_v1  ;;  %388 = vmatpush3.msra.mxu1 %v17_v1  ;;  %v18_v3 = vld [vmem:[%s487_s1] sm:$0xff]  ;;  %v359_v4 = vld [vmem:[%s487_s1 + $0x8] sm:$0xff]  ;;  %v361_v6 = vld [vmem:[%s486_s0 + $0x10] sm:$0xff] }
   0x3   :  { %382 = vmatprep.subr.mxu0 %v413_v0  ;;  %389 = vmatprep.subr.mxu1 %v413_v0  ;;  %v187_v7 = vld [vmem:[%s488_s2] sm:$0xff] }
   0x4   :  { %383 = vmatpush3.msra.mxu0 %v16_v2  ;;  %384 = vmatprep.mubr.msk.f32.mxu0 %vm414_vm1, %v413_v0 }
   0x5   :  { %390 = vmatpush3.msra.mxu1 %v16_v2  ;;  %391 = vmatprep.mubr.msk.f32.mxu1 %vm414_vm1, %v413_v0 }
   0x6   :  { %385 = vmatmul.mubr.msk.f32.vlgmr.msra.gmra.mxu0 %vm25_vm0, %v18_v3  ;;  %392 = vmatmul.mubr.msk.f32.vlgmr.msra.gmra.mxu1 %vm25_vm0, %v359_v4 }
   0x7   :  { %394 = vmatprep.subr.mxu0 %v413_v0  ;;  %401 = vmatprep.subr.mxu1 %v413_v0 }
   0x8   :  { %395 = vmatpush3.msra.mxu0 %v362_v5  ;;  %402 = vmatpush3.msra.mxu1 %v362_v5 }
   0x9   :  { %396 = vmatprep.subr.mxu0 %v413_v0  ;;  %403 = vmatprep.subr.mxu1 %v413_v0 }
   0xa   :  { %397 = vmatpush3.msra.mxu0 %v361_v6  ;;  %398 = vmatprep.mubr.msk.f32.mxu0 %vm414_vm1, %v413_v0 }
   0xb   :  { %404 = vmatpush3.msra.mxu1 %v361_v6  ;;  %405 = vmatprep.mubr.msk.f32.mxu1 %vm414_vm1, %v413_v0 }
   0xc   :  { %399 = vmatmul.mubr.msk.f32.vlgmr.msra.gmra.mxu0 %vm25_vm0, %v18_v3  ;;  %406 = vmatmul.mubr.msk.f32.vlgmr.msra.gmra.mxu1 %vm25_vm0, %v359_v4 }
   0xd   :  { %412 = vset.pattern.permute.xlu1 %v415_v8  ;;  %411 = vset.pattern.permute.xlu0 %v415_v8 }
   0xe   :  { %190 = vperm.xlu1 %412, %v187_v7   ;;  %22 = vperm.xlu0 %411, %v187_v7  }
  0x12   :  { %272 = vperm.xlu1 %412, %v187_v7   ;;  %106 = vperm.xlu0 %411, %v187_v7  }
  0x89   :  { %v23_v9 = vpop.permute.xlu0 %22  ;;  %v191_v11 = vpop.permute.xlu1 %190 }
  0x8d   :  { %v107_v10 = vpop.permute.xlu0 %106  ;;  %v273_v18 = vpop.permute.xlu1 %272 }
  0xc6   :  { %v95_v12 = vpop.f32.mrf.mxu0  ;;  %v178_v13 = vpop.f32.mrf.mxu1 }
  0xc7   :  { %v96_v14 = vadd.f32 %v95_v12, %v23_v9  ;;  %v179_v15 = vadd.f32 %v178_v13, %v107_v10 }
  0xc8   :  { %v386_v16 = vpop.f32.mrf.mxu0  ;;  %v393_v17 = vpop.f32.mrf.mxu1 }
  0xc9   :  { %100 = vst.msk [vmem:[%s489_s3] sm:$0xff] %vm99_vm2, %v96_v14  ;;  %182 = vst.msk [vmem:[%s490_s4] sm:$0xff] %vm99_vm2, %v179_v15 }
  0xcc   :  { %v262_v19 = vpop.f32.mrf.mxu0  ;;  %v344_v20 = vpop.f32.mrf.mxu1 }
  0xcd   :  { %v263_v21 = vadd.f32 %v262_v19, %v191_v11  ;;  %v345_v22 = vadd.f32 %v344_v20, %v273_v18 }
  0xce   :  { %v400_v23 = vpop.f32.mrf.mxu0  ;;  %v407_v24 = vpop.f32.mrf.mxu1 }
  0xcf   :  { %364 = vst.msk [vmem:[%s489_s3 + $0x8] sm:$0xff] %vm99_vm2, %v263_v21  ;;  %367 = vst.msk [vmem:[%s490_s4 + $0x8] sm:$0xff] %vm99_vm2, %v345_v22 }

// kernel: wavelet_unet_forward.21
= control target key start
LH: loop header
LB: loop body
LE: loop exit
PB: predicated region body
PF: predicated region fallthrough
CT: control target
= control target key end

     0   :  { %s1304_s14 = smov 127   ;;  %s1305_s15 = smov 125   ;;  %v1306_v1 = vmov 0.0   ;;  %vm1307_vm0 = vmmov 0   ;;  %vm23_vm1 = vcmask 64512   ;;  %s1451_s0 = inlined_call_operand.vmem [shape: f32[2,8,22], index: 0, kind: input, shape index: {}]   ;;  %s1452_s1 = inlined_call_operand.vmem [shape: f32[7,4,8], index: 1, kind: input, shape index: {}]   ;;  %s1453_s2 = inlined_call_operand.vmem [shape: f32[4,1], index: 2, kind: input, shape index: {}]   ;;  %s1454_s3 = inlined_call_operand.hbm [shape: f32[2,4,16], index: 3, kind: output, shape index: {}]  }
   0x1   :  { %v15_v0 = vld [vmem:[%s1451_s0] sm:$0xff]  ;;  %1198 = vmatprep.subr.mxu0 %v1306_v1  ;;  %1200 = vmatprep.mubr.msk.f32.mxu0 %vm1307_vm0, %v1306_v1  ;;  %s1308_s18 = smov 126   ;;  %s1309_s19 = smov 124  }
   0x2   :  { %20 = vrot.lane.b32.xlu0 %v15_v0, %s1304_s14  ;;  %251 = vrot.lane.b32.xlu1 %v15_v0, %s1305_s15  ;;  %v16_v2 = vld [vmem:[%s1452_s1] sm:$0xf] }
   0x3   :  { %1203 = vmatprep.subr.mxu1 %v1306_v1  ;;  %1205 = vmatprep.mubr.msk.f32.mxu1 %vm1307_vm0, %v1306_v1 }
   0x4   :  { %1204 = vmatpush3.msra.mxu1 %v15_v0 }
   0x6   :  { %172 = vrot.lane.b32.xlu0 %v15_v0, %s1308_s18  ;;  %330 = vrot.lane.b32.xlu1 %v15_v0, %s1309_s19 }
   0x7   :  { %8 = vsyncpa [#allocation3], 0  ;;  %1213 = vmatprep.subr.mxu1 %v1306_v1  ;;  %1206 = vmatmul.mubr.msk.f32.vlgmr.msra.gmra.mxu1 %vm23_vm1, %v16_v2  ;;  %s1310_s20 = smov 123   ;;  %s1311_s21 = smov 122   ;;  %v1156_v3 = vld [vmem:[%s1451_s0 + $0x8] sm:$0xff]  ;;  %v1312_v4 = vmov 0  }
   0x8   :  { %1215 = vmatprep.mubr.msk.f32.mxu1 %vm1307_vm0, %v1306_v1  ;;  %1280 = vset.pattern.permute.xlu0 %v1312_v4  ;;  %v565_v5 = vld [vmem:[%s1453_s2] sm:$0xf]  ;;  %v1143_v7 = vld [vmem:[%s1452_s1 + $0x4] sm:$0xf]  ;;  %v1148_v10 = vld [vmem:[%s1452_s1 + $0xc] sm:$0xf] }
   0x9   :  { %1281 = vset.pattern.permute.xlu1 %v1312_v4  ;;  %v1118_v6 = vld [vmem:[%s1453_s2] sm:$0xf]  ;;  %v1146_v11 = vld [vmem:[%s1452_s1 + $0x8] sm:$0xf]  ;;  %v1150_v14 = vld [vmem:[%s1452_s1 + $0x10] sm:$0xf] }
   0xa   :  { %409 = vrot.lane.b32.xlu0 %v15_v0, %s1310_s20  ;;  %488 = vrot.lane.b32.xlu1 %v15_v0, %s1311_s21  ;;  %v1152_v15 = vld [vmem:[%s1452_s1 + $0x14] sm:$0xf]  ;;  %v1154_v18 = vld [vmem:[%s1452_s1 + $0x18] sm:$0xf]  ;;  %vm572_vm2 = vcmask 125952  }
   0xb   :  { %v1157_v19 = vld [vmem:[%s1452_s1 + $0x4] sm:$0xf]  ;;  %v576_v22 = vld [vmem:[%s1452_s1] sm:$0xf]  ;;  %v1160_v23 = vld [vmem:[%s1452_s1 + $0x8] sm:$0xf] }
   0xc   :  { %v1162_v26 = vld [vmem:[%s1452_s1 + $0xc] sm:$0xf]  ;;  %v1164_v27 = vld [vmem:[%s1452_s1 + $0x10] sm:$0xf]  ;;  %v1166_v30 = vld [vmem:[%s1452_s1 + $0x14] sm:$0xf] }
   0xd   :  { %v1168_v31 = vld [vmem:[%s1452_s1 + $0x18] sm:$0xf]  ;;  %s1313_s1 = smov [#allocation2]  }
   0xe   :  { %579 = vrot.lane.b32.xlu0 %v1156_v3, %s1304_s14  ;;  %729 = vrot.lane.b32.xlu1 %v1156_v3, %s1308_s18  ;;  %s1132_s25 = sshll.u32 %s1313_s1, 4  ;;  %s1133_s25 = int_to_ptr.vmem [resolvable:$true] %s1132_s25 }
   0xf   :  { %s1282_s26 = scalar_lea.vmem %s1133_s25, 128  ;;  %p1287_p1 = scmp.lt.s32.totalorder %s1133_s25, %s1133_s25 }
  0x10   :  { %p1283_p0 = scmp.ne.s32.totalorder %s1133_s25, %s1282_s26  ;;  %p1288_p2 = scmp.lt.s32.totalorder %s1282_s26, %s1282_s26 }
  0x12   :  { %807 = vrot.lane.b32.xlu0 %v1156_v3, %s1305_s15  ;;  %885 = vrot.lane.b32.xlu1 %v1156_v3, %s1309_s19  ;;  %p1289_p3 = por %p1288_p2, %p1287_p1 }
  0x14   :  { %p1290_p4 = pnand %p1289_p3, %p1283_p0 }
  0x16   :  { %963 = vrot.lane.b32.xlu0 %v1156_v3, %s1310_s20  ;;  %1041 = vrot.lane.b32.xlu1 %v1156_v3, %s1311_s21 }
  0x1a   :  { %568 = vperm.xlu0 %1280, %v565_v5   ;;  %1121 = vperm.xlu1 %1281, %v1118_v6  }
  0x74   :  { %v21_v8 = vpop.permute.xlu0 %20  ;;  %v252_v9 = vpop.permute.xlu1 %251 }
  0x75   :  { %1199 = vmatpush3.msra.mxu0 %v21_v8  ;;  %1214 = vmatpush3.msra.mxu1 %v252_v9 }
  0x76   :  { %1201 = vmatmul.mubr.msk.f32.vlgmr.msra.gmra.mxu0 %vm23_vm1, %v1143_v7  ;;  %1208 = vmatprep.subr.mxu0 %v1306_v1 }
  0x77   :  { %1210 = vmatprep.mubr.msk.f32.mxu0 %vm1307_vm0, %v1306_v1  ;;  %1216 = vmatmul.mubr.msk.f32.vlgmr.msra.gmra.mxu1 %vm23_vm1, %v1148_v10 }
  0x78   :  { %v173_v12 = vpop.permute.xlu0 %172  ;;  %v331_v13 = vpop.permute.xlu1 %330  ;;  %1223 = vmatprep.subr.mxu1 %v1306_v1  ;;  %1225 = vmatprep.mubr.msk.f32.mxu1 %vm1307_vm0, %v1306_v1 }
  0x79   :  { %1209 = vmatpush3.msra.mxu0 %v173_v12 }
  0x7a   :  { %1211 = vmatmul.mubr.msk.f32.vlgmr.msra.gmra.mxu0 %vm23_vm1, %v1146_v11  ;;  %1218 = vmatprep.subr.mxu0 %v1306_v1 }
  0x7b   :  { %1219 = vmatpush3.msra.mxu0 %v331_v13  ;;  %1220 = vmatprep.mubr.msk.f32.mxu0 %vm1307_vm0, %v1306_v1 }
  0x7c   :  { %v410_v16 = vpop.permute.xlu0 %409  ;;  %v489_v17 = vpop.permute.xlu1 %488  ;;  %1228 = vmatprep.subr.mxu0 %v1306_v1 }
  0x7d   :  { %1224 = vmatpush3.msra.mxu1 %v410_v16 }
  0x7e   :  { %1221 = vmatmul.mubr.msk.f32.vlgmr.msra.gmra.mxu0 %vm23_vm1, %v1150_v14  ;;  %1226 = vmatmul.mubr.msk.f32.vlgmr.msra.gmra.mxu1 %vm23_vm1, %v1152_v15 }
  0x7f   :  { %1229 = vmatpush3.msra.mxu0 %v489_v17  ;;  %1230 = vmatprep.mubr.msk.f32.mxu0 %vm1307_vm0, %v1306_v1 }
  0x80   :  { %v580_v20 = vpop.permute.xlu0 %579  ;;  %1233 = vmatprep.subr.mxu1 %v1306_v1  ;;  %1235 = vmatprep.mubr.msk.f32.mxu1 %vm1307_vm0, %v1306_v1  ;;  %v730_v21 = vpop.permute.xlu1 %729 }
  0x81   :  { %1234 = vmatpush3.msra.mxu1 %v580_v20  ;;  %1238 = vmatprep.subr.mxu0 %v1306_v1 }
  0x82   :  { %1231 = vmatmul.mubr.msk.f32.vlgmr.msra.gmra.mxu0 %vm23_vm1, %v1154_v18  ;;  %1236 = vmatmul.mubr.msk.f32.vlgmr.msra.gmra.mxu1 %vm23_vm1, %v1157_v19 }
  0x83   :  { %1239 = vmatpush3.msra.mxu0 %v1156_v3  ;;  %1240 = vmatprep.mubr.msk.f32.mxu0 %vm1307_vm0, %v1306_v1 }
  0x84   :  { %1243 = vmatprep.subr.mxu1 %v1306_v1  ;;  %1248 = vmatprep.subr.mxu0 %v1306_v1  ;;  %v808_v24 = vpop.permute.xlu0 %807  ;;  %v886_v25 = vpop.permute.xlu1 %885 }
  0x85   :  { %1244 = vmatpush3.msra.mxu1 %v730_v21  ;;  %1245 = vmatprep.mubr.msk.f32.mxu1 %vm1307_vm0, %v1306_v1 }
  0x86   :  { %1241 = vmatmul.mubr.msk.f32.vlgmr.msra.gmra.mxu0 %vm23_vm1, %v576_v22  ;;  %1246 = vmatmul.mubr.msk.f32.vlgmr.msra.gmra.mxu1 %vm23_vm1, %v1160_v23 }
  0x87   :  { %1249 = vmatpush3.msra.mxu0 %v808_v24  ;;  %1250 = vmatprep.mubr.msk.f32.mxu0 %vm1307_vm0, %v1306_v1 }
  0x88   :  { %1253 = vmatprep.subr.mxu1 %v1306_v1  ;;  %1258 = vmatprep.subr.mxu0 %v1306_v1  ;;  %v964_v28 = vpop.permute.xlu0 %963  ;;  %v1042_v29 = vpop.permute.xlu1 %1041 }
  0x89   :  { %1254 = vmatpush3.msra.mxu1 %v886_v25  ;;  %1255 = vmatprep.mubr.msk.f32.mxu1 %vm1307_vm0, %v1306_v1 }
  0x8a   :  { %1251 = vmatmul.mubr.msk.f32.vlgmr.msra.gmra.mxu0 %vm23_vm1, %v1162_v26  ;;  %1256 = vmatmul.mubr.msk.f32.vlgmr.msra.gmra.mxu1 %vm23_vm1, %v1164_v27 }
  0x8b   :  { %1259 = vmatpush3.msra.mxu0 %v964_v28  ;;  %1260 = vmatprep.mubr.msk.f32.mxu0 %vm1307_vm0, %v1306_v1 }
  0x8c   :  { %1263 = vmatprep.subr.mxu1 %v1306_v1  ;;  %1265 = vmatprep.mubr.msk.f32.mxu1 %vm1307_vm0, %v1306_v1 }
  0x8d   :  { %1264 = vmatpush3.msra.mxu1 %v1042_v29 }
  0x8e   :  { %1261 = vmatmul.mubr.msk.f32.vlgmr.msra.gmra.mxu0 %vm23_vm1, %v1166_v30  ;;  %1266 = vmatmul.mubr.msk.f32.vlgmr.msra.gmra.mxu1 %vm23_vm1, %v1168_v31 }
  0x95   :  { %v569_v49 = vpop.permute.xlu0 %568  ;;  %v1122_v7 = vpop.permute.xlu1 %1121 }
  0xc7   :  { %v166_v32 = vpop.f32.mrf.mxu1 }
  0xc9   :  { %v1207_v33 = vpop.f32.mrf.mxu1 }
 0x136   :  { %v93_v34 = vpop.f32.mrf.mxu0 }
 0x137   :  { %v323_v35 = vpop.f32.mrf.mxu1  ;;  %v167_v37 = vadd.f32 %v166_v32, %v93_v34 }
 0x138   :  { %v1202_v36 = vpop.f32.mrf.mxu0 }
 0x139   :  { %v1217_v38 = vpop.f32.mrf.mxu1 }
 0x13a   :  { %v244_v39 = vpop.f32.mrf.mxu0 }
 0x13b   :  { %v248_v40 = vadd.f32 %v244_v39, %v167_v37 }
 0x13c   :  { %v1212_v41 = vpop.f32.mrf.mxu0 }
 0x13d   :  { %v327_v42 = vadd.f32 %v323_v35, %v248_v40 }
 0x13e   :  { %v402_v43 = vpop.f32.mrf.mxu0  ;;  %v481_v44 = vpop.f32.mrf.mxu1 }
 0x13f   :  { %v406_v45 = vadd.f32 %v402_v43, %v327_v42 }
 0x140   :  { %v1222_v46 = vpop.f32.mrf.mxu0  ;;  %v1227_v47 = vpop.f32.mrf.mxu1 }
 0x141   :  { %v485_v48 = vadd.f32 %v481_v44, %v406_v45 }
 0x142   :  { %v560_v50 = vpop.f32.mrf.mxu0  ;;  %v651_v51 = vpop.f32.mrf.mxu1 }
 0x143   :  { %v564_v52 = vadd.f32 %v560_v50, %v485_v48 }
 0x144   :  { %v1232_v53 = vpop.f32.mrf.mxu0  ;;  %v1237_v54 = vpop.f32.mrf.mxu1 }
 0x145   :  { %v571_v55 = vadd.f32 %v569_v49, %v564_v52 }
 0x146   :  { %v724_v56 = vpop.f32.mrf.mxu0  ;;  %v801_v57 = vpop.f32.mrf.mxu1 }
 0x147   :  { %573 = vst.msk [vmem:[#allocation2] sm:$0xf] %vm572_vm2, %v571_v55  ;;  %v725_v58 = vadd.f32 %v724_v56, %v651_v51 }
 0x148   :  { %v1242_v59 = vpop.f32.mrf.mxu0  ;;  %v1247_v60 = vpop.f32.mrf.mxu1 }
 0x149   :  { %v805_v61 = vadd.f32 %v801_v57, %v725_v58 }
 0x14a   :  { %v879_v62 = vpop.f32.mrf.mxu0  ;;  %v957_v63 = vpop.f32.mrf.mxu1 }
 0x14b   :  { %v883_v0 = vadd.f32 %v879_v62, %v805_v61 }
 0x14c   :  { %v1252_v1 = vpop.f32.mrf.mxu0  ;;  %v1257_v2 = vpop.f32.mrf.mxu1 }
 0x14d   :  { %v961_v3 = vadd.f32 %v957_v63, %v883_v0 }
 0x14e   :  { %v1035_v4 = vpop.f32.mrf.mxu0  ;;  %v1113_v5 = vpop.f32.mrf.mxu1 }
 0x14f   :  { %v1039_v6 = vadd.f32 %v1035_v4, %v961_v3 }
 0x150   :  { %v1262_v8 = vpop.f32.mrf.mxu0  ;;  %v1267_v9 = vpop.f32.mrf.mxu1 }
 0x151   :  { %v1117_v10 = vadd.f32 %v1113_v5, %v1039_v6 }
 0x153   :  { %v1124_v11 = vadd.f32 %v1122_v7, %v1117_v10 }
 0x155   :  { %1126 = vst.msk [vmem:[#allocation2 + $0x4] sm:$0xf] %vm572_vm2, %v1124_v11 }
 0x156   :  { %1293 = shalt.err (!%p1290_p4)
}
 0x157   :  { %s1314_s27 = smov 64   ;;  %s1315_s0 = smov 4  }
 0x158   :  { %1138 = dma.vmem_to_hbm [thread:$0]  %s1133_s25, 128, %s1454_s3, [#allocation3], %s1314_s27, %s1314_s27, %s1315_s0  }
 0x159   :  { %1302 = dma.done.wait [#allocation3], 128  }
 0x15a   :  { %1303 = vsyncadd [#allocation3], 4294967168 }
 0x15b   :  { %1142 = vsyncpa [#allocation3], 1 }

// kernel: wavelet_unet_forward.16
= control target key start
LH: loop header
LB: loop body
LE: loop exit
PB: predicated region body
PF: predicated region fallthrough
CT: control target
= control target key end

     0   :  { %v5314_v2 = vmov 0   ;;  %s5315_s21 = smov 126   ;;  %vm118_vm0 = vcmask 261120   ;;  %s5316_s28 = smov 125   ;;  %vm3816_vm1 = vcmask 31744   ;;  %s6935_s0 = inlined_call_operand.vmem [shape: f32[2,32,10], index: 0, kind: input, shape index: {}]   ;;  %s6936_s1 = inlined_call_operand.vmem [shape: f32[3,32,32], index: 1, kind: input, shape index: {}]   ;;  %s6937_s2 = inlined_call_operand.vmem [shape: f32[32,1], index: 2, kind: input, shape index: {}]   ;;  %s6938_s4 = inlined_call_operand.vmem [shape: f32[32,1], index: 4, kind: input, shape index: {}]   ;;  %s6939_s7 = inlined_call_operand.vmem [shape: f32[32,96], index: 7, kind: input, shape index: {}]   ;;  %s6940_s6 = inlined_call_operand.vmem [shape: f32[32,1], index: 6, kind: input, shape index: {}]   ;;  %s6941_s8 = inlined_call_operand.vmem [shape: f32[32,1], index: 8, kind: input, shape index: {}]   ;;  %s6942_s3 = inlined_call_operand.vmem [shape: f32[5,32,32], index: 3, kind: input, shape index: {}]   ;;  %s6943_s9 = inlined_call_operand.vmem [shape: f32[32,1], index: 9, kind: input, shape index: {}]   ;;  %s6944_s5 = inlined_call_operand.vmem [shape: f32[7,32,32], index: 5, kind: input, shape index: {}]   ;;  %s6945_s10 = inlined_call_operand.vmem [shape: f32[32,1], index: 10, kind: input, shape index: {}]   ;;  %s6946_s11 = inlined_call_operand.vmem [shape: f32[2,32,4], index: 11, kind: output, shape index: {}]  }
   0x1   :  { %v5386_v0 = vld [vmem:[%s6935_s0 + $0x18] sm:$0xff]  ;;  %v5391_v1 = vld [vmem:[%s6935_s0 + $0x8] sm:$0xff]  ;;  %5265 = vset.pattern.permute.xlu1 %v5314_v2  ;;  %5264 = vset.pattern.permute.xlu0 %v5314_v2  ;;  %v5400_v3 = vld [vmem:[%s6935_s0 + $0x10] sm:$0xff]  ;;  %s5317_s12 = smov 124   ;;  %s5318_s22 = smov 127  }
   0x2   :  { %112 = vrot.lane.b32.xlu0 %v5386_v0, %s5315_s21  ;;  %108 = vrot.lane.b32.xlu1 %v5391_v1, %s5315_s21  ;;  %v5405_v4 = vld [vmem:[%s6935_s0] sm:$0xff]  ;;  %v72_v7 = vld [vmem:[%s6937_s2 + $0x10] sm:$0xff]  ;;  %s5319_s23 = smov 123   ;;  %s5320_s18 = smov 96  }
   0x3   :  { %v5414_v5 = vld [vmem:[%s6936_s1] sm:$0xff]  ;;  %v73_v8 = vld [vmem:[%s6937_s2 + $0x18] sm:$0xff]  ;;  %v71_v9 = vld [vmem:[%s6937_s2 + $0x8] sm:$0xff]  ;;  %s5321_s24 = smov 122  }
   0x4   :  { %4759 = vmatprep.mubr.msk.f32.mxu0 %vm118_vm0, %v5414_v5  ;;  %v4267_v6 = vld [vmem:[%s6936_s1 + $0x20] sm:$0xff]  ;;  %v564_v11 = vld [vmem:[%s6938_s4 + $0x18] sm:$0xff]  ;;  %v563_v12 = vld [vmem:[%s6938_s4 + $0x10] sm:$0xff] }
   0x5   :  { %4773 = vmatprep.mubr.msk.f32.mxu1 %vm118_vm0, %v4267_v6  ;;  %v70_v10 = vld [vmem:[%s6937_s2] sm:$0xff]  ;;  %v562_v13 = vld [vmem:[%s6938_s4 + $0x8] sm:$0xff]  ;;  %v5493_v17 = vld [vmem:[%s6939_s7 + $0x10] sm:$0xff] }
   0x6   :  { %110 = vrot.lane.b32.xlu0 %v5400_v3, %s5315_s21  ;;  %106 = vrot.lane.b32.xlu1 %v5405_v4, %s5315_s21  ;;  %v561_v14 = vld [vmem:[%s6938_s4] sm:$0xff]  ;;  %v5486_v16 = vld [vmem:[%s6939_s7 + $0x8] sm:$0xff]  ;;  %s5322_s4 = smov 64  }
   0x7   :  { %v5481_v15 = vld [vmem:[%s6939_s7] sm:$0xff]  ;;  %v5498_v18 = vld [vmem:[%s6939_s7 + $0x18] sm:$0xff]  ;;  %v1249_v20 = vld [vmem:[%s6940_s6 + $0x10] sm:$0xff] }
   0x8   :  { %v1250_v19 = vld [vmem:[%s6940_s6 + $0x18] sm:$0xff]  ;;  %v1248_v21 = vld [vmem:[%s6940_s6 + $0x8] sm:$0xff]  ;;  %v1247_v22 = vld [vmem:[%s6940_s6] sm:$0xff] }
   0x9   :  { %v5525_v23 = vld [vmem:[%s6935_s0 + $0x38] sm:$0xff]  ;;  %v5530_v24 = vld [vmem:[%s6935_s0 + $0x30] sm:$0xff]  ;;  %v5539_v25 = vld [vmem:[%s6935_s0 + $0x28] sm:$0xff] }
   0xa   :  { %231 = vrot.lane.b32.xlu0 %v5386_v0, %s5316_s28  ;;  %229 = vrot.lane.b32.xlu1 %v5400_v3, %s5316_s28  ;;  %v5547_v26 = vld [vmem:[%s6935_s0 + $0x20] sm:$0xff]  ;;  %v5603_v33 = vld [vmem:[%s6936_s1 + $0x8] sm:$0xff] }
   0xb   :  { %v5610_v34 = vld [vmem:[%s6936_s1 + $0x10] sm:$0xff]  ;;  %v5627_v37 = vld [vmem:[%s6936_s1 + $0x18] sm:$0xff]  ;;  %v5634_v38 = vld [vmem:[%s6936_s1 + $0x40] sm:$0xff] }
   0xc   :  { %v4268_v41 = vld [vmem:[%s6936_s1 + $0x28] sm:$0xff]  ;;  %v4269_v42 = vld [vmem:[%s6936_s1 + $0x30] sm:$0xff]  ;;  %v4270_v45 = vld [vmem:[%s6936_s1 + $0x38] sm:$0xff] }
   0xd   :  { %v5678_v46 = vld [vmem:[%s6936_s1 + $0x48] sm:$0xff]  ;;  %v5685_v47 = vld [vmem:[%s6936_s1 + $0x50] sm:$0xff]  ;;  %v42_v48 = vld [vmem:[%s6941_s8] sm:$0xff] }
   0xe   :  { %349 = vrot.lane.b32.xlu0 %v5386_v0, %s5317_s12  ;;  %227 = vrot.lane.b32.xlu1 %v5391_v1, %s5316_s28  ;;  %v5702_v49 = vld [vmem:[%s6936_s1 + $0x58] sm:$0xff]  ;;  %v43_v50 = vld [vmem:[%s6941_s8 + $0x8] sm:$0xff] }
   0xf   :  { %v5712_v51 = vld [vmem:[%s6942_s3] sm:$0xff]  ;;  %v44_v52 = vld [vmem:[%s6941_s8 + $0x10] sm:$0xff]  ;;  %v45_v53 = vld [vmem:[%s6941_s8 + $0x18] sm:$0xff] }
  0x10   :  { %v3907_v56 = vld [vmem:[%s6943_s9 + $0x8] sm:$0xff]  ;;  %v3906_v57 = vld [vmem:[%s6943_s9] sm:$0xff]  ;;  %v3908_v60 = vld [vmem:[%s6943_s9 + $0x10] sm:$0xff] }
  0x11   :  { %v3909_v61 = vld [vmem:[%s6943_s9 + $0x18] sm:$0xff] }
  0x12   :  { %347 = vrot.lane.b32.xlu0 %v5400_v3, %s5317_s12  ;;  %225 = vrot.lane.b32.xlu1 %v5405_v4, %s5316_s28 }
  0x16   :  { %345 = vrot.lane.b32.xlu0 %v5391_v1, %s5317_s12  ;;  %343 = vrot.lane.b32.xlu1 %v5405_v4, %s5317_s12 }
  0x1a   :  { %86 = vperm.xlu1 %5265, %v72_v7   ;;  %91 = vperm.xlu0 %5264, %v73_v8   ;;  %v5761_v7 = vld [vmem:[%s6942_s3 + $0x8] sm:$0xff]  ;;  %v5767_v8 = vld [vmem:[%s6942_s3 + $0x10] sm:$0xff] }
  0x1e   :  { %81 = vperm.xlu1 %5265, %v71_v9   ;;  %76 = vperm.xlu0 %5264, %v70_v10  }
  0x22   :  { %599 = vrot.lane.b32.xlu1 %v5386_v0, %s5318_s22  ;;  %597 = vrot.lane.b32.xlu0 %v5400_v3, %s5318_s22 }
  0x26   :  { %595 = vrot.lane.b32.xlu1 %v5391_v1, %s5318_s22  ;;  %593 = vrot.lane.b32.xlu0 %v5405_v4, %s5318_s22 }
  0x2a   :  { %1035 = vrot.lane.b32.xlu1 %v5386_v0, %s5319_s23  ;;  %1033 = vrot.lane.b32.xlu0 %v5400_v3, %s5319_s23 }
  0x2e   :  { %1031 = vrot.lane.b32.xlu1 %v5391_v1, %s5319_s23  ;;  %1029 = vrot.lane.b32.xlu0 %v5405_v4, %s5319_s23 }
  0x32   :  { %582 = vperm.xlu1 %5265, %v564_v11   ;;  %577 = vperm.xlu0 %5264, %v563_v12   ;;  %v5783_v11 = vld [vmem:[%s6942_s3 + $0x18] sm:$0xff]  ;;  %v5789_v12 = vld [vmem:[%s6942_s3 + $0x40] sm:$0xff] }
  0x36   :  { %572 = vperm.xlu1 %5265, %v562_v13   ;;  %567 = vperm.xlu0 %5264, %v561_v14  }
  0x3a   :  { %1142 = vrot.lane.b32.xlu1 %v5481_v15, %s5320_s18  ;;  %1144 = vrot.lane.b32.xlu0 %v5486_v16, %s5320_s18 }
  0x3e   :  { %1146 = vrot.lane.b32.xlu1 %v5493_v17, %s5320_s18  ;;  %1148 = vrot.lane.b32.xlu0 %v5498_v18, %s5320_s18 }
  0x42   :  { %1921 = vrot.lane.b32.xlu1 %v5386_v0, %s5321_s24  ;;  %1919 = vrot.lane.b32.xlu0 %v5400_v3, %s5321_s24 }
  0x46   :  { %1917 = vrot.lane.b32.xlu1 %v5391_v1, %s5321_s24  ;;  %1915 = vrot.lane.b32.xlu0 %v5405_v4, %s5321_s24 }
  0x4a   :  { %1268 = vperm.xlu1 %5265, %v1250_v19   ;;  %1263 = vperm.xlu0 %5264, %v1249_v20   ;;  %v5811_v19 = vld [vmem:[%s6942_s3 + $0x50] sm:$0xff] }
  0x4e   :  { %1258 = vperm.xlu1 %5265, %v1248_v21   ;;  %1253 = vperm.xlu0 %5264, %v1247_v22   ;;  %v5827_v22 = vld [vmem:[%s6942_s3 + $0x58] sm:$0xff] }
  0x52   :  { %2148 = vrot.lane.b32.xlu1 %v5525_v23, %s5315_s21  ;;  %2146 = vrot.lane.b32.xlu0 %v5530_v24, %s5315_s21 }
  0x56   :  { %2144 = vrot.lane.b32.xlu1 %v5539_v25, %s5315_s21  ;;  %2028 = vrot.lane.b32.xlu0 %v5481_v15, %s5322_s4 }
  0x5a   :  { %2030 = vrot.lane.b32.xlu1 %v5486_v16, %s5322_s4  ;;  %2142 = vrot.lane.b32.xlu0 %v5547_v26, %s5315_s21 }
  0x5e   :  { %2249 = vrot.lane.b32.xlu1 %v5525_v23, %s5316_s28  ;;  %2247 = vrot.lane.b32.xlu0 %v5530_v24, %s5316_s28 }
  0x62   :  { %2350 = vrot.lane.b32.xlu1 %v5525_v23, %s5317_s12  ;;  %2032 = vrot.lane.b32.xlu0 %v5493_v17, %s5322_s4 }
  0x66   :  { %2034 = vrot.lane.b32.xlu1 %v5498_v18, %s5322_s4  ;;  %2245 = vrot.lane.b32.xlu0 %v5539_v25, %s5316_s28 }
  0x6a   :  { %2348 = vrot.lane.b32.xlu1 %v5530_v24, %s5317_s12  ;;  %2243 = vrot.lane.b32.xlu0 %v5547_v26, %s5316_s28 }
  0x6e   :  { %2346 = vrot.lane.b32.xlu1 %v5539_v25, %s5317_s12  ;;  %2344 = vrot.lane.b32.xlu0 %v5547_v26, %s5317_s12 }
  0x72   :  { %2540 = vrot.lane.b32.xlu1 %v5525_v23, %s5318_s22  ;;  %2538 = vrot.lane.b32.xlu0 %v5530_v24, %s5318_s22 }
  0x74   :  { %v5574_v27 = vpop.permute.xlu0 %112  ;;  %v5576_v28 = vpop.permute.xlu1 %108 }
  0x75   :  { %4751 = vmatprep.subr.mxu0 %v5574_v27 }
  0x76   :  { %4752 = vmatpush3.msra.mxu0 %v5574_v27  ;;  %2536 = vrot.lane.b32.xlu1 %v5539_v25, %s5318_s22 }
  0x77   :  { %2534 = vrot.lane.b32.xlu0 %v5547_v26, %s5318_s22 }
  0x78   :  { %v5584_v29 = vpop.permute.xlu0 %110  ;;  %v5586_v30 = vpop.permute.xlu1 %106 }
  0x79   :  { %4753 = vmatprep.subr.mxu0 %v5584_v29 }
  0x7a   :  { %4754 = vmatpush3.msra.mxu0 %v5584_v29  ;;  %2908 = vrot.lane.b32.xlu1 %v5525_v23, %s5319_s23 }
  0x7b   :  { %4755 = vmatprep.subr.mxu0 %v5576_v28  ;;  %2906 = vrot.lane.b32.xlu0 %v5530_v24, %s5319_s23 }
  0x7c   :  { %v5595_v31 = vpop.permute.xlu0 %231  ;;  %4756 = vmatpush3.msra.mxu0 %v5576_v28  ;;  %v5598_v32 = vpop.permute.xlu1 %229 }
  0x7d   :  { %7029 = vst [vmem:[#allocation2_spill] sm:$0xff] %v5595_v31  ;;  %7030 = vst [vmem:[#allocation3_spill] sm:$0xff] %v5598_v32  ;;  %4765 = vmatprep.subr.mxu1 %v5595_v31  ;;  %4757 = vmatprep.subr.mxu0 %v5586_v30 }
  0x7e   :  { %4758 = vmatpush3.msra.mxu0 %v5586_v30  ;;  %4766 = vmatpush3.msra.mxu1 %v5595_v31 }
  0x7f   :  { %4767 = vmatprep.subr.mxu1 %v5598_v32  ;;  %4760 = vmatmul.mubr.msk.f32.vlgmr.msra.gmra.mxu0 %vm118_vm0, %v5603_v33 }
  0x80   :  { %v5617_v35 = vpop.permute.xlu0 %349  ;;  %4768 = vmatpush3.msra.mxu1 %v5598_v32  ;;  %v5620_v36 = vpop.permute.xlu1 %227  ;;  %4762 = vmatprep.mubr.msk.f32.mxu0 %vm118_vm0, %v5610_v34 }
  0x81   :  { %7031 = vst [vmem:[#allocation4_spill] sm:$0xff] %v5620_v36  ;;  %4779 = vmatprep.subr.mxu0 %v5617_v35  ;;  %4769 = vmatprep.subr.mxu1 %v5620_v36 }
  0x82   :  { %4780 = vmatpush3.msra.mxu0 %v5617_v35  ;;  %4770 = vmatpush3.msra.mxu1 %v5620_v36 }
  0x83   :  { %4763 = vmatmul.mubr.msk.f32.gmra.mxu0 %vm118_vm0, %v5627_v37  ;;  %2904 = vrot.lane.b32.xlu1 %v5539_v25, %s5319_s23 }
  0x84   :  { %v5642_v39 = vpop.permute.xlu0 %347  ;;  %v5644_v40 = vpop.permute.xlu1 %225  ;;  %4787 = vmatprep.mubr.msk.f32.mxu0 %vm118_vm0, %v5634_v38  ;;  %2902 = vrot.lane.b32.xlu0 %v5547_v26, %s5319_s23 }
  0x85   :  { %7032 = vst [vmem:[#allocation5_spill] sm:$0xff] %v5644_v40  ;;  %4771 = vmatprep.subr.mxu1 %v5644_v40  ;;  %4781 = vmatprep.subr.mxu0 %v5642_v39 }
  0x86   :  { %4772 = vmatpush3.msra.mxu1 %v5644_v40  ;;  %4782 = vmatpush3.msra.mxu0 %v5642_v39 }
  0x87   :  { %4774 = vmatmul.mubr.msk.f32.vlgmr.msra.gmra.mxu1 %vm118_vm0, %v4268_v41  ;;  %3632 = vrot.lane.b32.xlu1 %v5525_v23, %s5321_s24  ;;  %v5833_v41 = vld [vmem:[%s6942_s3 + $0x80] sm:$0xff] }
  0x88   :  { %v5663_v43 = vpop.permute.xlu0 %345  ;;  %4776 = vmatprep.mubr.msk.f32.mxu1 %vm118_vm0, %v4269_v42  ;;  %v5666_v44 = vpop.permute.xlu1 %343  ;;  %3630 = vrot.lane.b32.xlu0 %v5530_v24, %s5321_s24 }
  0x89   :  { %7033 = vst [vmem:[#allocation6_spill] sm:$0xff] %v5663_v43  ;;  %7034 = vst [vmem:[#allocation7_spill] sm:$0xff] %v5666_v44  ;;  %4783 = vmatprep.subr.mxu0 %v5663_v43 }
  0x8a   :  { %4784 = vmatpush3.msra.mxu0 %v5663_v43 }
  0x8b   :  { %4777 = vmatmul.mubr.msk.f32.gmra.mxu1 %vm118_vm0, %v4270_v45  ;;  %4785 = vmatprep.subr.mxu0 %v5666_v44 }
  0x8c   :  { %4786 = vmatpush3.msra.mxu0 %v5666_v44  ;;  %3628 = vrot.lane.b32.xlu1 %v5539_v25, %s5321_s24 }
  0x8d   :  { %4788 = vmatmul.mubr.msk.f32.vlgmr.msra.gmra.mxu0 %vm118_vm0, %v5678_v46  ;;  %3626 = vrot.lane.b32.xlu0 %v5547_v26, %s5321_s24 }
  0x8e   :  { %4790 = vmatprep.mubr.msk.f32.mxu0 %vm118_vm0, %v5685_v47  ;;  %4801 = vmatprep.mubr.msk.f32.mxu1 %vm118_vm0, %v5481_v15  ;;  %v5805_v15 = vld [vmem:[%s6942_s3 + $0x48] sm:$0xff] }
  0x90   :  { %48 = vperm.xlu1 %5265, %v42_v48   ;;  %v5849_v48 = vld [vmem:[%s6942_s3 + $0x88] sm:$0xff] }
  0x91   :  { %4791 = vmatmul.mubr.msk.f32.gmra.mxu0 %vm118_vm0, %v5702_v49  ;;  %53 = vperm.xlu0 %5264, %v43_v50   ;;  %v5855_v50 = vld [vmem:[%s6942_s3 + $0x90] sm:$0xff] }
  0x92   :  { %4815 = vmatprep.mubr.msk.f32.mxu0 %vm118_vm0, %v5712_v51 }
  0x94   :  { %58 = vperm.xlu1 %5265, %v44_v52  }
  0x95   :  { %v5724_v54 = vpop.permute.xlu1 %86  ;;  %v5726_v55 = vpop.permute.xlu0 %91  ;;  %63 = vperm.xlu0 %5264, %v45_v53  }
  0x98   :  { %3921 = vperm.xlu1 %5265, %v3907_v56   ;;  %v5871_v56 = vld [vmem:[%s6942_s3 + $0x98] sm:$0xff] }
  0x99   :  { %v5734_v58 = vpop.permute.xlu1 %81  ;;  %v5736_v59 = vpop.permute.xlu0 %76  ;;  %3916 = vperm.xlu0 %5264, %v3906_v57  }
  0x9c   :  { %3926 = vperm.xlu1 %5265, %v3908_v60  }
  0x9d   :  { %v5744_v62 = vpop.permute.xlu1 %599  ;;  %v5746_v63 = vpop.permute.xlu0 %597  ;;  %3931 = vperm.xlu0 %5264, %v3909_v61   ;;  %v5893_v61 = vld [vmem:[%s6944_s5 + $0x8] sm:$0xff] }
  0x9e   :  { %7035 = vst [vmem:[#allocation8_spill] sm:$0xff] %v5744_v62  ;;  %7036 = vst [vmem:[#allocation9_spill] sm:$0xff] %v5746_v63  ;;  %4807 = vmatprep.subr.mxu0 %v5744_v62 }
  0x9f   :  { %4808 = vmatpush3.msra.mxu0 %v5744_v62  ;;  %v5998_v62 = vld [vmem:[%s6944_s5 + $0xc0] sm:$0xff] }
  0xa0   :  { %4809 = vmatprep.subr.mxu0 %v5746_v63  ;;  %4092 = vperm.xlu1 %5265, %v3906_v57   ;;  %v5877_v57 = vld [vmem:[%s6944_s5] sm:$0xff] }
  0xa1   :  { %4810 = vmatpush3.msra.mxu0 %v5746_v63  ;;  %v5752_v2 = vpop.permute.xlu1 %595  ;;  %v5754_v6 = vpop.permute.xlu0 %593 }
  0xa2   :  { %7037 = vst [vmem:[#allocation10_spill] sm:$0xff] %v5752_v2  ;;  %7038 = vst [vmem:[#allocation11_spill] sm:$0xff] %v5754_v6  ;;  %4811 = vmatprep.subr.mxu0 %v5752_v2 }
  0xa3   :  { %4812 = vmatpush3.msra.mxu0 %v5752_v2 }
  0xa4   :  { %4813 = vmatprep.subr.mxu0 %v5754_v6 }
  0xa5   :  { %4814 = vmatpush3.msra.mxu0 %v5754_v6  ;;  %v5770_v9 = vpop.permute.xlu1 %1035  ;;  %v5772_v10 = vpop.permute.xlu0 %1033  ;;  %v5951_v6 = vld [vmem:[%s6944_s5 + $0x58] sm:$0xff] }
  0xa6   :  { %7039 = vst [vmem:[#allocation12_spill] sm:$0xff] %v5770_v9  ;;  %7040 = vst [vmem:[#allocation13_spill] sm:$0xff] %v5772_v10  ;;  %4816 = vmatmul.mubr.msk.f32.vlgmr.msra.gmra.mxu0 %vm118_vm0, %v5761_v7  ;;  %4835 = vmatprep.subr.mxu0 %v5595_v31 }
  0xa7   :  { %4836 = vmatpush3.msra.mxu0 %v5595_v31  ;;  %4818 = vmatprep.mubr.msk.f32.mxu0 %vm118_vm0, %v5767_v8 }
  0xa8   :  { %4837 = vmatprep.subr.mxu0 %v5598_v32 }
  0xa9   :  { %4838 = vmatpush3.msra.mxu0 %v5598_v32  ;;  %v5792_v13 = vpop.permute.xlu1 %1031  ;;  %v5794_v14 = vpop.permute.xlu0 %1029 }
  0xaa   :  { %7041 = vst [vmem:[#allocation14_spill] sm:$0xff] %v5792_v13  ;;  %7042 = vst [vmem:[#allocation15_spill] sm:$0xff] %v5794_v14  ;;  %4819 = vmatmul.mubr.msk.f32.gmra.mxu0 %vm118_vm0, %v5783_v11  ;;  %4839 = vmatprep.subr.mxu0 %v5620_v36 }
  0xab   :  { %4840 = vmatpush3.msra.mxu0 %v5620_v36  ;;  %4843 = vmatprep.mubr.msk.f32.mxu0 %vm118_vm0, %v5789_v12  ;;  %v5935_v36 = vld [vmem:[%s6944_s5 + $0x50] sm:$0xff] }
  0xac   :  { %4841 = vmatprep.subr.mxu0 %v5644_v40 }
  0xad   :  { %4842 = vmatpush3.msra.mxu0 %v5644_v40  ;;  %v5814_v20 = vpop.permute.xlu1 %582  ;;  %v5816_v21 = vpop.permute.xlu0 %577  ;;  %v5929_v40 = vld [vmem:[%s6944_s5 + $0x48] sm:$0xff] }
  0xae   :  { %7043 = vst [vmem:[#allocation16_spill] sm:$0xff] %v5814_v20  ;;  %7044 = vst [vmem:[#allocation17_spill] sm:$0xff] %v5816_v21  ;;  %4844 = vmatmul.mubr.msk.f32.vlgmr.msra.gmra.mxu0 %vm118_vm0, %v5805_v15  ;;  %4863 = vmatprep.subr.mxu0 %v5770_v9 }
  0xaf   :  { %4864 = vmatpush3.msra.mxu0 %v5770_v9  ;;  %4846 = vmatprep.mubr.msk.f32.mxu0 %vm118_vm0, %v5811_v19 }
  0xb0   :  { %4865 = vmatprep.subr.mxu0 %v5772_v10 }
  0xb1   :  { %4866 = vmatpush3.msra.mxu0 %v5772_v10  ;;  %v5836_v42 = vpop.permute.xlu1 %572  ;;  %v5838_v45 = vpop.permute.xlu0 %567 }
  0xb2   :  { %7045 = vst [vmem:[#allocation18_spill] sm:$0xff] %v5836_v42  ;;  %7046 = vst [vmem:[#allocation19_spill] sm:$0xff] %v5838_v45  ;;  %4847 = vmatmul.mubr.msk.f32.gmra.mxu0 %vm118_vm0, %v5827_v22  ;;  %4867 = vmatprep.subr.mxu0 %v5792_v13 }
  0xb3   :  { %4868 = vmatpush3.msra.mxu0 %v5792_v13  ;;  %4871 = vmatprep.mubr.msk.f32.mxu0 %vm118_vm0, %v5833_v41 }
  0xb4   :  { %4869 = vmatprep.subr.mxu0 %v5794_v14 }
  0xb5   :  { %4870 = vmatpush3.msra.mxu0 %v5794_v14  ;;  %v5858_v52 = vpop.permute.xlu1 %1142  ;;  %v5860_v53 = vpop.permute.xlu0 %1144 }
  0xb6   :  { %7047 = vst [vmem:[#allocation20_spill] sm:$0xff] %v5858_v52  ;;  %7048 = vst [vmem:[#allocation21_spill] sm:$0xff] %v5860_v53  ;;  %4872 = vmatmul.mubr.msk.f32.vlgmr.msra.gmra.mxu0 %vm118_vm0, %v5849_v48  ;;  %4891 = vmatprep.subr.mxu0 %v5386_v0 }
  0xb7   :  { %4892 = vmatpush3.msra.mxu0 %v5386_v0  ;;  %4874 = vmatprep.mubr.msk.f32.mxu0 %vm118_vm0, %v5855_v50 }
  0xb8   :  { %4893 = vmatprep.subr.mxu0 %v5400_v3 }
  0xb9   :  { %4894 = vmatpush3.msra.mxu0 %v5400_v3  ;;  %v5880_v60 = vpop.permute.xlu1 %1146  ;;  %v5882_v0 = vpop.permute.xlu0 %1148  ;;  %v5899_v3 = vld [vmem:[%s6944_s5 + $0x10] sm:$0xff] }
  0xba   :  { %7049 = vst [vmem:[#allocation22_spill] sm:$0xff] %v5880_v60  ;;  %7050 = vst [vmem:[#allocation23_spill] sm:$0xff] %v5882_v0  ;;  %4875 = vmatmul.mubr.msk.f32.gmra.mxu0 %vm118_vm0, %v5871_v56  ;;  %4895 = vmatprep.subr.mxu0 %v5391_v1  ;;  %v5973_v0 = vld [vmem:[%s6944_s5 + $0x88] sm:$0xff]  ;;  %v5993_v60 = vld [vmem:[%s6944_s5 + $0x98] sm:$0xff] }
  0xbb   :  { %4896 = vmatpush3.msra.mxu0 %v5391_v1  ;;  %4899 = vmatprep.mubr.msk.f32.mxu0 %vm118_vm0, %v5877_v57  ;;  %v5911_v1 = vld [vmem:[%s6944_s5 + $0x18] sm:$0xff] }
  0xbc   :  { %4897 = vmatprep.subr.mxu0 %v5405_v4 }
  0xbd   :  { %4898 = vmatpush3.msra.mxu0 %v5405_v4  ;;  %v1922_v14 = vpop.permute.xlu1 %1921  ;;  %v1920_v13 = vpop.permute.xlu0 %1919  ;;  %v5917_v4 = vld [vmem:[%s6944_s5 + $0x40] sm:$0xff] }
  0xbe   :  { %4900 = vmatmul.mubr.msk.f32.vlgmr.msra.gmra.mxu0 %vm118_vm0, %v5893_v61  ;;  %4919 = vmatprep.subr.mxu0 %v5574_v27 }
  0xbf   :  { %4920 = vmatpush3.msra.mxu0 %v5574_v27  ;;  %4902 = vmatprep.mubr.msk.f32.mxu0 %vm118_vm0, %v5899_v3 }
  0xc0   :  { %4921 = vmatprep.subr.mxu0 %v5584_v29 }
  0xc1   :  { %4922 = vmatpush3.msra.mxu0 %v5584_v29  ;;  %v1918_v10 = vpop.permute.xlu1 %1917  ;;  %v1916_v9 = vpop.permute.xlu0 %1915 }
  0xc2   :  { %4903 = vmatmul.mubr.msk.f32.gmra.mxu0 %vm118_vm0, %v5911_v1  ;;  %4923 = vmatprep.subr.mxu0 %v5576_v28 }
  0xc3   :  { %4924 = vmatpush3.msra.mxu0 %v5576_v28  ;;  %4927 = vmatprep.mubr.msk.f32.mxu0 %vm118_vm0, %v5917_v4 }
  0xc4   :  { %4925 = vmatprep.subr.mxu0 %v5586_v30 }
  0xc5   :  { %4926 = vmatpush3.msra.mxu0 %v5586_v30  ;;  %v5938_v32 = vpop.permute.xlu1 %1268  ;;  %v5940_v31 = vpop.permute.xlu0 %1263 }
  0xc6   :  { %7051 = vst [vmem:[#allocation24_spill] sm:$0xff] %v5938_v32  ;;  %7052 = vst [vmem:[#allocation25_spill] sm:$0xff] %v5940_v31  ;;  %4928 = vmatmul.mubr.msk.f32.vlgmr.msra.gmra.mxu0 %vm118_vm0, %v5929_v40  ;;  %4947 = vmatprep.subr.mxu0 %v5617_v35  ;;  %v5957_v31 = vld [vmem:[%s6944_s5 + $0x80] sm:$0xff] }
  0xc7   :  { %4948 = vmatpush3.msra.mxu0 %v5617_v35  ;;  %4930 = vmatprep.mubr.msk.f32.mxu0 %vm118_vm0, %v5935_v36 }
  0xc8   :  { %4949 = vmatprep.subr.mxu0 %v5642_v39 }
  0xc9   :  { %4950 = vmatpush3.msra.mxu0 %v5642_v39  ;;  %v5960_v32 = vpop.permute.xlu1 %1258  ;;  %v5962_v2 = vpop.permute.xlu0 %1253 }
  0xca   :  { %7053 = vst [vmem:[#allocation26_spill] sm:$0xff] %v5960_v32  ;;  %7054 = vst [vmem:[#allocation27_spill] sm:$0xff] %v5962_v2  ;;  %4931 = vmatmul.mubr.msk.f32.gmra.mxu0 %vm118_vm0, %v5951_v6  ;;  %4951 = vmatprep.subr.mxu0 %v5663_v43  ;;  %v5979_v2 = vld [vmem:[%s6944_s5 + $0x90] sm:$0xff] }
  0xcb   :  { %4952 = vmatpush3.msra.mxu0 %v5663_v43  ;;  %4955 = vmatprep.mubr.msk.f32.mxu0 %vm118_vm0, %v5957_v31 }
  0xcc   :  { %4953 = vmatprep.subr.mxu0 %v5666_v44 }
  0xcd   :  { %4954 = vmatpush3.msra.mxu0 %v5666_v44  ;;  %v5982_v32 = vpop.permute.xlu1 %2148  ;;  %v5984_v63 = vpop.permute.xlu0 %2146 }
  0xce   :  { %4956 = vmatmul.mubr.msk.f32.vlgmr.msra.gmra.mxu0 %vm118_vm0, %v5973_v0  ;;  %4975 = vmatprep.subr.mxu0 %v1922_v14 }
  0xcf   :  { %4976 = vmatpush3.msra.mxu0 %v1922_v14  ;;  %4958 = vmatprep.mubr.msk.f32.mxu0 %vm118_vm0, %v5979_v2  ;;  %v6011_v14 = vld [vmem:[%s6944_s5 + $0xc8] sm:$0xff] }
  0xd0   :  { %4977 = vmatprep.subr.mxu0 %v1920_v13 }
  0xd1   :  { %4978 = vmatpush3.msra.mxu0 %v1920_v13  ;;  %v6000_v53 = vpop.permute.xlu1 %2144  ;;  %v6002_v45 = vpop.permute.xlu0 %2028  ;;  %v6016_v13 = vld [vmem:[%s6944_s5 + $0xd0] sm:$0xff] }
  0xd2   :  { %7055 = vst [vmem:[#allocation28_spill] sm:$0xff] %v6002_v45  ;;  %4959 = vmatmul.mubr.msk.f32.gmra.mxu0 %vm118_vm0, %v5993_v60  ;;  %4979 = vmatprep.subr.mxu0 %v1918_v10 }
  0xd3   :  { %4980 = vmatpush3.msra.mxu0 %v1918_v10  ;;  %4983 = vmatprep.mubr.msk.f32.mxu0 %vm118_vm0, %v5998_v62  ;;  %v6031_v10 = vld [vmem:[%s6944_s5 + $0xd8] sm:$0xff] }
  0xd4   :  { %4981 = vmatprep.subr.mxu0 %v1916_v9 }
  0xd5   :  { %4982 = vmatpush3.msra.mxu0 %v1916_v9  ;;  %v6018_v45 = vpop.permute.xlu1 %2030  ;;  %v6020_v21 = vpop.permute.xlu0 %2142 }
  0xd6   :  { %7056 = vst [vmem:[#allocation29_spill] sm:$0xff] %v6018_v45  ;;  %4984 = vmatmul.mubr.msk.f32.vlgmr.msra.gmra.mxu0 %vm118_vm0, %v6011_v14  ;;  %5003 = vmatprep.subr.mxu0 %v5982_v32 }
  0xd7   :  { %5004 = vmatpush3.msra.mxu0 %v5982_v32  ;;  %4986 = vmatprep.mubr.msk.f32.mxu0 %vm118_vm0, %v6016_v13 }
  0xd8   :  { %5005 = vmatprep.subr.mxu0 %v5984_v63 }
  0xd9   :  { %5006 = vmatpush3.msra.mxu0 %v5984_v63  ;;  %v6035_v9 = vpop.permute.xlu1 %2249  ;;  %v6037_v45 = vpop.permute.xlu0 %2247 }
  0xda   :  { %4987 = vmatmul.mubr.msk.f32.gmra.mxu0 %vm118_vm0, %v6031_v10  ;;  %5007 = vmatprep.subr.mxu0 %v6000_v53 }
  0xdb   :  { %5008 = vmatpush3.msra.mxu0 %v6000_v53  ;;  %5011 = vmatprep.mubr.msk.f32.mxu0 %vm118_vm0, %v5414_v5 }
  0xdc   :  { %5009 = vmatprep.subr.mxu0 %v6020_v21 }
  0xdd   :  { %5010 = vmatpush3.msra.mxu0 %v6020_v21  ;;  %v6047_v42 = vpop.permute.xlu1 %2350  ;;  %v6049_v20 = vpop.permute.xlu0 %2032 }
  0xde   :  { %7057 = vst [vmem:[#allocation30_spill] sm:$0xff] %v6049_v20  ;;  %5012 = vmatmul.mubr.msk.f32.vlgmr.msra.gmra.mxu0 %vm118_vm0, %v5603_v33  ;;  %5031 = vmatprep.subr.mxu0 %v6047_v42 }
  0xdf   :  { %5014 = vmatprep.mubr.msk.f32.mxu0 %vm118_vm0, %v5610_v34  ;;  %5032 = vmatpush3.msra.mxu0 %v6047_v42 }
  0xe1   :  { %v6057_v52 = vpop.permute.xlu1 %2034  ;;  %v6059_v5 = vpop.permute.xlu0 %2245 }
  0xe2   :  { %7058 = vst [vmem:[#allocation31_spill] sm:$0xff] %v6057_v52  ;;  %5015 = vmatmul.mubr.msk.f32.gmra.mxu0 %vm118_vm0, %v5627_v37 }
  0xe3   :  { %5039 = vmatprep.mubr.msk.f32.mxu0 %vm118_vm0, %v5634_v38 }
  0xe5   :  { %v6065_v20 = vpop.permute.xlu1 %2348  ;;  %v6067_v33 = vpop.permute.xlu0 %2243 }
  0xe6   :  { %5033 = vmatprep.subr.mxu0 %v6065_v20 }
  0xe7   :  { %5034 = vmatpush3.msra.mxu0 %v6065_v20 }
  0xe9   :  { %v6071_v34 = vpop.permute.xlu1 %2346  ;;  %v6073_v44 = vpop.permute.xlu0 %2344 }
  0xea   :  { %5035 = vmatprep.subr.mxu0 %v6071_v34 }
  0xeb   :  { %5036 = vmatpush3.msra.mxu0 %v6071_v34 }
  0xec   :  { %5037 = vmatprep.subr.mxu0 %v6073_v44 }
  0xed   :  { %5038 = vmatpush3.msra.mxu0 %v6073_v44  ;;  %v6079_v37 = vpop.permute.xlu1 %2540  ;;  %v6081_v38 = vpop.permute.xlu0 %2538 }
  0xee   :  { %7059 = vst [vmem:[#allocation32_spill] sm:$0xff] %v6079_v37  ;;  %7060 = vst [vmem:[#allocation33_spill] sm:$0xff] %v6081_v38  ;;  %5040 = vmatmul.mubr.msk.f32.vlgmr.msra.gmra.mxu0 %vm118_vm0, %v5678_v46  ;;  %5059 = vmatprep.subr.mxu0 %v6079_v37 }
  0xef   :  { %5060 = vmatpush3.msra.mxu0 %v6079_v37  ;;  %5042 = vmatprep.mubr.msk.f32.mxu0 %vm118_vm0, %v5685_v47 }
  0xf0   :  { %5061 = vmatprep.subr.mxu0 %v6081_v38 }
  0xf1   :  { %5062 = vmatpush3.msra.mxu0 %v6081_v38  ;;  %v6091_v52 = vpop.permute.xlu1 %2536  ;;  %v6093_v43 = vpop.permute.xlu0 %2534 }
  0xf2   :  { %7061 = vst [vmem:[#allocation34_spill] sm:$0xff] %v6091_v52  ;;  %7062 = vst [vmem:[#allocation35_spill] sm:$0xff] %v6093_v43  ;;  %5043 = vmatmul.mubr.msk.f32.gmra.mxu0 %vm118_vm0, %v5702_v49  ;;  %5063 = vmatprep.subr.mxu0 %v6091_v52 }
  0xf3   :  { %5064 = vmatpush3.msra.mxu0 %v6091_v52  ;;  %5067 = vmatprep.mubr.msk.f32.mxu0 %vm118_vm0, %v5712_v51 }
  0xf4   :  { %5065 = vmatprep.subr.mxu0 %v6093_v43 }
  0xf5   :  { %5066 = vmatpush3.msra.mxu0 %v6093_v43  ;;  %v6111_v46 = vpop.permute.xlu1 %2908  ;;  %v6119_v47 = vpop.permute.xlu0 %2906 }
  0xf6   :  { %5068 = vmatmul.mubr.msk.f32.vlgmr.msra.gmra.mxu0 %vm118_vm0, %v5761_v7  ;;  %5087 = vmatprep.subr.mxu0 %v6035_v9  ;;  %7063 = vst [vmem:[#allocation36_spill] sm:$0xff] %v6111_v46  ;;  %7064 = vst [vmem:[#allocation37_spill] sm:$0xff] %v6119_v47 }
  0xf7   :  { %5088 = vmatpush3.msra.mxu0 %v6035_v9  ;;  %5070 = vmatprep.mubr.msk.f32.mxu0 %vm118_vm0, %v5767_v8 }
  0xf8   :  { %5089 = vmatprep.subr.mxu0 %v6037_v45 }
  0xf9   :  { %5090 = vmatpush3.msra.mxu0 %v6037_v45  ;;  %v6129_v49 = vpop.permute.xlu1 %2904  ;;  %v6133_v51 = vpop.permute.xlu0 %2902 }
  0xfa   :  { %5071 = vmatmul.mubr.msk.f32.gmra.mxu0 %vm118_vm0, %v5783_v11  ;;  %5091 = vmatprep.subr.mxu0 %v6059_v5  ;;  %7065 = vst [vmem:[#allocation38_spill] sm:$0xff] %v6129_v49  ;;  %7066 = vst [vmem:[#allocation39_spill] sm:$0xff] %v6133_v51 }
  0xfb   :  { %5092 = vmatpush3.msra.mxu0 %v6059_v5  ;;  %5095 = vmatprep.mubr.msk.f32.mxu0 %vm118_vm0, %v5789_v12 }
  0xfc   :  { %5093 = vmatprep.subr.mxu0 %v6067_v33 }
  0xfd   :  { %5094 = vmatpush3.msra.mxu0 %v6067_v33 }
  0xfe   :  { %5096 = vmatmul.mubr.msk.f32.vlgmr.msra.gmra.mxu0 %vm118_vm0, %v5805_v15  ;;  %5115 = vmatprep.subr.mxu0 %v6111_v46 }
  0xff   :  { %5116 = vmatpush3.msra.mxu0 %v6111_v46  ;;  %5098 = vmatprep.mubr.msk.f32.mxu0 %vm118_vm0, %v5811_v19 }
 0x100   :  { %5117 = vmatprep.subr.mxu0 %v6119_v47 }
 0x101   :  { %5118 = vmatpush3.msra.mxu0 %v6119_v47 }
 0x102   :  { %5099 = vmatmul.mubr.msk.f32.gmra.mxu0 %vm118_vm0, %v5827_v22  ;;  %5119 = vmatprep.subr.mxu0 %v6129_v49 }
 0x103   :  { %5120 = vmatpush3.msra.mxu0 %v6129_v49  ;;  %5123 = vmatprep.mubr.msk.f32.mxu0 %vm118_vm0, %v5833_v41 }
 0x104   :  { %5121 = vmatprep.subr.mxu0 %v6133_v51 }
 0x105   :  { %5122 = vmatpush3.msra.mxu0 %v6133_v51 }
 0x106   :  { %5124 = vmatmul.mubr.msk.f32.vlgmr.msra.gmra.mxu0 %vm118_vm0, %v5849_v48  ;;  %5143 = vmatprep.subr.mxu0 %v5525_v23 }
 0x107   :  { %5144 = vmatpush3.msra.mxu0 %v5525_v23  ;;  %5126 = vmatprep.mubr.msk.f32.mxu0 %vm118_vm0, %v5855_v50  ;;  %v3633_v23 = vpop.permute.xlu1 %3632 }
 0x108   :  { %5145 = vmatprep.subr.mxu0 %v5530_v24 }
 0x109   :  { %5146 = vmatpush3.msra.mxu0 %v5530_v24  ;;  %v3631_v24 = vpop.permute.xlu0 %3630 }
 0x10a   :  { %5127 = vmatmul.mubr.msk.f32.gmra.mxu0 %vm118_vm0, %v5871_v56  ;;  %5147 = vmatprep.subr.mxu0 %v5539_v25 }
 0x10b   :  { %5148 = vmatpush3.msra.mxu0 %v5539_v25  ;;  %5151 = vmatprep.mubr.msk.f32.mxu0 %vm118_vm0, %v5877_v57  ;;  %v3629_v25 = vpop.permute.xlu1 %3628 }
 0x10c   :  { %5149 = vmatprep.subr.mxu0 %v5547_v26 }
 0x10d   :  { %5150 = vmatpush3.msra.mxu0 %v5547_v26  ;;  %v3627_v26 = vpop.permute.xlu0 %3626 }
 0x10e   :  { %5152 = vmatmul.mubr.msk.f32.vlgmr.msra.gmra.mxu0 %vm118_vm0, %v5893_v61  ;;  %5171 = vmatprep.subr.mxu0 %v5982_v32 }
 0x10f   :  { %5154 = vmatprep.mubr.msk.f32.mxu0 %vm118_vm0, %v5899_v3  ;;  %5172 = vmatpush3.msra.mxu0 %v5982_v32 }
 0x110   :  { %5173 = vmatprep.subr.mxu0 %v5984_v63 }
 0x111   :  { %5174 = vmatpush3.msra.mxu0 %v5984_v63 }
 0x112   :  { %5155 = vmatmul.mubr.msk.f32.gmra.mxu0 %vm118_vm0, %v5911_v1  ;;  %5175 = vmatprep.subr.mxu0 %v6000_v53 }
 0x113   :  { %5176 = vmatpush3.msra.mxu0 %v6000_v53  ;;  %5179 = vmatprep.mubr.msk.f32.mxu0 %vm118_vm0, %v5917_v4 }
 0x114   :  { %5177 = vmatprep.subr.mxu0 %v6020_v21 }
 0x115   :  { %5178 = vmatpush3.msra.mxu0 %v6020_v21 }
 0x116   :  { %5199 = vmatprep.subr.mxu0 %v6047_v42  ;;  %5180 = vmatmul.mubr.msk.f32.vlgmr.msra.gmra.mxu0 %vm118_vm0, %v5929_v40 }
 0x117   :  { %5200 = vmatpush3.msra.mxu0 %v6047_v42  ;;  %5182 = vmatprep.mubr.msk.f32.mxu0 %vm118_vm0, %v5935_v36 }
 0x118   :  { %5201 = vmatprep.subr.mxu0 %v6065_v20 }
 0x119   :  { %5202 = vmatpush3.msra.mxu0 %v6065_v20 }
 0x11a   :  { %5203 = vmatprep.subr.mxu0 %v6071_v34  ;;  %5183 = vmatmul.mubr.msk.f32.gmra.mxu0 %vm118_vm0, %v5951_v6 }
 0x11b   :  { %5204 = vmatpush3.msra.mxu0 %v6071_v34  ;;  %5207 = vmatprep.mubr.msk.f32.mxu0 %vm118_vm0, %v5957_v31 }
 0x11c   :  { %5205 = vmatprep.subr.mxu0 %v6073_v44 }
 0x11d   :  { %5206 = vmatpush3.msra.mxu0 %v6073_v44 }
 0x11e   :  { %5208 = vmatmul.mubr.msk.f32.vlgmr.msra.gmra.mxu0 %vm118_vm0, %v5973_v0  ;;  %5227 = vmatprep.subr.mxu0 %v3633_v23 }
 0x11f   :  { %5228 = vmatpush3.msra.mxu0 %v3633_v23  ;;  %5210 = vmatprep.mubr.msk.f32.mxu0 %vm118_vm0, %v5979_v2 }
 0x120   :  { %5229 = vmatprep.subr.mxu0 %v3631_v24 }
 0x121   :  { %5230 = vmatpush3.msra.mxu0 %v3631_v24 }
 0x122   :  { %5211 = vmatmul.mubr.msk.f32.gmra.mxu0 %vm118_vm0, %v5993_v60  ;;  %5231 = vmatprep.subr.mxu0 %v3629_v25 }
 0x123   :  { %5232 = vmatpush3.msra.mxu0 %v3629_v25  ;;  %5235 = vmatprep.mubr.msk.f32.mxu0 %vm118_vm0, %v5998_v62 }
 0x124   :  { %5233 = vmatprep.subr.mxu0 %v3627_v26 }
 0x125   :  { %5234 = vmatpush3.msra.mxu0 %v3627_v26 }
 0x126   :  { %5236 = vmatmul.mubr.msk.f32.vlgmr.msra.gmra.mxu0 %vm118_vm0, %v6011_v14  ;;  %v6219_v14 = vld [vmem:[%s6942_s3 + $0x20] sm:$0xff] }
 0x127   :  { %5238 = vmatprep.mubr.msk.f32.mxu0 %vm118_vm0, %v6016_v13  ;;  %v7071_v13 = vld [vmem:[#allocation20_spill] sm:$0xff] }
 0x12a   :  { %5239 = vmatmul.mubr.msk.f32.gmra.mxu0 %vm118_vm0, %v6031_v10 }
 0x13f   :  { %v4761_v31 = vpop.f32.mrf.mxu0 }
 0x140   :  { %v217_v19 = vadd.f32 %v4761_v31, %v5734_v58 }
 0x141   :  { %v197_v36 = vpop.f32.mrf.mxu0 }
 0x142   :  { %v216_v60 = vadd.f32 %v197_v36, %v5736_v59 }
 0x143   :  { %v4764_v40 = vpop.f32.mrf.mxu0 }
 0x144   :  { %v219_v62 = vadd.f32 %v4764_v40, %v5726_v55 }
 0x145   :  { %v207_v7 = vpop.f32.mrf.mxu0 }
 0x146   :  { %v218_v22 = vadd.f32 %v207_v7, %v5724_v54 }
 0x147   :  { %v4775_v2 = vpop.f32.mrf.mxu1 }
 0x148   :  { %v335_v0 = vadd.f32 %v4775_v2, %v217_v19  ;;  %v7072_v19 = vld [vmem:[#allocation16_spill] sm:$0xff] }
 0x149   :  { %v315_v6 = vpop.f32.mrf.mxu1 }
 0x14a   :  { %v334_v3 = vadd.f32 %v315_v6, %v216_v60 }
 0x14b   :  { %v4778_v8 = vpop.f32.mrf.mxu1 }
 0x14c   :  { %v337_v41 = vadd.f32 %v4778_v8, %v219_v62 }
 0x14d   :  { %v4789_v11 = vpop.f32.mrf.mxu0  ;;  %v325_v12 = vpop.f32.mrf.mxu1 }
 0x14e   :  { %v336_v50 = vadd.f32 %v325_v12, %v218_v22  ;;  %v453_v1 = vadd.f32 %v4789_v11, %v335_v0 }
 0x14f   :  { %v433_v15 = vpop.f32.mrf.mxu0 }
 0x150   :  { %v452_v4 = vadd.f32 %v433_v15, %v334_v3  ;;  %v7075_v3 = vld [vmem:[#allocation19_spill] sm:$0xff] }
 0x151   :  { %v4792_v48 = vpop.f32.mrf.mxu0 }
 0x152   :  { %v455_v56 = vadd.f32 %v4792_v48, %v337_v41  ;;  %v7073_v48 = vld [vmem:[#allocation18_spill] sm:$0xff] }
 0x153   :  { %v443_v57 = vpop.f32.mrf.mxu0 }
 0x154   :  { %v454_v61 = vadd.f32 %v443_v57, %v336_v50  ;;  %4793 = vmatprep.subr.mxu1 %v455_v56 }
 0x155   :  { %4794 = vmatpush3.msra.mxu1 %v455_v56  ;;  %v7074_v56 = vld [vmem:[#allocation17_spill] sm:$0xff] }
 0x156   :  { %4795 = vmatprep.subr.mxu1 %v454_v61 }
 0x157   :  { %4796 = vmatpush3.msra.mxu1 %v454_v61 }
 0x158   :  { %4797 = vmatprep.subr.mxu1 %v453_v1 }
 0x159   :  { %4798 = vmatpush3.msra.mxu1 %v453_v1 }
 0x15a   :  { %4799 = vmatprep.subr.mxu1 %v452_v4 }
 0x15b   :  { %4800 = vmatpush3.msra.mxu1 %v452_v4 }
 0x15c   :  { %4802 = vmatmul.mubr.msk.f32.vlgmr.msra.gmra.mxu1 %vm118_vm0, %v5486_v16  ;;  %4821 = vmatprep.subr.mxu1 %v5574_v27  ;;  %v6231_v16 = vld [vmem:[%s6942_s3 + $0x28] sm:$0xff] }
 0x15d   :  { %4822 = vmatpush3.msra.mxu1 %v5574_v27  ;;  %4804 = vmatprep.mubr.msk.f32.mxu1 %vm118_vm0, %v5493_v17  ;;  %v6237_v17 = vld [vmem:[%s6942_s3 + $0x30] sm:$0xff]  ;;  %v6255_v27 = vld [vmem:[%s6942_s3 + $0x60] sm:$0xff] }
 0x15e   :  { %4823 = vmatprep.subr.mxu1 %v5584_v29 }
 0x15f   :  { %4824 = vmatpush3.msra.mxu1 %v5584_v29  ;;  %v6267_v29 = vld [vmem:[%s6942_s3 + $0x68] sm:$0xff] }
 0x160   :  { %4805 = vmatmul.mubr.msk.f32.gmra.mxu1 %vm118_vm0, %v5498_v18  ;;  %4825 = vmatprep.subr.mxu1 %v5576_v28  ;;  %v6249_v18 = vld [vmem:[%s6942_s3 + $0x38] sm:$0xff] }
 0x161   :  { %4826 = vmatpush3.msra.mxu1 %v5576_v28  ;;  %4829 = vmatprep.mubr.msk.f32.mxu1 %vm118_vm0, %v6219_v14  ;;  %v7067_v28 = vld [vmem:[#allocation6_spill] sm:$0xff] }
 0x162   :  { %4827 = vmatprep.subr.mxu1 %v5586_v30 }
 0x163   :  { %4828 = vmatpush3.msra.mxu1 %v5586_v30  ;;  %v7068_v30 = vld [vmem:[#allocation7_spill] sm:$0xff] }
 0x164   :  { %4830 = vmatmul.mubr.msk.f32.vlgmr.msra.gmra.mxu1 %vm118_vm0, %v6231_v16  ;;  %4849 = vmatprep.subr.mxu1 %v5617_v35 }
 0x165   :  { %4850 = vmatpush3.msra.mxu1 %v5617_v35  ;;  %4832 = vmatprep.mubr.msk.f32.mxu1 %vm118_vm0, %v6237_v17  ;;  %v6273_v35 = vld [vmem:[%s6942_s3 + $0x70] sm:$0xff] }
 0x166   :  { %4851 = vmatprep.subr.mxu1 %v5642_v39  ;;  %7069 = vst [vmem:[#allocation6_spill] sm:$0xff] %v6273_v35  ;;  %v4817_v10 = vpop.f32.mrf.mxu0 }
 0x167   :  { %4852 = vmatpush3.msra.mxu1 %v5642_v39  ;;  %v6283_v39 = vld [vmem:[%s6942_s3 + $0x78] sm:$0xff]  ;;  %v703_v50 = vadd.f32 %v4817_v10, %v7073_v48 }
 0x168   :  { %4833 = vmatmul.mubr.msk.f32.gmra.mxu1 %vm118_vm0, %v6249_v18  ;;  %4853 = vmatprep.subr.mxu1 %v7067_v28  ;;  %7070 = vst [vmem:[#allocation7_spill] sm:$0xff] %v6283_v39  ;;  %v683_v23 = vpop.f32.mrf.mxu0 }
 0x169   :  { %4854 = vmatpush3.msra.mxu1 %v7067_v28  ;;  %4857 = vmatprep.mubr.msk.f32.mxu1 %vm118_vm0, %v6255_v27  ;;  %v702_v1 = vadd.f32 %v683_v23, %v7075_v3 }
 0x16a   :  { %4855 = vmatprep.subr.mxu1 %v7068_v30  ;;  %v4820_v24 = vpop.f32.mrf.mxu0 }
 0x16b   :  { %4856 = vmatpush3.msra.mxu1 %v7068_v30  ;;  %v705_v22 = vadd.f32 %v4820_v24, %v7072_v19 }
 0x16c   :  { %4858 = vmatmul.mubr.msk.f32.vlgmr.msra.gmra.mxu1 %vm118_vm0, %v6267_v29  ;;  %v693_v25 = vpop.f32.mrf.mxu0 }
 0x16d   :  { %4860 = vmatprep.mubr.msk.f32.mxu1 %vm118_vm0, %v6273_v35  ;;  %v704_v57 = vadd.f32 %v693_v25, %v7074_v56 }
 0x16e   :  { %v4845_v26 = vpop.f32.mrf.mxu0 }
 0x170   :  { %4861 = vmatmul.mubr.msk.f32.gmra.mxu1 %vm118_vm0, %v6283_v39  ;;  %v895_v31 = vpop.f32.mrf.mxu0 }
 0x171   :  { %4885 = vmatprep.mubr.msk.f32.mxu1 %vm118_vm0, %v7071_v13 }
 0x172   :  { %v4848_v2 = vpop.f32.mrf.mxu0 }
 0x174   :  { %v905_v8 = vpop.f32.mrf.mxu0 }
 0x176   :  { %v4873_v12 = vpop.f32.mrf.mxu0 }
 0x178   :  { %v1119_v0 = vpop.f32.mrf.mxu0 }
 0x17a   :  { %v4876_v47 = vpop.f32.mrf.mxu0 }
 0x21c   :  { %v6289_v36 = vpop.f32.mrf.mxu1 }
 0x21e   :  { %v6291_v40 = vpop.f32.mrf.mxu1 }
 0x220   :  { %v6293_v6 = vpop.f32.mrf.mxu1 }
 0x222   :  { %v6295_v7 = vpop.f32.mrf.mxu1 }
 0x224   :  { %v4831_v62 = vpop.f32.mrf.mxu1 }
 0x225   :  { %v809_v4 = vadd.f32 %v4831_v62, %v703_v50  ;;  %v7092_v50 = vld [vmem:[#allocation5_spill] sm:$0xff] }
 0x226   :  { %v789_v11 = vpop.f32.mrf.mxu1 }
 0x227   :  { %v808_v51 = vadd.f32 %v789_v11, %v702_v1  ;;  %v915_v43 = vadd.f32 %v4845_v26, %v809_v4  ;;  %v7084_v26 = vld [vmem:[#allocation11_spill] sm:$0xff]  ;;  %v7098_v1 = vld [vmem:[#allocation14_spill] sm:$0xff] }
 0x228   :  { %v4834_v15 = vpop.f32.mrf.mxu1  ;;  %v7088_v11 = vld [vmem:[#allocation3_spill] sm:$0xff] }
 0x229   :  { %v811_v60 = vadd.f32 %v4834_v15, %v705_v22  ;;  %v914_v10 = vadd.f32 %v895_v31, %v808_v51  ;;  %v1129_v15 = vpop.f32.mrf.mxu0  ;;  %v6323_v51 = vld [vmem:[%s6944_s5 + $0x28] sm:$0xff]  ;;  %v6329_v31 = vld [vmem:[%s6944_s5 + $0x30] sm:$0xff] }
 0x22a   :  { %v799_v41 = vpop.f32.mrf.mxu1  ;;  %v6395_v4 = vld [vmem:[%s6944_s5 + $0xa8] sm:$0xff] }
 0x22b   :  { %v810_v28 = vadd.f32 %v799_v41, %v704_v57  ;;  %v917_v49 = vadd.f32 %v4848_v2, %v811_v60  ;;  %v7086_v2 = vld [vmem:[#allocation2_spill] sm:$0xff]  ;;  %v7090_v41 = vld [vmem:[#allocation4_spill] sm:$0xff]  ;;  %v6377_v60 = vld [vmem:[%s6944_s5 + $0x78] sm:$0xff]  ;;  %7099 = vst [vmem:[#allocation14_spill] sm:$0xff] %v6395_v4 }
 0x22c   :  { %v4859_v61 = vpop.f32.mrf.mxu1  ;;  %v7094_v57 = vld [vmem:[#allocation12_spill] sm:$0xff] }
 0x22d   :  { %v916_v24 = vadd.f32 %v905_v8, %v810_v28  ;;  %v1021_v37 = vadd.f32 %v4859_v61, %v915_v43  ;;  %v7077_v43 = vld [vmem:[#allocation8_spill] sm:$0xff]  ;;  %v6341_v8 = vld [vmem:[%s6944_s5 + $0x38] sm:$0xff]  ;;  %7095 = vst [vmem:[#allocation12_spill] sm:$0xff] %v6377_v60  ;;  %v6383_v61 = vld [vmem:[%s6944_s5 + $0xa0] sm:$0xff] }
 0x22e   :  { %v1001_v30 = vpop.f32.mrf.mxu1  ;;  %7087 = vst [vmem:[#allocation11_spill] sm:$0xff] %v6341_v8  ;;  %v7100_v28 = vld [vmem:[#allocation15_spill] sm:$0xff] }
 0x22f   :  { %v1020_v22 = vadd.f32 %v1001_v30, %v914_v10  ;;  %v1139_v23 = vadd.f32 %v4873_v12, %v1021_v37  ;;  %v6311_v37 = vld [vmem:[%s6944_s5 + $0x20] sm:$0xff]  ;;  %v6401_v30 = vld [vmem:[%s6944_s5 + $0xb0] sm:$0xff] }
 0x230   :  { %v4862_v46 = vpop.f32.mrf.mxu1  ;;  %7080 = vst [vmem:[#allocation8_spill] sm:$0xff] %v6311_v37  ;;  %v6347_v12 = vld [vmem:[%s6944_s5 + $0x60] sm:$0xff]  ;;  %7101 = vst [vmem:[#allocation15_spill] sm:$0xff] %v6401_v30  ;;  %v7103_v10 = vld [vmem:[#allocation28_spill] sm:$0xff] }
 0x231   :  { %v1023_v52 = vadd.f32 %v4862_v46, %v917_v49  ;;  %v1138_v62 = vadd.f32 %v1119_v0, %v1020_v22  ;;  %v7076_v46 = vld [vmem:[#allocation21_spill] sm:$0xff]  ;;  %v7082_v49 = vld [vmem:[#allocation10_spill] sm:$0xff]  ;;  %7089 = vst [vmem:[#allocation40_spill] sm:$0xff] %v6347_v12 }
 0x232   :  { %v1011_v38 = vpop.f32.mrf.mxu1  ;;  %7085 = vst [vmem:[#allocation10_spill] sm:$0xff] %v6329_v31  ;;  %v7096_v0 = vld [vmem:[#allocation13_spill] sm:$0xff] }
 0x233   :  { %v1141_v48 = vadd.f32 %v4876_v47, %v1023_v52  ;;  %v1022_v25 = vadd.f32 %v1011_v38, %v916_v24  ;;  %v7078_v52 = vld [vmem:[#allocation22_spill] sm:$0xff]  ;;  %v7079_v38 = vld [vmem:[#allocation9_spill] sm:$0xff]  ;;  %v7081_v47 = vld [vmem:[#allocation23_spill] sm:$0xff]  ;;  %7097 = vst [vmem:[#allocation13_spill] sm:$0xff] %v6383_v61 }
 0x234   :  { %7083 = vst [vmem:[#allocation9_spill] sm:$0xff] %v6323_v51  ;;  %v6411_v24 = vld [vmem:[%s6944_s5 + $0xb8] sm:$0xff] }
 0x235   :  { %v1140_v56 = vadd.f32 %v1129_v15, %v1022_v25  ;;  %4877 = vmatprep.subr.mxu1 %v1141_v48  ;;  %7102 = vst [vmem:[#allocation43_spill] sm:$0xff] %v6411_v24  ;;  %v4901_v25 = vpop.f32.mrf.mxu0 }
 0x236   :  { %4878 = vmatpush3.msra.mxu1 %v1141_v48  ;;  %v6359_v48 = vld [vmem:[%s6944_s5 + $0x68] sm:$0xff] }
 0x237   :  { %4879 = vmatprep.subr.mxu1 %v1140_v56  ;;  %7091 = vst [vmem:[#allocation41_spill] sm:$0xff] %v6359_v48  ;;  %v1357_v15 = vpop.f32.mrf.mxu0 }
 0x238   :  { %4880 = vmatpush3.msra.mxu1 %v1140_v56  ;;  %v6365_v56 = vld [vmem:[%s6944_s5 + $0x70] sm:$0xff] }
 0x239   :  { %4881 = vmatprep.subr.mxu1 %v1139_v23  ;;  %7093 = vst [vmem:[#allocation42_spill] sm:$0xff] %v6365_v56  ;;  %v4904_v22 = vpop.f32.mrf.mxu0 }
 0x23a   :  { %4882 = vmatpush3.msra.mxu1 %v1139_v23 }
 0x23b   :  { %4883 = vmatprep.subr.mxu1 %v1138_v62  ;;  %v1367_v23 = vpop.f32.mrf.mxu0 }
 0x23c   :  { %4884 = vmatpush3.msra.mxu1 %v1138_v62 }
 0x23d   :  { %4886 = vmatmul.mubr.msk.f32.vlgmr.msra.gmra.mxu1 %vm118_vm0, %v7076_v46  ;;  %4905 = vmatprep.subr.mxu1 %v7077_v43  ;;  %v4929_v62 = vpop.f32.mrf.mxu0 }
 0x23e   :  { %4906 = vmatpush3.msra.mxu1 %v7077_v43  ;;  %4888 = vmatprep.mubr.msk.f32.mxu1 %vm118_vm0, %v7078_v52 }
 0x23f   :  { %4907 = vmatprep.subr.mxu1 %v7079_v38  ;;  %v1569_v43 = vpop.f32.mrf.mxu0 }
 0x240   :  { %4908 = vmatpush3.msra.mxu1 %v7079_v38  ;;  %v6417_v38 = vpop.permute.xlu0 %53 }
 0x241   :  { %4889 = vmatmul.mubr.msk.f32.gmra.mxu1 %vm118_vm0, %v7081_v47  ;;  %4909 = vmatprep.subr.mxu1 %v7082_v49  ;;  %7104 = vst [vmem:[#allocation44_spill] sm:$0xff] %v6417_v38 }
 0x242   :  { %4910 = vmatpush3.msra.mxu1 %v7082_v49  ;;  %4913 = vmatprep.mubr.msk.f32.mxu1 %vm118_vm0, %v6311_v37  ;;  %v4932_v49 = vpop.f32.mrf.mxu0 }
 0x243   :  { %4911 = vmatprep.subr.mxu1 %v7084_v26 }
 0x244   :  { %4912 = vmatpush3.msra.mxu1 %v7084_v26  ;;  %v6419_v26 = vpop.permute.xlu1 %48 }
 0x245   :  { %4914 = vmatmul.mubr.msk.f32.vlgmr.msra.gmra.mxu1 %vm118_vm0, %v6323_v51  ;;  %4933 = vmatprep.subr.mxu1 %v7086_v2  ;;  %7105 = vst [vmem:[#allocation45_spill] sm:$0xff] %v6419_v26 }
 0x246   :  { %4934 = vmatpush3.msra.mxu1 %v7086_v2  ;;  %4916 = vmatprep.mubr.msk.f32.mxu1 %vm118_vm0, %v6329_v31  ;;  %v6427_v2 = vpop.permute.xlu0 %63  ;;  %v7110_v31 = vld [vmem:[#allocation25_spill] sm:$0xff] }
 0x247   :  { %4935 = vmatprep.subr.mxu1 %v7088_v11  ;;  %7106 = vst [vmem:[#allocation46_spill] sm:$0xff] %v6427_v2  ;;  %v1378_v51 = vadd.f32 %v1367_v23, %v7110_v31 }
 0x248   :  { %4936 = vmatpush3.msra.mxu1 %v7088_v11 }
 0x249   :  { %4917 = vmatmul.mubr.msk.f32.gmra.mxu1 %vm118_vm0, %v6341_v8  ;;  %4937 = vmatprep.subr.mxu1 %v7090_v41 }
 0x24a   :  { %4938 = vmatpush3.msra.mxu1 %v7090_v41  ;;  %4941 = vmatprep.mubr.msk.f32.mxu1 %vm118_vm0, %v6347_v12  ;;  %v6429_v41 = vpop.permute.xlu1 %58  ;;  %v7108_v12 = vld [vmem:[#allocation24_spill] sm:$0xff] }
 0x24b   :  { %4939 = vmatprep.subr.mxu1 %v7092_v50  ;;  %7107 = vst [vmem:[#allocation47_spill] sm:$0xff] %v6429_v41 }
 0x24c   :  { %4940 = vmatpush3.msra.mxu1 %v7092_v50 }
 0x24d   :  { %4942 = vmatmul.mubr.msk.f32.vlgmr.msra.gmra.mxu1 %vm118_vm0, %v6359_v48  ;;  %4961 = vmatprep.subr.mxu1 %v7094_v57 }
 0x24e   :  { %4962 = vmatpush3.msra.mxu1 %v7094_v57  ;;  %4944 = vmatprep.mubr.msk.f32.mxu1 %vm118_vm0, %v6365_v56  ;;  %v558_v57 = vadd.f32 %v6289_v36, %v6417_v38  ;;  %v559_v36 = vadd.f32 %v6295_v7, %v6429_v41 }
 0x24f   :  { %4963 = vmatprep.subr.mxu1 %v7096_v0 }
 0x250   :  { %4964 = vmatpush3.msra.mxu1 %v7096_v0  ;;  %v1579_v0 = vpop.f32.mrf.mxu0 }
 0x251   :  { %4945 = vmatmul.mubr.msk.f32.gmra.mxu1 %vm118_vm0, %v6377_v60  ;;  %4965 = vmatprep.subr.mxu1 %v7098_v1 }
 0x252   :  { %4966 = vmatpush3.msra.mxu1 %v7098_v1  ;;  %4969 = vmatprep.mubr.msk.f32.mxu1 %vm118_vm0, %v6383_v61 }
 0x253   :  { %4967 = vmatprep.subr.mxu1 %v7100_v28 }
 0x254   :  { %4968 = vmatpush3.msra.mxu1 %v7100_v28  ;;  %v557_v28 = vadd.f32 %v6291_v40, %v6419_v26 }
 0x255   :  { %4970 = vmatmul.mubr.msk.f32.vlgmr.msra.gmra.mxu1 %vm118_vm0, %v6395_v4 }
 0x256   :  { %4972 = vmatprep.mubr.msk.f32.mxu1 %vm118_vm0, %v6401_v30  ;;  %v4957_v30 = vpop.f32.mrf.mxu0 }
 0x259   :  { %4973 = vmatmul.mubr.msk.f32.gmra.mxu1 %vm118_vm0, %v6411_v24 }
 0x25a   :  { %4997 = vmatprep.mubr.msk.f32.mxu1 %vm118_vm0, %v7103_v10  ;;  %v560_v10 = vadd.f32 %v6293_v6, %v6427_v2  ;;  %v1379_v6 = vadd.f32 %v4904_v22, %v7108_v12  ;;  %v7109_v2 = vld [vmem:[#allocation26_spill] sm:$0xff] }
 0x25b   :  { %v1377_v8 = vadd.f32 %v4901_v25, %v7109_v2 }
 0x2fd   :  { %v4887_v1 = vpop.f32.mrf.mxu1 }
 0x2fe   :  { %v6425_v11 = vadd.f32 %v4887_v1, %v558_v57  ;;  %v1781_v1 = vpop.f32.mrf.mxu0 }
 0x2ff   :  { %v1224_v50 = vpop.f32.mrf.mxu1 }
 0x300   :  { %v6433_v24 = vadd.f32 %v1224_v50, %v557_v28  ;;  %v4960_v60 = vpop.f32.mrf.mxu0 }
 0x301   :  { %v4890_v4 = vpop.f32.mrf.mxu1 }
 0x302   :  { %v6437_v38 = vadd.f32 %v4890_v4, %v560_v10  ;;  %v1791_v50 = vpop.f32.mrf.mxu0  ;;  %v7111_v10 = vld [vmem:[#allocation27_spill] sm:$0xff] }
 0x303   :  { %v1234_v40 = vpop.f32.mrf.mxu1  ;;  %v1376_v41 = vadd.f32 %v1357_v15, %v7111_v10 }
 0x304   :  { %v6439_v57 = vadd.f32 %v1234_v40, %v559_v36  ;;  %v4985_v37 = vpop.f32.mrf.mxu0 }
 0x305   :  { %v4915_v26 = vpop.f32.mrf.mxu1 }
 0x306   :  { %v1483_v36 = vadd.f32 %v4915_v26, %v1377_v8  ;;  %v2005_v12 = vpop.f32.mrf.mxu0 }
 0x307   :  { %v1463_v61 = vpop.f32.mrf.mxu1 }
 0x308   :  { %v1482_v52 = vadd.f32 %v1463_v61, %v1376_v41  ;;  %v1589_v19 = vadd.f32 %v4929_v62, %v1483_v36  ;;  %v4988_v31 = vpop.f32.mrf.mxu0 }
 0x309   :  { %v4918_v56 = vpop.f32.mrf.mxu1 }
 0x30a   :  { %v1485_v7 = vadd.f32 %v4918_v56, %v1379_v6  ;;  %v1588_v25 = vadd.f32 %v1569_v43, %v1482_v52  ;;  %v5306_v52 = vld [vmem:[%s6936_s1 + $0x20] sm:$0xff] }
 0x30b   :  { %v1473_v48 = vpop.f32.mrf.mxu1 }
 0x30c   :  { %v1484_v40 = vadd.f32 %v1473_v48, %v1378_v51  ;;  %v1591_v46 = vadd.f32 %v4932_v49, %v1485_v7 }
 0x30d   :  { %v4943_v28 = vpop.f32.mrf.mxu1 }
 0x30e   :  { %v1590_v22 = vadd.f32 %v1579_v0, %v1484_v40  ;;  %v1695_v35 = vadd.f32 %v4943_v28, %v1589_v19 }
 0x30f   :  { %v1675_v4 = vpop.f32.mrf.mxu1 }
 0x310   :  { %v1694_v56 = vadd.f32 %v1675_v4, %v1588_v25  ;;  %v1801_v8 = vadd.f32 %v4957_v30, %v1695_v35  ;;  %v7112_v35 = vld [vmem:[#allocation29_spill] sm:$0xff] }
 0x311   :  { %v4946_v47 = vpop.f32.mrf.mxu1 }
 0x312   :  { %v1697_v13 = vadd.f32 %v4946_v47, %v1591_v46  ;;  %v1800_v61 = vadd.f32 %v1781_v1, %v1694_v56  ;;  %v2015_v46 = vpop.f32.mrf.mxu0 }
 0x313   :  { %v1685_v3 = vpop.f32.mrf.mxu1 }
 0x314   :  { %v1696_v2 = vadd.f32 %v1685_v3, %v1590_v22  ;;  %v1803_v6 = vadd.f32 %v4960_v60, %v1697_v13  ;;  %v7114_v13 = vld [vmem:[#allocation31_spill] sm:$0xff]  ;;  %v5013_v60 = vpop.f32.mrf.mxu0 }
 0x315   :  { %v4971_v39 = vpop.f32.mrf.mxu1 }
 0x316   :  { %v1802_v48 = vadd.f32 %v1791_v50, %v1696_v2  ;;  %v1907_v41 = vadd.f32 %v4971_v39, %v1801_v8  ;;  %v7113_v39 = vld [vmem:[#allocation30_spill] sm:$0xff]  ;;  %v5309_v2 = vld [vmem:[%s6936_s1 + $0x38] sm:$0xff]  ;;  %v2220_v30 = vpop.f32.mrf.mxu0 }
 0x317   :  { %v1887_v23 = vpop.f32.mrf.mxu1 }
 0x318   :  { %v1906_v47 = vadd.f32 %v1887_v23, %v1800_v61  ;;  %v2025_v19 = vadd.f32 %v4985_v37, %v1907_v41  ;;  %v5307_v37 = vld [vmem:[%s6936_s1 + $0x28] sm:$0xff]  ;;  %v5016_v43 = vpop.f32.mrf.mxu0  ;;  %v2240_v41 = vadd.f32 %v5013_v60, %v5734_v58  ;;  %v5312_v58 = vld [vmem:[%s6939_s7 + $0x10] sm:$0xff] }
 0x319   :  { %v4974_v15 = vpop.f32.mrf.mxu1 }
 0x31a   :  { %v1909_v51 = vadd.f32 %v4974_v15, %v1803_v6  ;;  %v2024_v3 = vadd.f32 %v2005_v12, %v1906_v47  ;;  %v5310_v12 = vld [vmem:[%s6939_s7] sm:$0xff]  ;;  %v2230_v28 = vpop.f32.mrf.mxu0 }
 0x31b   :  { %v1897_v26 = vpop.f32.mrf.mxu1 }
 0x31c   :  { %v2027_v49 = vadd.f32 %v4988_v31, %v1909_v51  ;;  %v1908_v62 = vadd.f32 %v1897_v26, %v1802_v48  ;;  %v5308_v31 = vld [vmem:[%s6936_s1 + $0x30] sm:$0xff]  ;;  %v5041_v40 = vpop.f32.mrf.mxu0 }
 0x31e   :  { %v2026_v0 = vadd.f32 %v2015_v46, %v1908_v62  ;;  %4989 = vmatprep.subr.mxu1 %v2027_v49  ;;  %v2422_v6 = vpop.f32.mrf.mxu0  ;;  %v2239_v62 = vadd.f32 %v2220_v30, %v5736_v59  ;;  %v5313_v59 = vld [vmem:[%s6939_s7 + $0x18] sm:$0xff] }
 0x31f   :  { %4990 = vmatpush3.msra.mxu1 %v2027_v49 }
 0x320   :  { %4991 = vmatprep.subr.mxu1 %v2026_v0  ;;  %v5044_v48 = vpop.f32.mrf.mxu0 }
 0x321   :  { %4992 = vmatpush3.msra.mxu1 %v2026_v0 }
 0x322   :  { %4993 = vmatprep.subr.mxu1 %v2025_v19 }
 0x323   :  { %4994 = vmatpush3.msra.mxu1 %v2025_v19  ;;  %v2432_v19 = vpop.f32.mrf.mxu0 }
 0x324   :  { %4995 = vmatprep.subr.mxu1 %v2024_v3 }
 0x325   :  { %4996 = vmatpush3.msra.mxu1 %v2024_v3 }
 0x326   :  { %4998 = vmatmul.mubr.msk.f32.vlgmr.msra.gmra.mxu1 %vm118_vm0, %v7112_v35  ;;  %5017 = vmatprep.subr.mxu1 %v6035_v9 }
 0x327   :  { %5000 = vmatprep.mubr.msk.f32.mxu1 %vm118_vm0, %v7113_v39  ;;  %5018 = vmatpush3.msra.mxu1 %v6035_v9 }
 0x328   :  { %5019 = vmatprep.subr.mxu1 %v6037_v45 }
 0x329   :  { %5020 = vmatpush3.msra.mxu1 %v6037_v45 }
 0x32a   :  { %5001 = vmatmul.mubr.msk.f32.gmra.mxu1 %vm118_vm0, %v7114_v13  ;;  %5021 = vmatprep.subr.mxu1 %v6059_v5 }
 0x32b   :  { %5022 = vmatpush3.msra.mxu1 %v6059_v5  ;;  %5025 = vmatprep.mubr.msk.f32.mxu1 %vm118_vm0, %v5306_v52 }
 0x32c   :  { %5023 = vmatprep.subr.mxu1 %v6067_v33 }
 0x32d   :  { %5024 = vmatpush3.msra.mxu1 %v6067_v33 }
 0x32e   :  { %5026 = vmatmul.mubr.msk.f32.vlgmr.msra.gmra.mxu1 %vm118_vm0, %v5307_v37 }
 0x32f   :  { %5028 = vmatprep.mubr.msk.f32.mxu1 %vm118_vm0, %v5308_v31 }
 0x332   :  { %5029 = vmatmul.mubr.msk.f32.gmra.mxu1 %vm118_vm0, %v5309_v2 }
 0x333   :  { %5053 = vmatprep.mubr.msk.f32.mxu1 %vm118_vm0, %v5310_v12 }
 0x3e6   :  { %v4999_v1 = vpop.f32.mrf.mxu1 }
 0x3e7   :  { %v6480_v50 = vadd.f32 %v4999_v1, %v6425_v11 }
 0x3e8   :  { %v2110_v7 = vpop.f32.mrf.mxu1 }
 0x3e9   :  { %v6483_v4 = vadd.f32 %v2110_v7, %v6433_v24  ;;  %v3820_v36 = vsel %vm3816_vm1, %v6480_v50, 0.0  ;;  %v7119_v7 = vld [vmem:[#allocation18_spill] sm:$0xff] }
 0x3ea   :  { %3821 = vadd.xlane.f32.xlu0 %v3820_v36  ;;  %v5002_v22 = vpop.f32.mrf.mxu1 }
 0x3eb   :  { %v6488_v25 = vadd.f32 %v5002_v22, %v6437_v38  ;;  %v3817_v23 = vsel %vm3816_vm1, %v6483_v4, 0.0  ;;  %v2242_v38 = vadd.f32 %v5016_v43, %v5726_v55  ;;  %v7118_v43 = vld [vmem:[#allocation16_spill] sm:$0xff] }
 0x3ec   :  { %v2120_v56 = vpop.f32.mrf.mxu1  ;;  %3818 = vadd.xlane.f32.xlu1 %v3817_v23 }
 0x3ed   :  { %v6493_v11 = vadd.f32 %v2120_v56, %v6439_v57  ;;  %v3826_v15 = vsel %vm3816_vm1, %v6488_v25, 0.0  ;;  %v2241_v57 = vadd.f32 %v2230_v28, %v5724_v54  ;;  %v5311_v54 = vld [vmem:[%s6939_s7 + $0x8] sm:$0xff] }
 0x3ee   :  { %v5027_v24 = vpop.f32.mrf.mxu1 }
 0x3ef   :  { %v3823_v8 = vsel %vm3816_vm1, %v6493_v11, 0.0  ;;  %v2341_v46 = vadd.f32 %v5027_v24, %v2240_v41  ;;  %v7121_v24 = vld [vmem:[#allocation19_spill] sm:$0xff] }
 0x3f0   :  { %v2321_v51 = vpop.f32.mrf.mxu1  ;;  %3827 = vadd.xlane.f32.xlu1 %v3826_v15  ;;  %3824 = vadd.xlane.f32.xlu0 %v3823_v8 }
 0x3f1   :  { %v2340_v3 = vadd.f32 %v2321_v51, %v2239_v62  ;;  %v2442_v37 = vadd.f32 %v5041_v40, %v2341_v46  ;;  %v7120_v40 = vld [vmem:[#allocation17_spill] sm:$0xff] }
 0x3f2   :  { %v5030_v26 = vpop.f32.mrf.mxu1 }
 0x3f3   :  { %v2343_v61 = vadd.f32 %v5030_v26, %v2242_v38  ;;  %v2441_v55 = vadd.f32 %v2422_v6, %v2340_v3 }
 0x3f4   :  { %v2331_v49 = vpop.f32.mrf.mxu1 }
 0x3f5   :  { %v2444_v47 = vadd.f32 %v5044_v48, %v2343_v61  ;;  %v2342_v0 = vadd.f32 %v2331_v49, %v2241_v57 }
 0x3f7   :  { %v2443_v52 = vadd.f32 %v2432_v19, %v2342_v0  ;;  %5045 = vmatprep.subr.mxu1 %v2444_v47 }
 0x3f8   :  { %5046 = vmatpush3.msra.mxu1 %v2444_v47 }
 0x3f9   :  { %5047 = vmatprep.subr.mxu1 %v2443_v52 }
 0x3fa   :  { %5048 = vmatpush3.msra.mxu1 %v2443_v52 }
 0x3fb   :  { %5049 = vmatprep.subr.mxu1 %v2442_v37 }
 0x3fc   :  { %5050 = vmatpush3.msra.mxu1 %v2442_v37 }
 0x3fd   :  { %5051 = vmatprep.subr.mxu1 %v2441_v55 }
 0x3fe   :  { %5052 = vmatpush3.msra.mxu1 %v2441_v55 }
 0x3ff   :  { %5054 = vmatmul.mubr.msk.f32.vlgmr.msra.gmra.mxu1 %vm118_vm0, %v5311_v54  ;;  %5073 = vmatprep.subr.mxu1 %v5982_v32 }
 0x400   :  { %5074 = vmatpush3.msra.mxu1 %v5982_v32  ;;  %5056 = vmatprep.mubr.msk.f32.mxu1 %vm118_vm0, %v5312_v58  ;;  %v7115_v32 = vld [vmem:[#allocation6_spill] sm:$0xff] }
 0x401   :  { %5075 = vmatprep.subr.mxu1 %v5984_v63 }
 0x402   :  { %5076 = vmatpush3.msra.mxu1 %v5984_v63  ;;  %v7116_v63 = vld [vmem:[#allocation7_spill] sm:$0xff] }
 0x403   :  { %5057 = vmatmul.mubr.msk.f32.gmra.mxu1 %vm118_vm0, %v5313_v59  ;;  %5077 = vmatprep.subr.mxu1 %v6000_v53  ;;  %v7122_v59 = vld [vmem:[#allocation21_spill] sm:$0xff] }
 0x404   :  { %5078 = vmatpush3.msra.mxu1 %v6000_v53  ;;  %5081 = vmatprep.mubr.msk.f32.mxu1 %vm118_vm0, %v6219_v14 }
 0x405   :  { %5079 = vmatprep.subr.mxu1 %v6020_v21 }
 0x406   :  { %5080 = vmatpush3.msra.mxu1 %v6020_v21  ;;  %v5069_v21 = vpop.f32.mrf.mxu0 }
 0x407   :  { %5082 = vmatmul.mubr.msk.f32.vlgmr.msra.gmra.mxu1 %vm118_vm0, %v6231_v16  ;;  %5101 = vmatprep.subr.mxu1 %v6047_v42  ;;  %v2632_v36 = vadd.f32 %v5069_v21, %v7119_v7  ;;  %v7126_v21 = vld [vmem:[#allocation23_spill] sm:$0xff] }
 0x408   :  { %5102 = vmatpush3.msra.mxu1 %v6047_v42  ;;  %5084 = vmatprep.mubr.msk.f32.mxu1 %vm118_vm0, %v6237_v17  ;;  %v2612_v42 = vpop.f32.mrf.mxu0  ;;  %v7141_v7 = vld [vmem:[#allocation39_spill] sm:$0xff] }
 0x409   :  { %5103 = vmatprep.subr.mxu1 %v6065_v20  ;;  %v2631_v15 = vadd.f32 %v2612_v42, %v7121_v24  ;;  %v7127_v42 = vld [vmem:[#allocation34_spill] sm:$0xff] }
 0x40a   :  { %5104 = vmatpush3.msra.mxu1 %v6065_v20  ;;  %v7117_v20 = vld [vmem:[#allocation20_spill] sm:$0xff]  ;;  %v5072_v53 = vpop.f32.mrf.mxu0 }
 0x40b   :  { %5085 = vmatmul.mubr.msk.f32.gmra.mxu1 %vm118_vm0, %v6249_v18  ;;  %5105 = vmatprep.subr.mxu1 %v6071_v34  ;;  %v2634_v1 = vadd.f32 %v5072_v53, %v7118_v43  ;;  %v7128_v53 = vld [vmem:[#allocation8_spill] sm:$0xff] }
 0x40c   :  { %5106 = vmatpush3.msra.mxu1 %v6071_v34  ;;  %5109 = vmatprep.mubr.msk.f32.mxu1 %vm118_vm0, %v6255_v27  ;;  %v2622_v34 = vpop.f32.mrf.mxu0  ;;  %v7138_v43 = vld [vmem:[#allocation12_spill] sm:$0xff] }
 0x40d   :  { %5107 = vmatprep.subr.mxu1 %v6073_v44  ;;  %v2633_v22 = vadd.f32 %v2622_v34, %v7120_v40  ;;  %v7129_v34 = vld [vmem:[#allocation35_spill] sm:$0xff] }
 0x40e   :  { %5108 = vmatpush3.msra.mxu1 %v6073_v44  ;;  %v5097_v14 = vpop.f32.mrf.mxu0  ;;  %v7143_v40 = vld [vmem:[#allocation15_spill] sm:$0xff] }
 0x40f   :  { %5110 = vmatmul.mubr.msk.f32.vlgmr.msra.gmra.mxu1 %vm118_vm0, %v6267_v29 }
 0x410   :  { %5112 = vmatprep.mubr.msk.f32.mxu1 %vm118_vm0, %v7115_v32  ;;  %v2790_v16 = vpop.f32.mrf.mxu0  ;;  %v7123_v32 = vld [vmem:[#allocation32_spill] sm:$0xff] }
 0x412   :  { %v5100_v18 = vpop.f32.mrf.mxu0 }
 0x413   :  { %5113 = vmatmul.mubr.msk.f32.gmra.mxu1 %vm118_vm0, %v7116_v63  ;;  %v7124_v63 = vld [vmem:[#allocation22_spill] sm:$0xff] }
 0x414   :  { %5137 = vmatprep.mubr.msk.f32.mxu1 %vm118_vm0, %v7117_v20  ;;  %v2800_v31 = vpop.f32.mrf.mxu0  ;;  %v7125_v20 = vld [vmem:[#allocation33_spill] sm:$0xff] }
 0x416   :  { %v5125_v60 = vpop.f32.mrf.mxu0 }
 0x418   :  { %v2980_v56 = vpop.f32.mrf.mxu0 }
 0x41a   :  { %v5128_v41 = vpop.f32.mrf.mxu0 }
 0x41c   :  { %v2990_v52 = vpop.f32.mrf.mxu0 }
 0x4bf   :  { %v6549_v17 = vpop.f32.mrf.mxu1 }
 0x4c1   :  { %v6551_v44 = vpop.f32.mrf.mxu1 }
 0x4c3   :  { %v6553_v27 = vpop.f32.mrf.mxu1 }
 0x4c5   :  { %v6555_v29 = vpop.f32.mrf.mxu1 }
 0x4c7   :  { %v5083_v2 = vpop.f32.mrf.mxu1 }
 0x4c8   :  { %v2721_v8 = vadd.f32 %v5083_v2, %v2632_v36  ;;  %v7134_v2 = vld [vmem:[#allocation41_spill] sm:$0xff]  ;;  %v7142_v36 = vld [vmem:[#allocation14_spill] sm:$0xff] }
 0x4c9   :  { %v2701_v12 = vpop.f32.mrf.mxu1 }
 0x4ca   :  { %v2720_v48 = vadd.f32 %v2701_v12, %v2631_v15  ;;  %v2810_v61 = vadd.f32 %v5097_v14, %v2721_v8  ;;  %v7130_v14 = vld [vmem:[#allocation9_spill] sm:$0xff]  ;;  %v7135_v12 = vld [vmem:[#allocation36_spill] sm:$0xff] }
 0x4cb   :  { %v5086_v30 = vpop.f32.mrf.mxu1 }
 0x4cc   :  { %v2723_v23 = vadd.f32 %v5086_v30, %v2634_v1  ;;  %v2809_v0 = vadd.f32 %v2790_v16, %v2720_v48  ;;  %v7131_v16 = vld [vmem:[#allocation10_spill] sm:$0xff]  ;;  %v7137_v30 = vld [vmem:[#allocation37_spill] sm:$0xff]  ;;  %v7146_v48 = vld [vmem:[#allocation44_spill] sm:$0xff] }
 0x4cd   :  { %v2711_v28 = vpop.f32.mrf.mxu1  ;;  %v7139_v1 = vld [vmem:[#allocation38_spill] sm:$0xff] }
 0x4ce   :  { %v2722_v51 = vadd.f32 %v2711_v28, %v2633_v22  ;;  %v2812_v26 = vadd.f32 %v5100_v18, %v2723_v23  ;;  %v7132_v18 = vld [vmem:[#allocation11_spill] sm:$0xff]  ;;  %v7140_v28 = vld [vmem:[#allocation13_spill] sm:$0xff]  ;;  %v7145_v23 = vld [vmem:[#allocation28_spill] sm:$0xff] }
 0x4cf   :  { %v5111_v6 = vpop.f32.mrf.mxu1  ;;  %v7144_v22 = vld [vmem:[#allocation43_spill] sm:$0xff] }
 0x4d0   :  { %v2811_v62 = vadd.f32 %v2800_v31, %v2722_v51  ;;  %v2899_v47 = vadd.f32 %v5111_v6, %v2810_v61  ;;  %v7133_v31 = vld [vmem:[#allocation40_spill] sm:$0xff]  ;;  %v7147_v61 = vld [vmem:[#allocation45_spill] sm:$0xff] }
 0x4d1   :  { %v2879_v38 = vpop.f32.mrf.mxu1 }
 0x4d2   :  { %v2898_v37 = vadd.f32 %v2879_v38, %v2809_v0  ;;  %v3000_v54 = vadd.f32 %v5125_v60, %v2899_v47  ;;  %v7136_v60 = vld [vmem:[#allocation42_spill] sm:$0xff] }
 0x4d3   :  { %v5114_v57 = vpop.f32.mrf.mxu1  ;;  %v7148_v47 = vld [vmem:[#allocation46_spill] sm:$0xff] }
 0x4d4   :  { %v2901_v49 = vadd.f32 %v5114_v57, %v2812_v26  ;;  %v2999_v58 = vadd.f32 %v2980_v56, %v2898_v37  ;;  %v5153_v56 = vpop.f32.mrf.mxu0  ;;  %v2531_v26 = vadd.f32 %v6549_v17, %v7146_v48  ;;  %v2533_v0 = vadd.f32 %v6553_v27, %v7148_v47  ;;  %v7149_v37 = vld [vmem:[#allocation47_spill] sm:$0xff] }
 0x4d5   :  { %v2889_v46 = vpop.f32.mrf.mxu1 }
 0x4d6   :  { %v3002_v19 = vadd.f32 %v5128_v41, %v2901_v49  ;;  %v2900_v3 = vadd.f32 %v2889_v46, %v2811_v62  ;;  %v3158_v6 = vpop.f32.mrf.mxu0  ;;  %v2530_v49 = vadd.f32 %v6551_v44, %v7147_v61 }
 0x4d8   :  { %v3001_v55 = vadd.f32 %v2990_v52, %v2900_v3  ;;  %5129 = vmatprep.subr.mxu1 %v3002_v19  ;;  %v5156_v24 = vpop.f32.mrf.mxu0 }
 0x4d9   :  { %5130 = vmatpush3.msra.mxu1 %v3002_v19 }
 0x4da   :  { %5131 = vmatprep.subr.mxu1 %v3001_v55  ;;  %v3168_v15 = vpop.f32.mrf.mxu0 }
 0x4db   :  { %5132 = vmatpush3.msra.mxu1 %v3001_v55  ;;  %v2532_v55 = vadd.f32 %v6555_v29, %v7149_v37 }
 0x4dc   :  { %5133 = vmatprep.subr.mxu1 %v3000_v54  ;;  %v5181_v8 = vpop.f32.mrf.mxu0 }
 0x4dd   :  { %5134 = vmatpush3.msra.mxu1 %v3000_v54 }
 0x4de   :  { %5135 = vmatprep.subr.mxu1 %v2999_v58  ;;  %v3336_v51 = vpop.f32.mrf.mxu0 }
 0x4df   :  { %5136 = vmatpush3.msra.mxu1 %v2999_v58 }
 0x4e0   :  { %5138 = vmatmul.mubr.msk.f32.vlgmr.msra.gmra.mxu1 %vm118_vm0, %v7122_v59  ;;  %5157 = vmatprep.subr.mxu1 %v7123_v32  ;;  %v5184_v38 = vpop.f32.mrf.mxu0 }
 0x4e1   :  { %5140 = vmatprep.mubr.msk.f32.mxu1 %vm118_vm0, %v7124_v63  ;;  %5158 = vmatpush3.msra.mxu1 %v7123_v32 }
 0x4e2   :  { %5159 = vmatprep.subr.mxu1 %v7125_v20  ;;  %v3346_v57 = vpop.f32.mrf.mxu0 }
 0x4e3   :  { %5160 = vmatpush3.msra.mxu1 %v7125_v20 }
 0x4e4   :  { %5141 = vmatmul.mubr.msk.f32.gmra.mxu1 %vm118_vm0, %v7126_v21  ;;  %5161 = vmatprep.subr.mxu1 %v7127_v42  ;;  %v5209_v52 = vpop.f32.mrf.mxu0 }
 0x4e5   :  { %5162 = vmatpush3.msra.mxu1 %v7127_v42  ;;  %5165 = vmatprep.mubr.msk.f32.mxu1 %vm118_vm0, %v7128_v53  ;;  %v7150_v42 = vld [vmem:[#allocation24_spill] sm:$0xff] }
 0x4e6   :  { %5163 = vmatprep.subr.mxu1 %v7129_v34  ;;  %v3514_v44 = vpop.f32.mrf.mxu0  ;;  %v3180_v27 = vadd.f32 %v5156_v24, %v7150_v42 }
 0x4e7   :  { %5164 = vmatpush3.msra.mxu1 %v7129_v34 }
 0x4e8   :  { %5166 = vmatmul.mubr.msk.f32.vlgmr.msra.gmra.mxu1 %vm118_vm0, %v7130_v14  ;;  %5185 = vmatprep.subr.mxu1 %v6035_v9  ;;  %v5212_v20 = vpop.f32.mrf.mxu0  ;;  %v7151_v14 = vld [vmem:[#allocation26_spill] sm:$0xff] }
 0x4e9   :  { %5186 = vmatpush3.msra.mxu1 %v6035_v9  ;;  %5168 = vmatprep.mubr.msk.f32.mxu1 %vm118_vm0, %v7131_v16  ;;  %v3178_v16 = vadd.f32 %v5153_v56, %v7151_v14  ;;  %v4085_v14 = vld [vmem:[%s6943_s9 + $0x18] sm:$0xff] }
 0x4ea   :  { %5187 = vmatprep.subr.mxu1 %v6037_v45  ;;  %v3524_v34 = vpop.f32.mrf.mxu0 }
 0x4eb   :  { %5188 = vmatpush3.msra.mxu1 %v6037_v45 }
 0x4ec   :  { %5169 = vmatmul.mubr.msk.f32.gmra.mxu1 %vm118_vm0, %v7132_v18  ;;  %5189 = vmatprep.subr.mxu1 %v6059_v5  ;;  %v7152_v18 = vld [vmem:[#allocation25_spill] sm:$0xff] }
 0x4ed   :  { %5190 = vmatpush3.msra.mxu1 %v6059_v5  ;;  %5193 = vmatprep.mubr.msk.f32.mxu1 %vm118_vm0, %v7133_v31  ;;  %v3179_v31 = vadd.f32 %v3168_v15, %v7152_v18  ;;  %v3941_v18 = vld [vmem:[%s6945_s10 + $0x18] sm:$0xff] }
 0x4ee   :  { %5191 = vmatprep.subr.mxu1 %v6067_v33 }
 0x4ef   :  { %5192 = vmatpush3.msra.mxu1 %v6067_v33 }
 0x4f0   :  { %5194 = vmatmul.mubr.msk.f32.vlgmr.msra.gmra.mxu1 %vm118_vm0, %v7134_v2  ;;  %5213 = vmatprep.subr.mxu1 %v7135_v12 }
 0x4f1   :  { %5214 = vmatpush3.msra.mxu1 %v7135_v12  ;;  %5196 = vmatprep.mubr.msk.f32.mxu1 %vm118_vm0, %v7136_v60  ;;  %v3177_v12 = vadd.f32 %v3158_v6, %v7111_v10 }
 0x4f2   :  { %5215 = vmatprep.subr.mxu1 %v7137_v30 }
 0x4f3   :  { %5216 = vmatpush3.msra.mxu1 %v7137_v30 }
 0x4f4   :  { %5197 = vmatmul.mubr.msk.f32.gmra.mxu1 %vm118_vm0, %v7138_v43  ;;  %5217 = vmatprep.subr.mxu1 %v7139_v1 }
 0x4f5   :  { %5218 = vmatpush3.msra.mxu1 %v7139_v1  ;;  %5221 = vmatprep.mubr.msk.f32.mxu1 %vm118_vm0, %v7140_v28  ;;  %v5237_v1 = vpop.f32.mrf.mxu0 }
 0x4f6   :  { %5219 = vmatprep.subr.mxu1 %v7141_v7 }
 0x4f7   :  { %5220 = vmatpush3.msra.mxu1 %v7141_v7  ;;  %v3704_v48 = vpop.f32.mrf.mxu0 }
 0x4f8   :  { %5222 = vmatmul.mubr.msk.f32.vlgmr.msra.gmra.mxu1 %vm118_vm0, %v7142_v36 }
 0x4f9   :  { %5224 = vmatprep.mubr.msk.f32.mxu1 %vm118_vm0, %v7143_v40  ;;  %v5240_v10 = vpop.f32.mrf.mxu0 }
 0x4fc   :  { %5225 = vmatmul.mubr.msk.f32.gmra.mxu1 %vm118_vm0, %v7144_v22 }
 0x4fd   :  { %5249 = vmatprep.mubr.msk.f32.mxu1 %vm118_vm0, %v7145_v23 }
 0x5a0   :  { %v5139_v41 = vpop.f32.mrf.mxu1 }
 0x5a1   :  { %v6621_v62 = vadd.f32 %v5139_v41, %v2531_v26 }
 0x5a2   :  { %v3069_v46 = vpop.f32.mrf.mxu1 }
 0x5a3   :  { %v6625_v19 = vadd.f32 %v3069_v46, %v2530_v49 }
 0x5a4   :  { %v5142_v3 = vpop.f32.mrf.mxu1 }
 0x5a5   :  { %v6629_v54 = vadd.f32 %v5142_v3, %v2533_v0 }
 0x5a6   :  { %v3079_v17 = vpop.f32.mrf.mxu1 }
 0x5a7   :  { %v6631_v58 = vadd.f32 %v3079_v17, %v2532_v55 }
 0x5a8   :  { %v5167_v59 = vpop.f32.mrf.mxu1 }
 0x5a9   :  { %v3267_v60 = vadd.f32 %v5167_v59, %v3178_v16  ;;  %v3939_v16 = vld [vmem:[%s6945_s10 + $0x8] sm:$0xff] }
 0x5aa   :  { %v3247_v32 = vpop.f32.mrf.mxu1 }
 0x5ab   :  { %v3266_v28 = vadd.f32 %v3247_v32, %v3177_v12  ;;  %v3356_v40 = vadd.f32 %v5181_v8, %v3267_v60 }
 0x5ac   :  { %v5170_v63 = vpop.f32.mrf.mxu1 }
 0x5ad   :  { %v3269_v29 = vadd.f32 %v5170_v63, %v3180_v27  ;;  %v3355_v26 = vadd.f32 %v3336_v51, %v3266_v28 }
 0x5ae   :  { %v3257_v21 = vpop.f32.mrf.mxu1 }
 0x5af   :  { %v3268_v30 = vadd.f32 %v3257_v21, %v3179_v31  ;;  %v3358_v7 = vadd.f32 %v5184_v38, %v3269_v29  ;;  %v6675_v31 = vpop.permute.xlu1 %3921 }
 0x5b0   :  { %v5195_v53 = vpop.f32.mrf.mxu1 }
 0x5b1   :  { %v3357_v22 = vadd.f32 %v3346_v57, %v3268_v30  ;;  %v3445_v56 = vadd.f32 %v5195_v53, %v3356_v40  ;;  %v3714_v57 = vpop.f32.mrf.mxu0 }
 0x5b2   :  { %v3425_v2 = vpop.f32.mrf.mxu1 }
 0x5b3   :  { %v3444_v61 = vadd.f32 %v3425_v2, %v3355_v26  ;;  %v3534_v6 = vadd.f32 %v5209_v52, %v3445_v56  ;;  %v6677_v29 = vpop.permute.xlu1 %3926  ;;  %v6679_v2 = vpop.permute.xlu0 %3916 }
 0x5b4   :  { %v5198_v43 = vpop.f32.mrf.mxu1 }
 0x5b5   :  { %v3447_v23 = vadd.f32 %v5198_v43, %v3358_v7  ;;  %v3533_v37 = vadd.f32 %v3514_v44, %v3444_v61 }
 0x5b6   :  { %v3435_v36 = vpop.f32.mrf.mxu1 }
 0x5b7   :  { %v3446_v41 = vadd.f32 %v3435_v36, %v3357_v22  ;;  %v3536_v49 = vadd.f32 %v5212_v20, %v3447_v23  ;;  %v6681_v12 = vpop.permute.xlu1 %4092  ;;  %v6683_v60 = vpop.permute.xlu0 %3931 }
 0x5b8   :  { %v5223_v24 = vpop.f32.mrf.mxu1 }
 0x5b9   :  { %v3535_v47 = vadd.f32 %v3524_v34, %v3446_v41  ;;  %v3623_v38 = vadd.f32 %v5223_v24, %v3534_v6  ;;  %v6663_v34 = vld [vmem:[%s6945_s10 + $0x10] sm:$0xff] }
 0x5ba   :  { %v3603_v15 = vpop.f32.mrf.mxu1 }
 0x5bb   :  { %v3622_v17 = vadd.f32 %v3603_v15, %v3533_v37  ;;  %v3724_v51 = vadd.f32 %v5237_v1, %v3623_v38  ;;  %v3819_v30 = vpop.xlane.xlu1 %3818  ;;  %v3822_v43 = vpop.xlane.xlu0 %3821 }
 0x5bc   :  { %v5226_v46 = vpop.f32.mrf.mxu1 }
 0x5bd   :  { %v3625_v0 = vadd.f32 %v5226_v46, %v3536_v49  ;;  %v3723_v32 = vadd.f32 %v3704_v48, %v3622_v17 }
 0x5be   :  { %v3613_v3 = vpop.f32.mrf.mxu1 }
 0x5bf   :  { %v3726_v55 = vadd.f32 %v5240_v10, %v3625_v0  ;;  %v3624_v8 = vadd.f32 %v3613_v3, %v3535_v47  ;;  %v3828_v1 = vpop.xlane.xlu1 %3827  ;;  %v3825_v28 = vpop.xlane.xlu0 %3824 }
 0x5c1   :  { %v3725_v59 = vadd.f32 %v3714_v57, %v3624_v8  ;;  %5241 = vmatprep.subr.mxu1 %v3726_v55 }
 0x5c2   :  { %5242 = vmatpush3.msra.mxu1 %v3726_v55 }
 0x5c3   :  { %5243 = vmatprep.subr.mxu1 %v3725_v59 }
 0x5c4   :  { %5244 = vmatpush3.msra.mxu1 %v3725_v59 }
 0x5c5   :  { %5245 = vmatprep.subr.mxu1 %v3724_v51 }
 0x5c6   :  { %5246 = vmatpush3.msra.mxu1 %v3724_v51 }
 0x5c7   :  { %5247 = vmatprep.subr.mxu1 %v3723_v32 }
 0x5c8   :  { %5248 = vmatpush3.msra.mxu1 %v3723_v32 }
 0x5c9   :  { %5250 = vmatmul.mubr.msk.f32.vlgmr.msra.gmra.mxu1 %vm118_vm0, %v7112_v35 }
 0x5ca   :  { %5252 = vmatprep.mubr.msk.f32.mxu1 %vm118_vm0, %v7113_v39 }
 0x5cd   :  { %5253 = vmatmul.mubr.msk.f32.gmra.mxu1 %vm118_vm0, %v7114_v13 }
 0x689   :  { %v5251_v52 = vpop.f32.mrf.mxu1 }
 0x68a   :  { %v3813_v44 = vadd.f32 %v5251_v52, %v6621_v62 }
 0x68b   :  { %v3793_v63 = vpop.f32.mrf.mxu1 }
 0x68c   :  { %v3812_v20 = vadd.f32 %v3793_v63, %v6625_v19  ;;  %v3832_v21 = vsel %vm3816_vm1, %v3813_v44, 0.0  ;;  %v4084_v19 = vld [vmem:[%s6943_s9 + $0x10] sm:$0xff] }
 0x68d   :  { %v5254_v42 = vpop.f32.mrf.mxu1  ;;  %3833 = vadd.xlane.f32.xlu1 %v3832_v21 }
 0x68e   :  { %v3815_v27 = vadd.f32 %v5254_v42, %v6629_v54  ;;  %v3829_v35 = vsel %vm3816_vm1, %v3812_v20, 0.0  ;;  %v3938_v54 = vld [vmem:[%s6945_s10] sm:$0xff] }
 0x68f   :  { %v3803_v53 = vpop.f32.mrf.mxu1  ;;  %3830 = vadd.xlane.f32.xlu0 %v3829_v35 }
 0x690   :  { %v3814_v39 = vadd.f32 %v3803_v53, %v6631_v58  ;;  %v3838_v13 = vsel %vm3816_vm1, %v3815_v27, 0.0  ;;  %v4083_v58 = vld [vmem:[%s6943_s9 + $0x8] sm:$0xff] }
 0x691   :  { %3839 = vadd.xlane.f32.xlu1 %v3838_v13 }
 0x692   :  { %v3835_v62 = vsel %vm3816_vm1, %v3814_v39, 0.0 }
 0x693   :  { %3836 = vadd.xlane.f32.xlu0 %v3835_v62 }
 0x6a2   :  { %4102 = vperm.xlu1 %5265, %v4084_v19  }
 0x6a6   :  { %3944 = vperm.xlu1 %5265, %v3938_v54  }
 0x6a9   :  { %4097 = vperm.xlu0 %5264, %v4083_v58  }
 0x6aa   :  { %3954 = vperm.xlu1 %5265, %v6663_v34  }
 0x6ad   :  { %4107 = vperm.xlu0 %5264, %v4085_v14  }
 0x6ae   :  { %4120 = vperm.xlu1 %5265, %v3938_v54  }
 0x6b1   :  { %3949 = vperm.xlu0 %5264, %v3939_v16  }
 0x6b5   :  { %3959 = vperm.xlu0 %5264, %v3941_v18  }
 0x6b9   :  { %4125 = vperm.xlu0 %5264, %v3939_v16  }
 0x716   :  { %v3834_v7 = vpop.xlane.xlu1 %3833 }
 0x717   :  { %v3842_v36 = vadd.f32 %v3834_v7, %v3822_v43 }
 0x718   :  { %v3831_v40 = vpop.xlane.xlu0 %3830 }
 0x719   :  { %v3847_v22 = vmul.f32 0.125, %v3842_v36  ;;  %v3841_v23 = vadd.f32 %v3831_v40, %v3819_v30 }
 0x71a   :  { %v3840_v24 = vpop.xlane.xlu1 %3839 }
 0x71b   :  { %v6686_v48 = vsub.f32 %v6480_v50, %v3847_v22  ;;  %v3846_v26 = vmul.f32 0.125, %v3841_v23  ;;  %v3844_v56 = vadd.f32 %v3840_v24, %v3828_v1  ;;  %v6688_v41 = vsub.f32 %v3813_v44, %v3847_v22 }
 0x71c   :  { %v3837_v15 = vpop.xlane.xlu0 %3836 }
 0x71d   :  { %v6691_v61 = vsub.f32 %v6483_v4, %v3846_v26  ;;  %v6693_v49 = vsub.f32 %v3812_v20, %v3846_v26  ;;  %v3849_v46 = vmul.f32 0.125, %v3844_v56  ;;  %v3843_v10 = vadd.f32 %v3837_v15, %v3825_v28 }
 0x71e   :  { %v3855_v6 = vmul.f32 %v6686_v48, %v6686_v48  ;;  %v3875_v4 = vmul.f32 %v6688_v41, %v6688_v41  ;;  %v6730_v42 = vpop.permute.xlu1 %4102 }
 0x71f   :  { %v3848_v47 = vmul.f32 0.125, %v3843_v10  ;;  %v3854_v50 = vmul.f32 %v6691_v61, %v6691_v61  ;;  %v6700_v0 = vsub.f32 %v6488_v25, %v3849_v46  ;;  %v3874_v55 = vmul.f32 %v6693_v49, %v6693_v49 }
 0x720   :  { %v3861_v3 = vsel %vm3816_vm1, %v3855_v6, 0.0  ;;  %v6711_v8 = vsub.f32 %v3815_v27, %v3849_v46  ;;  %v3881_v25 = vsel %vm3816_vm1, %v3875_v4, 0.0 }
 0x721   :  { %v6706_v37 = vsub.f32 %v6493_v11, %v3848_v47  ;;  %3862 = vadd.xlane.f32.xlu1 %v3861_v3  ;;  %v3858_v38 = vsel %vm3816_vm1, %v3854_v50, 0.0  ;;  %v3857_v57 = vmul.f32 %v6700_v0, %v6700_v0  ;;  %v6716_v17 = vsub.f32 %v3814_v39, %v3848_v47 }
 0x722   :  { %3859 = vadd.xlane.f32.xlu0 %v3858_v38  ;;  %v3878_v11 = vsel %vm3816_vm1, %v3874_v55, 0.0  ;;  %v3877_v32 = vmul.f32 %v6711_v8, %v6711_v8  ;;  %v3945_v35 = vpop.permute.xlu1 %3944 }
 0x723   :  { %v3856_v59 = vmul.f32 %v6706_v37, %v6706_v37  ;;  %v3867_v51 = vsel %vm3816_vm1, %v3857_v57, 0.0  ;;  %v3876_v44 = vmul.f32 %v6716_v17, %v6716_v17 }
 0x724   :  { %v3887_v63 = vsel %vm3816_vm1, %v3877_v32, 0.0  ;;  %v4098_v21 = vpop.permute.xlu0 %4097 }
 0x725   :  { %3882 = vadd.xlane.f32.xlu1 %v3881_v25  ;;  %v3864_v52 = vsel %vm3816_vm1, %v3856_v59, 0.0  ;;  %v3884_v20 = vsel %vm3816_vm1, %v3876_v44, 0.0 }
 0x726   :  { %3879 = vadd.xlane.f32.xlu0 %v3878_v11  ;;  %v6734_v39 = vpop.permute.xlu1 %3954 }
 0x728   :  { %v6732_v27 = vpop.permute.xlu0 %4107 }
 0x729   :  { %3868 = vadd.xlane.f32.xlu1 %v3867_v51 }
 0x72a   :  { %3865 = vadd.xlane.f32.xlu0 %v3864_v52  ;;  %v4121_v62 = vpop.permute.xlu1 %4120 }
 0x72c   :  { %v3950_v53 = vpop.permute.xlu0 %3949 }
 0x72d   :  { %3888 = vadd.xlane.f32.xlu1 %v3887_v63 }
 0x72e   :  { %3885 = vadd.xlane.f32.xlu0 %v3884_v20 }
 0x730   :  { %v6736_v13 = vpop.permute.xlu0 %3959 }
 0x734   :  { %v4126_v19 = vpop.permute.xlu0 %4125 }
 0x73e   :  { %4130 = vperm.xlu1 %5265, %v6663_v34  }
 0x744   :  { %4135 = vperm.xlu0 %5264, %v3941_v18  }
 0x7aa   :  { %v3863_v54 = vpop.xlane.xlu1 %3862 }
 0x7ab   :  { %v3860_v58 = vpop.xlane.xlu0 %3859 }
 0x7ae   :  { %v3883_v14 = vpop.xlane.xlu1 %3882 }
 0x7af   :  { %v3891_v16 = vadd.f32 %v3883_v14, %v3863_v54  ;;  %v3880_v30 = vpop.xlane.xlu0 %3879 }
 0x7b0   :  { %v3890_v34 = vadd.f32 %v3880_v30, %v3860_v58 }
 0x7b1   :  { %v3895_v18 = vmul.f32 0.125, %v3891_v16 }
 0x7b2   :  { %v3894_v43 = vmul.f32 0.125, %v3890_v34  ;;  %v3869_v1 = vpop.xlane.xlu1 %3868 }
 0x7b3   :  { %v3899_v28 = vadd.f32 1e-05, %v3895_v18  ;;  %v3866_v7 = vpop.xlane.xlu0 %3865 }
 0x7b4   :  { %v3898_v36 = vadd.f32 1e-05, %v3894_v43 }
 0x7b5   :  { %5266 = vrsqrt.f32 %v3899_v28 }
 0x7b6   :  { %5268 = vrsqrt.f32 %v3898_v36  ;;  %v3889_v40 = vpop.xlane.xlu1 %3888 }
 0x7b7   :  { %v3893_v22 = vadd.f32 %v3889_v40, %v3869_v1  ;;  %v3886_v23 = vpop.xlane.xlu0 %3885 }
 0x7b8   :  { %v3892_v24 = vadd.f32 %v3886_v23, %v3866_v7 }
 0x7b9   :  { %v3897_v26 = vmul.f32 0.125, %v3893_v22 }
 0x7ba   :  { %v3896_v56 = vmul.f32 0.125, %v3892_v24  ;;  %v4131_v36 = vpop.permute.xlu1 %4130 }
 0x7bb   :  { %v3901_v15 = vadd.f32 1e-05, %v3897_v26 }
 0x7bc   :  { %v3900_v46 = vadd.f32 1e-05, %v3896_v56 }
 0x7bd   :  { %5270 = vrsqrt.f32 %v3901_v15 }
 0x7be   :  { %5272 = vrsqrt.f32 %v3900_v46 }
 0x7c2   :  { %v5267_v10 = vpop.eup %5266 }
 0x7c3   :  { %v5269_v6 = vpop.eup %5268  ;;  %v3911_v47 = vmul.f32 %v5267_v10, %v6686_v48  ;;  %v4087_v50 = vmul.f32 %v5267_v10, %v6688_v41 }
 0x7c4   :  { %v3910_v3 = vmul.f32 %v5269_v6, %v6691_v61  ;;  %v4086_v4 = vmul.f32 %v5269_v6, %v6693_v49 }
 0x7c5   :  { %v3935_v38 = vmul.f32 %v6675_v31, %v3911_v47  ;;  %v4111_v55 = vmul.f32 %v4098_v21, %v4087_v50 }
 0x7c6   :  { %v3934_v25 = vmul.f32 %v6679_v2, %v3910_v3  ;;  %v4110_v57 = vmul.f32 %v6681_v12, %v4086_v4 }
 0x7c7   :  { %v6745_v11 = vadd.f32 %v3950_v53, %v3935_v38  ;;  %v6747_v59 = vadd.f32 %v4126_v19, %v4111_v55 }
 0x7c8   :  { %v6749_v51 = vadd.f32 %v3945_v35, %v3934_v25  ;;  %v6751_v48 = vadd.f32 %v4121_v62, %v4110_v57 }
 0x7c9   :  { %v6754_v41 = vmul.f32 0.70710677, %v6745_v11  ;;  %v6757_v61 = vmul.f32 0.70710677, %v6747_v59 }
 0x7ca   :  { %v6760_v31 = vmul.f32 0.70710677, %v6749_v51  ;;  %v6763_v2 = vmul.f32 0.70710677, %v6751_v48  ;;  %v5271_v20 = vpop.eup %5270 }
 0x7cb   :  { %v3975_v12 = vand.u32 2147483647, %v6754_v41  ;;  %v4151_v49 = vand.u32 2147483647, %v6757_v61  ;;  %v5273_v35 = vpop.eup %5272  ;;  %v3913_v58 = vmul.f32 %v5271_v20, %v6700_v0  ;;  %v4089_v18 = vmul.f32 %v5271_v20, %v6711_v8 }
 0x7cc   :  { %v3974_v32 = vand.u32 2147483647, %v6760_v31  ;;  %v4150_v52 = vand.u32 2147483647, %v6763_v2  ;;  %v3912_v14 = vmul.f32 %v5273_v35, %v6706_v37  ;;  %v4088_v34 = vmul.f32 %v5273_v35, %v6716_v17 }
 0x7cd   :  { %v3979_v44 = vmul.f32 0.3275911, %v3975_v12  ;;  %v4155_v63 = vmul.f32 0.3275911, %v4151_v49  ;;  %v3937_v30 = vmul.f32 %v6683_v60, %v3913_v58  ;;  %v4113_v0 = vmul.f32 %v6732_v27, %v4089_v18 }
 0x7ce   :  { %v3978_v21 = vmul.f32 0.3275911, %v3974_v32  ;;  %v4154_v19 = vmul.f32 0.3275911, %v4150_v52  ;;  %v3936_v43 = vmul.f32 %v6677_v29, %v3912_v14  ;;  %v4112_v28 = vmul.f32 %v6730_v42, %v4088_v34  ;;  %v4136_v29 = vpop.permute.xlu0 %4135 }
 0x7cf   :  { %v3983_v53 = vadd.f32 1.0, %v3979_v44  ;;  %v4159_v62 = vadd.f32 1.0, %v4155_v63  ;;  %v6776_v1 = vadd.f32 %v6736_v13, %v3937_v30  ;;  %v4031_v7 = vsub.f32 0.0, %v3975_v12 }
 0x7d0   :  { %v3982_v54 = vadd.f32 1.0, %v3978_v21  ;;  %v4158_v16 = vadd.f32 1.0, %v4154_v19  ;;  %v6781_v37 = vadd.f32 %v6734_v39, %v3936_v43  ;;  %v6786_v8 = vadd.f32 %v4131_v36, %v4112_v28 }
 0x7d1   :  { %5274 = vrcp.f32 %v3983_v53  ;;  %v6784_v60 = vmul.f32 0.70710677, %v6776_v1  ;;  %v4207_v17 = vsub.f32 0.0, %v4151_v49  ;;  %v6791_v40 = vadd.f32 %v4136_v29, %v4113_v0 }
 0x7d2   :  { %5276 = vrcp.f32 %v4159_v62  ;;  %v6789_v13 = vmul.f32 0.70710677, %v6781_v37  ;;  %v6795_v27 = vmul.f32 0.70710677, %v6786_v8  ;;  %v4035_v39 = vmul.f32 %v4031_v7, %v3975_v12 }
 0x7d3   :  { %5278 = vrcp.f32 %v3982_v54  ;;  %v3977_v42 = vand.u32 2147483647, %v6784_v60  ;;  %v6799_v23 = vmul.f32 0.70710677, %v6791_v40  ;;  %v4030_v24 = vsub.f32 0.0, %v3974_v32 }
 0x7d4   :  { %5280 = vrcp.f32 %v4158_v16  ;;  %v3976_v22 = vand.u32 2147483647, %v6789_v13  ;;  %v4152_v56 = vand.u32 2147483647, %v6795_v27  ;;  %v4211_v15 = vmul.f32 %v4207_v17, %v4151_v49 }
 0x7d5   :  { %v3981_v26 = vmul.f32 0.3275911, %v3977_v42  ;;  %v4206_v46 = vsub.f32 0.0, %v4150_v52  ;;  %v4153_v6 = vand.u32 2147483647, %v6799_v23  ;;  %v4034_v12 = vmul.f32 %v4030_v24, %v3974_v32 }
 0x7d6   :  { %v3980_v10 = vmul.f32 0.3275911, %v3976_v22  ;;  %v4156_v50 = vmul.f32 0.3275911, %v4152_v56  ;;  %v4040_v4 = vmul.f32 1.442695, %v4035_v39 }
 0x7d7   :  { %v3985_v47 = vadd.f32 1.0, %v3981_v26  ;;  %v4157_v55 = vmul.f32 0.3275911, %v4153_v6  ;;  %v4216_v63 = vmul.f32 1.442695, %v4211_v15  ;;  %v4210_v20 = vmul.f32 %v4206_v46, %v4150_v52 }
 0x7d8   :  { %v3984_v38 = vadd.f32 1.0, %v3980_v10  ;;  %v4160_v44 = vadd.f32 1.0, %v4156_v50  ;;  %v4033_v62 = vsub.f32 0.0, %v3977_v42  ;;  %v4038_v14 = vmul.f32 1.442695, %v4034_v12 }
 0x7d9   :  { %5282 = vrcp.f32 %v3985_v47  ;;  %v4161_v19 = vadd.f32 1.0, %v4157_v55  ;;  %v4214_v52 = vmul.f32 1.442695, %v4210_v20  ;;  %v4032_v30 = vsub.f32 0.0, %v3976_v22 }
 0x7da   :  { %5284 = vrcp.f32 %v3984_v38  ;;  %v4037_v0 = vmul.f32 %v4033_v62, %v3977_v42  ;;  %v4208_v7 = vsub.f32 0.0, %v4152_v56  ;;  %v6820_v39 = vmul.f32 0.5, %v6745_v11 }
 0x7db   :  { %5286 = vpow2.f32 %v4040_v4  ;;  %v4036_v26 = vmul.f32 %v4032_v30, %v3976_v22  ;;  %v4209_v15 = vsub.f32 0.0, %v4153_v6  ;;  %v6825_v42 = vmul.f32 0.5, %v6747_v59 }
 0x7dc   :  { %5288 = vrcp.f32 %v4160_v44  ;;  %v4044_v4 = vmul.f32 1.442695, %v4037_v0  ;;  %v4212_v38 = vmul.f32 %v4208_v7, %v4152_v56  ;;  %v6829_v11 = vmul.f32 0.5, %v6749_v51 }
 0x7dd   :  { %5290 = vpow2.f32 %v4216_v63  ;;  %v4042_v59 = vmul.f32 1.442695, %v4036_v26  ;;  %v4213_v63 = vmul.f32 %v4209_v15, %v4153_v6  ;;  %vm4055_vm2 = vcmp.ge.f32.partialorder %v6754_v41, 0.0 }
 0x7de   :  { %v6803_v3 = vpop.eup %5274  ;;  %5292 = vrcp.f32 %v4161_v19  ;;  %vm4231_vm3 = vcmp.ge.f32.partialorder %v6757_v61, 0.0  ;;  %vm4054_vm4 = vcmp.ge.f32.partialorder %v6760_v31, 0.0  ;;  %vm4230_vm5 = vcmp.ge.f32.partialorder %v6763_v2, 0.0 }
 0x7df   :  { %v6805_v25 = vpop.eup %5276  ;;  %v3995_v57 = vmul.f32 1.0614054, %v6803_v3  ;;  %5294 = vpow2.f32 %v4038_v14  ;;  %vm4057_vm6 = vcmp.ge.f32.partialorder %v6784_v60, 0.0  ;;  %vm4056_vm7 = vcmp.ge.f32.partialorder %v6789_v13, 0.0 }
 0x7e0   :  { %v4171_v49 = vmul.f32 1.0614054, %v6805_v25  ;;  %v6809_v35 = vpop.eup %5278  ;;  %5296 = vpow2.f32 %v4214_v52  ;;  %vm4232_vm8 = vcmp.ge.f32.partialorder %v6795_v27, 0.0  ;;  %vm4233_vm9 = vcmp.ge.f32.partialorder %v6799_v23, 0.0 }
 0x7e1   :  { %v3999_v21 = vadd.f32 -1.4531521, %v3995_v57  ;;  %v3994_v58 = vmul.f32 1.0614054, %v6809_v35  ;;  %v6813_v32 = vpop.eup %5280  ;;  %5298 = vpow2.f32 %v4044_v4 }
 0x7e2   :  { %v4175_v53 = vadd.f32 -1.4531521, %v4171_v49  ;;  %v4170_v43 = vmul.f32 1.0614054, %v6813_v32  ;;  %v6836_v49 = vmul.f32 0.5, %v6751_v48  ;;  %5300 = vpow2.f32 %v4042_v59 }
 0x7e3   :  { %v4003_v54 = vmul.f32 %v6803_v3, %v3999_v21  ;;  %v3998_v18 = vadd.f32 -1.4531521, %v3994_v58 }
 0x7e4   :  { %v4179_v16 = vmul.f32 %v6805_v25, %v4175_v53  ;;  %v4174_v17 = vadd.f32 -1.4531521, %v4170_v43 }
 0x7e5   :  { %v4007_v34 = vadd.f32 1.4214138, %v4003_v54  ;;  %v4002_v29 = vmul.f32 %v6809_v35, %v3998_v18  ;;  %v4218_v54 = vmul.f32 1.442695, %v4212_v38  ;;  %v4220_v18 = vmul.f32 1.442695, %v4213_v63 }
 0x7e6   :  { %v4183_v28 = vadd.f32 1.4214138, %v4179_v16  ;;  %v4178_v47 = vmul.f32 %v6813_v32, %v4174_v17  ;;  %v6832_v12 = vpop.eup %5282 }
 0x7e7   :  { %v4011_v36 = vmul.f32 %v6803_v3, %v4007_v34  ;;  %v4006_v10 = vadd.f32 1.4214138, %v4002_v29  ;;  %v6838_v20 = vpop.eup %5284  ;;  %v3997_v51 = vmul.f32 1.0614054, %v6832_v12  ;;  %5302 = vpow2.f32 %v4218_v54 }
 0x7e8   :  { %v4187_v24 = vmul.f32 %v6805_v25, %v4183_v28  ;;  %v4182_v22 = vadd.f32 1.4214138, %v4178_v47  ;;  %v3996_v19 = vmul.f32 1.0614054, %v6838_v20  ;;  %v5287_v58 = vpop.eup %5286  ;;  %5304 = vpow2.f32 %v4220_v18 }
 0x7e9   :  { %v4015_v46 = vadd.f32 -0.28449672, %v4011_v36  ;;  %v4010_v57 = vmul.f32 %v6809_v35, %v4006_v10  ;;  %v4001_v16 = vadd.f32 -1.4531521, %v3997_v51  ;;  %v6847_v52 = vpop.eup %5288 }
 0x7ea   :  { %v4191_v50 = vadd.f32 -0.28449672, %v4187_v24  ;;  %v4186_v53 = vmul.f32 %v6813_v32, %v4182_v22  ;;  %v4000_v34 = vadd.f32 -1.4531521, %v3996_v19  ;;  %v5291_v43 = vpop.eup %5290  ;;  %v4172_v17 = vmul.f32 1.0614054, %v6847_v52 }
 0x7eb   :  { %v4019_v55 = vmul.f32 %v6803_v3, %v4015_v46  ;;  %v4014_v21 = vadd.f32 -0.28449672, %v4010_v57  ;;  %v6855_v24 = vpop.eup %5292 }
 0x7ec   :  { %v4195_v44 = vmul.f32 %v6805_v25, %v4191_v50  ;;  %v4190_v14 = vadd.f32 -0.28449672, %v4186_v53  ;;  %v4004_v29 = vmul.f32 %v6838_v20, %v4000_v34  ;;  %v5295_v10 = vpop.eup %5294  ;;  %v4176_v4 = vadd.f32 -1.4531521, %v4172_v17 }
 0x7ed   :  { %v4023_v56 = vadd.f32 0.2548296, %v4019_v55  ;;  %v4018_v6 = vmul.f32 %v6809_v35, %v4014_v21 }
 0x7ee   :  { %v4199_v62 = vadd.f32 0.2548296, %v4195_v44  ;;  %v4194_v7 = vmul.f32 %v6813_v32, %v4190_v14  ;;  %v4008_v50 = vadd.f32 1.4214138, %v4004_v29  ;;  %v5297_v44 = vpop.eup %5296 }
 0x7ef   :  { %v4027_v48 = vmul.f32 %v6803_v3, %v4023_v56  ;;  %v4022_v0 = vadd.f32 0.2548296, %v4018_v6  ;;  %v4005_v3 = vmul.f32 %v6832_v12, %v4001_v16  ;;  %v4173_v56 = vmul.f32 1.0614054, %v6855_v24 }
 0x7f0   :  { %v4203_v30 = vmul.f32 %v6805_v25, %v4199_v62  ;;  %v4198_v15 = vadd.f32 0.2548296, %v4194_v7  ;;  %v4012_v63 = vmul.f32 %v6838_v20, %v4008_v50 }
 0x7f1   :  { %v4047_v28 = vmul.f32 %v5287_v58, %v4027_v48  ;;  %v4026_v26 = vmul.f32 %v6809_v35, %v4022_v0  ;;  %v4009_v46 = vadd.f32 1.4214138, %v4005_v3  ;;  %v4180_v35 = vmul.f32 %v6847_v52, %v4176_v4  ;;  %v7153_v3 = vld [vmem:[#allocation4_spill] sm:$0xff] }
 0x7f2   :  { %v4223_v36 = vmul.f32 %v5291_v43, %v4203_v30  ;;  %v4202_v57 = vmul.f32 %v6813_v32, %v4198_v15  ;;  %v4016_v54 = vadd.f32 -0.28449672, %v4012_v63  ;;  %v4177_v18 = vadd.f32 -1.4531521, %v4173_v56  ;;  %v5299_v43 = vpop.eup %5298 }
 0x7f3   :  { %v4051_v25 = vsub.f32 1.0, %v4047_v28  ;;  %v4046_v55 = vmul.f32 %v5295_v10, %v4026_v26  ;;  %v4013_v22 = vmul.f32 %v6832_v12, %v4009_v46  ;;  %v4184_v58 = vadd.f32 1.4214138, %v4180_v35  ;;  %v5301_v26 = vpop.eup %5300 }
 0x7f4   :  { %v4227_v47 = vsub.f32 1.0, %v4223_v36  ;;  %v4222_v51 = vmul.f32 %v5297_v44, %v4202_v57  ;;  %v4020_v34 = vmul.f32 %v6838_v20, %v4016_v54  ;;  %v3968_v54 = vmul.f32 0.5, %v6781_v37 }
 0x7f5   :  { %v4059_v38 = vsub.f32 0.0, %v4051_v25  ;;  %v4050_v53 = vsub.f32 1.0, %v4046_v55  ;;  %v4017_v62 = vadd.f32 -0.28449672, %v4013_v22  ;;  %v4188_v41 = vmul.f32 %v6847_v52, %v4184_v58 }
 0x7f6   :  { %v4235_v59 = vsub.f32 0.0, %v4227_v47  ;;  %v4226_v14 = vsub.f32 1.0, %v4222_v51  ;;  %v4024_v17 = vadd.f32 0.2548296, %v4020_v34 }
 0x7f7   :  { %v4063_v21 = vsel %vm4055_vm2, %v4051_v25, %v4059_v38  ;;  %v4058_v6 = vsub.f32 0.0, %v4050_v53  ;;  %v4021_v16 = vmul.f32 %v6832_v12, %v4017_v62  ;;  %v4192_v25 = vadd.f32 -0.28449672, %v4188_v41  ;;  %v7156_v41 = vld [vmem:[#allocation3_spill] sm:$0xff] }
 0x7f8   :  { %v4067_v19 = vadd.f32 1.0, %v4063_v21  ;;  %v4239_v32 = vsel %vm4231_vm3, %v4227_v47, %v4235_v59  ;;  %v4234_v0 = vsub.f32 0.0, %v4226_v14  ;;  %v4028_v47 = vmul.f32 %v6838_v20, %v4024_v17 }
 0x7f9   :  { %v4243_v48 = vadd.f32 1.0, %v4239_v32  ;;  %v4062_v61 = vsel %vm4054_vm4, %v4050_v53, %v4058_v6  ;;  %v4025_v7 = vadd.f32 0.2548296, %v4021_v16  ;;  %v4196_v50 = vmul.f32 %v6847_v52, %v4192_v25 }
 0x7fa   :  { %v4071_v30 = vmul.f32 %v4067_v19, %v6820_v39  ;;  %v4066_v29 = vadd.f32 1.0, %v4062_v61  ;;  %v4238_v15 = vsel %vm4230_vm5, %v4226_v14, %v4234_v0  ;;  %v4048_v20 = vmul.f32 %v5301_v26, %v4028_v47 }
 0x7fb   :  { %v4247_v28 = vmul.f32 %v4243_v48, %v6825_v42  ;;  %v4029_v46 = vmul.f32 %v6832_v12, %v4025_v7  ;;  %v4181_v42 = vmul.f32 %v6855_v24, %v4177_v18  ;;  %v4242_v10 = vadd.f32 1.0, %v4238_v15  ;;  %v7154_v12 = vld [vmem:[#allocation5_spill] sm:$0xff] }
 0x7fc   :  { %v4075_v36 = vadd.f32 %v4071_v30, %v7153_v3  ;;  %v4070_v31 = vmul.f32 %v4066_v29, %v6829_v11  ;;  %v4200_v55 = vadd.f32 0.2548296, %v4196_v50  ;;  %v4052_v63 = vsub.f32 1.0, %v4048_v20  ;;  %v7155_v30 = vld [vmem:[#allocation2_spill] sm:$0xff] }
 0x7fd   :  { %v4251_v39 = vadd.f32 %v4247_v28, %v6059_v5  ;;  %v5303_v5 = vpop.eup %5302  ;;  %v4049_v4 = vmul.f32 %v5299_v43, %v4029_v46  ;;  %v4185_v2 = vadd.f32 1.4214138, %v4181_v42  ;;  %v4246_v38 = vmul.f32 %v4242_v10, %v6836_v49 }
 0x7fe   :  { %4079 = vst.msk [vmem:[%s6946_s11 + $0x8] sm:$0xff] %vm3816_vm1, %v4075_v36  ;;  %v4074_v11 = vadd.f32 %v4070_v31, %v7154_v12  ;;  %v5305_v57 = vpop.eup %5304  ;;  %v4204_v35 = vmul.f32 %v6847_v52, %v4200_v55  ;;  %v4060_v49 = vsub.f32 0.0, %v4052_v63  ;;  %v3969_v62 = vmul.f32 0.5, %v6776_v1 }
 0x7ff   :  { %4460 = vst.msk [vmem:[%s6946_s11 + $0x28] sm:$0xff] %vm3816_vm1, %v4251_v39  ;;  %v4053_v22 = vsub.f32 1.0, %v4049_v4  ;;  %v4189_v44 = vmul.f32 %v6855_v24, %v4185_v2  ;;  %v4250_v59 = vadd.f32 %v4246_v38, %v6067_v33  ;;  %v4144_v1 = vmul.f32 0.5, %v6786_v8 }
 0x800   :  { %4078 = vst.msk [vmem:[%s6946_s11] sm:$0xff] %vm3816_vm1, %v4074_v11  ;;  %v4224_v53 = vmul.f32 %v5303_v5, %v4204_v35  ;;  %v4064_v52 = vsel %vm4056_vm7, %v4052_v63, %v4060_v49  ;;  %v4145_v0 = vmul.f32 0.5, %v6791_v40 }
 0x801   :  { %v4061_v56 = vsub.f32 0.0, %v4053_v22  ;;  %v4193_v21 = vadd.f32 -0.28449672, %v4189_v44  ;;  %4459 = vst.msk [vmem:[%s6946_s11 + $0x20] sm:$0xff] %vm3816_vm1, %v4250_v59  ;;  %v4068_v60 = vadd.f32 1.0, %v4064_v52 }
 0x802   :  { %v4228_v32 = vsub.f32 1.0, %v4224_v53 }
 0x803   :  { %v4065_v33 = vsel %vm4057_vm6, %v4053_v22, %v4061_v56  ;;  %v4197_v51 = vmul.f32 %v6855_v24, %v4193_v21  ;;  %v4072_v14 = vmul.f32 %v4068_v60, %v3968_v54 }
 0x804   :  { %v4069_v19 = vadd.f32 1.0, %v4065_v33  ;;  %v4236_v6 = vsub.f32 0.0, %v4228_v32 }
 0x805   :  { %v4201_v58 = vadd.f32 0.2548296, %v4197_v51  ;;  %v4076_v18 = vadd.f32 %v4072_v14, %v7156_v41 }
 0x806   :  { %v4073_v48 = vmul.f32 %v4069_v19, %v3969_v62  ;;  %v4240_v34 = vsel %vm4232_vm8, %v4228_v32, %v4236_v6 }
 0x807   :  { %v4205_v16 = vmul.f32 %v6855_v24, %v4201_v58  ;;  %v4244_v43 = vadd.f32 1.0, %v4240_v34  ;;  %4080 = vst.msk [vmem:[%s6946_s11 + $0x10] sm:$0xff] %vm3816_vm1, %v4076_v18 }
 0x808   :  { %v4077_v13 = vadd.f32 %v4073_v48, %v7155_v30 }
 0x809   :  { %v4225_v28 = vmul.f32 %v5305_v57, %v4205_v16  ;;  %v4248_v37 = vmul.f32 %v4244_v43, %v4144_v1 }
 0x80a   :  { %4081 = vst.msk [vmem:[%s6946_s11 + $0x18] sm:$0xff] %vm3816_vm1, %v4077_v13 }
 0x80b   :  { %v4229_v27 = vsub.f32 1.0, %v4225_v28  ;;  %v4252_v24 = vadd.f32 %v4248_v37, %v6037_v45 }
 0x80d   :  { %v4237_v61 = vsub.f32 0.0, %v4229_v27  ;;  %4461 = vst.msk [vmem:[%s6946_s11 + $0x30] sm:$0xff] %vm3816_vm1, %v4252_v24 }
 0x80f   :  { %v4241_v8 = vsel %vm4233_vm9, %v4229_v27, %v4237_v61 }
 0x810   :  { %v4245_v7 = vadd.f32 1.0, %v4241_v8 }
 0x812   :  { %v4249_v3 = vmul.f32 %v4245_v7, %v4145_v0 }
 0x814   :  { %v4253_v36 = vadd.f32 %v4249_v3, %v6035_v9 }
 0x816   :  { %4462 = vst.msk [vmem:[%s6946_s11 + $0x38] sm:$0xff] %vm3816_vm1, %v4253_v36 }

</bundles_post_ra>
